<compile_context>
chip_gen: v6e
topology: v6e:2x2x1
jax: 0.10.0
libtpu: 0.0.40
codegen_flags: <defaults>
</compile_context>

<pallas_src>
import functools

import numpy as np
import jax
import jax.numpy as jnp
from jax import lax
from jax.experimental import pallas as pl
from jax.experimental.pallas import tpu as pltpu

LN_EPS = 1e-5
# raw_attn is returned in f32 to match the PyTorch module; switch to jnp.bfloat16 if the consumer
# accepts it -- that halves pass-2's largest HBM write (the [N, nhead, W, W] raw-logit store).
RAW_ATTN_DTYPE = jnp.float32


# --------------------------------------------------------------------------------------------
# small helpers
# --------------------------------------------------------------------------------------------
def _row_tile(n_rows):
    # projections are HBM-bound: big tiles (~85% of roofline at >=512 rows), full slab if small
    return n_rows if n_rows <= 2048 else 1024


def _attn_vmem_limit():
    """Scoped-VMEM cap with pipeline headroom (generation aware when the query is available)."""
    try:
        cap = pltpu.get_tpu_info().vmem_capacity_bytes
    except Exception:
        cap = 64 * 1024 * 1024
    return int(min(cap * 7 // 8, 100 * 1024 * 1024))


# ---------------- Kernel 1: fused LayerNorm + linear projection (row-tiled) ----------------
def _ln_proj_kernel(x_ref, g_ref, b_ref, w_ref, pb_ref, o_ref):
    x = x_ref[...]                                                # [T, C] f32
    mean = jnp.mean(x, axis=-1, keepdims=True)
    var = jnp.mean((x - mean) ** 2, axis=-1, keepdims=True)       # biased var (PyTorch LN)
    y = ((x - mean) * lax.rsqrt(var + LN_EPS) * g_ref[...] + b_ref[...]).astype(jnp.bfloat16)
    o_ref[...] = (jnp.dot(y, w_ref[...], preferred_element_type=jnp.float32)
                  + pb_ref[...]).astype(o_ref.dtype)


def ln_proj(x2d, gamma, beta, w_t, bias):
    R, C = x2d.shape
    Cout = w_t.shape[1]
    T = _row_tile(R)
    return pl.pallas_call(
        _ln_proj_kernel,
        grid=(pl.cdiv(R, T),),
        out_shape=jax.ShapeDtypeStruct((R, Cout), jnp.bfloat16),
        in_specs=[pl.BlockSpec((T, C), lambda i: (i, 0)),
                  pl.BlockSpec((1, C), lambda i: (0, 0)),
                  pl.BlockSpec((1, C), lambda i: (0, 0)),
                  pl.BlockSpec((C, Cout), lambda i: (0, 0)),       # resident weight
                  pl.BlockSpec((1, Cout), lambda i: (0, 0))],
        out_specs=pl.BlockSpec((T, Cout), lambda i: (i, 0)),
        compiler_params=pltpu.CompilerParams(dimension_semantics=("parallel",)),
    )(x2d, gamma, beta, w_t, bias)


# -------- Kernel 2: fused LayerNorm + full in_proj, split into q / kv at store time --------
def _ln_qkv_split_kernel(x_ref, g_ref, b_ref, w_ref, pb_ref, q_ref, kv_ref):
    x = x_ref[...]
    mean = jnp.mean(x, axis=-1, keepdims=True)
    var = jnp.mean((x - mean) ** 2, axis=-1, keepdims=True)
    y = ((x - mean) * lax.rsqrt(var + LN_EPS) * g_ref[...] + b_ref[...]).astype(jnp.bfloat16)
    qkv = jnp.dot(y, w_ref[...], preferred_element_type=jnp.float32) + pb_ref[...]
    C = q_ref.shape[-1]
    q_ref[...] = qkv[:, :C].astype(q_ref.dtype)
    kv_ref[...] = qkv[:, C:].astype(kv_ref.dtype)


def ln_qkv_split(x2d, gamma, beta, w_t, bias):
    R, C = x2d.shape
    Cout = w_t.shape[1]            # 3C
    T = _row_tile(R)
    return pl.pallas_call(
        _ln_qkv_split_kernel,
        grid=(pl.cdiv(R, T),),
        out_shape=(jax.ShapeDtypeStruct((R, C), jnp.bfloat16),
                   jax.ShapeDtypeStruct((R, Cout - C), jnp.bfloat16)),
        in_specs=[pl.BlockSpec((T, C), lambda i: (i, 0)),
                  pl.BlockSpec((1, C), lambda i: (0, 0)),
                  pl.BlockSpec((1, C), lambda i: (0, 0)),
                  pl.BlockSpec((C, Cout), lambda i: (0, 0)),       # resident full in_proj weight
                  pl.BlockSpec((1, Cout), lambda i: (0, 0))],
        out_specs=(pl.BlockSpec((T, C), lambda i: (i, 0)),
                   pl.BlockSpec((T, Cout - C), lambda i: (i, 0))),
        compiler_params=pltpu.CompilerParams(dimension_semantics=("parallel",)),
    )(x2d, gamma, beta, w_t, bias)


# ------- Kernel 3: plain linear for the relative-position table (projected BEFORE gather) -------
def _linear_kernel(x_ref, w_ref, b_ref, o_ref):
    y = x_ref[...].astype(jnp.bfloat16)
    o_ref[...] = (jnp.dot(y, w_ref[...], preferred_element_type=jnp.float32)
                  + b_ref[...]).astype(o_ref.dtype)


def linear_bf16(x2d, w_t, bias):
    R, C = x2d.shape
    Cout = w_t.shape[1]
    T = _row_tile(R)
    return pl.pallas_call(
        _linear_kernel,
        grid=(pl.cdiv(R, T),),
        out_shape=jax.ShapeDtypeStruct((R, Cout), jnp.bfloat16),
        in_specs=[pl.BlockSpec((T, C), lambda i: (i, 0)),
                  pl.BlockSpec((C, Cout), lambda i: (0, 0)),
                  pl.BlockSpec((1, Cout), lambda i: (0, 0))],
        out_specs=pl.BlockSpec((T, Cout), lambda i: (i, 0)),
        compiler_params=pltpu.CompilerParams(dimension_semantics=("parallel",)),
    )(x2d, w_t, bias)


# ------------------- strided-roll feature probe for the Toeplitz relative shift -------------------
def probe_relative_shift_roll(W):
    """Return (shift, stride) such that
         pltpu.roll(x, shift, 1, stride=stride, stride_axis=0)[w, j] == x[w, (j - (W + w)) % 2W]
    (the relative shift used by the MXU fast path), or None if unsupported -> XLA bias fallback.
    Runs eagerly on the device at the real W, and also exercises the [:, :W].T epilogue."""
    n = 2 * W
    x_np = np.arange(W * n, dtype=np.float32).reshape(W, n)       # exact in f32 for W <= 2048
    want = np.stack([np.roll(x_np[w], W + w) for w in range(W)])[:, :W].T

    def make(shift, stride):
        def k(x_ref, o_ref):
            r = pltpu.roll(x_ref[...], shift, 1, stride=stride, stride_axis=0)
            o_ref[...] = r[:, :W].T
        return pl.pallas_call(k, out_shape=jax.ShapeDtypeStruct((W, W), jnp.float32))

    for shift, stride in ((W, 1), (W, -1)):
        try:
            got = np.asarray(make(shift, stride)(jnp.asarray(x_np)))
        except Exception:
            continue
        if np.array_equal(got, want):
            return (shift, stride)
    return None


def choose_pos_impl(W, pos_indexes):
    """Pick the positional-score implementation: roll params for the in-kernel MXU+shift fast
    path (requires the canonical STTR pos_indexes[w, v] = v - w + W - 1), else None."""
    idx = np.asarray(pos_indexes).reshape(-1)
    canon = ((W - 1 - np.arange(W))[:, None] + np.arange(W)[None, :]).reshape(-1)
    if idx.shape != canon.shape or not np.array_equal(idx, canon):
        return None
    return probe_relative_shift_roll(W)


# ------ Kernel 4: relative cross-attention core + out_proj + residual (+ fused norm2/kv) ------
def _rel_cross_attn_kernel(*refs, nhead, scaling, bn, C, emit_raw, fused_kv, roll_params):
    use_roll = roll_params is not None
    it = iter(refs)
    q_ref, kv_ref = next(it), next(it)
    if use_roll:
        krp_ref, qrp_ref = next(it), next(it)
    else:
        bias_ref = next(it)
    wout_ref, bout_ref, res_ref = next(it), next(it), next(it)
    if fused_kv:
        g2_ref, b2_ref, wkv_ref, bkv_ref = next(it), next(it), next(it), next(it)
    o_ref = next(it)
    raw_ref = next(it) if emit_raw else None
    kvo_ref = next(it) if fused_kv else None
    ctx_ref = next(it)                                            # VMEM scratch [W, C] bf16

    W = q_ref.shape[0]
    h = C // nhead
    dn = (((1,), (1,)), ((), ()))                                 # A @ B.T (contract the h axis)
    wout = wout_ref[...]
    bout = bout_ref[...]
    if use_roll:
        shift, stride = roll_params
        krp = krp_ref[...]                                        # [2W, C]  k_r table, zero row 0
        qrp = qrp_ref[...]                                        # [2W, C]  q_r table, rev+padded

    for b in range(bn):
        q = q_ref[:, b * C:(b + 1) * C]                           # [W, C] bf16
        k = kv_ref[:, 2 * b * C:2 * b * C + C]
        v = kv_ref[:, 2 * b * C + C:2 * (b + 1) * C]
        for e in range(nhead):
            lo, hi = e * h, (e + 1) * h
            qe, ke, ve = q[:, lo:hi], k[:, lo:hi], v[:, lo:hi]
            # content-content and both positional terms on the MXU (f32 accumulation)
            s = lax.dot_general(qe, ke, dn, preferred_element_type=jnp.float32)        # [W, W]
            if use_roll:
                s2f = lax.dot_general(qe, krp[:, lo:hi], dn,
                                      preferred_element_type=jnp.float32)              # [W, 2W]
                s3f = lax.dot_general(ke, qrp[:, lo:hi], dn,
                                      preferred_element_type=jnp.float32)              # [W, 2W]
                # Toeplitz "relative shift": per-row strided roll on the XLU, keep first W cols
                s2 = pltpu.roll(s2f, shift, 1, stride=stride, stride_axis=0)[:, :W]
                s3 = pltpu.roll(s3f, shift, 1, stride=stride, stride_axis=0)[:, :W].T
                s = s + s2 + s3
            else:
                col = (b * nhead + e) * W
                s = s + bias_ref[:, col:col + W]
            logits = s * scaling
            if raw_ref is not None:
                raw_ref[b, e] = logits.astype(raw_ref.dtype)
            m = jnp.max(logits, axis=-1, keepdims=True)
            p = jnp.exp(logits - m)
            p = p * pl.reciprocal(jnp.sum(p, axis=-1, keepdims=True), approx=True)
            ctx_ref[:, lo:hi] = jnp.dot(p.astype(jnp.bfloat16), ve,
                                        preferred_element_type=jnp.float32).astype(jnp.bfloat16)
        # fused out-projection + residual (residual is the un-normalized input feature)
        new_feat = (jnp.dot(ctx_ref[...], wout, preferred_element_type=jnp.float32)
                    + bout + res_ref[:, b * C:(b + 1) * C])                              # [W, C]
        o_ref[:, b * C:(b + 1) * C] = new_feat
        if fused_kv:
            # fused norm2 + kv projection of the updated feature (saves an HBM round trip)
            mean = jnp.mean(new_feat, axis=-1, keepdims=True)
            var = jnp.mean((new_feat - mean) ** 2, axis=-1, keepdims=True)
            y = ((new_feat - mean) * lax.rsqrt(var + LN_EPS) * g2_ref[...] + b2_ref[...]
                 ).astype(jnp.bfloat16)
            kvo_ref[:, 2 * b * C:2 * (b + 1) * C] = (
                jnp.dot(y, wkv_ref[...], preferred_element_type=jnp.float32)
                + bkv_ref[...]).astype(kvo_ref.dtype)


def rel_cross_attention(q3, kv3, pos_inputs, w_out_t, b_out, residual, *, nhead, roll_params,
                        emit_raw=False, kv_fuse=None, bn=1):
    """pos_inputs = (krp, qrp) resident [2W, C] tables when roll_params is given, else a
    precomputed positional bias [W, N*nhead*W] f32.  kv_fuse = (g2, b2, w_kv_t, b_kv) or None."""
    W, N, C = q3.shape
    scaling = float(C // nhead) ** -0.5
    assert N % bn == 0
    q_flat = q3.reshape(W, N * C)
    kv_flat = kv3.reshape(W, N * 2 * C)
    res_flat = residual.reshape(W, N * C)

    in_specs = [pl.BlockSpec((W, bn * C), lambda n: (0, n)),             # q  (batch column block)
                pl.BlockSpec((W, bn * 2 * C), lambda n: (0, n))]         # k|v
    args = [q_flat, kv_flat]
    if roll_params is not None:
        krp, qrp = pos_inputs
        in_specs += [pl.BlockSpec((2 * W, C), lambda n: (0, 0)),         # small resident tables
                     pl.BlockSpec((2 * W, C), lambda n: (0, 0))]
        args += [krp, qrp]
    else:
        in_specs += [pl.BlockSpec((W, bn * nhead * W), lambda n: (0, n))]
        args += [pos_inputs]
    in_specs += [pl.BlockSpec((C, C), lambda n: (0, 0)),                 # out_proj weight (resident)
                 pl.BlockSpec((1, C), lambda n: (0, 0)),
                 pl.BlockSpec((W, bn * C), lambda n: (0, n))]            # residual
    args += [w_out_t, b_out, res_flat]
    if kv_fuse is not None:
        g2, b2, w_kv_t, b_kv = kv_fuse
        in_specs += [pl.BlockSpec((1, C), lambda n: (0, 0)),
                     pl.BlockSpec((1, C), lambda n: (0, 0)),
                     pl.BlockSpec((C, 2 * C), lambda n: (0, 0)),
                     pl.BlockSpec((1, 2 * C), lambda n: (0, 0))]
        args += [g2, b2, w_kv_t, b_kv]

    out_shape = [jax.ShapeDtypeStruct((W, N * C), jnp.float32)]
    out_specs = [pl.BlockSpec((W, bn * C), lambda n: (0, n))]
    if emit_raw:
        out_shape.append(jax.ShapeDtypeStruct((N, nhead, W, W), RAW_ATTN_DTYPE))
        out_specs.append(pl.BlockSpec((bn, nhead, W, W), lambda n: (n, 0, 0, 0)))
    if kv_fuse is not None:
        out_shape.append(jax.ShapeDtypeStruct((W, N * 2 * C), jnp.bfloat16))
        out_specs.append(pl.BlockSpec((W, bn * 2 * C), lambda n: (0, n)))

    kernel = functools.partial(_rel_cross_attn_kernel, nhead=nhead, scaling=scaling, bn=bn,
                               C=C, emit_raw=emit_raw, fused_kv=kv_fuse is not None,
                               roll_params=roll_params)
    res = pl.pallas_call(
        kernel,
        grid=(N // bn,),
        out_shape=tuple(out_shape),
        in_specs=in_specs,
        out_specs=tuple(out_specs),
        scratch_shapes=[pltpu.VMEM((W, C), jnp.bfloat16)],
        compiler_params=pltpu.CompilerParams(
            dimension_semantics=("parallel",),
            vmem_limit_bytes=_attn_vmem_limit()),
    )(*args)
    if not isinstance(res, (tuple, list)):
        res = (res,)
    out = res[0].reshape(W, N, C)
    raw = res[1] if emit_raw else None
    kv_new = res[-1].reshape(W, N, 2 * C) if kv_fuse is not None else None
    return out, raw, kv_new


# ---------------- Full layer: norm1 -> attn (right<-left) -> norm2 -> attn (left<-right) ----------------
def transformer_cross_attn_layer(feat_left, feat_right, pos, pos_indexes, params, nhead,
                                 roll_params=None, batch_block=4):
    W, N, C = feat_left.shape
    if C % 128 != 0:
        raise ValueError("C must be a multiple of 128 for lane-dense attention blocking")

    # batch block: amortize per-step overhead / widen DMA rows, but keep >= 2 grid steps
    # when possible so the v7x megacore can shard the "parallel" axis.
    bn = max(d for d in range(1, min(batch_block, N) + 1) if N % d == 0)
    while N // bn < 2 and bn > 1:
        bn = max(d for d in range(1, bn) if N % d == 0)

    in_w = params["in_proj_weight"]      # [3C, C]
    in_b = params["in_proj_bias"]        # [3C]
    out_w = params["out_proj_weight"]    # [C, C]
    out_b = params["out_proj_bias"]      # [C]

    w_in_t = in_w.T.astype(jnp.bfloat16)         # [C, 3C]
    w_q_t = w_in_t[:, :C]
    w_kv_t = w_in_t[:, C:]
    w_pos_t = w_in_t[:, :2 * C]
    w_out_t = out_w.T.astype(jnp.bfloat16)
    b_in = in_b.reshape(1, 3 * C)
    b_q = in_b[:C].reshape(1, C)
    b_kv = in_b[C:].reshape(1, 2 * C)
    b_pos = in_b[:2 * C].reshape(1, 2 * C)
    b_o = out_b.reshape(1, C)

    g1 = params["ln1_gamma"].reshape(1, C)
    be1 = params["ln1_beta"].reshape(1, C)
    g2 = params["ln2_gamma"].reshape(1, C)
    be2 = params["ln2_beta"].reshape(1, C)

    R = W * N
    # norm1(left) projected once with the resident full in_proj weight:
    #   q_left -> query of the left-update pass, kv_left -> key/value of the right-update pass
    q_left, kv_left = ln_qkv_split(feat_left.reshape(R, C), g1, be1, w_in_t, b_in)
    # norm1(right) -> query of the right-update pass
    q_right = ln_proj(feat_right.reshape(R, C), g1, be1, w_q_t, b_q)

    # relative-position table projected BEFORE any gather: [2W-1, 2C] = q_r | k_r
    pos_proj = linear_bf16(pos, w_pos_t, b_pos)
    qr_tab = pos_proj[:, :C]
    kr_tab = pos_proj[:, C:]

    kv_fuse = (g2, be2, w_kv_t, b_kv)

    if roll_params is not None:
        # MXU fast path: un-gathered tables, zero row prepended so the in-kernel relative-shift
        # roll amounts stay in [W, 2W-1].  Assumes the canonical pos_indexes[w,v] = v - w + W - 1
        # (verified by choose_pos_impl).  flip(pos)[d] == pos[2W-2-d] -> flipped tables for pass 1.
        zero = jnp.zeros((1, C), jnp.bfloat16)
        krp_fwd = jnp.concatenate([zero, kr_tab], axis=0)          # [2W, C]
        qrp_fwd = jnp.concatenate([zero, qr_tab[::-1]], axis=0)    # q_r reversed + padded
        krp_flip = jnp.concatenate([zero, kr_tab[::-1]], axis=0)
        qrp_flip = jnp.concatenate([zero, qr_tab], axis=0)
        pos1 = (krp_flip, qrp_flip)
        pos2 = (krp_fwd, qrp_fwd)
    else:
        # TODO(synk): fallback when the strided-roll lowering is unavailable - positional scores
        # are precomputed in XLA (still matmul-shaped) and streamed as a per-batch bias.
        idx = pos_indexes.reshape(-1).astype(jnp.int32)
        h = C // nhead

        def make_bias(q_wnc, k_wnc, qr, kr):
            q4 = q_wnc.reshape(W, N, nhead, h).astype(jnp.float32)
            k4 = k_wnc.reshape(W, N, nhead, h).astype(jnp.float32)
            krg = jnp.take(kr, idx, axis=0).reshape(W, W, nhead, h).astype(jnp.float32)
            qrg = jnp.take(qr, idx, axis=0).reshape(W, W, nhead, h).astype(jnp.float32)
            t = (jnp.einsum('wneh,wveh->wnev', q4, krg)
                 + jnp.einsum('vneh,wveh->wnev', k4, qrg))
            return t.reshape(W, N * nhead * W)

        qr_flip, kr_flip = qr_tab[::-1], kr_tab[::-1]
        pos1 = make_bias(q_right.reshape(W, N, C),
                         kv_left.reshape(W, N, 2 * C)[:, :, :C], qr_flip, kr_flip)
        pos2 = None   # needs kv_right, built after pass 1

    # pass 1: update right (query = norm1(right), key/value = norm1(left), flipped pos);
    # norm2 + the kv projection of the updated right feature are fused into the epilogue.
    feat_right_new, _, kv_right = rel_cross_attention(
        q_right.reshape(W, N, C), kv_left.reshape(W, N, 2 * C), pos1,
        w_out_t, b_o, feat_right, nhead=nhead, roll_params=roll_params,
        emit_raw=False, kv_fuse=kv_fuse, bn=bn)

    if roll_params is None:
        pos2 = make_bias(q_left.reshape(W, N, C), kv_right[:, :, :C], qr_tab, kr_tab)

    # pass 2: update left (query = norm1(left), key/value = norm2(updated right), unflipped pos)
    feat_left_new, raw_attn, _ = rel_cross_attention(
        q_left.reshape(W, N, C), kv_right, pos2,
        w_out_t, b_o, feat_left, nhead=nhead, roll_params=roll_params,
        emit_raw=True, kv_fuse=None, bn=bn)

    feat = jnp.concatenate([feat_left_new, feat_right_new], axis=1)     # cat along batch dim
    return feat, raw_attn


# ---------------- pure-JAX reference (mirrors the PyTorch module, all f32) ----------------
def reference(feat_left, feat_right, pos, pos_indexes, params, nhead):
    W, N, C = feat_left.shape
    h = C // nhead
    in_w, in_b = params["in_proj_weight"], params["in_proj_bias"]
    out_w, out_b = params["out_proj_weight"], params["out_proj_bias"]

    def layer_norm(x, g, b):
        m = x.mean(-1, keepdims=True)
        v = ((x - m) ** 2).mean(-1, keepdims=True)
        return (x - m) / jnp.sqrt(v + LN_EPS) * g + b

    def mha_relative(query, key, pos_enc):
        w = query.shape[0]
        bsz = query.shape[1]
        q = query @ in_w[:C].T + in_b[:C]
        kvp = key @ in_w[C:].T + in_b[C:]
        k, v = jnp.split(kvp, 2, axis=-1)
        pos_sel = pos_enc[pos_indexes.reshape(-1)].reshape(w, w, C)
        qk_r = pos_sel @ in_w[:2 * C].T + in_b[:2 * C]
        q_r, k_r = jnp.split(qk_r, 2, axis=-1)
        scaling = float(h) ** -0.5
        q = q * scaling
        q_r = q_r * scaling
        q4 = q.reshape(w, bsz, nhead, h)
        k4 = k.reshape(w, bsz, nhead, h)
        v4 = v.reshape(w, bsz, nhead, h)
        qr4 = q_r.reshape(w, w, nhead, h)
        kr4 = k_r.reshape(w, w, nhead, h)
        attn = (jnp.einsum('wnec,vnec->newv', q4, k4)
                + jnp.einsum('wnec,wvec->newv', q4, kr4)
                + jnp.einsum('vnec,wvec->newv', k4, qr4))
        raw = attn
        p = jax.nn.softmax(attn, axis=-1)
        vo = jnp.einsum('newv,vnec->wnec', p, v4).reshape(w, bsz, C)
        vo = vo @ out_w.T + out_b
        return vo, raw

    fl2 = layer_norm(feat_left, params["ln1_gamma"], params["ln1_beta"])
    fr2 = layer_norm(feat_right, params["ln1_gamma"], params["ln1_beta"])
    pos_flipped = jnp.flip(pos, axis=0)
    right_upd, _ = mha_relative(fr2, fl2, pos_flipped)
    feat_right_new = feat_right + right_upd
    fr3 = layer_norm(feat_right_new, params["ln2_gamma"], params["ln2_beta"])
    left_upd, raw = mha_relative(fl2, fr3, pos)
    feat_left_new = feat_left + left_upd
    feat = jnp.concatenate([feat_left_new, feat_right_new], axis=1)
    return feat, raw


if __name__ == "__main__":
    # W positions, N = H*N batch per image, C channels.  W=64 keeps the relative-shift operand
    # [W, 2W] exactly one lane-tile wide (2W = 128) while staying small.
    W, N, C, nhead = 64, 2, 128, 4

    key = jax.random.PRNGKey(0)
    ks = jax.random.split(key, 11)
    feat_left = jax.random.normal(ks[0], (W, N, C), jnp.float32)
    feat_right = jax.random.normal(ks[1], (W, N, C), jnp.float32)
    pos = jax.random.normal(ks[2], (2 * W - 1, C), jnp.float32)
    i = jnp.arange(W)
    pos_indexes = ((W - 1 - i)[:, None] + i[None, :]).reshape(-1).astype(jnp.int32)  # [W*W]

    params = dict(
        ln1_gamma=1.0 + 0.1 * jax.random.normal(ks[3], (C,), jnp.float32),
        ln1_beta=0.1 * jax.random.normal(ks[4], (C,), jnp.float32),
        ln2_gamma=1.0 + 0.1 * jax.random.normal(ks[5], (C,), jnp.float32),
        ln2_beta=0.1 * jax.random.normal(ks[6], (C,), jnp.float32),
        in_proj_weight=0.05 * jax.random.normal(ks[7], (3 * C, C), jnp.float32),
        in_proj_bias=0.02 * jax.random.normal(ks[8], (3 * C,), jnp.float32),
        out_proj_weight=0.05 * jax.random.normal(ks[9], (C, C), jnp.float32),
        out_proj_bias=0.02 * jax.random.normal(ks[10], (C,), jnp.float32),
    )

    # feature-detect the strided roll used for the in-kernel relative shift (eager, outside jit)
    roll_params = choose_pos_impl(W, pos_indexes)

    layer = jax.jit(functools.partial(transformer_cross_attn_layer, nhead=nhead,
                                      roll_params=roll_params))
    feat, raw_attn = layer(feat_left, feat_right, pos, pos_indexes, params)
    feat = jax.block_until_ready(feat)
    raw_attn = jax.block_until_ready(raw_attn)

    feat_ref, raw_ref = reference(feat_left, feat_right, pos, pos_indexes, params, nhead)
    np.testing.assert_allclose(np.asarray(feat), np.asarray(feat_ref), rtol=2e-2, atol=2e-2)
    np.testing.assert_allclose(np.asarray(raw_attn.astype(jnp.float32)), np.asarray(raw_ref),
                               rtol=2e-2, atol=2e-2)

    print("KERNEL_OK")
</pallas_src>

<mosaic_0001>
module attributes {stable_mosaic.version = 11 : i64} {
  func.func @k(%arg0: memref<64x128xf32, #tpu.memory_space<vmem>>, %arg1: memref<64x64xf32, #tpu.memory_space<vmem>>) attributes {dimension_semantics = [], scalar_prefetch = 0 : i64, scratch_operands = 0 : i64, tpu.core_type = #tpu.core_type<tc>} {
    %c0 = arith.constant 0 : index
    %c0_0 = arith.constant 0 : index
    %0 = vector.load %arg0[%c0, %c0_0] : memref<64x128xf32, #tpu.memory_space<vmem>>, vector<64x128xf32>
    %c64_i32 = arith.constant 64 : i32
    %1 = tpu.dynamic_rotate %0 by %c64_i32 dim 1 {stride = 1 : si32, stride_dimension = 0 : si32} : vector<64x128xf32>, i32 -> vector<64x128xf32>
    %2 = vector.extract_strided_slice %1 {offsets = [0, 0], sizes = [64, 64], strides = [1, 1]} : vector<64x128xf32> to vector<64x64xf32>
    %3 = tpu.transpose %2, [1, 0] : vector<64x64xf32> -> vector<64x64xf32>
    %c0_1 = arith.constant 0 : index
    %c0_2 = arith.constant 0 : index
    %4 = vector.load %arg1[%c0_1, %c0_2] : memref<64x64xf32, #tpu.memory_space<vmem>>, vector<64x64xf32>
    tpu.vector_store %arg1[%c0_1, %c0_2], %3 {strides = array<i32>} : memref<64x64xf32, #tpu.memory_space<vmem>>, vector<64x64xf32>,
    return
  }
}

module attributes {stable_mosaic.version = 11 : i64} {
  func.func @_linear_kernel(%arg0: i32, %arg1: memref<127x128xf32, #tpu.memory_space<vmem>>, %arg2: memref<128x256xbf16, #tpu.memory_space<vmem>>, %arg3: memref<1x256xf32, #tpu.memory_space<vmem>>, %arg4: memref<127x256xbf16, #tpu.memory_space<vmem>>) attributes {dimension_semantics = [#tpu.dimension_semantics<parallel>], iteration_bounds = array<i64: 1>, scalar_prefetch = 0 : i64, scratch_operands = 0 : i64, tpu.core_type = #tpu.core_type<tc>, window_params = [{transform_indices = @transform_0, window_bounds = array<i64: 127, 128>}, {pipeline_mode = #tpu.pipeline_mode<synchronous>, transform_indices = @transform_1, window_bounds = array<i64: 128, 256>}, {pipeline_mode = #tpu.pipeline_mode<synchronous>, transform_indices = @transform_2, window_bounds = array<i64: 1, 256>}, {transform_indices = @transform_3, window_bounds = array<i64: 127, 256>}]} {
    %c0 = arith.constant 0 : index
    %c0_0 = arith.constant 0 : index
    %0 = vector.load %arg1[%c0, %c0_0] : memref<127x128xf32, #tpu.memory_space<vmem>>, vector<127x128xf32>
    %1 = arith.truncf %0 : vector<127x128xf32> to vector<127x128xbf16>
    %c0_1 = arith.constant 0 : index
    %c0_2 = arith.constant 0 : index
    %2 = vector.load %arg2[%c0_1, %c0_2] : memref<128x256xbf16, #tpu.memory_space<vmem>>, vector<128x256xbf16>
    %cst = arith.constant dense<0.000000e+00> : vector<127x256xf32>
    %3 = tpu.matmul %1, %2, %cst {dimension_numbers = #tpu.dot_dimension_numbers<[1], [0], [0], [1], [0, 0, 1, 1], [], []>} : vector<127x128xbf16>, vector<128x256xbf16>, vector<127x256xf32> -> vector<127x256xf32>
    %c0_3 = arith.constant 0 : index
    %c0_4 = arith.constant 0 : index
    %4 = vector.load %arg3[%c0_3, %c0_4] : memref<1x256xf32, #tpu.memory_space<vmem>>, vector<1x256xf32>
    %5 = vector.broadcast %4 : vector<1x256xf32> to vector<127x256xf32>
    %6 = arith.addf %3, %5 : vector<127x256xf32>
    %7 = arith.truncf %6 : vector<127x256xf32> to vector<127x256xbf16>
    %c0_5 = arith.constant 0 : index
    %c0_6 = arith.constant 0 : index
    %8 = vector.load %arg4[%c0_5, %c0_6] : memref<127x256xbf16, #tpu.memory_space<vmem>>, vector<127x256xbf16>
    tpu.vector_store %arg4[%c0_5, %c0_6], %7 {strides = array<i32>} : memref<127x256xbf16, #tpu.memory_space<vmem>>, vector<127x256xbf16>,
    return
  }
  func.func @transform_0(%arg0: i32) -> (i32, i32) {
    %c0_i32 = arith.constant 0 : i32
    %c0_i32_0 = arith.constant 0 : i32
    return %arg0, %c0_i32 : i32, i32
  }
  func.func @transform_1(%arg0: i32) -> (i32, i32) {
    %c0_i32 = arith.constant 0 : i32
    %c0_i32_0 = arith.constant 0 : i32
    %c0_i32_1 = arith.constant 0 : i32
    return %c0_i32, %c0_i32_0 : i32, i32
  }
  func.func @transform_2(%arg0: i32) -> (i32, i32) {
    %c0_i32 = arith.constant 0 : i32
    %c0_i32_0 = arith.constant 0 : i32
    %c0_i32_1 = arith.constant 0 : i32
    return %c0_i32, %c0_i32_0 : i32, i32
  }
  func.func @transform_3(%arg0: i32) -> (i32, i32) {
    %c0_i32 = arith.constant 0 : i32
    %c0_i32_0 = arith.constant 0 : i32
    return %arg0, %c0_i32 : i32, i32
  }
}

module attributes {stable_mosaic.version = 11 : i64} {
  func.func @_ln_qkv_split_kernel(%arg0: i32, %arg1: memref<128x128xf32, #tpu.memory_space<vmem>>, %arg2: memref<1x128xf32, #tpu.memory_space<vmem>>, %arg3: memref<1x128xf32, #tpu.memory_space<vmem>>, %arg4: memref<128x384xbf16, #tpu.memory_space<vmem>>, %arg5: memref<1x384xf32, #tpu.memory_space<vmem>>, %arg6: memref<128x128xbf16, #tpu.memory_space<vmem>>, %arg7: memref<128x256xbf16, #tpu.memory_space<vmem>>) attributes {dimension_semantics = [#tpu.dimension_semantics<parallel>], iteration_bounds = array<i64: 1>, scalar_prefetch = 0 : i64, scratch_operands = 0 : i64, tpu.core_type = #tpu.core_type<tc>, window_params = [{transform_indices = @transform_0, window_bounds = array<i64: 128, 128>}, {pipeline_mode = #tpu.pipeline_mode<synchronous>, transform_indices = @transform_1, window_bounds = array<i64: 1, 128>}, {pipeline_mode = #tpu.pipeline_mode<synchronous>, transform_indices = @transform_2, window_bounds = array<i64: 1, 128>}, {pipeline_mode = #tpu.pipeline_mode<synchronous>, transform_indices = @transform_3, window_bounds = array<i64: 128, 384>}, {pipeline_mode = #tpu.pipeline_mode<synchronous>, transform_indices = @transform_4, window_bounds = array<i64: 1, 384>}, {transform_indices = @transform_5, window_bounds = array<i64: 128, 128>}, {transform_indices = @transform_6, window_bounds = array<i64: 128, 256>}]} {
    %c0 = arith.constant 0 : index
    %c0_0 = arith.constant 0 : index
    %0 = vector.load %arg1[%c0, %c0_0] : memref<128x128xf32, #tpu.memory_space<vmem>>, vector<128x128xf32>
    %cst = arith.constant dense<0.000000e+00> : vector<128xf32>
    %1 = vector.multi_reduction <add>, %0, %cst [1] : vector<128x128xf32> to vector<128xf32>
    %2 = vector.shape_cast %1 : vector<128xf32> to vector<128x1xf32>
    %cst_1 = arith.constant 1.280000e+02 : f32
    %3 = vector.broadcast %cst_1 : f32 to vector<128x1xf32>
    %4 = arith.divf %2, %3 : vector<128x1xf32>
    %5 = vector.broadcast %4 : vector<128x1xf32> to vector<128x128xf32>
    %6 = arith.subf %0, %5 : vector<128x128xf32>
    %7 = arith.mulf %6, %6 : vector<128x128xf32>
    %cst_2 = arith.constant dense<0.000000e+00> : vector<128xf32>
    %8 = vector.multi_reduction <add>, %7, %cst_2 [1] : vector<128x128xf32> to vector<128xf32>
    %9 = vector.shape_cast %8 : vector<128xf32> to vector<128x1xf32>
    %cst_3 = arith.constant 1.280000e+02 : f32
    %10 = vector.broadcast %cst_3 : f32 to vector<128x1xf32>
    %11 = arith.divf %9, %10 : vector<128x1xf32>
    %12 = vector.broadcast %4 : vector<128x1xf32> to vector<128x128xf32>
    %13 = arith.subf %0, %12 : vector<128x128xf32>
    %cst_4 = arith.constant 9.99999974E-6 : f32
    %14 = vector.broadcast %cst_4 : f32 to vector<128x1xf32>
    %15 = arith.addf %11, %14 : vector<128x1xf32>
    %16 = math.rsqrt %15 : vector<128x1xf32>
    %17 = vector.broadcast %16 : vector<128x1xf32> to vector<128x128xf32>
    %18 = arith.mulf %13, %17 : vector<128x128xf32>
    %c0_5 = arith.constant 0 : index
    %c0_6 = arith.constant 0 : index
    %19 = vector.load %arg2[%c0_5, %c0_6] : memref<1x128xf32, #tpu.memory_space<vmem>>, vector<1x128xf32>
    %20 = vector.broadcast %19 : vector<1x128xf32> to vector<128x128xf32>
    %21 = arith.mulf %18, %20 : vector<128x128xf32>
    %c0_7 = arith.constant 0 : index
    %c0_8 = arith.constant 0 : index
    %22 = vector.load %arg3[%c0_7, %c0_8] : memref<1x128xf32, #tpu.memory_space<vmem>>, vector<1x128xf32>
    %23 = vector.broadcast %22 : vector<1x128xf32> to vector<128x128xf32>
    %24 = arith.addf %21, %23 : vector<128x128xf32>
    %25 = arith.truncf %24 : vector<128x128xf32> to vector<128x128xbf16>
    %c0_9 = arith.constant 0 : index
    %c0_10 = arith.constant 0 : index
    %26 = vector.load %arg4[%c0_9, %c0_10] : memref<128x384xbf16, #tpu.memory_space<vmem>>, vector<128x384xbf16>
    %cst_11 = arith.constant dense<0.000000e+00> : vector<128x384xf32>
    %27 = tpu.matmul %25, %26, %cst_11 {dimension_numbers = #tpu.dot_dimension_numbers<[1], [0], [0], [1], [0, 0, 1, 1], [], []>} : vector<128x128xbf16>, vector<128x384xbf16>, vector<128x384xf32> -> vector<128x384xf32>
    %c0_12 = arith.constant 0 : index
    %c0_13 = arith.constant 0 : index
    %28 = vector.load %arg5[%c0_12, %c0_13] : memref<1x384xf32, #tpu.memory_space<vmem>>, vector<1x384xf32>
    %29 = vector.broadcast %28 : vector<1x384xf32> to vector<128x384xf32>
    %30 = arith.addf %27, %29 : vector<128x384xf32>
    %31 = vector.extract_strided_slice %30 {offsets = [0, 0], sizes = [128, 128], strides = [1, 1]} : vector<128x384xf32> to vector<128x128xf32>
    %32 = arith.truncf %31 : vector<128x128xf32> to vector<128x128xbf16>
    %c0_14 = arith.constant 0 : index
    %c0_15 = arith.constant 0 : index
    %33 = vector.load %arg6[%c0_14, %c0_15] : memref<128x128xbf16, #tpu.memory_space<vmem>>, vector<128x128xbf16>
    tpu.vector_store %arg6[%c0_14, %c0_15], %32 {strides = array<i32>} : memref<128x128xbf16, #tpu.memory_space<vmem>>, vector<128x128xbf16>,
    %34 = vector.extract_strided_slice %30 {offsets = [0, 128], sizes = [128, 256], strides = [1, 1]} : vector<128x384xf32> to vector<128x256xf32>
    %35 = arith.truncf %34 : vector<128x256xf32> to vector<128x256xbf16>
    %c0_16 = arith.constant 0 : index
    %c0_17 = arith.constant 0 : index
    %36 = vector.load %arg7[%c0_16, %c0_17] : memref<128x256xbf16, #tpu.memory_space<vmem>>, vector<128x256xbf16>
    tpu.vector_store %arg7[%c0_16, %c0_17], %35 {strides = array<i32>} : memref<128x256xbf16, #tpu.memory_space<vmem>>, vector<128x256xbf16>,
    return
  }
  func.func @transform_0(%arg0: i32) -> (i32, i32) {
    %c0_i32 = arith.constant 0 : i32
    %c0_i32_0 = arith.constant 0 : i32
    return %arg0, %c0_i32 : i32, i32
  }
  func.func @transform_1(%arg0: i32) -> (i32, i32) {
    %c0_i32 = arith.constant 0 : i32
    %c0_i32_0 = arith.constant 0 : i32
    %c0_i32_1 = arith.constant 0 : i32
    return %c0_i32, %c0_i32_0 : i32, i32
  }
  func.func @transform_2(%arg0: i32) -> (i32, i32) {
    %c0_i32 = arith.constant 0 : i32
    %c0_i32_0 = arith.constant 0 : i32
    %c0_i32_1 = arith.constant 0 : i32
    return %c0_i32, %c0_i32_0 : i32, i32
  }
  func.func @transform_3(%arg0: i32) -> (i32, i32) {
    %c0_i32 = arith.constant 0 : i32
    %c0_i32_0 = arith.constant 0 : i32
    %c0_i32_1 = arith.constant 0 : i32
    return %c0_i32, %c0_i32_0 : i32, i32
  }
  func.func @transform_4(%arg0: i32) -> (i32, i32) {
    %c0_i32 = arith.constant 0 : i32
    %c0_i32_0 = arith.constant 0 : i32
    %c0_i32_1 = arith.constant 0 : i32
    return %c0_i32, %c0_i32_0 : i32, i32
  }
  func.func @transform_5(%arg0: i32) -> (i32, i32) {
    %c0_i32 = arith.constant 0 : i32
    %c0_i32_0 = arith.constant 0 : i32
    return %arg0, %c0_i32 : i32, i32
  }
  func.func @transform_6(%arg0: i32) -> (i32, i32) {
    %c0_i32 = arith.constant 0 : i32
    %c0_i32_0 = arith.constant 0 : i32
    return %arg0, %c0_i32 : i32, i32
  }
}

module attributes {stable_mosaic.version = 11 : i64} {
  func.func @_ln_proj_kernel(%arg0: i32, %arg1: memref<128x128xf32, #tpu.memory_space<vmem>>, %arg2: memref<1x128xf32, #tpu.memory_space<vmem>>, %arg3: memref<1x128xf32, #tpu.memory_space<vmem>>, %arg4: memref<128x128xbf16, #tpu.memory_space<vmem>>, %arg5: memref<1x128xf32, #tpu.memory_space<vmem>>, %arg6: memref<128x128xbf16, #tpu.memory_space<vmem>>) attributes {dimension_semantics = [#tpu.dimension_semantics<parallel>], iteration_bounds = array<i64: 1>, scalar_prefetch = 0 : i64, scratch_operands = 0 : i64, tpu.core_type = #tpu.core_type<tc>, window_params = [{transform_indices = @transform_0, window_bounds = array<i64: 128, 128>}, {pipeline_mode = #tpu.pipeline_mode<synchronous>, transform_indices = @transform_1, window_bounds = array<i64: 1, 128>}, {pipeline_mode = #tpu.pipeline_mode<synchronous>, transform_indices = @transform_2, window_bounds = array<i64: 1, 128>}, {pipeline_mode = #tpu.pipeline_mode<synchronous>, transform_indices = @transform_3, window_bounds = array<i64: 128, 128>}, {pipeline_mode = #tpu.pipeline_mode<synchronous>, transform_indices = @transform_4, window_bounds = array<i64: 1, 128>}, {transform_indices = @transform_5, window_bounds = array<i64: 128, 128>}]} {
    %c0 = arith.constant 0 : index
    %c0_0 = arith.constant 0 : index
    %0 = vector.load %arg1[%c0, %c0_0] : memref<128x128xf32, #tpu.memory_space<vmem>>, vector<128x128xf32>
    %cst = arith.constant dense<0.000000e+00> : vector<128xf32>
    %1 = vector.multi_reduction <add>, %0, %cst [1] : vector<128x128xf32> to vector<128xf32>
    %2 = vector.shape_cast %1 : vector<128xf32> to vector<128x1xf32>
    %cst_1 = arith.constant 1.280000e+02 : f32
    %3 = vector.broadcast %cst_1 : f32 to vector<128x1xf32>
    %4 = arith.divf %2, %3 : vector<128x1xf32>
    %5 = vector.broadcast %4 : vector<128x1xf32> to vector<128x128xf32>
    %6 = arith.subf %0, %5 : vector<128x128xf32>
    %7 = arith.mulf %6, %6 : vector<128x128xf32>
    %cst_2 = arith.constant dense<0.000000e+00> : vector<128xf32>
    %8 = vector.multi_reduction <add>, %7, %cst_2 [1] : vector<128x128xf32> to vector<128xf32>
    %9 = vector.shape_cast %8 : vector<128xf32> to vector<128x1xf32>
    %cst_3 = arith.constant 1.280000e+02 : f32
    %10 = vector.broadcast %cst_3 : f32 to vector<128x1xf32>
    %11 = arith.divf %9, %10 : vector<128x1xf32>
    %12 = vector.broadcast %4 : vector<128x1xf32> to vector<128x128xf32>
    %13 = arith.subf %0, %12 : vector<128x128xf32>
    %cst_4 = arith.constant 9.99999974E-6 : f32
    %14 = vector.broadcast %cst_4 : f32 to vector<128x1xf32>
    %15 = arith.addf %11, %14 : vector<128x1xf32>
    %16 = math.rsqrt %15 : vector<128x1xf32>
    %17 = vector.broadcast %16 : vector<128x1xf32> to vector<128x128xf32>
    %18 = arith.mulf %13, %17 : vector<128x128xf32>
    %c0_5 = arith.constant 0 : index
    %c0_6 = arith.constant 0 : index
    %19 = vector.load %arg2[%c0_5, %c0_6] : memref<1x128xf32, #tpu.memory_space<vmem>>, vector<1x128xf32>
    %20 = vector.broadcast %19 : vector<1x128xf32> to vector<128x128xf32>
    %21 = arith.mulf %18, %20 : vector<128x128xf32>
    %c0_7 = arith.constant 0 : index
    %c0_8 = arith.constant 0 : index
    %22 = vector.load %arg3[%c0_7, %c0_8] : memref<1x128xf32, #tpu.memory_space<vmem>>, vector<1x128xf32>
    %23 = vector.broadcast %22 : vector<1x128xf32> to vector<128x128xf32>
    %24 = arith.addf %21, %23 : vector<128x128xf32>
    %25 = arith.truncf %24 : vector<128x128xf32> to vector<128x128xbf16>
    %c0_9 = arith.constant 0 : index
    %c0_10 = arith.constant 0 : index
    %26 = vector.load %arg4[%c0_9, %c0_10] : memref<128x128xbf16, #tpu.memory_space<vmem>>, vector<128x128xbf16>
    %cst_11 = arith.constant dense<0.000000e+00> : vector<128x128xf32>
    %27 = tpu.matmul %25, %26, %cst_11 {dimension_numbers = #tpu.dot_dimension_numbers<[1], [0], [0], [1], [0, 0, 1, 1], [], []>} : vector<128x128xbf16>, vector<128x128xbf16>, vector<128x128xf32> -> vector<128x128xf32>
    %c0_12 = arith.constant 0 : index
    %c0_13 = arith.constant 0 : index
    %28 = vector.load %arg5[%c0_12, %c0_13] : memref<1x128xf32, #tpu.memory_space<vmem>>, vector<1x128xf32>
    %29 = vector.broadcast %28 : vector<1x128xf32> to vector<128x128xf32>
    %30 = arith.addf %27, %29 : vector<128x128xf32>
    %31 = arith.truncf %30 : vector<128x128xf32> to vector<128x128xbf16>
    %c0_14 = arith.constant 0 : index
    %c0_15 = arith.constant 0 : index
    %32 = vector.load %arg6[%c0_14, %c0_15] : memref<128x128xbf16, #tpu.memory_space<vmem>>, vector<128x128xbf16>
    tpu.vector_store %arg6[%c0_14, %c0_15], %31 {strides = array<i32>} : memref<128x128xbf16, #tpu.memory_space<vmem>>, vector<128x128xbf16>,
    return
  }
  func.func @transform_0(%arg0: i32) -> (i32, i32) {
    %c0_i32 = arith.constant 0 : i32
    %c0_i32_0 = arith.constant 0 : i32
    return %arg0, %c0_i32 : i32, i32
  }
  func.func @transform_1(%arg0: i32) -> (i32, i32) {
    %c0_i32 = arith.constant 0 : i32
    %c0_i32_0 = arith.constant 0 : i32
    %c0_i32_1 = arith.constant 0 : i32
    return %c0_i32, %c0_i32_0 : i32, i32
  }
  func.func @transform_2(%arg0: i32) -> (i32, i32) {
    %c0_i32 = arith.constant 0 : i32
    %c0_i32_0 = arith.constant 0 : i32
    %c0_i32_1 = arith.constant 0 : i32
    return %c0_i32, %c0_i32_0 : i32, i32
  }
  func.func @transform_3(%arg0: i32) -> (i32, i32) {
    %c0_i32 = arith.constant 0 : i32
    %c0_i32_0 = arith.constant 0 : i32
    %c0_i32_1 = arith.constant 0 : i32
    return %c0_i32, %c0_i32_0 : i32, i32
  }
  func.func @transform_4(%arg0: i32) -> (i32, i32) {
    %c0_i32 = arith.constant 0 : i32
    %c0_i32_0 = arith.constant 0 : i32
    %c0_i32_1 = arith.constant 0 : i32
    return %c0_i32, %c0_i32_0 : i32, i32
  }
  func.func @transform_5(%arg0: i32) -> (i32, i32) {
    %c0_i32 = arith.constant 0 : i32
    %c0_i32_0 = arith.constant 0 : i32
    return %arg0, %c0_i32 : i32, i32
  }
}

module attributes {stable_mosaic.version = 11 : i64} {
  func.func @_rel_cross_attn_kernel(%arg0: i32, %arg1: memref<64x128xbf16, #tpu.memory_space<vmem>>, %arg2: memref<64x256xbf16, #tpu.memory_space<vmem>>, %arg3: memref<64x256xf32, #tpu.memory_space<vmem>>, %arg4: memref<128x128xbf16, #tpu.memory_space<vmem>>, %arg5: memref<1x128xf32, #tpu.memory_space<vmem>>, %arg6: memref<64x128xf32, #tpu.memory_space<vmem>>, %arg7: memref<1x128xf32, #tpu.memory_space<vmem>>, %arg8: memref<1x128xf32, #tpu.memory_space<vmem>>, %arg9: memref<128x256xbf16, #tpu.memory_space<vmem>>, %arg10: memref<1x256xf32, #tpu.memory_space<vmem>>, %arg11: memref<64x128xf32, #tpu.memory_space<vmem>>, %arg12: memref<64x256xbf16, #tpu.memory_space<vmem>>, %arg13: memref<64x128xbf16, #tpu.memory_space<vmem>>) attributes {dimension_semantics = [#tpu.dimension_semantics<parallel>], iteration_bounds = array<i64: 2>, scalar_prefetch = 0 : i64, scratch_operands = 1 : i64, tpu.core_type = #tpu.core_type<tc>, window_params = [{transform_indices = @transform_0, window_bounds = array<i64: 64, 128>}, {transform_indices = @transform_1, window_bounds = array<i64: 64, 256>}, {transform_indices = @transform_2, window_bounds = array<i64: 64, 256>}, {pipeline_mode = #tpu.pipeline_mode<synchronous>, transform_indices = @transform_3, window_bounds = array<i64: 128, 128>}, {pipeline_mode = #tpu.pipeline_mode<synchronous>, transform_indices = @transform_4, window_bounds = array<i64: 1, 128>}, {transform_indices = @transform_5, window_bounds = array<i64: 64, 128>}, {pipeline_mode = #tpu.pipeline_mode<synchronous>, transform_indices = @transform_6, window_bounds = array<i64: 1, 128>}, {pipeline_mode = #tpu.pipeline_mode<synchronous>, transform_indices = @transform_7, window_bounds = array<i64: 1, 128>}, {pipeline_mode = #tpu.pipeline_mode<synchronous>, transform_indices = @transform_8, window_bounds = array<i64: 128, 256>}, {pipeline_mode = #tpu.pipeline_mode<synchronous>, transform_indices = @transform_9, window_bounds = array<i64: 1, 256>}, {transform_indices = @transform_10, window_bounds = array<i64: 64, 128>}, {transform_indices = @transform_11, window_bounds = array<i64: 64, 256>}]} {
    %c0 = arith.constant 0 : index
    %c0_0 = arith.constant 0 : index
    %0 = vector.load %arg4[%c0, %c0_0] : memref<128x128xbf16, #tpu.memory_space<vmem>>, vector<128x128xbf16>
    %c0_1 = arith.constant 0 : index
    %c0_2 = arith.constant 0 : index
    %1 = vector.load %arg5[%c0_1, %c0_2] : memref<1x128xf32, #tpu.memory_space<vmem>>, vector<1x128xf32>
    %c0_3 = arith.constant 0 : index
    %c0_4 = arith.constant 0 : index
    %2 = vector.load %arg1[%c0_3, %c0_4] : memref<64x128xbf16, #tpu.memory_space<vmem>>, vector<64x128xbf16>
    %c0_5 = arith.constant 0 : index
    %c0_6 = arith.constant 0 : index
    %3 = vector.load %arg2[%c0_5, %c0_6] : memref<64x256xbf16, #tpu.memory_space<vmem>>, vector<64x128xbf16>
    %c0_7 = arith.constant 0 : index
    %c128 = arith.constant 128 : index
    %4 = vector.load %arg2[%c0_7, %c128] : memref<64x256xbf16, #tpu.memory_space<vmem>>, vector<64x128xbf16>
    %5 = vector.extract_strided_slice %2 {offsets = [0, 0], sizes = [64, 32], strides = [1, 1]} : vector<64x128xbf16> to vector<64x32xbf16>
    %6 = vector.extract_strided_slice %3 {offsets = [0, 0], sizes = [64, 32], strides = [1, 1]} : vector<64x128xbf16> to vector<64x32xbf16>
    %7 = vector.extract_strided_slice %4 {offsets = [0, 0], sizes = [64, 32], strides = [1, 1]} : vector<64x128xbf16> to vector<64x32xbf16>
    %cst = arith.constant dense<0.000000e+00> : vector<64x64xf32>
    %8 = tpu.matmul %5, %6, %cst {dimension_numbers = #tpu.dot_dimension_numbers<[1], [1], [0], [0], [0, 0, 1, 0], [], []>} : vector<64x32xbf16>, vector<64x32xbf16>, vector<64x64xf32> -> vector<64x64xf32>
    %c0_8 = arith.constant 0 : index
    %c0_9 = arith.constant 0 : index
    %9 = vector.load %arg3[%c0_8, %c0_9] : memref<64x256xf32, #tpu.memory_space<vmem>>, vector<64x64xf32>
    %10 = arith.addf %8, %9 : vector<64x64xf32>
    %cst_10 = arith.constant 0.176776692 : f32
    %11 = vector.broadcast %cst_10 : f32 to vector<64x64xf32>
    %12 = arith.mulf %10, %11 : vector<64x64xf32>
    %cst_11 = arith.constant dense<0xFF800000> : vector<64xf32>
    %13 = vector.multi_reduction <maximumf>, %12, %cst_11 [1] : vector<64x64xf32> to vector<64xf32>
    %14 = vector.shape_cast %13 : vector<64xf32> to vector<64x1xf32>
    %15 = vector.broadcast %14 : vector<64x1xf32> to vector<64x64xf32>
    %16 = arith.subf %12, %15 : vector<64x64xf32>
    %17 = math.exp %16 : vector<64x64xf32>
    %cst_12 = arith.constant dense<0.000000e+00> : vector<64xf32>
    %18 = vector.multi_reduction <add>, %17, %cst_12 [1] : vector<64x64xf32> to vector<64xf32>
    %19 = vector.shape_cast %18 : vector<64xf32> to vector<64x1xf32>
    %20 = tpu.reciprocal %19 {approx = true} : vector<64x1xf32> -> vector<64x1xf32>
    %21 = vector.broadcast %20 : vector<64x1xf32> to vector<64x64xf32>
    %22 = arith.mulf %17, %21 : vector<64x64xf32>
    %23 = arith.truncf %22 : vector<64x64xf32> to vector<64x64xbf16>
    %cst_13 = arith.constant dense<0.000000e+00> : vector<64x32xf32>
    %24 = tpu.matmul %23, %7, %cst_13 {dimension_numbers = #tpu.dot_dimension_numbers<[1], [0], [0], [1], [0, 0, 1, 1], [], []>} : vector<64x64xbf16>, vector<64x32xbf16>, vector<64x32xf32> -> vector<64x32xf32>
    %25 = arith.truncf %24 : vector<64x32xf32> to vector<64x32xbf16>
    %c0_14 = arith.constant 0 : index
    %c0_15 = arith.constant 0 : index
    %26 = vector.load %arg13[%c0_14, %c0_15] : memref<64x128xbf16, #tpu.memory_space<vmem>>, vector<64x32xbf16>
    tpu.vector_store %arg13[%c0_14, %c0_15], %25 {strides = array<i32>} : memref<64x128xbf16, #tpu.memory_space<vmem>>, vector<64x32xbf16>,
    %27 = vector.extract_strided_slice %2 {offsets = [0, 32], sizes = [64, 32], strides = [1, 1]} : vector<64x128xbf16> to vector<64x32xbf16>
    %28 = vector.extract_strided_slice %3 {offsets = [0, 32], sizes = [64, 32], strides = [1, 1]} : vector<64x128xbf16> to vector<64x32xbf16>
    %29 = vector.extract_strided_slice %4 {offsets = [0, 32], sizes = [64, 32], strides = [1, 1]} : vector<64x128xbf16> to vector<64x32xbf16>
    %cst_16 = arith.constant dense<0.000000e+00> : vector<64x64xf32>
    %30 = tpu.matmul %27, %28, %cst_16 {dimension_numbers = #tpu.dot_dimension_numbers<[1], [1], [0], [0], [0, 0, 1, 0], [], []>} : vector<64x32xbf16>, vector<64x32xbf16>, vector<64x64xf32> -> vector<64x64xf32>
    %c0_17 = arith.constant 0 : index
    %c64 = arith.constant 64 : index
    %31 = vector.load %arg3[%c0_17, %c64] : memref<64x256xf32, #tpu.memory_space<vmem>>, vector<64x64xf32>
    %32 = arith.addf %30, %31 : vector<64x64xf32>
    %cst_18 = arith.constant 0.176776692 : f32
    %33 = vector.broadcast %cst_18 : f32 to vector<64x64xf32>
    %34 = arith.mulf %32, %33 : vector<64x64xf32>
    %cst_19 = arith.constant dense<0xFF800000> : vector<64xf32>
    %35 = vector.multi_reduction <maximumf>, %34, %cst_19 [1] : vector<64x64xf32> to vector<64xf32>
    %36 = vector.shape_cast %35 : vector<64xf32> to vector<64x1xf32>
    %37 = vector.broadcast %36 : vector<64x1xf32> to vector<64x64xf32>
    %38 = arith.subf %34, %37 : vector<64x64xf32>
    %39 = math.exp %38 : vector<64x64xf32>
    %cst_20 = arith.constant dense<0.000000e+00> : vector<64xf32>
    %40 = vector.multi_reduction <add>, %39, %cst_20 [1] : vector<64x64xf32> to vector<64xf32>
    %41 = vector.shape_cast %40 : vector<64xf32> to vector<64x1xf32>
    %42 = tpu.reciprocal %41 {approx = true} : vector<64x1xf32> -> vector<64x1xf32>
    %43 = vector.broadcast %42 : vector<64x1xf32> to vector<64x64xf32>
    %44 = arith.mulf %39, %43 : vector<64x64xf32>
    %45 = arith.truncf %44 : vector<64x64xf32> to vector<64x64xbf16>
    %cst_21 = arith.constant dense<0.000000e+00> : vector<64x32xf32>
    %46 = tpu.matmul %45, %29, %cst_21 {dimension_numbers = #tpu.dot_dimension_numbers<[1], [0], [0], [1], [0, 0, 1, 1], [], []>} : vector<64x64xbf16>, vector<64x32xbf16>, vector<64x32xf32> -> vector<64x32xf32>
    %47 = arith.truncf %46 : vector<64x32xf32> to vector<64x32xbf16>
    %c0_22 = arith.constant 0 : index
    %c32 = arith.constant 32 : index
    %48 = vector.load %arg13[%c0_22, %c32] : memref<64x128xbf16, #tpu.memory_space<vmem>>, vector<64x32xbf16>
    tpu.vector_store %arg13[%c0_22, %c32], %47 {strides = array<i32>} : memref<64x128xbf16, #tpu.memory_space<vmem>>, vector<64x32xbf16>,
    %49 = vector.extract_strided_slice %2 {offsets = [0, 64], sizes = [64, 32], strides = [1, 1]} : vector<64x128xbf16> to vector<64x32xbf16>
    %50 = vector.extract_strided_slice %3 {offsets = [0, 64], sizes = [64, 32], strides = [1, 1]} : vector<64x128xbf16> to vector<64x32xbf16>
    %51 = vector.extract_strided_slice %4 {offsets = [0, 64], sizes = [64, 32], strides = [1, 1]} : vector<64x128xbf16> to vector<64x32xbf16>
    %cst_23 = arith.constant dense<0.000000e+00> : vector<64x64xf32>
    %52 = tpu.matmul %49, %50, %cst_23 {dimension_numbers = #tpu.dot_dimension_numbers<[1], [1], [0], [0], [0, 0, 1, 0], [], []>} : vector<64x32xbf16>, vector<64x32xbf16>, vector<64x64xf32> -> vector<64x64xf32>
    %c0_24 = arith.constant 0 : index
    %c128_25 = arith.constant 128 : index
    %53 = vector.load %arg3[%c0_24, %c128_25] : memref<64x256xf32, #tpu.memory_space<vmem>>, vector<64x64xf32>
    %54 = arith.addf %52, %53 : vector<64x64xf32>
    %cst_26 = arith.constant 0.176776692 : f32
    %55 = vector.broadcast %cst_26 : f32 to vector<64x64xf32>
    %56 = arith.mulf %54, %55 : vector<64x64xf32>
    %cst_27 = arith.constant dense<0xFF800000> : vector<64xf32>
    %57 = vector.multi_reduction <maximumf>, %56, %cst_27 [1] : vector<64x64xf32> to vector<64xf32>
    %58 = vector.shape_cast %57 : vector<64xf32> to vector<64x1xf32>
    %59 = vector.broadcast %58 : vector<64x1xf32> to vector<64x64xf32>
    %60 = arith.subf %56, %59 : vector<64x64xf32>
    %61 = math.exp %60 : vector<64x64xf32>
    %cst_28 = arith.constant dense<0.000000e+00> : vector<64xf32>
    %62 = vector.multi_reduction <add>, %61, %cst_28 [1] : vector<64x64xf32> to vector<64xf32>
    %63 = vector.shape_cast %62 : vector<64xf32> to vector<64x1xf32>
    %64 = tpu.reciprocal %63 {approx = true} : vector<64x1xf32> -> vector<64x1xf32>
    %65 = vector.broadcast %64 : vector<64x1xf32> to vector<64x64xf32>
    %66 = arith.mulf %61, %65 : vector<64x64xf32>
    %67 = arith.truncf %66 : vector<64x64xf32> to vector<64x64xbf16>
    %cst_29 = arith.constant dense<0.000000e+00> : vector<64x32xf32>
    %68 = tpu.matmul %67, %51, %cst_29 {dimension_numbers = #tpu.dot_dimension_numbers<[1], [0], [0], [1], [0, 0, 1, 1], [], []>} : vector<64x64xbf16>, vector<64x32xbf16>, vector<64x32xf32> -> vector<64x32xf32>
    %69 = arith.truncf %68 : vector<64x32xf32> to vector<64x32xbf16>
    %c0_30 = arith.constant 0 : index
    %c64_31 = arith.constant 64 : index
    %70 = vector.load %arg13[%c0_30, %c64_31] : memref<64x128xbf16, #tpu.memory_space<vmem>>, vector<64x32xbf16>
    tpu.vector_store %arg13[%c0_30, %c64_31], %69 {strides = array<i32>} : memref<64x128xbf16, #tpu.memory_space<vmem>>, vector<64x32xbf16>,
    %71 = vector.extract_strided_slice %2 {offsets = [0, 96], sizes = [64, 32], strides = [1, 1]} : vector<64x128xbf16> to vector<64x32xbf16>
    %72 = vector.extract_strided_slice %3 {offsets = [0, 96], sizes = [64, 32], strides = [1, 1]} : vector<64x128xbf16> to vector<64x32xbf16>
    %73 = vector.extract_strided_slice %4 {offsets = [0, 96], sizes = [64, 32], strides = [1, 1]} : vector<64x128xbf16> to vector<64x32xbf16>
    %cst_32 = arith.constant dense<0.000000e+00> : vector<64x64xf32>
    %74 = tpu.matmul %71, %72, %cst_32 {dimension_numbers = #tpu.dot_dimension_numbers<[1], [1], [0], [0], [0, 0, 1, 0], [], []>} : vector<64x32xbf16>, vector<64x32xbf16>, vector<64x64xf32> -> vector<64x64xf32>
    %c0_33 = arith.constant 0 : index
    %c192 = arith.constant 192 : index
    %75 = vector.load %arg3[%c0_33, %c192] : memref<64x256xf32, #tpu.memory_space<vmem>>, vector<64x64xf32>
    %76 = arith.addf %74, %75 : vector<64x64xf32>
    %cst_34 = arith.constant 0.176776692 : f32
    %77 = vector.broadcast %cst_34 : f32 to vector<64x64xf32>
    %78 = arith.mulf %76, %77 : vector<64x64xf32>
    %cst_35 = arith.constant dense<0xFF800000> : vector<64xf32>
    %79 = vector.multi_reduction <maximumf>, %78, %cst_35 [1] : vector<64x64xf32> to vector<64xf32>
    %80 = vector.shape_cast %79 : vector<64xf32> to vector<64x1xf32>
    %81 = vector.broadcast %80 : vector<64x1xf32> to vector<64x64xf32>
    %82 = arith.subf %78, %81 : vector<64x64xf32>
    %83 = math.exp %82 : vector<64x64xf32>
    %cst_36 = arith.constant dense<0.000000e+00> : vector<64xf32>
    %84 = vector.multi_reduction <add>, %83, %cst_36 [1] : vector<64x64xf32> to vector<64xf32>
    %85 = vector.shape_cast %84 : vector<64xf32> to vector<64x1xf32>
    %86 = tpu.reciprocal %85 {approx = true} : vector<64x1xf32> -> vector<64x1xf32>
    %87 = vector.broadcast %86 : vector<64x1xf32> to vector<64x64xf32>
    %88 = arith.mulf %83, %87 : vector<64x64xf32>
    %89 = arith.truncf %88 : vector<64x64xf32> to vector<64x64xbf16>
    %cst_37 = arith.constant dense<0.000000e+00> : vector<64x32xf32>
    %90 = tpu.matmul %89, %73, %cst_37 {dimension_numbers = #tpu.dot_dimension_numbers<[1], [0], [0], [1], [0, 0, 1, 1], [], []>} : vector<64x64xbf16>, vector<64x32xbf16>, vector<64x32xf32> -> vector<64x32xf32>
    %91 = arith.truncf %90 : vector<64x32xf32> to vector<64x32xbf16>
    %c0_38 = arith.constant 0 : index
    %c96 = arith.constant 96 : index
    %92 = vector.load %arg13[%c0_38, %c96] : memref<64x128xbf16, #tpu.memory_space<vmem>>, vector<64x32xbf16>
    tpu.vector_store %arg13[%c0_38, %c96], %91 {strides = array<i32>} : memref<64x128xbf16, #tpu.memory_space<vmem>>, vector<64x32xbf16>,
    %c0_39 = arith.constant 0 : index
    %c0_40 = arith.constant 0 : index
    %93 = vector.load %arg13[%c0_39, %c0_40] : memref<64x128xbf16, #tpu.memory_space<vmem>>, vector<64x128xbf16>
    %cst_41 = arith.constant dense<0.000000e+00> : vector<64x128xf32>
    %94 = tpu.matmul %93, %0, %cst_41 {dimension_numbers = #tpu.dot_dimension_numbers<[1], [0], [0], [1], [0, 0, 1, 1], [], []>} : vector<64x128xbf16>, vector<128x128xbf16>, vector<64x128xf32> -> vector<64x128xf32>
    %95 = vector.broadcast %1 : vector<1x128xf32> to vector<64x128xf32>
    %96 = arith.addf %94, %95 : vector<64x128xf32>
    %c0_42 = arith.constant 0 : index
    %c0_43 = arith.constant 0 : index
    %97 = vector.load %arg6[%c0_42, %c0_43] : memref<64x128xf32, #tpu.memory_space<vmem>>, vector<64x128xf32>
    %98 = arith.addf %96, %97 : vector<64x128xf32>
    %c0_44 = arith.constant 0 : index
    %c0_45 = arith.constant 0 : index
    %99 = vector.load %arg11[%c0_44, %c0_45] : memref<64x128xf32, #tpu.memory_space<vmem>>, vector<64x128xf32>
    tpu.vector_store %arg11[%c0_44, %c0_45], %98 {strides = array<i32>} : memref<64x128xf32, #tpu.memory_space<vmem>>, vector<64x128xf32>,
    %cst_46 = arith.constant dense<0.000000e+00> : vector<64xf32>
    %100 = vector.multi_reduction <add>, %98, %cst_46 [1] : vector<64x128xf32> to vector<64xf32>
    %101 = vector.shape_cast %100 : vector<64xf32> to vector<64x1xf32>
    %cst_47 = arith.constant 1.280000e+02 : f32
    %102 = vector.broadcast %cst_47 : f32 to vector<64x1xf32>
    %103 = arith.divf %101, %102 : vector<64x1xf32>
    %104 = vector.broadcast %103 : vector<64x1xf32> to vector<64x128xf32>
    %105 = arith.subf %98, %104 : vector<64x128xf32>
    %106 = arith.mulf %105, %105 : vector<64x128xf32>
    %cst_48 = arith.constant dense<0.000000e+00> : vector<64xf32>
    %107 = vector.multi_reduction <add>, %106, %cst_48 [1] : vector<64x128xf32> to vector<64xf32>
    %108 = vector.shape_cast %107 : vector<64xf32> to vector<64x1xf32>
    %cst_49 = arith.constant 1.280000e+02 : f32
    %109 = vector.broadcast %cst_49 : f32 to vector<64x1xf32>
    %110 = arith.divf %108, %109 : vector<64x1xf32>
    %111 = vector.broadcast %103 : vector<64x1xf32> to vector<64x128xf32>
    %112 = arith.subf %98, %111 : vector<64x128xf32>
    %cst_50 = arith.constant 9.99999974E-6 : f32
    %113 = vector.broadcast %cst_50 : f32 to vector<64x1xf32>
    %114 = arith.addf %110, %113 : vector<64x1xf32>
    %115 = math.rsqrt %114 : vector<64x1xf32>
    %116 = vector.broadcast %115 : vector<64x1xf32> to vector<64x128xf32>
    %117 = arith.mulf %112, %116 : vector<64x128xf32>
    %c0_51 = arith.constant 0 : index
    %c0_52 = arith.constant 0 : index
    %118 = vector.load %arg7[%c0_51, %c0_52] : memref<1x128xf32, #tpu.memory_space<vmem>>, vector<1x128xf32>
    %119 = vector.broadcast %118 : vector<1x128xf32> to vector<64x128xf32>
    %120 = arith.mulf %117, %119 : vector<64x128xf32>
    %c0_53 = arith.constant 0 : index
    %c0_54 = arith.constant 0 : index
    %121 = vector.load %arg8[%c0_53, %c0_54] : memref<1x128xf32, #tpu.memory_space<vmem>>, vector<1x128xf32>
    %122 = vector.broadcast %121 : vector<1x128xf32> to vector<64x128xf32>
    %123 = arith.addf %120, %122 : vector<64x128xf32>
    %124 = arith.truncf %123 : vector<64x128xf32> to vector<64x128xbf16>
    %c0_55 = arith.constant 0 : index
    %c0_56 = arith.constant 0 : index
    %125 = vector.load %arg9[%c0_55, %c0_56] : memref<128x256xbf16, #tpu.memory_space<vmem>>, vector<128x256xbf16>
    %cst_57 = arith.constant dense<0.000000e+00> : vector<64x256xf32>
    %126 = tpu.matmul %124, %125, %cst_57 {dimension_numbers = #tpu.dot_dimension_numbers<[1], [0], [0], [1], [0, 0, 1, 1], [], []>} : vector<64x128xbf16>, vector<128x256xbf16>, vector<64x256xf32> -> vector<64x256xf32>
    %c0_58 = arith.constant 0 : index
    %c0_59 = arith.constant 0 : index
    %127 = vector.load %arg10[%c0_58, %c0_59] : memref<1x256xf32, #tpu.memory_space<vmem>>, vector<1x256xf32>
    %128 = vector.broadcast %127 : vector<1x256xf32> to vector<64x256xf32>
    %129 = arith.addf %126, %128 : vector<64x256xf32>
    %130 = arith.truncf %129 : vector<64x256xf32> to vector<64x256xbf16>
    %c0_60 = arith.constant 0 : index
    %c0_61 = arith.constant 0 : index
    %131 = vector.load %arg12[%c0_60, %c0_61] : memref<64x256xbf16, #tpu.memory_space<vmem>>, vector<64x256xbf16>
    tpu.vector_store %arg12[%c0_60, %c0_61], %130 {strides = array<i32>} : memref<64x256xbf16, #tpu.memory_space<vmem>>, vector<64x256xbf16>,
    return
  }
  func.func @transform_0(%arg0: i32) -> (i32, i32) {
    %c0_i32 = arith.constant 0 : i32
    %c0_i32_0 = arith.constant 0 : i32
    return %c0_i32, %arg0 : i32, i32
  }
  func.func @transform_1(%arg0: i32) -> (i32, i32) {
    %c0_i32 = arith.constant 0 : i32
    %c0_i32_0 = arith.constant 0 : i32
    return %c0_i32, %arg0 : i32, i32
  }
  func.func @transform_2(%arg0: i32) -> (i32, i32) {
    %c0_i32 = arith.constant 0 : i32
    %c0_i32_0 = arith.constant 0 : i32
    return %c0_i32, %arg0 : i32, i32
  }
  func.func @transform_3(%arg0: i32) -> (i32, i32) {
    %c0_i32 = arith.constant 0 : i32
    %c0_i32_0 = arith.constant 0 : i32
    %c0_i32_1 = arith.constant 0 : i32
    return %c0_i32, %c0_i32_0 : i32, i32
  }
  func.func @transform_4(%arg0: i32) -> (i32, i32) {
    %c0_i32 = arith.constant 0 : i32
    %c0_i32_0 = arith.constant 0 : i32
    %c0_i32_1 = arith.constant 0 : i32
    return %c0_i32, %c0_i32_0 : i32, i32
  }
  func.func @transform_5(%arg0: i32) -> (i32, i32) {
    %c0_i32 = arith.constant 0 : i32
    %c0_i32_0 = arith.constant 0 : i32
    return %c0_i32, %arg0 : i32, i32
  }
  func.func @transform_6(%arg0: i32) -> (i32, i32) {
    %c0_i32 = arith.constant 0 : i32
    %c0_i32_0 = arith.constant 0 : i32
    %c0_i32_1 = arith.constant 0 : i32
    return %c0_i32, %c0_i32_0 : i32, i32
  }
  func.func @transform_7(%arg0: i32) -> (i32, i32) {
    %c0_i32 = arith.constant 0 : i32
    %c0_i32_0 = arith.constant 0 : i32
    %c0_i32_1 = arith.constant 0 : i32
    return %c0_i32, %c0_i32_0 : i32, i32
  }
  func.func @transform_8(%arg0: i32) -> (i32, i32) {
    %c0_i32 = arith.constant 0 : i32
    %c0_i32_0 = arith.constant 0 : i32
    %c0_i32_1 = arith.constant 0 : i32
    return %c0_i32, %c0_i32_0 : i32, i32
  }
  func.func @transform_9(%arg0: i32) -> (i32, i32) {
    %c0_i32 = arith.constant 0 : i32
    %c0_i32_0 = arith.constant 0 : i32
    %c0_i32_1 = arith.constant 0 : i32
    return %c0_i32, %c0_i32_0 : i32, i32
  }
  func.func @transform_10(%arg0: i32) -> (i32, i32) {
    %c0_i32 = arith.constant 0 : i32
    %c0_i32_0 = arith.constant 0 : i32
    return %c0_i32, %arg0 : i32, i32
  }
  func.func @transform_11(%arg0: i32) -> (i32, i32) {
    %c0_i32 = arith.constant 0 : i32
    %c0_i32_0 = arith.constant 0 : i32
    return %c0_i32, %arg0 : i32, i32
  }
}

module attributes {stable_mosaic.version = 11 : i64} {
  func.func @_rel_cross_attn_kernel(%arg0: i32, %arg1: memref<64x128xbf16, #tpu.memory_space<vmem>>, %arg2: memref<64x256xbf16, #tpu.memory_space<vmem>>, %arg3: memref<64x256xf32, #tpu.memory_space<vmem>>, %arg4: memref<128x128xbf16, #tpu.memory_space<vmem>>, %arg5: memref<1x128xf32, #tpu.memory_space<vmem>>, %arg6: memref<64x128xf32, #tpu.memory_space<vmem>>, %arg7: memref<64x128xf32, #tpu.memory_space<vmem>>, %arg8: memref<1x4x64x64xf32, #tpu.memory_space<vmem>>, %arg9: memref<64x128xbf16, #tpu.memory_space<vmem>>) attributes {dimension_semantics = [#tpu.dimension_semantics<parallel>], iteration_bounds = array<i64: 2>, scalar_prefetch = 0 : i64, scratch_operands = 1 : i64, tpu.core_type = #tpu.core_type<tc>, window_params = [{transform_indices = @transform_0, window_bounds = array<i64: 64, 128>}, {transform_indices = @transform_1, window_bounds = array<i64: 64, 256>}, {transform_indices = @transform_2, window_bounds = array<i64: 64, 256>}, {pipeline_mode = #tpu.pipeline_mode<synchronous>, transform_indices = @transform_3, window_bounds = array<i64: 128, 128>}, {pipeline_mode = #tpu.pipeline_mode<synchronous>, transform_indices = @transform_4, window_bounds = array<i64: 1, 128>}, {transform_indices = @transform_5, window_bounds = array<i64: 64, 128>}, {transform_indices = @transform_6, window_bounds = array<i64: 64, 128>}, {transform_indices = @transform_7, window_bounds = array<i64: 1, 4, 64, 64>}]} {
    %c0 = arith.constant 0 : index
    %c0_0 = arith.constant 0 : index
    %0 = vector.load %arg4[%c0, %c0_0] : memref<128x128xbf16, #tpu.memory_space<vmem>>, vector<128x128xbf16>
    %c0_1 = arith.constant 0 : index
    %c0_2 = arith.constant 0 : index
    %1 = vector.load %arg5[%c0_1, %c0_2] : memref<1x128xf32, #tpu.memory_space<vmem>>, vector<1x128xf32>
    %c0_3 = arith.constant 0 : index
    %c0_4 = arith.constant 0 : index
    %2 = vector.load %arg1[%c0_3, %c0_4] : memref<64x128xbf16, #tpu.memory_space<vmem>>, vector<64x128xbf16>
    %c0_5 = arith.constant 0 : index
    %c0_6 = arith.constant 0 : index
    %3 = vector.load %arg2[%c0_5, %c0_6] : memref<64x256xbf16, #tpu.memory_space<vmem>>, vector<64x128xbf16>
    %c0_7 = arith.constant 0 : index
    %c128 = arith.constant 128 : index
    %4 = vector.load %arg2[%c0_7, %c128] : memref<64x256xbf16, #tpu.memory_space<vmem>>, vector<64x128xbf16>
    %5 = vector.extract_strided_slice %2 {offsets = [0, 0], sizes = [64, 32], strides = [1, 1]} : vector<64x128xbf16> to vector<64x32xbf16>
    %6 = vector.extract_strided_slice %3 {offsets = [0, 0], sizes = [64, 32], strides = [1, 1]} : vector<64x128xbf16> to vector<64x32xbf16>
    %7 = vector.extract_strided_slice %4 {offsets = [0, 0], sizes = [64, 32], strides = [1, 1]} : vector<64x128xbf16> to vector<64x32xbf16>
    %cst = arith.constant dense<0.000000e+00> : vector<64x64xf32>
    %8 = tpu.matmul %5, %6, %cst {dimension_numbers = #tpu.dot_dimension_numbers<[1], [1], [0], [0], [0, 0, 1, 0], [], []>} : vector<64x32xbf16>, vector<64x32xbf16>, vector<64x64xf32> -> vector<64x64xf32>
    %c0_8 = arith.constant 0 : index
    %c0_9 = arith.constant 0 : index
    %9 = vector.load %arg3[%c0_8, %c0_9] : memref<64x256xf32, #tpu.memory_space<vmem>>, vector<64x64xf32>
    %10 = arith.addf %8, %9 : vector<64x64xf32>
    %cst_10 = arith.constant 0.176776692 : f32
    %11 = vector.broadcast %cst_10 : f32 to vector<64x64xf32>
    %12 = arith.mulf %10, %11 : vector<64x64xf32>
    %c0_11 = arith.constant 0 : index
    %c0_12 = arith.constant 0 : index
    %c0_13 = arith.constant 0 : index
    %c0_14 = arith.constant 0 : index
    %13 = vector.load %arg8[%c0_11, %c0_12, %c0_13, %c0_14] : memref<1x4x64x64xf32, #tpu.memory_space<vmem>>, vector<1x1x64x64xf32>
    %14 = vector.shape_cast %13 : vector<1x1x64x64xf32> to vector<64x64xf32>
    %15 = vector.shape_cast %12 : vector<64x64xf32> to vector<1x1x64x64xf32>
    tpu.vector_store %arg8[%c0_11, %c0_12, %c0_13, %c0_14], %15 {strides = array<i32>} : memref<1x4x64x64xf32, #tpu.memory_space<vmem>>, vector<1x1x64x64xf32>,
    %cst_15 = arith.constant dense<0xFF800000> : vector<64xf32>
    %16 = vector.multi_reduction <maximumf>, %12, %cst_15 [1] : vector<64x64xf32> to vector<64xf32>
    %17 = vector.shape_cast %16 : vector<64xf32> to vector<64x1xf32>
    %18 = vector.broadcast %17 : vector<64x1xf32> to vector<64x64xf32>
    %19 = arith.subf %12, %18 : vector<64x64xf32>
    %20 = math.exp %19 : vector<64x64xf32>
    %cst_16 = arith.constant dense<0.000000e+00> : vector<64xf32>
    %21 = vector.multi_reduction <add>, %20, %cst_16 [1] : vector<64x64xf32> to vector<64xf32>
    %22 = vector.shape_cast %21 : vector<64xf32> to vector<64x1xf32>
    %23 = tpu.reciprocal %22 {approx = true} : vector<64x1xf32> -> vector<64x1xf32>
    %24 = vector.broadcast %23 : vector<64x1xf32> to vector<64x64xf32>
    %25 = arith.mulf %20, %24 : vector<64x64xf32>
    %26 = arith.truncf %25 : vector<64x64xf32> to vector<64x64xbf16>
    %cst_17 = arith.constant dense<0.000000e+00> : vector<64x32xf32>
    %27 = tpu.matmul %26, %7, %cst_17 {dimension_numbers = #tpu.dot_dimension_numbers<[1], [0], [0], [1], [0, 0, 1, 1], [], []>} : vector<64x64xbf16>, vector<64x32xbf16>, vector<64x32xf32> -> vector<64x32xf32>
    %28 = arith.truncf %27 : vector<64x32xf32> to vector<64x32xbf16>
    %c0_18 = arith.constant 0 : index
    %c0_19 = arith.constant 0 : index
    %29 = vector.load %arg9[%c0_18, %c0_19] : memref<64x128xbf16, #tpu.memory_space<vmem>>, vector<64x32xbf16>
    tpu.vector_store %arg9[%c0_18, %c0_19], %28 {strides = array<i32>} : memref<64x128xbf16, #tpu.memory_space<vmem>>, vector<64x32xbf16>,
    %30 = vector.extract_strided_slice %2 {offsets = [0, 32], sizes = [64, 32], strides = [1, 1]} : vector<64x128xbf16> to vector<64x32xbf16>
    %31 = vector.extract_strided_slice %3 {offsets = [0, 32], sizes = [64, 32], strides = [1, 1]} : vector<64x128xbf16> to vector<64x32xbf16>
    %32 = vector.extract_strided_slice %4 {offsets = [0, 32], sizes = [64, 32], strides = [1, 1]} : vector<64x128xbf16> to vector<64x32xbf16>
    %cst_20 = arith.constant dense<0.000000e+00> : vector<64x64xf32>
    %33 = tpu.matmul %30, %31, %cst_20 {dimension_numbers = #tpu.dot_dimension_numbers<[1], [1], [0], [0], [0, 0, 1, 0], [], []>} : vector<64x32xbf16>, vector<64x32xbf16>, vector<64x64xf32> -> vector<64x64xf32>
    %c0_21 = arith.constant 0 : index
    %c64 = arith.constant 64 : index
    %34 = vector.load %arg3[%c0_21, %c64] : memref<64x256xf32, #tpu.memory_space<vmem>>, vector<64x64xf32>
    %35 = arith.addf %33, %34 : vector<64x64xf32>
    %cst_22 = arith.constant 0.176776692 : f32
    %36 = vector.broadcast %cst_22 : f32 to vector<64x64xf32>
    %37 = arith.mulf %35, %36 : vector<64x64xf32>
    %c0_23 = arith.constant 0 : index
    %c1 = arith.constant 1 : index
    %c0_24 = arith.constant 0 : index
    %c0_25 = arith.constant 0 : index
    %38 = vector.load %arg8[%c0_23, %c1, %c0_24, %c0_25] : memref<1x4x64x64xf32, #tpu.memory_space<vmem>>, vector<1x1x64x64xf32>
    %39 = vector.shape_cast %38 : vector<1x1x64x64xf32> to vector<64x64xf32>
    %40 = vector.shape_cast %37 : vector<64x64xf32> to vector<1x1x64x64xf32>
    tpu.vector_store %arg8[%c0_23, %c1, %c0_24, %c0_25], %40 {strides = array<i32>} : memref<1x4x64x64xf32, #tpu.memory_space<vmem>>, vector<1x1x64x64xf32>,
    %cst_26 = arith.constant dense<0xFF800000> : vector<64xf32>
    %41 = vector.multi_reduction <maximumf>, %37, %cst_26 [1] : vector<64x64xf32> to vector<64xf32>
    %42 = vector.shape_cast %41 : vector<64xf32> to vector<64x1xf32>
    %43 = vector.broadcast %42 : vector<64x1xf32> to vector<64x64xf32>
    %44 = arith.subf %37, %43 : vector<64x64xf32>
    %45 = math.exp %44 : vector<64x64xf32>
    %cst_27 = arith.constant dense<0.000000e+00> : vector<64xf32>
    %46 = vector.multi_reduction <add>, %45, %cst_27 [1] : vector<64x64xf32> to vector<64xf32>
    %47 = vector.shape_cast %46 : vector<64xf32> to vector<64x1xf32>
    %48 = tpu.reciprocal %47 {approx = true} : vector<64x1xf32> -> vector<64x1xf32>
    %49 = vector.broadcast %48 : vector<64x1xf32> to vector<64x64xf32>
    %50 = arith.mulf %45, %49 : vector<64x64xf32>
    %51 = arith.truncf %50 : vector<64x64xf32> to vector<64x64xbf16>
    %cst_28 = arith.constant dense<0.000000e+00> : vector<64x32xf32>
    %52 = tpu.matmul %51, %32, %cst_28 {dimension_numbers = #tpu.dot_dimension_numbers<[1], [0], [0], [1], [0, 0, 1, 1], [], []>} : vector<64x64xbf16>, vector<64x32xbf16>, vector<64x32xf32> -> vector<64x32xf32>
    %53 = arith.truncf %52 : vector<64x32xf32> to vector<64x32xbf16>
    %c0_29 = arith.constant 0 : index
    %c32 = arith.constant 32 : index
    %54 = vector.load %arg9[%c0_29, %c32] : memref<64x128xbf16, #tpu.memory_space<vmem>>, vector<64x32xbf16>
    tpu.vector_store %arg9[%c0_29, %c32], %53 {strides = array<i32>} : memref<64x128xbf16, #tpu.memory_space<vmem>>, vector<64x32xbf16>,
    %55 = vector.extract_strided_slice %2 {offsets = [0, 64], sizes = [64, 32], strides = [1, 1]} : vector<64x128xbf16> to vector<64x32xbf16>
    %56 = vector.extract_strided_slice %3 {offsets = [0, 64], sizes = [64, 32], strides = [1, 1]} : vector<64x128xbf16> to vector<64x32xbf16>
    %57 = vector.extract_strided_slice %4 {offsets = [0, 64], sizes = [64, 32], strides = [1, 1]} : vector<64x128xbf16> to vector<64x32xbf16>
    %cst_30 = arith.constant dense<0.000000e+00> : vector<64x64xf32>
    %58 = tpu.matmul %55, %56, %cst_30 {dimension_numbers = #tpu.dot_dimension_numbers<[1], [1], [0], [0], [0, 0, 1, 0], [], []>} : vector<64x32xbf16>, vector<64x32xbf16>, vector<64x64xf32> -> vector<64x64xf32>
    %c0_31 = arith.constant 0 : index
    %c128_32 = arith.constant 128 : index
    %59 = vector.load %arg3[%c0_31, %c128_32] : memref<64x256xf32, #tpu.memory_space<vmem>>, vector<64x64xf32>
    %60 = arith.addf %58, %59 : vector<64x64xf32>
    %cst_33 = arith.constant 0.176776692 : f32
    %61 = vector.broadcast %cst_33 : f32 to vector<64x64xf32>
    %62 = arith.mulf %60, %61 : vector<64x64xf32>
    %c0_34 = arith.constant 0 : index
    %c2 = arith.constant 2 : index
    %c0_35 = arith.constant 0 : index
    %c0_36 = arith.constant 0 : index
    %63 = vector.load %arg8[%c0_34, %c2, %c0_35, %c0_36] : memref<1x4x64x64xf32, #tpu.memory_space<vmem>>, vector<1x1x64x64xf32>
    %64 = vector.shape_cast %63 : vector<1x1x64x64xf32> to vector<64x64xf32>
    %65 = vector.shape_cast %62 : vector<64x64xf32> to vector<1x1x64x64xf32>
    tpu.vector_store %arg8[%c0_34, %c2, %c0_35, %c0_36], %65 {strides = array<i32>} : memref<1x4x64x64xf32, #tpu.memory_space<vmem>>, vector<1x1x64x64xf32>,
    %cst_37 = arith.constant dense<0xFF800000> : vector<64xf32>
    %66 = vector.multi_reduction <maximumf>, %62, %cst_37 [1] : vector<64x64xf32> to vector<64xf32>
    %67 = vector.shape_cast %66 : vector<64xf32> to vector<64x1xf32>
    %68 = vector.broadcast %67 : vector<64x1xf32> to vector<64x64xf32>
    %69 = arith.subf %62, %68 : vector<64x64xf32>
    %70 = math.exp %69 : vector<64x64xf32>
    %cst_38 = arith.constant dense<0.000000e+00> : vector<64xf32>
    %71 = vector.multi_reduction <add>, %70, %cst_38 [1] : vector<64x64xf32> to vector<64xf32>
    %72 = vector.shape_cast %71 : vector<64xf32> to vector<64x1xf32>
    %73 = tpu.reciprocal %72 {approx = true} : vector<64x1xf32> -> vector<64x1xf32>
    %74 = vector.broadcast %73 : vector<64x1xf32> to vector<64x64xf32>
    %75 = arith.mulf %70, %74 : vector<64x64xf32>
    %76 = arith.truncf %75 : vector<64x64xf32> to vector<64x64xbf16>
    %cst_39 = arith.constant dense<0.000000e+00> : vector<64x32xf32>
    %77 = tpu.matmul %76, %57, %cst_39 {dimension_numbers = #tpu.dot_dimension_numbers<[1], [0], [0], [1], [0, 0, 1, 1], [], []>} : vector<64x64xbf16>, vector<64x32xbf16>, vector<64x32xf32> -> vector<64x32xf32>
    %78 = arith.truncf %77 : vector<64x32xf32> to vector<64x32xbf16>
    %c0_40 = arith.constant 0 : index
    %c64_41 = arith.constant 64 : index
    %79 = vector.load %arg9[%c0_40, %c64_41] : memref<64x128xbf16, #tpu.memory_space<vmem>>, vector<64x32xbf16>
    tpu.vector_store %arg9[%c0_40, %c64_41], %78 {strides = array<i32>} : memref<64x128xbf16, #tpu.memory_space<vmem>>, vector<64x32xbf16>,
    %80 = vector.extract_strided_slice %2 {offsets = [0, 96], sizes = [64, 32], strides = [1, 1]} : vector<64x128xbf16> to vector<64x32xbf16>
    %81 = vector.extract_strided_slice %3 {offsets = [0, 96], sizes = [64, 32], strides = [1, 1]} : vector<64x128xbf16> to vector<64x32xbf16>
    %82 = vector.extract_strided_slice %4 {offsets = [0, 96], sizes = [64, 32], strides = [1, 1]} : vector<64x128xbf16> to vector<64x32xbf16>
    %cst_42 = arith.constant dense<0.000000e+00> : vector<64x64xf32>
    %83 = tpu.matmul %80, %81, %cst_42 {dimension_numbers = #tpu.dot_dimension_numbers<[1], [1], [0], [0], [0, 0, 1, 0], [], []>} : vector<64x32xbf16>, vector<64x32xbf16>, vector<64x64xf32> -> vector<64x64xf32>
    %c0_43 = arith.constant 0 : index
    %c192 = arith.constant 192 : index
    %84 = vector.load %arg3[%c0_43, %c192] : memref<64x256xf32, #tpu.memory_space<vmem>>, vector<64x64xf32>
    %85 = arith.addf %83, %84 : vector<64x64xf32>
    %cst_44 = arith.constant 0.176776692 : f32
    %86 = vector.broadcast %cst_44 : f32 to vector<64x64xf32>
    %87 = arith.mulf %85, %86 : vector<64x64xf32>
    %c0_45 = arith.constant 0 : index
    %c3 = arith.constant 3 : index
    %c0_46 = arith.constant 0 : index
    %c0_47 = arith.constant 0 : index
    %88 = vector.load %arg8[%c0_45, %c3, %c0_46, %c0_47] : memref<1x4x64x64xf32, #tpu.memory_space<vmem>>, vector<1x1x64x64xf32>
    %89 = vector.shape_cast %88 : vector<1x1x64x64xf32> to vector<64x64xf32>
    %90 = vector.shape_cast %87 : vector<64x64xf32> to vector<1x1x64x64xf32>
    tpu.vector_store %arg8[%c0_45, %c3, %c0_46, %c0_47], %90 {strides = array<i32>} : memref<1x4x64x64xf32, #tpu.memory_space<vmem>>, vector<1x1x64x64xf32>,
    %cst_48 = arith.constant dense<0xFF800000> : vector<64xf32>
    %91 = vector.multi_reduction <maximumf>, %87, %cst_48 [1] : vector<64x64xf32> to vector<64xf32>
    %92 = vector.shape_cast %91 : vector<64xf32> to vector<64x1xf32>
    %93 = vector.broadcast %92 : vector<64x1xf32> to vector<64x64xf32>
    %94 = arith.subf %87, %93 : vector<64x64xf32>
    %95 = math.exp %94 : vector<64x64xf32>
    %cst_49 = arith.constant dense<0.000000e+00> : vector<64xf32>
    %96 = vector.multi_reduction <add>, %95, %cst_49 [1] : vector<64x64xf32> to vector<64xf32>
    %97 = vector.shape_cast %96 : vector<64xf32> to vector<64x1xf32>
    %98 = tpu.reciprocal %97 {approx = true} : vector<64x1xf32> -> vector<64x1xf32>
    %99 = vector.broadcast %98 : vector<64x1xf32> to vector<64x64xf32>
    %100 = arith.mulf %95, %99 : vector<64x64xf32>
    %101 = arith.truncf %100 : vector<64x64xf32> to vector<64x64xbf16>
    %cst_50 = arith.constant dense<0.000000e+00> : vector<64x32xf32>
    %102 = tpu.matmul %101, %82, %cst_50 {dimension_numbers = #tpu.dot_dimension_numbers<[1], [0], [0], [1], [0, 0, 1, 1], [], []>} : vector<64x64xbf16>, vector<64x32xbf16>, vector<64x32xf32> -> vector<64x32xf32>
    %103 = arith.truncf %102 : vector<64x32xf32> to vector<64x32xbf16>
    %c0_51 = arith.constant 0 : index
    %c96 = arith.constant 96 : index
    %104 = vector.load %arg9[%c0_51, %c96] : memref<64x128xbf16, #tpu.memory_space<vmem>>, vector<64x32xbf16>
    tpu.vector_store %arg9[%c0_51, %c96], %103 {strides = array<i32>} : memref<64x128xbf16, #tpu.memory_space<vmem>>, vector<64x32xbf16>,
    %c0_52 = arith.constant 0 : index
    %c0_53 = arith.constant 0 : index
    %105 = vector.load %arg9[%c0_52, %c0_53] : memref<64x128xbf16, #tpu.memory_space<vmem>>, vector<64x128xbf16>
    %cst_54 = arith.constant dense<0.000000e+00> : vector<64x128xf32>
    %106 = tpu.matmul %105, %0, %cst_54 {dimension_numbers = #tpu.dot_dimension_numbers<[1], [0], [0], [1], [0, 0, 1, 1], [], []>} : vector<64x128xbf16>, vector<128x128xbf16>, vector<64x128xf32> -> vector<64x128xf32>
    %107 = vector.broadcast %1 : vector<1x128xf32> to vector<64x128xf32>
    %108 = arith.addf %106, %107 : vector<64x128xf32>
    %c0_55 = arith.constant 0 : index
    %c0_56 = arith.constant 0 : index
    %109 = vector.load %arg6[%c0_55, %c0_56] : memref<64x128xf32, #tpu.memory_space<vmem>>, vector<64x128xf32>
    %110 = arith.addf %108, %109 : vector<64x128xf32>
    %c0_57 = arith.constant 0 : index
    %c0_58 = arith.constant 0 : index
    %111 = vector.load %arg7[%c0_57, %c0_58] : memref<64x128xf32, #tpu.memory_space<vmem>>, vector<64x128xf32>
    tpu.vector_store %arg7[%c0_57, %c0_58], %110 {strides = array<i32>} : memref<64x128xf32, #tpu.memory_space<vmem>>, vector<64x128xf32>,
    return
  }
  func.func @transform_0(%arg0: i32) -> (i32, i32) {
    %c0_i32 = arith.constant 0 : i32
    %c0_i32_0 = arith.constant 0 : i32
    return %c0_i32, %arg0 : i32, i32
  }
  func.func @transform_1(%arg0: i32) -> (i32, i32) {
    %c0_i32 = arith.constant 0 : i32
    %c0_i32_0 = arith.constant 0 : i32
    return %c0_i32, %arg0 : i32, i32
  }
  func.func @transform_2(%arg0: i32) -> (i32, i32) {
    %c0_i32 = arith.constant 0 : i32
    %c0_i32_0 = arith.constant 0 : i32
    return %c0_i32, %arg0 : i32, i32
  }
  func.func @transform_3(%arg0: i32) -> (i32, i32) {
    %c0_i32 = arith.constant 0 : i32
    %c0_i32_0 = arith.constant 0 : i32
    %c0_i32_1 = arith.constant 0 : i32
    return %c0_i32, %c0_i32_0 : i32, i32
  }
  func.func @transform_4(%arg0: i32) -> (i32, i32) {
    %c0_i32 = arith.constant 0 : i32
    %c0_i32_0 = arith.constant 0 : i32
    %c0_i32_1 = arith.constant 0 : i32
    return %c0_i32, %c0_i32_0 : i32, i32
  }
  func.func @transform_5(%arg0: i32) -> (i32, i32) {
    %c0_i32 = arith.constant 0 : i32
    %c0_i32_0 = arith.constant 0 : i32
    return %c0_i32, %arg0 : i32, i32
  }
  func.func @transform_6(%arg0: i32) -> (i32, i32) {
    %c0_i32 = arith.constant 0 : i32
    %c0_i32_0 = arith.constant 0 : i32
    return %c0_i32, %arg0 : i32, i32
  }
  func.func @transform_7(%arg0: i32) -> (i32, i32, i32, i32) {
    %c0_i32 = arith.constant 0 : i32
    %c0_i32_0 = arith.constant 0 : i32
    %c0_i32_1 = arith.constant 0 : i32
    %c0_i32_2 = arith.constant 0 : i32
    return %arg0, %c0_i32, %c0_i32_0, %c0_i32_1 : i32, i32, i32, i32
  }
}

</mosaic_0001>

<bundles_post_ra>
// kernel: tpu_custom_call.1
= control target key start
LH: loop header
LB: loop body
LE: loop exit
PB: predicated region body
PF: predicated region fallthrough
CT: control target
= control target key end

     0   :  { %6 = vsyncpa [#allocation3], 0  ;;  %s220_s0 = inlined_call_operand.hbm [shape: f32[64,128], index: 0, kind: input, shape index: {}]   ;;  %s221_s1 = inlined_call_operand.hbm [shape: f32[64,64], index: 1, kind: output, shape index: {}]  }
   0x1   :  { %7 = vsyncpa [#allocation4], 0  ;;  %s178_s6 = smov [#allocation2]  }
   0x2   :  { %s13_s7 = sshll.u32 %s178_s6, 4  ;;  %s14_s7 = int_to_ptr.vmem [resolvable:$true] %s13_s7 }
   0x3   :  { %s142_s8 = scalar_lea.vmem %s14_s7, 1024  ;;  %p147_p1 = scmp.lt.s32.totalorder %s14_s7, %s14_s7 }
   0x4   :  { %p143_p0 = scmp.ne.s32.totalorder %s14_s7, %s142_s8  ;;  %p148_p2 = scmp.lt.s32.totalorder %s142_s8, %s142_s8 }
   0x6   :  { %p149_p3 = por %p148_p2, %p147_p1 }
   0x8   :  { %p150_p4 = pnand %p149_p3, %p143_p0 }
   0xa   :  { %153 = shalt.err (!%p150_p4)
}
   0xb   :  { %s179_s9 = smov 128   ;;  %s180_s10 = smov 8  }
   0xc   :  { %19 = dma.hbm_to_vmem [thread:$0]  %s220_s0, 1024, %s14_s7, [#allocation3], %s179_s9, %s179_s9, %s180_s10  }
   0xd   :  { %174 = dma.done.wait [#allocation3], 1024  }
   0xe   :  { %175 = vsyncadd [#allocation3], 4294966272  ;;  %v23_v0 = vld [vmem:[#allocation2] sm:$0xff]  ;;  %v25_v1 = vld [vmem:[#allocation2 + $0x10] sm:$0xff]  ;;  %s181_s13 = smov 320   ;;  %s182_s14 = smov 336  }
   0xf   :  { %33 = vrot.lane.b32.xlu0 %v23_v0, %s181_s13  ;;  %41 = vrot.lane.b32.xlu1 %v25_v1, %s182_s14  ;;  %v24_v2 = vld [vmem:[#allocation2 + $0x8] sm:$0xff]  ;;  %v26_v3 = vld [vmem:[#allocation2 + $0x18] sm:$0xff]  ;;  %s183_s15 = smov 328   ;;  %s184_s16 = smov 344   ;;  %v27_v4 = vld [vmem:[#allocation2 + $0x20] sm:$0xff]  ;;  %vm95_vm0 = vcmask 523264  }
  0x10   :  { %v28_v5 = vld [vmem:[#allocation2 + $0x28] sm:$0xff]  ;;  %s185_s17 = smov 352   ;;  %s186_s18 = smov 360   ;;  %v29_v6 = vld [vmem:[#allocation2 + $0x30] sm:$0xff]  ;;  %v30_v7 = vld [vmem:[#allocation2 + $0x38] sm:$0xff] }
  0x11   :  { %s187_s0 = smov 368   ;;  %s188_s19 = smov 376  }
  0x12   :  { %s189_s20 = smov [#allocation5]  }
  0x13   :  { %37 = vrot.lane.b32.xlu0 %v24_v2, %s183_s15  ;;  %45 = vrot.lane.b32.xlu1 %v26_v3, %s184_s16  ;;  %s109_s21 = sshll.u32 %s189_s20, 4  ;;  %s110_s21 = int_to_ptr.vmem [resolvable:$true] %s109_s21 }
  0x14   :  { %s154_s22 = scalar_lea.vmem %s110_s21, 1024  ;;  %p159_p6 = scmp.lt.s32.totalorder %s110_s21, %s110_s21 }
  0x15   :  { %p155_p5 = scmp.ne.s32.totalorder %s110_s21, %s154_s22  ;;  %p160_p7 = scmp.lt.s32.totalorder %s154_s22, %s154_s22 }
  0x17   :  { %49 = vrot.lane.b32.xlu0 %v27_v4, %s185_s17  ;;  %53 = vrot.lane.b32.xlu1 %v28_v5, %s186_s18  ;;  %p161_p8 = por %p160_p7, %p159_p6 }
  0x19   :  { %p162_p9 = pnand %p161_p8, %p155_p5 }
  0x1b   :  { %57 = vrot.lane.b32.xlu0 %v29_v6, %s187_s0  ;;  %61 = vrot.lane.b32.xlu1 %v30_v7, %s188_s19 }
  0x81   :  { %v34_v8 = vpop.permute.xlu0 %33  ;;  %v42_v10 = vpop.permute.xlu1 %41 }
  0x82   :  { %63 = vxpose.xlu0.b32.start [1/8] (short) (narrow) %v34_v8, 64 }
  0x85   :  { %v38_v9 = vpop.permute.xlu0 %37  ;;  %v46_v11 = vpop.permute.xlu1 %45 }
  0x86   :  { %64 = vxpose.xlu0.b32.cont [2/8] (short) (narrow) %v38_v9, 64 }
  0x89   :  { %v50_v12 = vpop.permute.xlu0 %49  ;;  %v54_v13 = vpop.permute.xlu1 %53 }
  0x8a   :  { %65 = vxpose.xlu0.b32.cont [3/8] (short) (narrow) %v42_v10, 64 }
  0x8d   :  { %v58_v14 = vpop.permute.xlu0 %57  ;;  %v62_v15 = vpop.permute.xlu1 %61 }
  0x8e   :  { %66 = vxpose.xlu0.b32.cont [4/8] (short) (narrow) %v46_v11, 64 }
  0x92   :  { %67 = vxpose.xlu0.b32.cont [5/8] (short) (narrow) %v50_v12, 64 }
  0x96   :  { %68 = vxpose.xlu0.b32.cont [6/8] (short) (narrow) %v54_v13, 64 }
  0x9a   :  { %69 = vxpose.xlu0.b32.cont [7/8] (short) (narrow) %v58_v14, 64 }
  0x9e   :  { %70 = vxpose.xlu0.b32.end [8/8] (short) (narrow) %v62_v15, 64 }
  0xfe   :  { %v79_v16 = vpop.trf.xlu0 }
  0xff   :  { %96 = vst.msk [vmem:[#allocation5] sm:$0xff] %vm95_vm0, %v79_v16 }
 0x102   :  { %v80_v17 = vpop.trf.xlu0 }
 0x103   :  { %97 = vst.msk [vmem:[#allocation5 + $0x8] sm:$0xff] %vm95_vm0, %v80_v17 }
 0x106   :  { %v81_v18 = vpop.trf.xlu0 }
 0x107   :  { %98 = vst.msk [vmem:[#allocation5 + $0x10] sm:$0xff] %vm95_vm0, %v81_v18 }
 0x10a   :  { %v82_v19 = vpop.trf.xlu0 }
 0x10b   :  { %99 = vst.msk [vmem:[#allocation5 + $0x18] sm:$0xff] %vm95_vm0, %v82_v19 }
 0x10e   :  { %v83_v20 = vpop.trf.xlu0 }
 0x10f   :  { %100 = vst.msk [vmem:[#allocation5 + $0x20] sm:$0xff] %vm95_vm0, %v83_v20 }
 0x112   :  { %v84_v21 = vpop.trf.xlu0 }
 0x113   :  { %101 = vst.msk [vmem:[#allocation5 + $0x28] sm:$0xff] %vm95_vm0, %v84_v21 }
 0x116   :  { %v85_v22 = vpop.trf.xlu0 }
 0x117   :  { %102 = vst.msk [vmem:[#allocation5 + $0x30] sm:$0xff] %vm95_vm0, %v85_v22 }
 0x11a   :  { %v86_v23 = vpop.trf.xlu0 }
 0x11b   :  { %103 = vst.msk [vmem:[#allocation5 + $0x38] sm:$0xff] %vm95_vm0, %v86_v23 }
 0x11c   :  { %165 = shalt.err (!%p162_p9)
}
 0x11d   :  { %115 = dma.vmem_to_hbm [thread:$0]  %s110_s21, 1024, %s221_s1, [#allocation4], %s179_s9, %s179_s9, %s180_s10  }
 0x11e   :  { %176 = dma.done.wait [#allocation4], 1024  }
 0x11f   :  { %177 = vsyncadd [#allocation4], 4294966272 }
 0x120   :  { %119 = vsyncpa [#allocation3], 1 }
 0x121   :  { %120 = vsyncpa [#allocation4], 1 }

// kernel: transformer_cross_attn_layer.7
= control target key start
LH: loop header
LB: loop body
LE: loop exit
PB: predicated region body
PF: predicated region fallthrough
CT: control target
= control target key end

     0   :  { %8 = vsyncpa [#allocation3], 0  ;;  %s514_s12 = smov [#allocation2]   ;;  %s694_s0 = inlined_call_operand.hbm [shape: f32[127,128], index: 0, kind: input, shape index: {}]   ;;  %s695_s1 = inlined_call_operand.vmem [shape: bf16[128,256], index: 1, kind: input, shape index: {}]   ;;  %s696_s2 = inlined_call_operand.vmem [shape: f32[1,256], index: 2, kind: input, shape index: {}]   ;;  %s697_s3 = inlined_call_operand.vmem [shape: bf16[127,256], index: 3, kind: output, shape index: {}]  }
   0x1   :  { %s14_s13 = sshll.u32 %s514_s12, 4  ;;  %s15_s13 = int_to_ptr.vmem [resolvable:$true] %s14_s13 }
   0x2   :  { %s500_s14 = scalar_lea.vmem %s15_s13, 2048  ;;  %p505_p1 = scmp.lt.s32.totalorder %s15_s13, %s15_s13 }
   0x3   :  { %p501_p0 = scmp.ne.s32.totalorder %s15_s13, %s500_s14  ;;  %p506_p2 = scmp.lt.s32.totalorder %s500_s14, %s500_s14 }
   0x5   :  { %p507_p3 = por %p506_p2, %p505_p1 }
   0x7   :  { %p508_p4 = pnand %p507_p3, %p501_p0 }
   0x9   :  { %511 = shalt.err (!%p508_p4)
}
   0xa   :  { %s515_s15 = smov 128   ;;  %s516_s16 = smov 8  }
   0xb   :  { %20 = dma.hbm_to_vmem [thread:$0]  %s694_s0, 2048, %s15_s13, [#allocation3], %s515_s15, %s515_s15, %s516_s16  }
   0xc   :  { %512 = dma.done.wait [#allocation3], 2048  }
   0xd   :  { %513 = vsyncadd [#allocation3], 4294965248  ;;  %v517_v0 = vmov 0   ;;  %v468_v1 = vld [vmem:[%s695_s1 + $0x74] ss:$8 sps:$4 sm:$0xff]   ;;  %v29_v17 = vld [vmem:[#allocation2] sm:$0xff]  ;;  %v71_v41 = vlaneseq }
   0xe   :  { %193 = vmatprep.mubr.bf16.mxu0 %v517_v0  ;;  %233 = vmatprep.mubr.bf16.mxu1 %v517_v0  ;;  %v470_v2 = vld [vmem:[%s695_s1 + $0x70] ss:$8 sps:$4 sm:$0xff]   ;;  %v471_v3 = vld [vmem:[%s695_s1 + $0x64] ss:$8 sps:$4 sm:$0xff]   ;;  %v473_v4 = vld [vmem:[%s695_s1 + $0x60] ss:$8 sps:$4 sm:$0xff]  }
   0xf   :  { %161 = vmatprep.subr.bf16.mxu0 %v468_v1  ;;  %448 = vmatprep.subr.bf16.mxu1 %v468_v1  ;;  %v474_v5 = vld [vmem:[%s695_s1 + $0x54] ss:$8 sps:$4 sm:$0xff]   ;;  %v476_v6 = vld [vmem:[%s695_s1 + $0x50] ss:$8 sps:$4 sm:$0xff]   ;;  %v477_v7 = vld [vmem:[%s695_s1 + $0x44] ss:$8 sps:$4 sm:$0xff]  }
  0x10   :  { %162 = vmatpush1.bf16.msra.mxu0 %v470_v2  ;;  %456 = vmatpush1.bf16.msra.mxu1 %v470_v2  ;;  %v479_v8 = vld [vmem:[%s695_s1 + $0x40] ss:$8 sps:$4 sm:$0xff]   ;;  %v480_v9 = vld [vmem:[%s695_s1 + $0x34] ss:$8 sps:$4 sm:$0xff]   ;;  %v482_v10 = vld [vmem:[%s695_s1 + $0x30] ss:$8 sps:$4 sm:$0xff]  }
  0x11   :  { %163 = vmatprep.subr.bf16.mxu0 %v471_v3  ;;  %449 = vmatprep.subr.bf16.mxu1 %v471_v3  ;;  %v483_v11 = vld [vmem:[%s695_s1 + $0x24] ss:$8 sps:$4 sm:$0xff]   ;;  %v485_v12 = vld [vmem:[%s695_s1 + $0x20] ss:$8 sps:$4 sm:$0xff]   ;;  %v486_v13 = vld [vmem:[%s695_s1 + $0x14] ss:$8 sps:$4 sm:$0xff]  }
  0x12   :  { %v488_v14 = vld [vmem:[%s695_s1 + $0x10] ss:$8 sps:$4 sm:$0xff]   ;;  %v489_v15 = vld [vmem:[%s695_s1 + $0x4] ss:$8 sps:$4 sm:$0xff]   ;;  %v491_v16 = vld [vmem:[%s695_s1] ss:$8 sps:$4 sm:$0xff]  }
  0x13   :  { %v30_v18 = vld [vmem:[#allocation2 + $0x8] sm:$0xff]  ;;  %v37_v19 = vld [vmem:[#allocation2 + $0x40] sm:$0xff]  ;;  %v31_v23 = vld [vmem:[#allocation2 + $0x10] sm:$0xff]  ;;  %v72_v42 = vshrl.u32 %v71_v41, 7  ;;  %vm385_vm0 = vcmask 1043456   ;;  %vm388_vm2 = vcmask 1047556  }
  0x14   :  { %164 = vmatpush1.bf16.msra.mxu0 %v473_v4  ;;  %457 = vmatpush1.bf16.msra.mxu1 %v473_v4  ;;  %v38_v20 = vld [vmem:[#allocation2 + $0x48] sm:$0xff]  ;;  %v45_v21 = vpack.c.bf16 %v30_v18, %v29_v17  ;;  %v32_v24 = vld [vmem:[#allocation2 + $0x18] sm:$0xff]  ;;  %v39_v25 = vld [vmem:[#allocation2 + $0x50] sm:$0xff]  ;;  %vm386_vm1 = vsmask.f32 3328 }
  0x15   :  { %165 = vmatprep.subr.bf16.mxu0 %v474_v5  ;;  %450 = vmatprep.subr.bf16.mxu1 %v474_v5  ;;  %v49_v22 = vpack.c.bf16 %v38_v20, %v37_v19  ;;  %v40_v26 = vld [vmem:[#allocation2 + $0x58] sm:$0xff]  ;;  %v46_v27 = vpack.c.bf16 %v32_v24, %v31_v23  ;;  %v33_v29 = vld [vmem:[#allocation2 + $0x20] sm:$0xff]  ;;  %v34_v30 = vld [vmem:[#allocation2 + $0x28] sm:$0xff]  ;;  %v73_v43 = vsub.s32 0, %v72_v42  ;;  %v77_v45 = vsub.s32 1, %v72_v42 }
  0x16   :  { %v50_v28 = vpack.c.bf16 %v40_v26, %v39_v25  ;;  %v41_v31 = vld [vmem:[#allocation2 + $0x60] sm:$0xff]  ;;  %v42_v32 = vld [vmem:[#allocation2 + $0x68] sm:$0xff]  ;;  %v47_v33 = vpack.c.bf16 %v34_v30, %v33_v29  ;;  %v35_v35 = vld [vmem:[#allocation2 + $0x30] sm:$0xff]  ;;  %vm389_vm3 = vsmask.f32 7424 }
  0x17   :  { %v51_v34 = vpack.c.bf16 %v42_v32, %v41_v31  ;;  %v36_v36 = vld [vmem:[#allocation2 + $0x38] sm:$0xff]  ;;  %v43_v37 = vld [vmem:[#allocation2 + $0x70] sm:$0xff]  ;;  %v69_v44 = vld [vmem:[%s696_s2] sm:$0x3] }
  0x18   :  { %166 = vmatpush1.bf16.msra.mxu0 %v476_v6  ;;  %458 = vmatpush1.bf16.msra.mxu1 %v476_v6  ;;  %v44_v38 = vld [vmem:[#allocation2 + $0x78] sm:$0x7f]  ;;  %v48_v39 = vpack.c.bf16 %v36_v36, %v35_v35  ;;  %v600_v46 = vrot.slane %v69_v44, %v73_v43  ;;  %v602_v47 = vrot.slane %v69_v44, %v77_v45  ;;  %vm669_vm4 = vmand %vm385_vm0, %vm386_vm1 }
  0x19   :  { %167 = vmatprep.subr.bf16.mxu0 %v477_v7  ;;  %451 = vmatprep.subr.bf16.mxu1 %v477_v7  ;;  %v52_v40 = vpack.c.bf16 %v44_v38, %v43_v37  ;;  %vm390_vm5 = vmand %vm388_vm2, %vm389_vm3 }
  0x1a   :  { %vm391_vm6 = vmor %vm390_vm5, %vm669_vm4 }
  0x1c   :  { %168 = vmatpush1.bf16.msra.mxu0 %v479_v8  ;;  %459 = vmatpush1.bf16.msra.mxu1 %v479_v8 }
  0x1d   :  { %169 = vmatprep.subr.bf16.mxu0 %v480_v9  ;;  %452 = vmatprep.subr.bf16.mxu1 %v480_v9 }
  0x20   :  { %170 = vmatpush1.bf16.msra.mxu0 %v482_v10  ;;  %460 = vmatpush1.bf16.msra.mxu1 %v482_v10 }
  0x21   :  { %171 = vmatprep.subr.bf16.mxu0 %v483_v11  ;;  %453 = vmatprep.subr.bf16.mxu1 %v483_v11 }
  0x24   :  { %172 = vmatpush1.bf16.msra.mxu0 %v485_v12  ;;  %461 = vmatpush1.bf16.msra.mxu1 %v485_v12 }
  0x25   :  { %173 = vmatprep.subr.bf16.mxu0 %v486_v13  ;;  %454 = vmatprep.subr.bf16.mxu1 %v486_v13 }
  0x28   :  { %174 = vmatpush1.bf16.msra.mxu0 %v488_v14  ;;  %462 = vmatpush1.bf16.msra.mxu1 %v488_v14 }
  0x29   :  { %175 = vmatprep.subr.bf16.mxu0 %v489_v15  ;;  %455 = vmatprep.subr.bf16.mxu1 %v489_v15 }
  0x2c   :  { %176 = vmatpush1.bf16.msra.mxu0 %v491_v16  ;;  %463 = vmatpush1.bf16.msra.mxu1 %v491_v16 }
  0x2f   :  { %194 = vmatmul.mubr.bf16.vlgmr.msra.gmra.mxu0 %v45_v21  ;;  %234 = vmatmul.mubr.bf16.vlgmr.msra.gmra.mxu1 %v49_v22 }
  0x30   :  { %203 = vmatprep.mubr.bf16.mxu0 %v517_v0  ;;  %243 = vmatprep.mubr.bf16.mxu1 %v517_v0 }
  0x37   :  { %204 = vmatmul.mubr.bf16.gmra.mxu0 %v46_v27  ;;  %244 = vmatmul.mubr.bf16.gmra.mxu1 %v50_v28 }
  0x38   :  { %213 = vmatprep.mubr.bf16.mxu0 %v517_v0  ;;  %253 = vmatprep.mubr.bf16.mxu1 %v517_v0 }
  0x3f   :  { %214 = vmatmul.mubr.bf16.gmra.mxu0 %v47_v33  ;;  %254 = vmatmul.mubr.bf16.gmra.mxu1 %v51_v34 }
  0x40   :  { %223 = vmatprep.mubr.bf16.mxu0 %v517_v0  ;;  %263 = vmatprep.mubr.bf16.mxu1 %v517_v0 }
  0x47   :  { %224 = vmatmul.mubr.bf16.gmra.mxu0 %v48_v39  ;;  %264 = vmatmul.mubr.bf16.gmra.mxu1 %v52_v40 }
  0xef   :  { %v195_v48 = vpop.f32.mrf.mxu0  ;;  %v235_v49 = vpop.f32.mrf.mxu1 }
  0xf0   :  { %v196_v50 = vadd.f32 %v195_v48, %v600_v46  ;;  %v236_v53 = vadd.f32 %v235_v49, %v600_v46 }
  0xf1   :  { %v197_v51 = vpop.f32.mrf.mxu0  ;;  %v237_v52 = vpop.f32.mrf.mxu1 }
  0xf2   :  { %v198_v54 = vadd.f32 %v197_v51, %v602_v47  ;;  %v238_v55 = vadd.f32 %v237_v52, %v602_v47 }
  0xf3   :  { %v199_v56 = vpop.f32.mrf.mxu0  ;;  %v239_v57 = vpop.f32.mrf.mxu1 }
  0xf4   :  { %v432_v58 = vpack.c.bf16 %v198_v54, %v196_v50  ;;  %v440_v59 = vpack.c.bf16 %v238_v55, %v236_v53  ;;  %v200_v62 = vadd.f32 %v199_v56, %v600_v46  ;;  %v240_v63 = vadd.f32 %v239_v57, %v600_v46 }
  0xf5   :  { %v201_v60 = vpop.f32.mrf.mxu0  ;;  %v241_v61 = vpop.f32.mrf.mxu1 }
  0xf6   :  { %370 = vst [vmem:[%s697_s3] sm:$0xff] %v432_v58  ;;  %378 = vst [vmem:[%s697_s3 + $0x40] sm:$0xff] %v440_v59  ;;  %v202_v0 = vadd.f32 %v201_v60, %v602_v47  ;;  %v242_v1 = vadd.f32 %v241_v61, %v602_v47 }
  0xf7   :  { %v205_v2 = vpop.f32.mrf.mxu0  ;;  %v245_v3 = vpop.f32.mrf.mxu1 }
  0xf8   :  { %v433_v4 = vpack.c.bf16 %v202_v0, %v200_v62  ;;  %v441_v5 = vpack.c.bf16 %v242_v1, %v240_v63  ;;  %v206_v6 = vadd.f32 %v205_v2, %v600_v46  ;;  %v246_v9 = vadd.f32 %v245_v3, %v600_v46  ;;  %v392_v1 = vld [vmem:[%s697_s3 + $0x78] sm:$0xff] }
  0xf9   :  { %v207_v7 = vpop.f32.mrf.mxu0  ;;  %v247_v8 = vpop.f32.mrf.mxu1 }
  0xfa   :  { %371 = vst [vmem:[%s697_s3 + $0x8] sm:$0xff] %v433_v4  ;;  %379 = vst [vmem:[%s697_s3 + $0x48] sm:$0xff] %v441_v5  ;;  %v208_v10 = vadd.f32 %v207_v7, %v602_v47  ;;  %v248_v11 = vadd.f32 %v247_v8, %v602_v47 }
  0xfb   :  { %v209_v12 = vpop.f32.mrf.mxu0  ;;  %v249_v13 = vpop.f32.mrf.mxu1 }
  0xfc   :  { %v434_v14 = vpack.c.bf16 %v208_v10, %v206_v6  ;;  %v442_v15 = vpack.c.bf16 %v248_v11, %v246_v9  ;;  %v210_v18 = vadd.f32 %v209_v12, %v600_v46  ;;  %v250_v19 = vadd.f32 %v249_v13, %v600_v46 }
  0xfd   :  { %v211_v16 = vpop.f32.mrf.mxu0  ;;  %v251_v17 = vpop.f32.mrf.mxu1 }
  0xfe   :  { %372 = vst [vmem:[%s697_s3 + $0x10] sm:$0xff] %v434_v14  ;;  %380 = vst [vmem:[%s697_s3 + $0x50] sm:$0xff] %v442_v15  ;;  %v212_v20 = vadd.f32 %v211_v16, %v602_v47  ;;  %v252_v21 = vadd.f32 %v251_v17, %v602_v47 }
  0xff   :  { %v215_v22 = vpop.f32.mrf.mxu0  ;;  %v255_v23 = vpop.f32.mrf.mxu1 }
 0x100   :  { %v435_v24 = vpack.c.bf16 %v212_v20, %v210_v18  ;;  %v443_v25 = vpack.c.bf16 %v252_v21, %v250_v19  ;;  %v216_v26 = vadd.f32 %v215_v22, %v600_v46  ;;  %v256_v29 = vadd.f32 %v255_v23, %v600_v46 }
 0x101   :  { %v217_v27 = vpop.f32.mrf.mxu0  ;;  %v257_v28 = vpop.f32.mrf.mxu1 }
 0x102   :  { %373 = vst [vmem:[%s697_s3 + $0x18] sm:$0xff] %v435_v24  ;;  %381 = vst [vmem:[%s697_s3 + $0x58] sm:$0xff] %v443_v25  ;;  %v218_v30 = vadd.f32 %v217_v27, %v602_v47  ;;  %v258_v31 = vadd.f32 %v257_v28, %v602_v47 }
 0x103   :  { %v219_v32 = vpop.f32.mrf.mxu0  ;;  %v259_v33 = vpop.f32.mrf.mxu1 }
 0x104   :  { %v436_v34 = vpack.c.bf16 %v218_v30, %v216_v26  ;;  %v444_v35 = vpack.c.bf16 %v258_v31, %v256_v29  ;;  %v220_v38 = vadd.f32 %v219_v32, %v600_v46  ;;  %v260_v39 = vadd.f32 %v259_v33, %v600_v46 }
 0x105   :  { %v221_v36 = vpop.f32.mrf.mxu0  ;;  %v261_v37 = vpop.f32.mrf.mxu1 }
 0x106   :  { %374 = vst [vmem:[%s697_s3 + $0x20] sm:$0xff] %v436_v34  ;;  %382 = vst [vmem:[%s697_s3 + $0x60] sm:$0xff] %v444_v35  ;;  %v222_v40 = vadd.f32 %v221_v36, %v602_v47  ;;  %v262_v41 = vadd.f32 %v261_v37, %v602_v47 }
 0x107   :  { %v225_v42 = vpop.f32.mrf.mxu0  ;;  %v265_v43 = vpop.f32.mrf.mxu1 }
 0x108   :  { %v437_v44 = vpack.c.bf16 %v222_v40, %v220_v38  ;;  %v445_v45 = vpack.c.bf16 %v262_v41, %v260_v39  ;;  %v226_v48 = vadd.f32 %v225_v42, %v600_v46  ;;  %v266_v51 = vadd.f32 %v265_v43, %v600_v46 }
 0x109   :  { %v227_v49 = vpop.f32.mrf.mxu0  ;;  %v267_v50 = vpop.f32.mrf.mxu1 }
 0x10a   :  { %375 = vst [vmem:[%s697_s3 + $0x28] sm:$0xff] %v437_v44  ;;  %383 = vst [vmem:[%s697_s3 + $0x68] sm:$0xff] %v445_v45  ;;  %v228_v52 = vadd.f32 %v227_v49, %v602_v47  ;;  %v268_v53 = vadd.f32 %v267_v50, %v602_v47 }
 0x10b   :  { %v229_v54 = vpop.f32.mrf.mxu0  ;;  %v269_v55 = vpop.f32.mrf.mxu1 }
 0x10c   :  { %v438_v57 = vpack.c.bf16 %v228_v52, %v226_v48  ;;  %v446_v58 = vpack.c.bf16 %v268_v53, %v266_v51  ;;  %v230_v61 = vadd.f32 %v229_v54, %v600_v46  ;;  %v270_v62 = vadd.f32 %v269_v55, %v600_v46 }
 0x10d   :  { %v231_v59 = vpop.f32.mrf.mxu0  ;;  %v271_v60 = vpop.f32.mrf.mxu1 }
 0x10e   :  { %376 = vst [vmem:[%s697_s3 + $0x30] sm:$0xff] %v438_v57  ;;  %384 = vst [vmem:[%s697_s3 + $0x70] sm:$0xff] %v446_v58  ;;  %v232_v63 = vadd.f32 %v231_v59, %v602_v47  ;;  %v272_v0 = vadd.f32 %v271_v60, %v602_v47 }
 0x110   :  { %v439_v2 = vpack.c.bf16 %v232_v63, %v230_v61  ;;  %v447_v3 = vpack.c.bf16 %v272_v0, %v270_v62 }
 0x112   :  { %377 = vst [vmem:[%s697_s3 + $0x38] sm:$0xff] %v439_v2  ;;  %v393_v4 = vsel %vm391_vm6, %v447_v3, %v392_v1 }
 0x113   :  { %394 = vst [vmem:[%s697_s3 + $0x78] sm:$0xff] %v393_v4 }
 0x114   :  { %399 = vsyncpa [#allocation3], 1 }

// kernel: transformer_cross_attn_layer.5
= control target key start
LH: loop header
LB: loop body
LE: loop exit
PB: predicated region body
PF: predicated region fallthrough
CT: control target
= control target key end

     0   :  { %s1554_s0 = inlined_call_operand.vmem [shape: f32[128,128], index: 0, kind: input, shape index: {}]   ;;  %s1555_s3 = inlined_call_operand.vmem [shape: bf16[128,384], index: 3, kind: input, shape index: {}]   ;;  %s1556_s1 = inlined_call_operand.vmem [shape: f32[1,128], index: 1, kind: input, shape index: {}]   ;;  %s1557_s2 = inlined_call_operand.vmem [shape: f32[1,128], index: 2, kind: input, shape index: {}]   ;;  %s1558_s4 = inlined_call_operand.vmem [shape: f32[1,384], index: 4, kind: input, shape index: {}]   ;;  %s1559_s5 = inlined_call_operand.vmem [shape: bf16[128,128], index: 5, kind: output, shape index: {0}]   ;;  %s1560_s6 = inlined_call_operand.vmem [shape: bf16[128,256], index: 6, kind: output, shape index: {1}]  }
   0x1   :  { %v23_v0 = vld [vmem:[%s1554_s0] sm:$0xff]  ;;  %v25_v1 = vld [vmem:[%s1554_s0 + $0x10] sm:$0xff]  ;;  %v24_v2 = vld [vmem:[%s1554_s0 + $0x8] sm:$0xff] }
   0x2   :  { %39 = vadd.xlane.f32.xlu0 %v23_v0  ;;  %43 = vadd.xlane.f32.xlu1 %v25_v1  ;;  %v26_v3 = vld [vmem:[%s1554_s0 + $0x18] sm:$0xff]  ;;  %v27_v4 = vld [vmem:[%s1554_s0 + $0x20] sm:$0xff]  ;;  %v28_v5 = vld [vmem:[%s1554_s0 + $0x28] sm:$0xff] }
   0x3   :  { %v29_v6 = vld [vmem:[%s1554_s0 + $0x30] sm:$0xff]  ;;  %v30_v7 = vld [vmem:[%s1554_s0 + $0x38] sm:$0xff]  ;;  %v1170_v8 = vld [vmem:[%s1554_s0 + $0x40] sm:$0xff] }
   0x4   :  { %v1175_v9 = vld [vmem:[%s1554_s0 + $0x48] sm:$0xff]  ;;  %v1182_v10 = vld [vmem:[%s1554_s0 + $0x50] sm:$0xff]  ;;  %v1187_v11 = vld [vmem:[%s1554_s0 + $0x58] sm:$0xff] }
   0x5   :  { %v1194_v12 = vld [vmem:[%s1554_s0 + $0x60] sm:$0xff]  ;;  %v1199_v13 = vld [vmem:[%s1554_s0 + $0x68] sm:$0xff]  ;;  %v1206_v14 = vld [vmem:[%s1554_s0 + $0x70] sm:$0xff] }
   0x6   :  { %41 = vadd.xlane.f32.xlu0 %v24_v2  ;;  %45 = vadd.xlane.f32.xlu1 %v26_v3  ;;  %v1211_v15 = vld [vmem:[%s1554_s0 + $0x78] sm:$0xff]  ;;  %v1045_v17 = vld [vmem:[%s1555_s3 + $0xa8] ss:$12 sps:$4 sm:$0xff]  }
   0x7   :  { %v1043_v16 = vld [vmem:[%s1555_s3 + $0xac] ss:$12 sps:$4 sm:$0xff]   ;;  %v1046_v53 = vld [vmem:[%s1555_s3 + $0x94] ss:$12 sps:$4 sm:$0xff]   ;;  %v1048_v54 = vld [vmem:[%s1555_s3 + $0xb0] ss:$12 sps:$4 sm:$0xff]  }
   0x8   :  { %447 = vmatprep.subr.bf16.mxu0 %v1043_v16  ;;  %v1049_v55 = vld [vmem:[%s1555_s3 + $0x90] ss:$12 sps:$4 sm:$0xff]   ;;  %1010 = vmatprep.subr.bf16.mxu1 %v1048_v54  ;;  %v1056_v16 = vld [vmem:[%s1555_s3 + $0x80] ss:$12 sps:$4 sm:$0xff]  }
   0x9   :  { %448 = vmatpush1.bf16.msra.mxu0 %v1045_v17  ;;  %1011 = vmatpush3.bf16.msra.mxu1 %v1048_v54 }
   0xa   :  { %47 = vadd.xlane.f32.xlu0 %v27_v4  ;;  %49 = vadd.xlane.f32.xlu1 %v28_v5 }
   0xb   :  { %449 = vmatprep.subr.bf16.mxu0 %v1046_v53 }
   0xd   :  { %450 = vmatpush1.bf16.msra.mxu0 %v1049_v55 }
   0xe   :  { %51 = vadd.xlane.f32.xlu0 %v29_v6  ;;  %53 = vadd.xlane.f32.xlu1 %v30_v7 }
  0x12   :  { %55 = vadd.xlane.f32.xlu0 %v1170_v8  ;;  %57 = vadd.xlane.f32.xlu1 %v1175_v9 }
  0x16   :  { %59 = vadd.xlane.f32.xlu0 %v1182_v10  ;;  %61 = vadd.xlane.f32.xlu1 %v1187_v11 }
  0x1a   :  { %63 = vadd.xlane.f32.xlu0 %v1194_v12  ;;  %65 = vadd.xlane.f32.xlu1 %v1199_v13 }
  0x1e   :  { %67 = vadd.xlane.f32.xlu0 %v1206_v14  ;;  %69 = vadd.xlane.f32.xlu1 %v1211_v15 }
  0x8b   :  { %v40_v18 = vpop.xlane.xlu0 %39  ;;  %v44_v19 = vpop.xlane.xlu1 %43 }
  0x8c   :  { %v72_v20 = vmul.f32 0.0078125, %v40_v18  ;;  %v74_v21 = vmul.f32 0.0078125, %v44_v19 }
  0x8e   :  { %v1221_v22 = vsub.f32 %v23_v0, %v72_v20  ;;  %v1223_v23 = vsub.f32 %v25_v1, %v74_v21  ;;  %v1050_v0 = vld [vmem:[%s1555_s3 + $0x7c] ss:$12 sps:$4 sm:$0xff]   ;;  %v1052_v1 = vld [vmem:[%s1555_s3 + $0x98] ss:$12 sps:$4 sm:$0xff]   ;;  %v1057_v20 = vld [vmem:[%s1555_s3 + $0x60] ss:$12 sps:$4 sm:$0xff]  }
  0x8f   :  { %v42_v24 = vpop.xlane.xlu0 %41  ;;  %v46_v25 = vpop.xlane.xlu1 %45  ;;  %451 = vmatprep.subr.bf16.mxu0 %v1050_v0  ;;  %1012 = vmatprep.subr.bf16.mxu1 %v1052_v1 }
  0x90   :  { %v73_v26 = vmul.f32 0.0078125, %v42_v24  ;;  %v104_v27 = vmul.f32 %v1221_v22, %v1221_v22  ;;  %v75_v28 = vmul.f32 0.0078125, %v46_v25  ;;  %v106_v31 = vmul.f32 %v1223_v23, %v1223_v23  ;;  %1013 = vmatpush3.bf16.msra.mxu1 %v1052_v1 }
  0x91   :  { %1014 = vmatprep.subr.bf16.mxu1 %v1056_v16 }
  0x92   :  { %v1227_v29 = vsub.f32 %v24_v2, %v73_v26  ;;  %120 = vadd.xlane.f32.xlu0 %v104_v27  ;;  %v1229_v30 = vsub.f32 %v26_v3, %v75_v28  ;;  %v1060_v27 = vld [vmem:[%s1555_s3 + $0x68] ss:$12 sps:$4 sm:$0xff]  }
  0x93   :  { %v48_v32 = vpop.xlane.xlu0 %47  ;;  %v50_v33 = vpop.xlane.xlu1 %49 }
  0x94   :  { %v76_v34 = vmul.f32 0.0078125, %v48_v32  ;;  %v105_v35 = vmul.f32 %v1227_v29, %v1227_v29  ;;  %v77_v36 = vmul.f32 0.0078125, %v50_v33  ;;  %v107_v39 = vmul.f32 %v1229_v30, %v1229_v30  ;;  %1015 = vmatpush3.bf16.msra.mxu1 %v1056_v16  ;;  %v1061_v33 = vld [vmem:[%s1555_s3 + $0x48] ss:$12 sps:$4 sm:$0xff]  }
  0x95   :  { %1016 = vmatprep.subr.bf16.mxu1 %v1060_v27 }
  0x96   :  { %v1235_v37 = vsub.f32 %v27_v4, %v76_v34  ;;  %124 = vadd.xlane.f32.xlu0 %v106_v31  ;;  %122 = vadd.xlane.f32.xlu1 %v105_v35  ;;  %v1237_v38 = vsub.f32 %v28_v5, %v77_v36  ;;  %v1053_v5 = vld [vmem:[%s1555_s3 + $0x78] ss:$12 sps:$4 sm:$0xff]   ;;  %v1065_v36 = vld [vmem:[%s1555_s3 + $0x30] ss:$12 sps:$4 sm:$0xff]  }
  0x97   :  { %v52_v40 = vpop.xlane.xlu0 %51  ;;  %v54_v41 = vpop.xlane.xlu1 %53  ;;  %452 = vmatpush1.bf16.msra.mxu0 %v1053_v5 }
  0x98   :  { %v78_v42 = vmul.f32 0.0078125, %v52_v40  ;;  %v108_v43 = vmul.f32 %v1235_v37, %v1235_v37  ;;  %v79_v44 = vmul.f32 0.0078125, %v54_v41  ;;  %v109_v47 = vmul.f32 %v1237_v38, %v1237_v38  ;;  %1017 = vmatpush3.bf16.msra.mxu1 %v1060_v27  ;;  %v1068_v40 = vld [vmem:[%s1555_s3 + $0x38] ss:$12 sps:$4 sm:$0xff]  }
  0x99   :  { %v1069_v41 = vld [vmem:[%s1555_s3 + $0x18] ss:$12 sps:$4 sm:$0xff]  }
  0x9a   :  { %v1243_v45 = vsub.f32 %v29_v6, %v78_v42  ;;  %126 = vadd.xlane.f32.xlu1 %v107_v39  ;;  %128 = vadd.xlane.f32.xlu0 %v108_v43  ;;  %v1245_v46 = vsub.f32 %v30_v7, %v79_v44  ;;  %v1066_v39 = vld [vmem:[%s1555_s3 + $0x1c] ss:$12 sps:$4 sm:$0xff]   ;;  %v1070_v42 = vld [vmem:[%s1555_s3 + $0x4] ss:$12 sps:$4 sm:$0xff]   ;;  %v1072_v43 = vld [vmem:[%s1555_s3 + $0x20] ss:$12 sps:$4 sm:$0xff]  }
  0x9b   :  { %v56_v48 = vpop.xlane.xlu0 %55  ;;  %v58_v49 = vpop.xlane.xlu1 %57  ;;  %v1073_v44 = vld [vmem:[%s1555_s3] ss:$12 sps:$4 sm:$0xff]  }
  0x9c   :  { %v80_v50 = vmul.f32 0.0078125, %v56_v48  ;;  %v110_v51 = vmul.f32 %v1243_v45, %v1243_v45  ;;  %v81_v52 = vmul.f32 0.0078125, %v58_v49  ;;  %v111_v58 = vmul.f32 %v1245_v46, %v1245_v46 }
  0x9d   :  { %v1107_v48 = vmov 0  }
  0x9e   :  { %v1261_v56 = vsub.f32 %v1170_v8, %v80_v50  ;;  %130 = vadd.xlane.f32.xlu1 %v109_v47  ;;  %132 = vadd.xlane.f32.xlu0 %v110_v51  ;;  %v1264_v57 = vsub.f32 %v1175_v9, %v81_v52  ;;  %v1074_v47 = vld [vmem:[%s1555_s3 + $0x8] ss:$12 sps:$4 sm:$0xff]  }
  0x9f   :  { %v60_v59 = vpop.xlane.xlu0 %59  ;;  %v62_v60 = vpop.xlane.xlu1 %61  ;;  %479 = vmatprep.mubr.bf16.mxu0 %v1107_v48 }
  0xa0   :  { %v82_v61 = vmul.f32 0.0078125, %v60_v59  ;;  %v112_v62 = vmul.f32 %v1261_v56, %v1261_v56  ;;  %v83_v63 = vmul.f32 0.0078125, %v62_v60  ;;  %v113_v4 = vmul.f32 %v1264_v57, %v1264_v57 }
  0xa2   :  { %v1277_v2 = vsub.f32 %v1182_v10, %v82_v61  ;;  %134 = vadd.xlane.f32.xlu1 %v111_v58  ;;  %136 = vadd.xlane.f32.xlu0 %v112_v62  ;;  %v1280_v3 = vsub.f32 %v1187_v11, %v83_v63  ;;  %v1054_v11 = vld [vmem:[%s1555_s3 + $0x64] ss:$12 sps:$4 sm:$0xff]  }
  0xa3   :  { %v64_v6 = vpop.xlane.xlu0 %63  ;;  %v66_v7 = vpop.xlane.xlu1 %65  ;;  %453 = vmatprep.subr.bf16.mxu0 %v1054_v11 }
  0xa4   :  { %v84_v8 = vmul.f32 0.0078125, %v64_v6  ;;  %v114_v9 = vmul.f32 %v1277_v2, %v1277_v2  ;;  %v85_v10 = vmul.f32 0.0078125, %v66_v7  ;;  %v115_v19 = vmul.f32 %v1280_v3, %v1280_v3  ;;  %454 = vmatpush1.bf16.msra.mxu0 %v1057_v20 }
  0xa6   :  { %v1296_v17 = vsub.f32 %v1194_v12, %v84_v8  ;;  %138 = vadd.xlane.f32.xlu1 %v113_v4  ;;  %140 = vadd.xlane.f32.xlu0 %v114_v9  ;;  %v1299_v18 = vsub.f32 %v1199_v13, %v85_v10  ;;  %v1058_v13 = vld [vmem:[%s1555_s3 + $0x4c] ss:$12 sps:$4 sm:$0xff]  }
  0xa7   :  { %v68_v21 = vpop.xlane.xlu0 %67  ;;  %v70_v24 = vpop.xlane.xlu1 %69  ;;  %455 = vmatprep.subr.bf16.mxu0 %v1058_v13 }
  0xa8   :  { %v86_v25 = vmul.f32 0.0078125, %v68_v21  ;;  %v116_v12 = vmul.f32 %v1296_v17, %v1296_v17  ;;  %v87_v26 = vmul.f32 0.0078125, %v70_v24  ;;  %v117_v32 = vmul.f32 %v1299_v18, %v1299_v18  ;;  %456 = vmatpush1.bf16.msra.mxu0 %v1061_v33 }
  0xaa   :  { %v1315_v28 = vsub.f32 %v1206_v14, %v86_v25  ;;  %142 = vadd.xlane.f32.xlu1 %v115_v19  ;;  %144 = vadd.xlane.f32.xlu0 %v116_v12  ;;  %v1318_v31 = vsub.f32 %v1211_v15, %v87_v26  ;;  %v1062_v14 = vld [vmem:[%s1555_s3 + $0x34] ss:$12 sps:$4 sm:$0xff]   ;;  %v1064_v15 = vld [vmem:[%s1555_s3 + $0x50] ss:$12 sps:$4 sm:$0xff]  }
  0xab   :  { %457 = vmatprep.subr.bf16.mxu0 %v1062_v14  ;;  %1018 = vmatprep.subr.bf16.mxu1 %v1064_v15  ;;  %v1364_v12 = vld [vmem:[%s1556_s1] ss:$0 sm:$0xff] }
  0xac   :  { %v118_v34 = vmul.f32 %v1315_v28, %v1315_v28  ;;  %v119_v35 = vmul.f32 %v1318_v31, %v1318_v31  ;;  %458 = vmatpush1.bf16.msra.mxu0 %v1065_v36  ;;  %1019 = vmatpush3.bf16.msra.mxu1 %v1064_v15 }
  0xad   :  { %459 = vmatprep.subr.bf16.mxu0 %v1066_v39  ;;  %1020 = vmatprep.subr.bf16.mxu1 %v1068_v40 }
  0xae   :  { %146 = vadd.xlane.f32.xlu1 %v117_v32  ;;  %148 = vadd.xlane.f32.xlu0 %v118_v34 }
  0xb0   :  { %460 = vmatpush1.bf16.msra.mxu0 %v1069_v41  ;;  %1021 = vmatpush3.bf16.msra.mxu1 %v1068_v40 }
  0xb1   :  { %461 = vmatprep.subr.bf16.mxu0 %v1070_v42  ;;  %1022 = vmatprep.subr.bf16.mxu1 %v1072_v43 }
  0xb2   :  { %150 = vadd.xlane.f32.xlu1 %v119_v35 }
  0xb4   :  { %462 = vmatpush1.bf16.msra.mxu0 %v1073_v44  ;;  %1023 = vmatpush3.bf16.msra.mxu1 %v1072_v43 }
  0xb5   :  { %1024 = vmatprep.subr.bf16.mxu1 %v1074_v47 }
  0xb8   :  { %1025 = vmatpush3.bf16.msra.mxu1 %v1074_v47 }
 0x11b   :  { %v121_v49 = vpop.xlane.xlu0 %120 }
 0x11c   :  { %v152_v50 = vmul.f32 0.0078125, %v121_v49 }
 0x11e   :  { %v168_v51 = vadd.f32 1e-05, %v152_v50 }
 0x11f   :  { %v123_v52 = vpop.xlane.xlu1 %122  ;;  %v125_v53 = vpop.xlane.xlu0 %124 }
 0x120   :  { %1075 = vrsqrt.f32 %v168_v51  ;;  %v153_v54 = vmul.f32 0.0078125, %v123_v52  ;;  %v154_v55 = vmul.f32 0.0078125, %v125_v53 }
 0x122   :  { %v169_v58 = vadd.f32 1e-05, %v153_v54  ;;  %v170_v59 = vadd.f32 1e-05, %v154_v55 }
 0x123   :  { %v127_v60 = vpop.xlane.xlu1 %126  ;;  %v129_v61 = vpop.xlane.xlu0 %128 }
 0x124   :  { %1077 = vrsqrt.f32 %v169_v58  ;;  %v155_v62 = vmul.f32 0.0078125, %v127_v60  ;;  %v156_v63 = vmul.f32 0.0078125, %v129_v61 }
 0x125   :  { %1079 = vrsqrt.f32 %v170_v59 }
 0x126   :  { %v171_v0 = vadd.f32 1e-05, %v155_v62  ;;  %v172_v1 = vadd.f32 1e-05, %v156_v63 }
 0x127   :  { %v131_v4 = vpop.xlane.xlu1 %130  ;;  %v133_v5 = vpop.xlane.xlu0 %132 }
 0x128   :  { %1081 = vrsqrt.f32 %v171_v0  ;;  %v157_v6 = vmul.f32 0.0078125, %v131_v4  ;;  %v158_v7 = vmul.f32 0.0078125, %v133_v5 }
 0x129   :  { %1083 = vrsqrt.f32 %v172_v1 }
 0x12a   :  { %v173_v8 = vadd.f32 1e-05, %v157_v6  ;;  %v174_v9 = vadd.f32 1e-05, %v158_v7 }
 0x12b   :  { %v135_v10 = vpop.xlane.xlu1 %134  ;;  %v137_v11 = vpop.xlane.xlu0 %136 }
 0x12c   :  { %1085 = vrsqrt.f32 %v173_v8  ;;  %v159_v16 = vmul.f32 0.0078125, %v135_v10  ;;  %v160_v19 = vmul.f32 0.0078125, %v137_v11 }
 0x12d   :  { %v1076_v20 = vpop.eup %1075  ;;  %1087 = vrsqrt.f32 %v174_v9 }
 0x12e   :  { %v175_v21 = vadd.f32 1e-05, %v159_v16  ;;  %v176_v24 = vadd.f32 1e-05, %v160_v19  ;;  %v200_v25 = vmul.f32 %v1076_v20, %v1221_v22  ;;  %v1371_v22 = vld [vmem:[%s1557_s2] ss:$0 sm:$0xff] }
 0x12f   :  { %v139_v26 = vpop.xlane.xlu1 %138  ;;  %v141_v13 = vpop.xlane.xlu0 %140 }
 0x130   :  { %1089 = vrsqrt.f32 %v175_v21  ;;  %v161_v27 = vmul.f32 0.0078125, %v139_v26  ;;  %v162_v32 = vmul.f32 0.0078125, %v141_v13  ;;  %v223_v34 = vmul.f32 %v1364_v12, %v200_v25 }
 0x131   :  { %v1078_v33 = vpop.eup %1077  ;;  %1091 = vrsqrt.f32 %v176_v24 }
 0x132   :  { %v1080_v14 = vpop.eup %1079  ;;  %v177_v15 = vadd.f32 1e-05, %v161_v27  ;;  %v178_v35 = vadd.f32 1e-05, %v162_v32  ;;  %v201_v36 = vmul.f32 %v1078_v33, %v1227_v29  ;;  %v246_v49 = vadd.f32 %v1371_v22, %v223_v34 }
 0x133   :  { %v143_v39 = vpop.xlane.xlu1 %142  ;;  %v145_v40 = vpop.xlane.xlu0 %144  ;;  %v202_v41 = vmul.f32 %v1080_v14, %v1223_v23 }
 0x134   :  { %1093 = vrsqrt.f32 %v177_v15  ;;  %v163_v42 = vmul.f32 0.0078125, %v143_v39  ;;  %v164_v43 = vmul.f32 0.0078125, %v145_v40  ;;  %v224_v44 = vmul.f32 %v1364_v12, %v201_v36 }
 0x135   :  { %v1082_v47 = vpop.eup %1081  ;;  %1095 = vrsqrt.f32 %v178_v35  ;;  %v225_v23 = vmul.f32 %v1364_v12, %v202_v41 }
 0x136   :  { %v1084_v50 = vpop.eup %1083  ;;  %v179_v29 = vadd.f32 1e-05, %v163_v42  ;;  %v180_v51 = vadd.f32 1e-05, %v164_v43  ;;  %v247_v52 = vadd.f32 %v1371_v22, %v224_v44  ;;  %v203_v53 = vmul.f32 %v1082_v47, %v1229_v30 }
 0x137   :  { %v147_v54 = vpop.xlane.xlu1 %146  ;;  %v149_v55 = vpop.xlane.xlu0 %148  ;;  %v204_v58 = vmul.f32 %v1084_v50, %v1235_v37  ;;  %v248_v37 = vadd.f32 %v1371_v22, %v225_v23 }
 0x138   :  { %1097 = vrsqrt.f32 %v179_v29  ;;  %v165_v59 = vmul.f32 0.0078125, %v147_v54  ;;  %v166_v60 = vmul.f32 0.0078125, %v149_v55  ;;  %v262_v61 = vpack.c.bf16 %v247_v52, %v246_v49 }
 0x139   :  { %v1086_v62 = vpop.eup %1085  ;;  %1099 = vrsqrt.f32 %v180_v51  ;;  %v226_v63 = vmul.f32 %v1364_v12, %v203_v53  ;;  %v227_v5 = vmul.f32 %v1364_v12, %v204_v58 }
 0x13a   :  { %v1088_v0 = vpop.eup %1087  ;;  %v181_v1 = vadd.f32 1e-05, %v165_v59  ;;  %v182_v4 = vadd.f32 1e-05, %v166_v60  ;;  %480 = vmatmul.mubr.bf16.vlgmr.msra.gmra.mxu0 %v262_v61  ;;  %1026 = vmatprep.mubr.bf16.mxu1 %v262_v61  ;;  %v205_v30 = vmul.f32 %v1086_v62, %v1237_v38 }
 0x13b   :  { %v151_v6 = vpop.xlane.xlu1 %150  ;;  %v249_v7 = vadd.f32 %v1371_v22, %v226_v63  ;;  %489 = vmatprep.mubr.bf16.mxu0 %v1107_v48  ;;  %v206_v8 = vmul.f32 %v1088_v0, %v1243_v45  ;;  %v250_v21 = vadd.f32 %v1371_v22, %v227_v5 }
 0x13c   :  { %1101 = vrsqrt.f32 %v181_v1  ;;  %v167_v9 = vmul.f32 0.0078125, %v151_v6  ;;  %v228_v10 = vmul.f32 %v1364_v12, %v205_v30 }
 0x13d   :  { %v1090_v11 = vpop.eup %1089  ;;  %1103 = vrsqrt.f32 %v182_v4  ;;  %v263_v16 = vpack.c.bf16 %v249_v7, %v248_v37  ;;  %v229_v38 = vmul.f32 %v1364_v12, %v206_v8 }
 0x13e   :  { %v1092_v19 = vpop.eup %1091  ;;  %v183_v20 = vadd.f32 1e-05, %v167_v9  ;;  %v251_v24 = vadd.f32 %v1371_v22, %v228_v10  ;;  %v207_v25 = vmul.f32 %v1090_v11, %v1245_v46 }
 0x13f   :  { %1027 = vmatmul.mubr.bf16.vlgmr.msra.gmra.mxu1 %v263_v16  ;;  %v208_v45 = vmul.f32 %v1092_v19, %v1261_v56  ;;  %v252_v32 = vadd.f32 %v1371_v22, %v229_v38 }
 0x140   :  { %1105 = vrsqrt.f32 %v183_v20  ;;  %v264_v26 = vpack.c.bf16 %v251_v24, %v250_v21  ;;  %v230_v13 = vmul.f32 %v1364_v12, %v207_v25 }
 0x141   :  { %v1094_v27 = vpop.eup %1093  ;;  %v231_v15 = vmul.f32 %v1364_v12, %v208_v45 }
 0x142   :  { %v1096_v33 = vpop.eup %1095  ;;  %490 = vmatmul.mubr.bf16.gmra.mxu0 %v263_v16  ;;  %1030 = vmatprep.mubr.bf16.mxu1 %v264_v26  ;;  %v253_v34 = vadd.f32 %v1371_v22, %v230_v13  ;;  %v209_v14 = vmul.f32 %v1094_v27, %v1264_v57 }
 0x143   :  { %499 = vmatprep.mubr.bf16.mxu0 %v1107_v48  ;;  %v210_v46 = vmul.f32 %v1096_v33, %v1277_v2  ;;  %v254_v41 = vadd.f32 %v1371_v22, %v231_v15 }
 0x144   :  { %v265_v56 = vpack.c.bf16 %v253_v34, %v252_v32  ;;  %v232_v35 = vmul.f32 %v1364_v12, %v209_v14 }
 0x145   :  { %v1098_v36 = vpop.eup %1097  ;;  %v233_v39 = vmul.f32 %v1364_v12, %v210_v46 }
 0x146   :  { %v1100_v40 = vpop.eup %1099  ;;  %v255_v42 = vadd.f32 %v1371_v22, %v232_v35  ;;  %v211_v43 = vmul.f32 %v1098_v36, %v1280_v3 }
 0x147   :  { %1031 = vmatmul.mubr.bf16.gmra.mxu1 %v265_v56  ;;  %v212_v57 = vmul.f32 %v1100_v40, %v1296_v17  ;;  %v256_v49 = vadd.f32 %v1371_v22, %v233_v39 }
 0x148   :  { %v266_v44 = vpack.c.bf16 %v255_v42, %v254_v41  ;;  %v234_v47 = vmul.f32 %v1364_v12, %v211_v43 }
 0x149   :  { %v1102_v2 = vpop.eup %1101  ;;  %v235_v52 = vmul.f32 %v1364_v12, %v212_v57 }
 0x14a   :  { %v1104_v50 = vpop.eup %1103  ;;  %500 = vmatmul.mubr.bf16.gmra.mxu0 %v264_v26  ;;  %1034 = vmatprep.mubr.bf16.mxu1 %v266_v44  ;;  %v257_v29 = vadd.f32 %v1371_v22, %v234_v47  ;;  %v213_v51 = vmul.f32 %v1102_v2, %v1299_v18 }
 0x14b   :  { %509 = vmatprep.mubr.bf16.mxu0 %v1107_v48  ;;  %v214_v3 = vmul.f32 %v1104_v50, %v1315_v28  ;;  %v258_v55 = vadd.f32 %v1371_v22, %v235_v52 }
 0x14c   :  { %v267_v17 = vpack.c.bf16 %v257_v29, %v256_v49  ;;  %v236_v53 = vmul.f32 %v1364_v12, %v213_v51 }
 0x14d   :  { %v1106_v54 = vpop.eup %1105  ;;  %v237_v59 = vmul.f32 %v1364_v12, %v214_v3 }
 0x14e   :  { %v259_v23 = vadd.f32 %v1371_v22, %v236_v53  ;;  %v215_v58 = vmul.f32 %v1106_v54, %v1318_v31  ;;  %v304_v31 = vlaneseq }
 0x14f   :  { %1035 = vmatmul.mubr.bf16.gmra.mxu1 %v267_v17  ;;  %v260_v28 = vadd.f32 %v1371_v22, %v237_v59 }
 0x150   :  { %v268_v18 = vpack.c.bf16 %v259_v23, %v258_v55  ;;  %v238_v60 = vmul.f32 %v1364_v12, %v215_v58  ;;  %v305_v12 = vshrl.u32 %v304_v31, 7 }
 0x152   :  { %510 = vmatmul.mubr.bf16.gmra.mxu0 %v265_v56  ;;  %1038 = vmatprep.mubr.bf16.mxu1 %v268_v18  ;;  %v261_v61 = vadd.f32 %v1371_v22, %v238_v60  ;;  %v306_v63 = vsub.s32 0, %v305_v12  ;;  %v302_v22 = vld [vmem:[%s1558_s4] sm:$0x7]  ;;  %v310_v1 = vsub.s32 1, %v305_v12  ;;  %v314_v5 = vsub.s32 2, %v305_v12 }
 0x153   :  { %519 = vmatprep.mubr.bf16.mxu0 %v1107_v48 }
 0x154   :  { %v269_v62 = vpack.c.bf16 %v261_v61, %v260_v28  ;;  %v1428_v4 = vrot.slane %v302_v22, %v306_v63  ;;  %v1430_v6 = vrot.slane %v302_v22, %v310_v1  ;;  %v1434_v9 = vrot.slane %v302_v22, %v314_v5 }
 0x157   :  { %1039 = vmatmul.mubr.bf16.gmra.mxu1 %v269_v62 }
 0x15a   :  { %520 = vmatmul.mubr.bf16.gmra.mxu0 %v266_v44 }
 0x15b   :  { %529 = vmatprep.mubr.bf16.mxu0 %v1107_v48 }
 0x162   :  { %530 = vmatmul.mubr.bf16.gmra.mxu0 %v267_v17 }
 0x163   :  { %539 = vmatprep.mubr.bf16.mxu0 %v1107_v48 }
 0x16a   :  { %540 = vmatmul.mubr.bf16.gmra.mxu0 %v268_v18 }
 0x16b   :  { %549 = vmatprep.mubr.bf16.mxu0 %v1107_v48 }
 0x172   :  { %550 = vmatmul.mubr.bf16.gmra.mxu0 %v269_v62 }
 0x1fa   :  { %v481_v0 = vpop.f32.mrf.mxu0 }
 0x1fb   :  { %v482_v7 = vadd.f32 %v481_v0, %v1428_v4 }
 0x1fc   :  { %v483_v30 = vpop.f32.mrf.mxu0 }
 0x1fd   :  { %v484_v38 = vadd.f32 %v483_v30, %v1430_v6 }
 0x1fe   :  { %v485_v37 = vpop.f32.mrf.mxu0 }
 0x1ff   :  { %v486_v48 = vadd.f32 %v485_v37, %v1428_v4  ;;  %v1028_v8 = vpop.f32.mrf.mxu1 }
 0x200   :  { %v487_v10 = vpop.f32.mrf.mxu0  ;;  %v603_v45 = vadd.f32 %v1028_v8, %v1434_v9 }
 0x201   :  { %v950_v11 = vpack.c.bf16 %v486_v48, %v482_v7  ;;  %v594_v16 = vpop.f32.mrf.mxu1  ;;  %v488_v27 = vadd.f32 %v487_v10, %v1430_v6 }
 0x202   :  { %v595_v19 = vadd.f32 %v594_v16, %v1434_v9  ;;  %v491_v20 = vpop.f32.mrf.mxu0 }
 0x203   :  { %951 = vst [vmem:[%s1559_s5] sm:$0xff] %v950_v11   ;;  %v1029_v21 = vpop.f32.mrf.mxu1  ;;  %v492_v34 = vadd.f32 %v491_v20, %v1428_v4 }
 0x204   :  { %v931_v24 = vpack.c.bf16 %v595_v19, %v484_v38  ;;  %v493_v25 = vpop.f32.mrf.mxu0  ;;  %v606_v36 = vadd.f32 %v1029_v21, %v1434_v9 }
 0x205   :  { %v494_v26 = vadd.f32 %v493_v25, %v1430_v6  ;;  %v597_v13 = vpop.f32.mrf.mxu1 }
 0x206   :  { %833 = vst [vmem:[%s1560_s6] sm:$0xff] %v931_v24  ;;  %v598_v32 = vadd.f32 %v597_v13, %v1434_v9  ;;  %v495_v33 = vpop.f32.mrf.mxu0 }
 0x207   :  { %v933_v14 = vpack.c.bf16 %v603_v45, %v494_v26  ;;  %v496_v15 = vadd.f32 %v495_v33, %v1428_v4  ;;  %v1032_v46 = vpop.f32.mrf.mxu1 }
 0x208   :  { %v932_v56 = vpack.c.bf16 %v598_v32, %v488_v27  ;;  %v497_v35 = vpop.f32.mrf.mxu0  ;;  %v619_v18 = vadd.f32 %v1032_v46, %v1434_v9 }
 0x209   :  { %835 = vst [vmem:[%s1560_s6 + $0x10] sm:$0xff] %v933_v14  ;;  %v955_v39 = vpack.c.bf16 %v496_v15, %v492_v34  ;;  %v498_v40 = vadd.f32 %v497_v35, %v1430_v6  ;;  %v610_v41 = vpop.f32.mrf.mxu1 }
 0x20a   :  { %834 = vst [vmem:[%s1560_s6 + $0x8] sm:$0xff] %v932_v56  ;;  %v501_v42 = vpop.f32.mrf.mxu0  ;;  %v611_v47 = vadd.f32 %v610_v41, %v1434_v9 }
 0x20b   :  { %987 = vst [vmem:[%s1559_s5 + $0x8] sm:$0xff] %v955_v39   ;;  %v934_v43 = vpack.c.bf16 %v606_v36, %v498_v40  ;;  %v1033_v57 = vpop.f32.mrf.mxu1  ;;  %v502_v29 = vadd.f32 %v501_v42, %v1428_v4 }
 0x20c   :  { %v503_v44 = vpop.f32.mrf.mxu0  ;;  %v622_v22 = vadd.f32 %v1033_v57, %v1434_v9 }
 0x20d   :  { %836 = vst [vmem:[%s1560_s6 + $0x18] sm:$0xff] %v934_v43  ;;  %v504_v2 = vadd.f32 %v503_v44, %v1430_v6  ;;  %v613_v49 = vpop.f32.mrf.mxu1 }
 0x20e   :  { %v505_v50 = vpop.f32.mrf.mxu0  ;;  %v614_v17 = vadd.f32 %v613_v49, %v1434_v9 }
 0x20f   :  { %v935_v51 = vpack.c.bf16 %v611_v47, %v504_v2  ;;  %v506_v52 = vadd.f32 %v505_v50, %v1428_v4  ;;  %v1036_v55 = vpop.f32.mrf.mxu1 }
 0x210   :  { %v507_v3 = vpop.f32.mrf.mxu0  ;;  %v635_v32 = vadd.f32 %v1036_v55, %v1434_v9 }
 0x211   :  { %837 = vst [vmem:[%s1560_s6 + $0x20] sm:$0xff] %v935_v51  ;;  %v960_v53 = vpack.c.bf16 %v506_v52, %v502_v29  ;;  %v508_v54 = vadd.f32 %v507_v3, %v1430_v6  ;;  %v626_v28 = vpop.f32.mrf.mxu1 }
 0x212   :  { %v511_v23 = vpop.f32.mrf.mxu0  ;;  %v627_v48 = vadd.f32 %v626_v28, %v1434_v9 }
 0x213   :  { %988 = vst [vmem:[%s1559_s5 + $0x10] sm:$0xff] %v960_v53   ;;  %v936_v58 = vpack.c.bf16 %v614_v17, %v508_v54  ;;  %v512_v62 = vadd.f32 %v511_v23, %v1428_v4  ;;  %v1037_v30 = vpop.f32.mrf.mxu1 }
 0x214   :  { %v513_v59 = vpop.f32.mrf.mxu0  ;;  %v638_v36 = vadd.f32 %v1037_v30, %v1434_v9 }
 0x215   :  { %838 = vst [vmem:[%s1560_s6 + $0x28] sm:$0xff] %v936_v58  ;;  %v514_v60 = vadd.f32 %v513_v59, %v1430_v6  ;;  %v629_v10 = vpop.f32.mrf.mxu1 }
 0x216   :  { %v515_v61 = vpop.f32.mrf.mxu0  ;;  %v630_v21 = vadd.f32 %v629_v10, %v1434_v9 }
 0x217   :  { %v937_v31 = vpack.c.bf16 %v619_v18, %v514_v60  ;;  %v516_v12 = vadd.f32 %v515_v61, %v1428_v4  ;;  %v1040_v45 = vpop.f32.mrf.mxu1 }
 0x218   :  { %v517_v63 = vpop.f32.mrf.mxu0  ;;  %v651_v58 = vadd.f32 %v1040_v45, %v1434_v9 }
 0x219   :  { %839 = vst [vmem:[%s1560_s6 + $0x30] sm:$0xff] %v937_v31  ;;  %v965_v0 = vpack.c.bf16 %v516_v12, %v512_v62  ;;  %v518_v1 = vadd.f32 %v517_v63, %v1430_v6  ;;  %v642_v34 = vpop.f32.mrf.mxu1 }
 0x21a   :  { %v521_v5 = vpop.f32.mrf.mxu0  ;;  %v643_v44 = vadd.f32 %v642_v34, %v1434_v9 }
 0x21b   :  { %989 = vst [vmem:[%s1559_s5 + $0x18] sm:$0xff] %v965_v0   ;;  %v938_v37 = vpack.c.bf16 %v622_v22, %v518_v1  ;;  %v522_v16 = vadd.f32 %v521_v5, %v1428_v4  ;;  %v1041_v41 = vpop.f32.mrf.mxu1 }
 0x21c   :  { %v523_v7 = vpop.f32.mrf.mxu0  ;;  %v654_v31 = vadd.f32 %v1041_v41, %v1434_v9 }
 0x21d   :  { %840 = vst [vmem:[%s1560_s6 + $0x38] sm:$0xff] %v938_v37  ;;  %v524_v8 = vadd.f32 %v523_v7, %v1430_v6  ;;  %v645_v2 = vpop.f32.mrf.mxu1 }
 0x21e   :  { %v525_v11 = vpop.f32.mrf.mxu0  ;;  %v646_v3 = vadd.f32 %v645_v2, %v1434_v9 }
 0x21f   :  { %v939_v38 = vpack.c.bf16 %v627_v48, %v524_v8  ;;  %v526_v19 = vadd.f32 %v525_v11, %v1428_v4 }
 0x220   :  { %v527_v20 = vpop.f32.mrf.mxu0 }
 0x221   :  { %841 = vst [vmem:[%s1560_s6 + $0x40] sm:$0xff] %v939_v38  ;;  %v970_v24 = vpack.c.bf16 %v526_v19, %v522_v16  ;;  %v528_v25 = vadd.f32 %v527_v20, %v1430_v6 }
 0x222   :  { %v531_v26 = vpop.f32.mrf.mxu0 }
 0x223   :  { %990 = vst [vmem:[%s1559_s5 + $0x20] sm:$0xff] %v970_v24   ;;  %v940_v13 = vpack.c.bf16 %v630_v21, %v528_v25  ;;  %v532_v15 = vadd.f32 %v531_v26, %v1428_v4 }
 0x224   :  { %v533_v27 = vpop.f32.mrf.mxu0 }
 0x225   :  { %842 = vst [vmem:[%s1560_s6 + $0x48] sm:$0xff] %v940_v13  ;;  %v534_v33 = vadd.f32 %v533_v27, %v1430_v6 }
 0x226   :  { %v535_v14 = vpop.f32.mrf.mxu0 }
 0x227   :  { %v941_v46 = vpack.c.bf16 %v635_v32, %v534_v33  ;;  %v536_v56 = vadd.f32 %v535_v14, %v1428_v4 }
 0x228   :  { %v537_v35 = vpop.f32.mrf.mxu0 }
 0x229   :  { %843 = vst [vmem:[%s1560_s6 + $0x50] sm:$0xff] %v941_v46  ;;  %v975_v39 = vpack.c.bf16 %v536_v56, %v532_v15  ;;  %v538_v40 = vadd.f32 %v537_v35, %v1430_v6 }
 0x22a   :  { %v541_v42 = vpop.f32.mrf.mxu0 }
 0x22b   :  { %991 = vst [vmem:[%s1559_s5 + $0x28] sm:$0xff] %v975_v39   ;;  %v942_v43 = vpack.c.bf16 %v638_v36, %v538_v40  ;;  %v542_v50 = vadd.f32 %v541_v42, %v1428_v4 }
 0x22c   :  { %v543_v57 = vpop.f32.mrf.mxu0 }
 0x22d   :  { %844 = vst [vmem:[%s1560_s6 + $0x58] sm:$0xff] %v942_v43  ;;  %v544_v47 = vadd.f32 %v543_v57, %v1430_v6 }
 0x22e   :  { %v545_v49 = vpop.f32.mrf.mxu0 }
 0x22f   :  { %v943_v29 = vpack.c.bf16 %v643_v44, %v544_v47  ;;  %v546_v51 = vadd.f32 %v545_v49, %v1428_v4 }
 0x230   :  { %v547_v52 = vpop.f32.mrf.mxu0 }
 0x231   :  { %845 = vst [vmem:[%s1560_s6 + $0x60] sm:$0xff] %v943_v29  ;;  %v980_v17 = vpack.c.bf16 %v546_v51, %v542_v50  ;;  %v548_v53 = vadd.f32 %v547_v52, %v1430_v6 }
 0x232   :  { %v551_v54 = vpop.f32.mrf.mxu0 }
 0x233   :  { %992 = vst [vmem:[%s1559_s5 + $0x30] sm:$0xff] %v980_v17   ;;  %v944_v55 = vpack.c.bf16 %v646_v3, %v548_v53  ;;  %v552_v60 = vadd.f32 %v551_v54, %v1428_v4 }
 0x234   :  { %v553_v23 = vpop.f32.mrf.mxu0 }
 0x235   :  { %846 = vst [vmem:[%s1560_s6 + $0x68] sm:$0xff] %v944_v55  ;;  %v554_v59 = vadd.f32 %v553_v23, %v1430_v6 }
 0x236   :  { %v555_v18 = vpop.f32.mrf.mxu0 }
 0x237   :  { %v945_v28 = vpack.c.bf16 %v651_v58, %v554_v59  ;;  %v556_v61 = vadd.f32 %v555_v18, %v1428_v4 }
 0x238   :  { %v557_v62 = vpop.f32.mrf.mxu0 }
 0x239   :  { %847 = vst [vmem:[%s1560_s6 + $0x70] sm:$0xff] %v945_v28  ;;  %v985_v12 = vpack.c.bf16 %v556_v61, %v552_v60  ;;  %v558_v63 = vadd.f32 %v557_v62, %v1430_v6 }
 0x23b   :  { %993 = vst [vmem:[%s1559_s5 + $0x38] sm:$0xff] %v985_v12   ;;  %v946_v22 = vpack.c.bf16 %v654_v31, %v558_v63 }
 0x23d   :  { %848 = vst [vmem:[%s1560_s6 + $0x78] sm:$0xff] %v946_v22 }

// kernel: transformer_cross_attn_layer.6
= control target key start
LH: loop header
LB: loop body
LE: loop exit
PB: predicated region body
PF: predicated region fallthrough
CT: control target
= control target key end

     0   :  { %s989_s0 = inlined_call_operand.vmem [shape: f32[128,128], index: 0, kind: input, shape index: {}]   ;;  %s990_s3 = inlined_call_operand.vmem [shape: bf16[128,128], index: 3, kind: input, shape index: {}]   ;;  %s991_s1 = inlined_call_operand.vmem [shape: f32[1,128], index: 1, kind: input, shape index: {}]   ;;  %s992_s2 = inlined_call_operand.vmem [shape: f32[1,128], index: 2, kind: input, shape index: {}]   ;;  %s993_s4 = inlined_call_operand.vmem [shape: f32[1,128], index: 4, kind: input, shape index: {}]   ;;  %s994_s5 = inlined_call_operand.vmem [shape: bf16[128,128], index: 5, kind: output, shape index: {}]  }
   0x1   :  { %v21_v0 = vld [vmem:[%s989_s0] sm:$0xff]  ;;  %v22_v2 = vld [vmem:[%s989_s0 + $0x8] sm:$0xff]  ;;  %v23_v4 = vld [vmem:[%s989_s0 + $0x10] sm:$0xff] }
   0x2   :  { %v29_v1 = vld [vmem:[%s989_s0 + $0x40] sm:$0xff]  ;;  %37 = vadd.xlane.f32.xlu0 %v21_v0  ;;  %v30_v3 = vld [vmem:[%s989_s0 + $0x48] sm:$0xff]  ;;  %v24_v5 = vld [vmem:[%s989_s0 + $0x18] sm:$0xff] }
   0x3   :  { %53 = vadd.xlane.f32.xlu1 %v29_v1  ;;  %v31_v6 = vld [vmem:[%s989_s0 + $0x50] sm:$0xff]  ;;  %v32_v7 = vld [vmem:[%s989_s0 + $0x58] sm:$0xff]  ;;  %v25_v8 = vld [vmem:[%s989_s0 + $0x20] sm:$0xff] }
   0x4   :  { %v26_v9 = vld [vmem:[%s989_s0 + $0x28] sm:$0xff]  ;;  %v777_v10 = vld [vmem:[%s989_s0 + $0x60] sm:$0xff]  ;;  %v789_v12 = vld [vmem:[%s989_s0 + $0x30] sm:$0xff] }
   0x5   :  { %v782_v11 = vld [vmem:[%s989_s0 + $0x68] sm:$0xff]  ;;  %v794_v13 = vld [vmem:[%s989_s0 + $0x38] sm:$0xff]  ;;  %v801_v14 = vld [vmem:[%s989_s0 + $0x70] sm:$0xff] }
   0x6   :  { %39 = vadd.xlane.f32.xlu0 %v22_v2  ;;  %v806_v15 = vld [vmem:[%s989_s0 + $0x78] sm:$0xff] }
   0x7   :  { %55 = vadd.xlane.f32.xlu1 %v30_v3  ;;  %v674_v59 = vld [vmem:[%s990_s3 + $0x38] sm:$0xff]  }
   0x8   :  { %626 = vmatprep.subr.bf16.mxu0 %v674_v59  ;;  %658 = vmatprep.subr.bf16.mxu1 %v674_v59 }
   0x9   :  { %627 = vmatpush3.bf16.msra.mxu0 %v674_v59  ;;  %666 = vmatpush3.bf16.msra.mxu1 %v674_v59 }
   0xa   :  { %41 = vadd.xlane.f32.xlu0 %v23_v4 }
   0xb   :  { %43 = vadd.xlane.f32.xlu1 %v24_v5 }
   0xe   :  { %57 = vadd.xlane.f32.xlu0 %v31_v6 }
   0xf   :  { %59 = vadd.xlane.f32.xlu1 %v32_v7 }
  0x12   :  { %45 = vadd.xlane.f32.xlu0 %v25_v8 }
  0x13   :  { %47 = vadd.xlane.f32.xlu1 %v26_v9 }
  0x16   :  { %61 = vadd.xlane.f32.xlu0 %v777_v10 }
  0x17   :  { %63 = vadd.xlane.f32.xlu1 %v782_v11 }
  0x1a   :  { %49 = vadd.xlane.f32.xlu0 %v789_v12 }
  0x1b   :  { %51 = vadd.xlane.f32.xlu1 %v794_v13 }
  0x1e   :  { %65 = vadd.xlane.f32.xlu0 %v801_v14 }
  0x1f   :  { %67 = vadd.xlane.f32.xlu1 %v806_v15 }
  0x8b   :  { %v38_v16 = vpop.xlane.xlu0 %37 }
  0x8c   :  { %v54_v17 = vpop.xlane.xlu1 %53  ;;  %v70_v18 = vmul.f32 0.0078125, %v38_v16 }
  0x8d   :  { %v78_v19 = vmul.f32 0.0078125, %v54_v17 }
  0x8e   :  { %v810_v20 = vsub.f32 %v21_v0, %v70_v18 }
  0x8f   :  { %v812_v21 = vsub.f32 %v29_v1, %v78_v19  ;;  %v40_v22 = vpop.xlane.xlu0 %39 }
  0x90   :  { %v56_v23 = vpop.xlane.xlu1 %55  ;;  %v71_v24 = vmul.f32 0.0078125, %v40_v22  ;;  %v102_v25 = vmul.f32 %v810_v20, %v810_v20  ;;  %v678_v22 = vld [vmem:[%s990_s3 + $0x18] sm:$0xff]  }
  0x91   :  { %v79_v26 = vmul.f32 0.0078125, %v56_v23  ;;  %v110_v29 = vmul.f32 %v812_v21, %v812_v21  ;;  %v679_v23 = vld [vmem:[%s990_s3 + $0x10] sm:$0xff]  }
  0x92   :  { %v816_v27 = vsub.f32 %v22_v2, %v71_v24  ;;  %118 = vadd.xlane.f32.xlu0 %v102_v25  ;;  %v680_v24 = vld [vmem:[%s990_s3 + $0x8] sm:$0xff]   ;;  %v681_v25 = vld [vmem:[%s990_s3] sm:$0xff]  }
  0x93   :  { %v818_v28 = vsub.f32 %v30_v3, %v79_v26  ;;  %v42_v30 = vpop.xlane.xlu0 %41 }
  0x94   :  { %v44_v31 = vpop.xlane.xlu1 %43  ;;  %v72_v32 = vmul.f32 0.0078125, %v42_v30  ;;  %v103_v33 = vmul.f32 %v816_v27, %v816_v27 }
  0x95   :  { %v73_v34 = vmul.f32 0.0078125, %v44_v31  ;;  %v111_v37 = vmul.f32 %v818_v28, %v818_v28 }
  0x96   :  { %v824_v35 = vsub.f32 %v23_v4, %v72_v32  ;;  %134 = vadd.xlane.f32.xlu0 %v110_v29  ;;  %120 = vadd.xlane.f32.xlu1 %v103_v33  ;;  %v675_v4 = vld [vmem:[%s990_s3 + $0x30] sm:$0xff]  }
  0x97   :  { %v826_v36 = vsub.f32 %v24_v5, %v73_v34  ;;  %v58_v38 = vpop.xlane.xlu0 %57  ;;  %628 = vmatprep.subr.bf16.mxu0 %v675_v4  ;;  %659 = vmatprep.subr.bf16.mxu1 %v675_v4 }
  0x98   :  { %v60_v39 = vpop.xlane.xlu1 %59  ;;  %v80_v40 = vmul.f32 0.0078125, %v58_v38  ;;  %v104_v41 = vmul.f32 %v824_v35, %v824_v35  ;;  %629 = vmatpush3.bf16.msra.mxu0 %v675_v4  ;;  %667 = vmatpush3.bf16.msra.mxu1 %v675_v4 }
  0x99   :  { %v81_v42 = vmul.f32 0.0078125, %v60_v39  ;;  %v105_v45 = vmul.f32 %v826_v36, %v826_v36 }
  0x9a   :  { %v832_v43 = vsub.f32 %v31_v6, %v80_v40  ;;  %136 = vadd.xlane.f32.xlu1 %v111_v37  ;;  %122 = vadd.xlane.f32.xlu0 %v104_v41 }
  0x9b   :  { %v834_v44 = vsub.f32 %v32_v7, %v81_v42  ;;  %v46_v46 = vpop.xlane.xlu0 %45 }
  0x9c   :  { %v48_v47 = vpop.xlane.xlu1 %47  ;;  %v74_v48 = vmul.f32 0.0078125, %v46_v46  ;;  %v112_v49 = vmul.f32 %v832_v43, %v832_v43 }
  0x9d   :  { %v75_v50 = vmul.f32 0.0078125, %v48_v47  ;;  %v113_v53 = vmul.f32 %v834_v44, %v834_v44 }
  0x9e   :  { %v840_v51 = vsub.f32 %v25_v8, %v74_v48  ;;  %124 = vadd.xlane.f32.xlu1 %v105_v45  ;;  %138 = vadd.xlane.f32.xlu0 %v112_v49 }
  0x9f   :  { %v842_v52 = vsub.f32 %v26_v9, %v75_v50  ;;  %v62_v54 = vpop.xlane.xlu0 %61 }
  0xa0   :  { %v64_v55 = vpop.xlane.xlu1 %63  ;;  %v82_v56 = vmul.f32 0.0078125, %v62_v54  ;;  %v106_v57 = vmul.f32 %v840_v51, %v840_v51 }
  0xa1   :  { %v83_v58 = vmul.f32 0.0078125, %v64_v55  ;;  %v107_v62 = vmul.f32 %v842_v52, %v842_v52 }
  0xa2   :  { %v852_v60 = vsub.f32 %v777_v10, %v82_v56  ;;  %140 = vadd.xlane.f32.xlu1 %v113_v53  ;;  %126 = vadd.xlane.f32.xlu0 %v106_v57 }
  0xa3   :  { %v855_v61 = vsub.f32 %v782_v11, %v83_v58  ;;  %v50_v63 = vpop.xlane.xlu0 %49 }
  0xa4   :  { %v52_v0 = vpop.xlane.xlu1 %51  ;;  %v76_v1 = vmul.f32 0.0078125, %v50_v63  ;;  %v114_v2 = vmul.f32 %v852_v60, %v852_v60 }
  0xa5   :  { %v77_v3 = vmul.f32 0.0078125, %v52_v0  ;;  %v115_v7 = vmul.f32 %v855_v61, %v855_v61 }
  0xa6   :  { %v865_v5 = vsub.f32 %v789_v12, %v76_v1  ;;  %128 = vadd.xlane.f32.xlu1 %v107_v62  ;;  %142 = vadd.xlane.f32.xlu0 %v114_v2  ;;  %v676_v12 = vld [vmem:[%s990_s3 + $0x28] sm:$0xff]   ;;  %v908_v1 = vld [vmem:[%s991_s1] ss:$0 sm:$0xff] }
  0xa7   :  { %v868_v6 = vsub.f32 %v794_v13, %v77_v3  ;;  %v66_v8 = vpop.xlane.xlu0 %65  ;;  %630 = vmatprep.subr.bf16.mxu0 %v676_v12  ;;  %660 = vmatprep.subr.bf16.mxu1 %v676_v12 }
  0xa8   :  { %v68_v9 = vpop.xlane.xlu1 %67  ;;  %v84_v10 = vmul.f32 0.0078125, %v66_v8  ;;  %v108_v11 = vmul.f32 %v865_v5, %v865_v5  ;;  %631 = vmatpush3.bf16.msra.mxu0 %v676_v12  ;;  %668 = vmatpush3.bf16.msra.mxu1 %v676_v12 }
  0xa9   :  { %v85_v16 = vmul.f32 0.0078125, %v68_v9  ;;  %v109_v18 = vmul.f32 %v868_v6, %v868_v6 }
  0xaa   :  { %v878_v13 = vsub.f32 %v801_v14, %v84_v10  ;;  %144 = vadd.xlane.f32.xlu1 %v115_v7  ;;  %130 = vadd.xlane.f32.xlu0 %v108_v11  ;;  %v677_v14 = vld [vmem:[%s990_s3 + $0x20] sm:$0xff]  }
  0xab   :  { %v881_v17 = vsub.f32 %v806_v15, %v85_v16  ;;  %632 = vmatprep.subr.bf16.mxu0 %v677_v14  ;;  %661 = vmatprep.subr.bf16.mxu1 %v677_v14 }
  0xac   :  { %v116_v19 = vmul.f32 %v878_v13, %v878_v13  ;;  %633 = vmatpush3.bf16.msra.mxu0 %v677_v14  ;;  %669 = vmatpush3.bf16.msra.mxu1 %v677_v14 }
  0xad   :  { %v117_v15 = vmul.f32 %v881_v17, %v881_v17  ;;  %634 = vmatprep.subr.bf16.mxu0 %v678_v22  ;;  %662 = vmatprep.subr.bf16.mxu1 %v678_v22 }
  0xae   :  { %132 = vadd.xlane.f32.xlu1 %v109_v18  ;;  %146 = vadd.xlane.f32.xlu0 %v116_v19 }
  0xb0   :  { %635 = vmatpush3.bf16.msra.mxu0 %v678_v22  ;;  %670 = vmatpush3.bf16.msra.mxu1 %v678_v22 }
  0xb1   :  { %636 = vmatprep.subr.bf16.mxu0 %v679_v23  ;;  %663 = vmatprep.subr.bf16.mxu1 %v679_v23 }
  0xb2   :  { %148 = vadd.xlane.f32.xlu1 %v117_v15 }
  0xb4   :  { %637 = vmatpush3.bf16.msra.mxu0 %v679_v23  ;;  %671 = vmatpush3.bf16.msra.mxu1 %v679_v23 }
  0xb5   :  { %638 = vmatprep.subr.bf16.mxu0 %v680_v24  ;;  %664 = vmatprep.subr.bf16.mxu1 %v680_v24 }
  0xb8   :  { %639 = vmatpush3.bf16.msra.mxu0 %v680_v24  ;;  %672 = vmatpush3.bf16.msra.mxu1 %v680_v24 }
  0xb9   :  { %640 = vmatprep.subr.bf16.mxu0 %v681_v25  ;;  %665 = vmatprep.subr.bf16.mxu1 %v681_v25 }
  0xbc   :  { %641 = vmatpush3.bf16.msra.mxu0 %v681_v25  ;;  %673 = vmatpush3.bf16.msra.mxu1 %v681_v25 }
 0x11b   :  { %v119_v26 = vpop.xlane.xlu0 %118 }
 0x11c   :  { %v150_v29 = vmul.f32 0.0078125, %v119_v26 }
 0x11e   :  { %v166_v30 = vadd.f32 1e-05, %v150_v29 }
 0x11f   :  { %v121_v31 = vpop.xlane.xlu1 %120  ;;  %v135_v32 = vpop.xlane.xlu0 %134 }
 0x120   :  { %682 = vrsqrt.f32 %v166_v30  ;;  %v151_v33 = vmul.f32 0.0078125, %v121_v31  ;;  %v158_v34 = vmul.f32 0.0078125, %v135_v32 }
 0x122   :  { %v167_v37 = vadd.f32 1e-05, %v151_v33  ;;  %v174_v38 = vadd.f32 1e-05, %v158_v34 }
 0x123   :  { %v137_v39 = vpop.xlane.xlu1 %136  ;;  %v123_v40 = vpop.xlane.xlu0 %122 }
 0x124   :  { %684 = vrsqrt.f32 %v167_v37  ;;  %v159_v41 = vmul.f32 0.0078125, %v137_v39  ;;  %v152_v42 = vmul.f32 0.0078125, %v123_v40 }
 0x125   :  { %686 = vrsqrt.f32 %v174_v38 }
 0x126   :  { %v175_v45 = vadd.f32 1e-05, %v159_v41  ;;  %v168_v46 = vadd.f32 1e-05, %v152_v42 }
 0x127   :  { %v125_v47 = vpop.xlane.xlu1 %124  ;;  %v139_v48 = vpop.xlane.xlu0 %138 }
 0x128   :  { %688 = vrsqrt.f32 %v175_v45  ;;  %v153_v49 = vmul.f32 0.0078125, %v125_v47  ;;  %v160_v50 = vmul.f32 0.0078125, %v139_v48 }
 0x129   :  { %690 = vrsqrt.f32 %v168_v46 }
 0x12a   :  { %v169_v53 = vadd.f32 1e-05, %v153_v49  ;;  %v176_v54 = vadd.f32 1e-05, %v160_v50 }
 0x12b   :  { %v141_v55 = vpop.xlane.xlu1 %140  ;;  %v127_v56 = vpop.xlane.xlu0 %126 }
 0x12c   :  { %692 = vrsqrt.f32 %v169_v53  ;;  %v161_v57 = vmul.f32 0.0078125, %v141_v55  ;;  %v154_v58 = vmul.f32 0.0078125, %v127_v56 }
 0x12d   :  { %v683_v59 = vpop.eup %682  ;;  %694 = vrsqrt.f32 %v176_v54 }
 0x12e   :  { %v177_v62 = vadd.f32 1e-05, %v161_v57  ;;  %v170_v63 = vadd.f32 1e-05, %v154_v58  ;;  %v198_v0 = vmul.f32 %v683_v59, %v810_v20  ;;  %v915_v20 = vld [vmem:[%s992_s2] ss:$0 sm:$0xff] }
 0x12f   :  { %v129_v2 = vpop.xlane.xlu1 %128  ;;  %v143_v3 = vpop.xlane.xlu0 %142 }
 0x130   :  { %696 = vrsqrt.f32 %v177_v62  ;;  %v155_v4 = vmul.f32 0.0078125, %v129_v2  ;;  %v162_v7 = vmul.f32 0.0078125, %v143_v3  ;;  %v221_v9 = vmul.f32 %v908_v1, %v198_v0 }
 0x131   :  { %v685_v8 = vpop.eup %684  ;;  %698 = vrsqrt.f32 %v170_v63 }
 0x132   :  { %v687_v10 = vpop.eup %686  ;;  %v171_v11 = vadd.f32 1e-05, %v155_v4  ;;  %v178_v16 = vadd.f32 1e-05, %v162_v7  ;;  %v199_v12 = vmul.f32 %v685_v8, %v816_v27  ;;  %v244_v25 = vadd.f32 %v915_v20, %v221_v9 }
 0x133   :  { %v145_v18 = vpop.xlane.xlu1 %144  ;;  %v131_v19 = vpop.xlane.xlu0 %130  ;;  %v206_v14 = vmul.f32 %v687_v10, %v812_v21 }
 0x134   :  { %700 = vrsqrt.f32 %v171_v11  ;;  %v163_v15 = vmul.f32 0.0078125, %v145_v18  ;;  %v156_v22 = vmul.f32 0.0078125, %v131_v19  ;;  %v222_v23 = vmul.f32 %v908_v1, %v199_v12 }
 0x135   :  { %v689_v24 = vpop.eup %688  ;;  %702 = vrsqrt.f32 %v178_v16  ;;  %v229_v21 = vmul.f32 %v908_v1, %v206_v14 }
 0x136   :  { %v691_v26 = vpop.eup %690  ;;  %v179_v27 = vadd.f32 1e-05, %v163_v15  ;;  %v172_v29 = vadd.f32 1e-05, %v156_v22  ;;  %v245_v30 = vadd.f32 %v915_v20, %v222_v23  ;;  %v207_v31 = vmul.f32 %v689_v24, %v818_v28 }
 0x137   :  { %v133_v32 = vpop.xlane.xlu1 %132  ;;  %v147_v33 = vpop.xlane.xlu0 %146  ;;  %v200_v34 = vmul.f32 %v691_v26, %v824_v35  ;;  %v252_v49 = vadd.f32 %v915_v20, %v229_v21 }
 0x138   :  { %704 = vrsqrt.f32 %v179_v27  ;;  %v157_v37 = vmul.f32 0.0078125, %v133_v32  ;;  %v164_v38 = vmul.f32 0.0078125, %v147_v33  ;;  %v260_v39 = vpack.c.bf16 %v245_v30, %v244_v25 }
 0x139   :  { %v693_v40 = vpop.eup %692  ;;  %706 = vrsqrt.f32 %v172_v29  ;;  %v230_v41 = vmul.f32 %v908_v1, %v207_v31  ;;  %v223_v42 = vmul.f32 %v908_v1, %v200_v34 }
 0x13a   :  { %v695_v45 = vpop.eup %694  ;;  %v173_v46 = vadd.f32 1e-05, %v157_v37  ;;  %v180_v47 = vadd.f32 1e-05, %v164_v38  ;;  %642 = vmatprep.mubr.bf16.mxu0 %v260_v39  ;;  %v201_v28 = vmul.f32 %v693_v40, %v826_v36 }
 0x13b   :  { %v149_v48 = vpop.xlane.xlu1 %148  ;;  %v253_v35 = vadd.f32 %v915_v20, %v230_v41  ;;  %v208_v50 = vmul.f32 %v695_v45, %v832_v43  ;;  %v246_v57 = vadd.f32 %v915_v20, %v223_v42  ;;  %v522_v41 = vld [vmem:[%s993_s4] ss:$0 sm:$0xff] }
 0x13c   :  { %708 = vrsqrt.f32 %v173_v46  ;;  %v165_v53 = vmul.f32 0.0078125, %v149_v48  ;;  %v224_v54 = vmul.f32 %v908_v1, %v201_v28 }
 0x13d   :  { %v697_v55 = vpop.eup %696  ;;  %710 = vrsqrt.f32 %v180_v47  ;;  %v264_v56 = vpack.c.bf16 %v253_v35, %v252_v49  ;;  %v231_v63 = vmul.f32 %v908_v1, %v208_v50 }
 0x13e   :  { %v699_v58 = vpop.eup %698  ;;  %v181_v59 = vadd.f32 1e-05, %v165_v53  ;;  %v247_v36 = vadd.f32 %v915_v20, %v224_v54  ;;  %v209_v62 = vmul.f32 %v697_v55, %v834_v44 }
 0x13f   :  { %650 = vmatprep.mubr.bf16.mxu1 %v264_v56  ;;  %v202_v43 = vmul.f32 %v699_v58, %v840_v51  ;;  %v254_v7 = vadd.f32 %v915_v20, %v231_v63 }
 0x140   :  { %712 = vrsqrt.f32 %v181_v59  ;;  %v261_v0 = vpack.c.bf16 %v247_v36, %v246_v57  ;;  %v232_v2 = vmul.f32 %v908_v1, %v209_v62 }
 0x141   :  { %v701_v3 = vpop.eup %700  ;;  %v225_v44 = vmul.f32 %v908_v1, %v202_v43 }
 0x142   :  { %v703_v4 = vpop.eup %702  ;;  %643 = vmatmul.mubr.bf16.vlgmr.msra.gmra.mxu0 %v261_v0  ;;  %v255_v8 = vadd.f32 %v915_v20, %v232_v2  ;;  %v203_v9 = vmul.f32 %v701_v3, %v842_v52 }
 0x143   :  { %v210_v10 = vmul.f32 %v703_v4, %v852_v60  ;;  %v248_v18 = vadd.f32 %v915_v20, %v225_v44 }
 0x144   :  { %v265_v11 = vpack.c.bf16 %v255_v8, %v254_v7  ;;  %v226_v51 = vmul.f32 %v908_v1, %v203_v9 }
 0x145   :  { %v705_v16 = vpop.eup %704  ;;  %v233_v15 = vmul.f32 %v908_v1, %v210_v10 }
 0x146   :  { %v707_v12 = vpop.eup %706  ;;  %651 = vmatmul.mubr.bf16.vlgmr.msra.gmra.mxu1 %v265_v11  ;;  %v249_v19 = vadd.f32 %v915_v20, %v226_v51  ;;  %v211_v14 = vmul.f32 %v705_v16, %v855_v61 }
 0x147   :  { %v204_v52 = vmul.f32 %v707_v12, %v865_v5  ;;  %v256_v25 = vadd.f32 %v915_v20, %v233_v15 }
 0x148   :  { %v262_v22 = vpack.c.bf16 %v249_v19, %v248_v18  ;;  %v234_v23 = vmul.f32 %v908_v1, %v211_v14 }
 0x149   :  { %v709_v60 = vpop.eup %708  ;;  %v227_v29 = vmul.f32 %v908_v1, %v204_v52 }
 0x14a   :  { %v711_v24 = vpop.eup %710  ;;  %646 = vmatprep.mubr.bf16.mxu0 %v262_v22  ;;  %v257_v26 = vadd.f32 %v915_v20, %v234_v23  ;;  %v205_v27 = vmul.f32 %v709_v60, %v868_v6 }
 0x14b   :  { %v212_v61 = vmul.f32 %v711_v24, %v878_v13  ;;  %v250_v32 = vadd.f32 %v915_v20, %v227_v29 }
 0x14c   :  { %v266_v30 = vpack.c.bf16 %v257_v26, %v256_v25  ;;  %v228_v31 = vmul.f32 %v908_v1, %v205_v27 }
 0x14d   :  { %v713_v5 = vpop.eup %712  ;;  %v235_v34 = vmul.f32 %v908_v1, %v212_v61 }
 0x14e   :  { %654 = vmatprep.mubr.bf16.mxu1 %v266_v30  ;;  %v251_v33 = vadd.f32 %v915_v20, %v228_v31  ;;  %v213_v21 = vmul.f32 %v713_v5, %v881_v17 }
 0x14f   :  { %v258_v38 = vadd.f32 %v915_v20, %v235_v34 }
 0x150   :  { %v263_v37 = vpack.c.bf16 %v251_v33, %v250_v32  ;;  %v236_v6 = vmul.f32 %v908_v1, %v213_v21 }
 0x152   :  { %647 = vmatmul.mubr.bf16.gmra.mxu0 %v263_v37  ;;  %v259_v13 = vadd.f32 %v915_v20, %v236_v6 }
 0x154   :  { %v267_v39 = vpack.c.bf16 %v259_v13, %v258_v38 }
 0x156   :  { %655 = vmatmul.mubr.bf16.gmra.mxu1 %v267_v39 }
 0x202   :  { %v644_v40 = vpop.f32.mrf.mxu0 }
 0x203   :  { %v382_v46 = vadd.f32 %v644_v40, %v522_v41 }
 0x204   :  { %v373_v42 = vpop.f32.mrf.mxu0 }
 0x205   :  { %v374_v1 = vadd.f32 %v522_v41, %v373_v42 }
 0x206   :  { %v645_v45 = vpop.f32.mrf.mxu0  ;;  %v652_v17 = vpop.f32.mrf.mxu1 }
 0x207   :  { %v385_v47 = vadd.f32 %v645_v45, %v522_v41  ;;  %v414_v20 = vadd.f32 %v652_v17, %v522_v41 }
 0x208   :  { %v376_v28 = vpop.f32.mrf.mxu0  ;;  %v405_v48 = vpop.f32.mrf.mxu1 }
 0x209   :  { %v571_v49 = vpack.c.bf16 %v385_v47, %v382_v46  ;;  %v377_v35 = vadd.f32 %v522_v41, %v376_v28  ;;  %v406_v56 = vadd.f32 %v522_v41, %v405_v48 }
 0x20a   :  { %v653_v50 = vpop.f32.mrf.mxu1 }
 0x20b   :  { %603 = vst [vmem:[%s994_s5 + $0x8] sm:$0xff] %v571_v49   ;;  %v566_v53 = vpack.c.bf16 %v377_v35, %v374_v1  ;;  %v417_v54 = vadd.f32 %v653_v50, %v522_v41 }
 0x20c   :  { %v408_v55 = vpop.f32.mrf.mxu1 }
 0x20d   :  { %567 = vst [vmem:[%s994_s5] sm:$0xff] %v566_v53   ;;  %v591_v57 = vpack.c.bf16 %v417_v54, %v414_v20  ;;  %v409_v58 = vadd.f32 %v522_v41, %v408_v55 }
 0x20f   :  { %607 = vst [vmem:[%s994_s5 + $0x28] sm:$0xff] %v591_v57   ;;  %v586_v59 = vpack.c.bf16 %v409_v58, %v406_v56 }
 0x211   :  { %606 = vst [vmem:[%s994_s5 + $0x20] sm:$0xff] %v586_v59  }
 0x212   :  { %v648_v36 = vpop.f32.mrf.mxu0 }
 0x213   :  { %v398_v0 = vadd.f32 %v648_v36, %v522_v41 }
 0x214   :  { %v389_v62 = vpop.f32.mrf.mxu0 }
 0x215   :  { %v390_v7 = vadd.f32 %v522_v41, %v389_v62 }
 0x216   :  { %v649_v63 = vpop.f32.mrf.mxu0  ;;  %v656_v43 = vpop.f32.mrf.mxu1 }
 0x217   :  { %v401_v2 = vadd.f32 %v649_v63, %v522_v41  ;;  %v430_v10 = vadd.f32 %v656_v43, %v522_v41 }
 0x218   :  { %v392_v3 = vpop.f32.mrf.mxu0  ;;  %v421_v4 = vpop.f32.mrf.mxu1 }
 0x219   :  { %v581_v8 = vpack.c.bf16 %v401_v2, %v398_v0  ;;  %v393_v9 = vadd.f32 %v522_v41, %v392_v3  ;;  %v422_v12 = vadd.f32 %v522_v41, %v421_v4 }
 0x21a   :  { %v657_v44 = vpop.f32.mrf.mxu1 }
 0x21b   :  { %605 = vst [vmem:[%s994_s5 + $0x18] sm:$0xff] %v581_v8   ;;  %v576_v11 = vpack.c.bf16 %v393_v9, %v390_v7  ;;  %v433_v51 = vadd.f32 %v657_v44, %v522_v41 }
 0x21c   :  { %v424_v16 = vpop.f32.mrf.mxu1 }
 0x21d   :  { %604 = vst [vmem:[%s994_s5 + $0x10] sm:$0xff] %v576_v11   ;;  %v601_v18 = vpack.c.bf16 %v433_v51, %v430_v10  ;;  %v425_v19 = vadd.f32 %v522_v41, %v424_v16 }
 0x21f   :  { %609 = vst [vmem:[%s994_s5 + $0x38] sm:$0xff] %v601_v18   ;;  %v596_v14 = vpack.c.bf16 %v425_v19, %v422_v12 }
 0x221   :  { %608 = vst [vmem:[%s994_s5 + $0x30] sm:$0xff] %v596_v14  }

// kernel: transformer_cross_attn_layer.8
= control target key start
LH: loop header
LB: loop body
LE: loop exit
PB: predicated region body
PF: predicated region fallthrough
CT: control target
= control target key end

     0   :  { %s3827_s17 = smov 0   ;;  %s3829_s18 = smov 0   ;;  %s4713_s0 = inlined_call_operand.vmem [shape: bf16[64,256], index: 0, kind: input, shape index: {}]   ;;  %s4714_s1 = inlined_call_operand.vmem [shape: bf16[64,512], index: 1, kind: input, shape index: {}]   ;;  %s4715_s2 = inlined_call_operand.vmem [shape: f32[64,512], index: 2, kind: input, shape index: {}]   ;;  %s4716_s3 = inlined_call_operand.vmem [shape: bf16[128,128], index: 3, kind: input, shape index: {}]   ;;  %s4717_s4 = inlined_call_operand.vmem [shape: f32[1,128], index: 4, kind: input, shape index: {}]   ;;  %s4718_s5 = inlined_call_operand.vmem [shape: f32[64,256], index: 5, kind: input, shape index: {}]   ;;  %s4719_s6 = inlined_call_operand.vmem [shape: f32[1,128], index: 6, kind: input, shape index: {}]   ;;  %s4720_s7 = inlined_call_operand.vmem [shape: f32[1,128], index: 7, kind: input, shape index: {}]   ;;  %s4721_s8 = inlined_call_operand.vmem [shape: bf16[128,256], index: 8, kind: input, shape index: {}]   ;;  %s4722_s9 = inlined_call_operand.vmem [shape: f32[1,256], index: 9, kind: input, shape index: {}]   ;;  %s4723_s10 = inlined_call_operand.vmem [shape: f32[64,256], index: 10, kind: output, shape index: {0}]   ;;  %s4724_s11 = inlined_call_operand.vmem [shape: bf16[64,512], index: 11, kind: output, shape index: {1}]  }
   0x1   :  { %s3831_s19 = smov 0  }
   0x2 LB: > { %s3843_s20 = sadd.s32 4294967295, %s3761_s19   ;;  %s3846_s21 = sadd.s32 1, %s3761_s19   ;;  %s3761_s19 = sphi %s3831_s19, %s4729_s19   ;;  %s3757_s18 = sphi %s3829_s18, %s4728_s18   ;;  %s3753_s17 = sphi %s3827_s17, %s4727_s17  }
   0x3   : > { %s26_s22 = ssub.s32 %s3761_s19, %s3846_s21  ;;  %s29_s23 = sadd.s32 1, %s3757_s18 }
   0x4   : > { %p27_p0 = scmp.eq.s32.totalorder %s26_s22, 0  ;;  %p36_p1 = scmp.ne.s32.totalorder %s3757_s18, %s3753_s17 }
   0x5   : > { %p37_p2 = scmp.eq.s32.totalorder %s3761_s19, 0  ;;  %p270_p3 = scmp.eq.s32.totalorder %s3843_s20, 1 }
   0x6   : > { %s3856_s24 = scalar_select %p27_p0, %s3757_s18, %s29_s23  }
   0x7   : > { %p3858_p4 = por %p37_p2, %p36_p1  ;;  %p3862_p5 = por %p270_p3, %p36_p1 }
   0x8   : > { %p3080_p6 = scmp.ge.s32.totalorder %s3761_s19, 2 }
   0xa   : > { %336 = sbr.rel (%p3080_p6) target bundleno = 52 (0x34), region = 40 }
   0xf   : > { %339 = sbr.rel (!%p3858_p4) target bundleno = 24 (0x18), region = 44  ;;  %s341_s27 = sand.u32 (%p3858_p4), 1, %s3757_s18  }
  0x10   : > { %s3082_s28 = sshll.u32 (%p3858_p4), %s3761_s19, 2  ;;  %s3081_s29 = sshll.u32 (%p3858_p4), %s341_s27, 5 }
  0x11   : > { %s345_s13 = scalar_lea.vmem (%p3858_p4), %s4713_s0, %s3082_s28  ;;  %s343_s14 = scalar_lea.vmem (%p3858_p4), [#allocation3], %s3081_s29 }
  0x12   : > { %v362_v0 = vld [vmem:[%s345_s13] sm:$0xf] (%p3858_p4)  ;;  %v364_v1 = vld [vmem:[%s345_s13 + $0x8] sm:$0xf] (%p3858_p4)  ;;  %v366_v2 = vld [vmem:[%s345_s13 + $0x10] sm:$0xf] (%p3858_p4) }
  0x13   : > { %363 = vst [vmem:[%s343_s14] sm:$0xf] (%p3858_p4), %v362_v0  ;;  %365 = vst [vmem:[%s343_s14 + $0x4] sm:$0xf] (%p3858_p4), %v364_v1  ;;  %v368_v3 = vld [vmem:[%s345_s13 + $0x18] sm:$0xf] (%p3858_p4) }
  0x14   : > { %v370_v4 = vld [vmem:[%s345_s13 + $0x20] sm:$0xf]  ;;  %367 = vst [vmem:[%s343_s14 + $0x8] sm:$0xf] %v366_v2  ;;  %369 = vst [vmem:[%s343_s14 + $0xc] sm:$0xf] %v368_v3 }
  0x15   : > { %371 = vst [vmem:[%s343_s14 + $0x10] sm:$0xf] %v370_v4  ;;  %v372_v5 = vld [vmem:[%s345_s13 + $0x28] sm:$0xf]  ;;  %v374_v6 = vld [vmem:[%s345_s13 + $0x30] sm:$0xf] }
  0x16   : > { %v376_v7 = vld [vmem:[%s345_s13 + $0x38] sm:$0xf]  ;;  %373 = vst [vmem:[%s343_s14 + $0x14] sm:$0xf] %v372_v5  ;;  %375 = vst [vmem:[%s343_s14 + $0x18] sm:$0xf] %v374_v6 }
  0x17   : > { %377 = vst [vmem:[%s343_s14 + $0x1c] sm:$0xf] %v376_v7 }
  0x18 PF: > { %417 = sbr.rel (!%p3858_p4) target bundleno = 32 (0x20), region = 85  ;;  %s419_s15 = sand.u32 (%p3858_p4), 1, %s3757_s18  }
  0x19   : > { %s3220_s16 = sshll.u32 (%p3858_p4), %s3761_s19, 3  ;;  %s3083_s22 = sshll.u32 (%p3858_p4), %s419_s15, 6 }
  0x1a   : > { %s424_s28 = scalar_lea.vmem (%p3858_p4), %s4714_s1, %s3220_s16  ;;  %s421_s29 = scalar_lea.vmem (%p3858_p4), [#allocation4], %s3083_s22 }
  0x1b   : > { %v467_v8 = vld [vmem:[%s424_s28] sm:$0xff] (%p3858_p4)  ;;  %v469_v9 = vld [vmem:[%s424_s28 + $0x10] sm:$0xff] (%p3858_p4) }
  0x1c   : > { %v471_v10 = vld [vmem:[%s424_s28 + $0x20] sm:$0xff] (%p3858_p4)  ;;  %468 = vst [vmem:[%s421_s29] sm:$0xff] (%p3858_p4), %v467_v8  ;;  %470 = vst [vmem:[%s421_s29 + $0x8] sm:$0xff] (%p3858_p4), %v469_v9  ;;  %v473_v11 = vld [vmem:[%s424_s28 + $0x30] sm:$0xff] (%p3858_p4) }
  0x1d   : > { %472 = vst [vmem:[%s421_s29 + $0x10] sm:$0xff] %v471_v10  ;;  %v475_v12 = vld [vmem:[%s424_s28 + $0x40] sm:$0xff]  ;;  %v477_v13 = vld [vmem:[%s424_s28 + $0x50] sm:$0xff]  ;;  %474 = vst [vmem:[%s421_s29 + $0x18] sm:$0xff] %v473_v11 }
  0x1e   : > { %476 = vst [vmem:[%s421_s29 + $0x20] sm:$0xff] %v475_v12  ;;  %478 = vst [vmem:[%s421_s29 + $0x28] sm:$0xff] %v477_v13  ;;  %v479_v14 = vld [vmem:[%s424_s28 + $0x60] sm:$0xff]  ;;  %v481_v15 = vld [vmem:[%s424_s28 + $0x70] sm:$0xff] }
  0x1f   : > { %480 = vst [vmem:[%s421_s29 + $0x30] sm:$0xff] %v479_v14  ;;  %482 = vst [vmem:[%s421_s29 + $0x38] sm:$0xff] %v481_v15 }
  0x20 PF: > { %488 = sbr.rel (!%p3858_p4) target bundleno = 44 (0x2c), region = 123  ;;  %s490_s30 = sand.u32 (%p3858_p4), 1, %s3757_s18  }
  0x21   : > { %s3221_s12 = sshll.u32 (%p3858_p4), %s3761_s19, 4  ;;  %s3086_s13 = sshll.u32 (%p3858_p4), %s490_s30, 7 }
  0x22   : > { %s3888_s16 = scalar_lea.vmem (%p3858_p4), %s4715_s2, %s3221_s12  ;;  %s492_s22 = scalar_lea.vmem (%p3858_p4), [#allocation5], %s3086_s13 }
  0x23   : > { %v508_v16 = vld [vmem:[%s3888_s16] sm:$0xff] (%p3858_p4)  ;;  %v510_v17 = vld [vmem:[%s3888_s16 + $0x8] sm:$0xff] (%p3858_p4) }
  0x24   : > { %v512_v18 = vld [vmem:[%s3888_s16 + $0x20] sm:$0xff] (%p3858_p4)  ;;  %509 = vst [vmem:[%s492_s22] sm:$0xff] (%p3858_p4), %v508_v16  ;;  %511 = vst [vmem:[%s492_s22 + $0x8] sm:$0xff] (%p3858_p4), %v510_v17  ;;  %v514_v19 = vld [vmem:[%s3888_s16 + $0x28] sm:$0xff] (%p3858_p4) }
  0x25   : > { %513 = vst [vmem:[%s492_s22 + $0x10] sm:$0xff] %v512_v18  ;;  %v516_v20 = vld [vmem:[%s3888_s16 + $0x40] sm:$0xff]  ;;  %v518_v21 = vld [vmem:[%s3888_s16 + $0x48] sm:$0xff]  ;;  %515 = vst [vmem:[%s492_s22 + $0x18] sm:$0xff] %v514_v19 }
  0x26   : > { %517 = vst [vmem:[%s492_s22 + $0x20] sm:$0xff] %v516_v20  ;;  %519 = vst [vmem:[%s492_s22 + $0x28] sm:$0xff] %v518_v21  ;;  %v520_v22 = vld [vmem:[%s3888_s16 + $0x60] sm:$0xff]  ;;  %v522_v23 = vld [vmem:[%s3888_s16 + $0x68] sm:$0xff] }
  0x27   : > { %v524_v24 = vld [vmem:[%s3888_s16 + $0x80] sm:$0xff]  ;;  %521 = vst [vmem:[%s492_s22 + $0x30] sm:$0xff] %v520_v22  ;;  %523 = vst [vmem:[%s492_s22 + $0x38] sm:$0xff] %v522_v23  ;;  %v526_v25 = vld [vmem:[%s3888_s16 + $0x88] sm:$0xff] }
  0x28   : > { %525 = vst [vmem:[%s492_s22 + $0x40] sm:$0xff] %v524_v24  ;;  %v528_v26 = vld [vmem:[%s3888_s16 + $0xa0] sm:$0xff]  ;;  %v530_v27 = vld [vmem:[%s3888_s16 + $0xa8] sm:$0xff]  ;;  %527 = vst [vmem:[%s492_s22 + $0x48] sm:$0xff] %v526_v25 }
  0x29   : > { %529 = vst [vmem:[%s492_s22 + $0x50] sm:$0xff] %v528_v26  ;;  %531 = vst [vmem:[%s492_s22 + $0x58] sm:$0xff] %v530_v27  ;;  %v532_v28 = vld [vmem:[%s3888_s16 + $0xc0] sm:$0xff]  ;;  %v534_v29 = vld [vmem:[%s3888_s16 + $0xc8] sm:$0xff] }
  0x2a   : > { %v536_v30 = vld [vmem:[%s3888_s16 + $0xe0] sm:$0xff]  ;;  %533 = vst [vmem:[%s492_s22 + $0x60] sm:$0xff] %v532_v28  ;;  %535 = vst [vmem:[%s492_s22 + $0x68] sm:$0xff] %v534_v29  ;;  %v538_v31 = vld [vmem:[%s3888_s16 + $0xe8] sm:$0xff] }
  0x2b   : > { %537 = vst [vmem:[%s492_s22 + $0x70] sm:$0xff] %v536_v30  ;;  %539 = vst [vmem:[%s492_s22 + $0x78] sm:$0xff] %v538_v31 }
  0x2c PF: > { %545 = sbr.rel (!%p3858_p4) target bundleno = 52 (0x34), region = 146  ;;  %s547_s23 = sand.u32 (%p3858_p4), 1, %s3757_s18  }
  0x2d   : > { %s3090_s27 = sshll.u32 (%p3858_p4), %s3761_s19, 3  ;;  %s3089_s28 = sshll.u32 (%p3858_p4), %s547_s23, 6 }
  0x2e   : > { %s551_s12 = scalar_lea.vmem (%p3858_p4), %s4718_s5, %s3090_s27  ;;  %s549_s13 = scalar_lea.vmem (%p3858_p4), [#allocation6], %s3089_s28 }
  0x2f   : > { %v594_v32 = vld [vmem:[%s551_s12] sm:$0xff] (%p3858_p4)  ;;  %v596_v33 = vld [vmem:[%s551_s12 + $0x10] sm:$0xff] (%p3858_p4) }
  0x30   : > { %v598_v34 = vld [vmem:[%s551_s12 + $0x20] sm:$0xff] (%p3858_p4)  ;;  %595 = vst [vmem:[%s549_s13] sm:$0xff] (%p3858_p4), %v594_v32  ;;  %597 = vst [vmem:[%s549_s13 + $0x8] sm:$0xff] (%p3858_p4), %v596_v33  ;;  %v600_v35 = vld [vmem:[%s551_s12 + $0x30] sm:$0xff] (%p3858_p4) }
  0x31   : > { %599 = vst [vmem:[%s549_s13 + $0x10] sm:$0xff] %v598_v34  ;;  %v602_v36 = vld [vmem:[%s551_s12 + $0x40] sm:$0xff]  ;;  %v604_v37 = vld [vmem:[%s551_s12 + $0x50] sm:$0xff]  ;;  %601 = vst [vmem:[%s549_s13 + $0x18] sm:$0xff] %v600_v35 }
  0x32   : > { %603 = vst [vmem:[%s549_s13 + $0x20] sm:$0xff] %v602_v36  ;;  %605 = vst [vmem:[%s549_s13 + $0x28] sm:$0xff] %v604_v37  ;;  %v606_v38 = vld [vmem:[%s551_s12 + $0x60] sm:$0xff]  ;;  %v608_v39 = vld [vmem:[%s551_s12 + $0x70] sm:$0xff] }
  0x33   : > { %607 = vst [vmem:[%s549_s13 + $0x30] sm:$0xff] %v606_v38  ;;  %609 = vst [vmem:[%s549_s13 + $0x38] sm:$0xff] %v608_v39 }
  0x34 PF: > { %p3091_p7 = scmp.ge.s32.totalorder %s3761_s19, 1  ;;  %p614_p8 = scmp.lt.s32.totalorder %s3761_s19, 3 }
  0x36   : > { %p615_p9 = pnand %p3091_p7, %p614_p8 }
  0x37   : > { %s3916_s25 = sand.u32 (!%p615_p9), 1, %s3753_s17   ;;  %s3763_s23 = smov (!%p615_p9), 96  }
  0x38   : > { %618 = sbr.rel (%p615_p9) target bundleno = 3415 (0xd57), region = 184  ;;  %s3919_s14 = sshll.u32 (!%p615_p9), %s3916_s25, 6 }
  0x39   : > { %s3922_s15 = scalar_lea.vmem (!%p615_p9), [#allocation4], %s3919_s14  ;;  %s3092_s17 = sshll.u32 (!%p615_p9), %s3916_s25, 5 }
  0x3a   : > { %s3937_s19 = scalar_lea.vmem (!%p615_p9), [#allocation3], %s3092_s17  ;;  %s3094_s16 = sshll.u32 (!%p615_p9), %s3916_s25, 7 }
  0x3b   : > { %s3976_s22 = scalar_lea.vmem (!%p615_p9), [#allocation5], %s3094_s16  ;;  %s3764_s27 = smov (!%p615_p9), 64  }
  0x3c   : > { %s3765_s28 = smov (!%p615_p9), 32   ;;  %s4548_s17 = scalar_lea.vmem (!%p615_p9), [#allocation7], %s3919_s14 }
  0x3d   : > { %vm789_vm0 = vcmask 261120   ;;  %v3925_v40 = vld [vmem:[%s3922_s15 + $0x30] ss:$8 sps:$4 sm:$0xff]   ;;  %v3928_v41 = vld [vmem:[%s3922_s15 + $0x20] ss:$8 sps:$4 sm:$0xff]   ;;  %vm887_vm1 = vcmask 523264  }
  0x3e   : > { %3491 = vmatprep.subr.msk.bf16.mxu0 %vm789_vm0, %v3925_v40  ;;  %v812_v42 = vsel %vm789_vm0, %v3925_v40, 0  ;;  %v3940_v43 = vld [vmem:[%s3937_s19] sm:$0xff]   ;;  %v809_v44 = vsel %vm789_vm0, %v3928_v41, 0  ;;  %v3947_v45 = vld [vmem:[%s3922_s15 + $0x10] ss:$8 sps:$4 sm:$0xff]   ;;  %v3961_v49 = vld [vmem:[%s3937_s19 + $0x8] sm:$0xff]  }
  0x3f   : > { %3340 = vmatpush3.bf16.xpose.msra.mxu0 %v812_v42  ;;  %3347 = vmatprep.mubr.msk.bf16.mxu0 %vm789_vm0, %v3940_v43  ;;  %v3952_v46 = vld [vmem:[%s3922_s15] ss:$8 sps:$4 sm:$0xff]   ;;  %v806_v47 = vsel %vm789_vm0, %v3947_v45, 0  ;;  %v3964_v50 = vld [vmem:[%s3937_s19 + $0x10] sm:$0xff]   ;;  %v3971_v51 = vld [vmem:[%s3937_s19 + $0x18] sm:$0xff]   ;;  %vm1113_vm2 = vcmask 257024  }
  0x40   : > { %3492 = vmatprep.subr.msk.bf16.mxu0 %vm789_vm0, %v3928_v41  ;;  %v803_v48 = vsel %vm789_vm0, %v3952_v46, 0  ;;  %v3979_v52 = vld [vmem:[%s3976_s22 + $0x20] sm:$0xff]  ;;  %v3986_v57 = vld [vmem:[%s3976_s22 + $0x30] sm:$0xff]  ;;  %vm1504_vm3 = vcmask 519424   ;;  %vm1863_vm4 = vcmask 781824   ;;  %vm2254_vm5 = vcmask 1044224  }
  0x41   : > { %v3982_v54 = vld [vmem:[%s3976_s22] sm:$0xff]  ;;  %v3990_v61 = vld [vmem:[%s3976_s22 + $0x10] sm:$0xff] }
  0x42   : > { %v3995_v2 = vld [vmem:[%s3976_s22 + $0x60] sm:$0xff]  ;;  %v4005_v12 = vld [vmem:[%s3976_s22 + $0x70] sm:$0xff] }
  0x43   : > { %v4000_v7 = vld [vmem:[%s3976_s22 + $0x40] sm:$0xff]  ;;  %v4010_v16 = vld [vmem:[%s3976_s22 + $0x50] sm:$0xff] }
  0x47   : > { %3342 = vmatpush3.bf16.xpose.msra.mxu0 %v809_v44 }
  0x48   : > { %3493 = vmatprep.subr.msk.bf16.mxu0 %vm789_vm0, %v3947_v45 }
  0x4f   : > { %3344 = vmatpush3.bf16.xpose.msra.mxu0 %v806_v47 }
  0x50   : > { %3494 = vmatprep.subr.msk.bf16.mxu0 %vm789_vm0, %v3952_v46 }
  0x57   : > { %3346 = vmatpush3.bf16.xpose.msra.mxu0 %v803_v48 }
  0x5e   : > { %3348 = vmatmul.mubr.msk.bf16.vlgmr.msra.gmra.mxu0 %vm789_vm0, %v3961_v49 }
  0x5f   : > { %3351 = vmatprep.mubr.msk.bf16.mxu0 %vm789_vm0, %v3964_v50 }
  0x66   : > { %3352 = vmatmul.mubr.msk.bf16.gmra.mxu0 %vm789_vm0, %v3971_v51 }
 0x11e   : > { %v3349_v53 = vpop.f32.mrf.mxu0 }
 0x11f   : > { %v857_v55 = vadd.f32 %v3349_v53, %v3979_v52 }
 0x120   : > { %v848_v56 = vpop.f32.mrf.mxu0 }
 0x121   : > { %v881_v58 = vmul.f32 0.17677669, %v857_v55  ;;  %v849_v59 = vadd.f32 %v848_v56, %v3982_v54 }
 0x122   : > { %v3350_v60 = vpop.f32.mrf.mxu0 }
 0x123   : > { %v879_v62 = vmul.f32 0.17677669, %v849_v59  ;;  %v860_v63 = vadd.f32 %v3350_v60, %v3986_v57  ;;  %v894_v0 = vsel %vm887_vm1, %v881_v58, -inf }
 0x124   : > { %895 = vmax.xlane.f32.xlu1 %v894_v0  ;;  %v851_v1 = vpop.f32.mrf.mxu0 }
 0x125   : > { %v882_v3 = vmul.f32 0.17677669, %v860_v63  ;;  %v852_v4 = vadd.f32 %v851_v1, %v3990_v61  ;;  %v888_v5 = vsel %vm887_vm1, %v879_v62, -inf }
 0x126   : > { %v3353_v6 = vpop.f32.mrf.mxu0  ;;  %889 = vmax.xlane.f32.xlu0 %v888_v5 }
 0x127   : > { %v880_v8 = vmul.f32 0.17677669, %v852_v4  ;;  %v873_v9 = vadd.f32 %v3353_v6, %v3995_v2  ;;  %v897_v10 = vsel %vm887_vm1, %v882_v3, -inf }
 0x128   : > { %898 = vmax.xlane.f32.xlu1 %v897_v10  ;;  %v864_v11 = vpop.f32.mrf.mxu0  ;;  %v4061_v10 = vld [vmem:[%s3922_s15 + $0x14] ss:$8 sps:$4 sm:$0xff]  }
 0x129   : > { %v865_v13 = vadd.f32 %v864_v11, %v4000_v7  ;;  %v891_v14 = vsel %vm887_vm1, %v880_v8, -inf  ;;  %v885_v17 = vmul.f32 0.17677669, %v873_v9  ;;  %v4054_v9 = vld [vmem:[%s3922_s15 + $0x24] ss:$8 sps:$4 sm:$0xff]  }
 0x12a   : > { %v3354_v15 = vpop.f32.mrf.mxu0  ;;  %892 = vmax.xlane.f32.xlu0 %v891_v14  ;;  %v4067_v11 = vld [vmem:[%s3922_s15 + $0x4] ss:$8 sps:$4 sm:$0xff]  }
 0x12b   : > { %v883_v18 = vmul.f32 0.17677669, %v865_v13  ;;  %v876_v19 = vadd.f32 %v3354_v15, %v4005_v12  ;;  %v906_v25 = vsel %vm887_vm1, %v885_v17, -inf }
 0x12c   : > { %v867_v20 = vpop.f32.mrf.mxu0 }
 0x12d   : > { %v868_v21 = vadd.f32 %v867_v20, %v4010_v16  ;;  %v900_v22 = vsel %vm887_vm1, %v883_v18, -inf  ;;  %v4015_v23 = vmul.f32 0.17677669, %v876_v19 }
 0x12e   : > { %901 = vmax.xlane.f32.xlu0 %v900_v22 }
 0x12f   : > { %v4017_v24 = vmul.f32 0.17677669, %v868_v21  ;;  %v909_v27 = vsel %vm887_vm1, %v4015_v23, -inf }
 0x131   : > { %v903_v26 = vsel %vm887_vm1, %v4017_v24, -inf }
 0x132   : > { %904 = vmax.xlane.f32.xlu1 %v903_v26  ;;  %907 = vmax.xlane.f32.xlu0 %v906_v25 }
 0x136   : > { %910 = vmax.xlane.f32.xlu1 %v909_v27 }
 0x1ad   : > { %v896_v28 = vpop.xlane.xlu1 %895 }
 0x1ae   : > { %v914_v29 = vsub.f32 %v881_v58, %v896_v28 }
 0x1af   : > { %v890_v30 = vpop.xlane.xlu0 %889 }
 0x1b0   : > { %v924_v31 = vmul.f32 1.442695, %v914_v29  ;;  %v912_v32 = vsub.f32 %v879_v62, %v890_v30 }
 0x1b1   : > { %v899_v33 = vpop.xlane.xlu1 %898 }
 0x1b2   : > { %3583 = vpow2.f32 %v924_v31  ;;  %v920_v34 = vmul.f32 1.442695, %v912_v32  ;;  %v915_v35 = vsub.f32 %v882_v3, %v899_v33 }
 0x1b3   : > { %v893_v36 = vpop.xlane.xlu0 %892 }
 0x1b4   : > { %3585 = vpow2.f32 %v920_v34  ;;  %v926_v37 = vmul.f32 1.442695, %v915_v35  ;;  %v913_v38 = vsub.f32 %v880_v8, %v893_v36  ;;  %v4049_v8 = vld [vmem:[%s3922_s15 + $0x34] ss:$8 sps:$4 sm:$0xff]  }
 0x1b5   : > { %3355 = vmatprep.subr.bf16.mxu1 %v4049_v8 }
 0x1b6   : > { %3587 = vpow2.f32 %v926_v37  ;;  %v922_v39 = vmul.f32 1.442695, %v913_v38  ;;  %3356 = vmatpush3.bf16.msra.mxu1 %v4049_v8 }
 0x1b7   : > { %v902_v42 = vpop.xlane.xlu0 %901  ;;  %3357 = vmatprep.subr.bf16.mxu1 %v4054_v9 }
 0x1b8   : > { %3589 = vpow2.f32 %v922_v39  ;;  %v916_v44 = vsub.f32 %v883_v18, %v902_v42 }
 0x1ba   : > { %v928_v56 = vmul.f32 1.442695, %v916_v44  ;;  %3358 = vmatpush3.bf16.msra.mxu1 %v4054_v9 }
 0x1bb   : > { %v908_v47 = vpop.xlane.xlu0 %907  ;;  %3359 = vmatprep.subr.bf16.mxu1 %v4061_v10  ;;  %v905_v13 = vpop.xlane.xlu1 %904 }
 0x1bc   : > { %v918_v48 = vsub.f32 %v885_v17, %v908_v47  ;;  %v917_v17 = vsub.f32 %v4017_v24, %v905_v13 }
 0x1be   : > { %v932_v53 = vmul.f32 1.442695, %v918_v48  ;;  %3360 = vmatpush3.bf16.msra.mxu1 %v4061_v10  ;;  %v930_v19 = vmul.f32 1.442695, %v917_v17 }
 0x1bf   : > { %v4024_v55 = vpop.eup %3583  ;;  %3361 = vmatprep.subr.bf16.mxu1 %v4067_v11  ;;  %v911_v14 = vpop.xlane.xlu1 %910 }
 0x1c0   : > { %v942_v58 = vsel %vm887_vm1, %v4024_v55, 0.0  ;;  %3591 = vpow2.f32 %v932_v53  ;;  %v919_v15 = vsub.f32 %v4015_v23, %v911_v14 }
 0x1c1   : > { %v4028_v59 = vpop.eup %3585  ;;  %943 = vadd.xlane.f32.xlu0 %v942_v58  ;;  %3593 = vpow2.f32 %v928_v56 }
 0x1c2   : > { %v936_v63 = vsel %vm887_vm1, %v4028_v59, 0.0  ;;  %3362 = vmatpush3.bf16.msra.mxu1 %v4067_v11  ;;  %v934_v18 = vmul.f32 1.442695, %v919_v15 }
 0x1c3   : > { %v4030_v60 = vpop.eup %3587 }
 0x1c4   : > { %v945_v62 = vsel %vm887_vm1, %v4030_v60, 0.0  ;;  %3595 = vpow2.f32 %v934_v18 }
 0x1c5   : > { %v4036_v0 = vpop.eup %3589  ;;  %946 = vadd.xlane.f32.xlu1 %v945_v62  ;;  %937 = vadd.xlane.f32.xlu0 %v936_v63  ;;  %3597 = vpow2.f32 %v930_v19 }
 0x1c6   : > { %v939_v1 = vsel %vm887_vm1, %v4036_v0, 0.0 }
 0x1c9   : > { %940 = vadd.xlane.f32.xlu1 %v939_v1 }
 0x1cd   : > { %v4040_v3 = vpop.eup %3591 }
 0x1ce   : > { %v954_v4 = vsel %vm887_vm1, %v4040_v3, 0.0  ;;  %v4044_v5 = vpop.eup %3593 }
 0x1cf   : > { %955 = vadd.xlane.f32.xlu0 %v954_v4  ;;  %v948_v6 = vsel %vm887_vm1, %v4044_v5, 0.0 }
 0x1d1   : > { %v4080_v20 = vpop.eup %3595 }
 0x1d2   : > { %v957_v21 = vsel %vm887_vm1, %v4080_v20, 0.0  ;;  %v4084_v22 = vpop.eup %3597 }
 0x1d3   : > { %949 = vadd.xlane.f32.xlu0 %v948_v6  ;;  %v951_v23 = vsel %vm887_vm1, %v4084_v22, 0.0 }
 0x1da   : > { %1142 = vrot.lane.b32.xlu1 %v3928_v41, %s3763_s23 }
 0x1de   : > { %1140 = vrot.lane.b32.xlu1 %v3947_v45, %s3763_s23 }
 0x1e9   : > { %1144 = vrot.lane.b32.xlu0 %v3925_v40, %s3763_s23 }
 0x1ed   : > { %1130 = vrot.lane.b32.xlu0 %v3940_v43, %s3763_s23 }
 0x1f1   : > { %1134 = vrot.lane.b32.xlu0 %v3964_v50, %s3763_s23 }
 0x1f5   : > { %1154 = vrot.lane.b32.xlu0 %v3982_v54, %s3764_s27 }
 0x1f9   : > { %1158 = vrot.lane.b32.xlu0 %v3979_v52, %s3764_s27 }
 0x1fd   : > { %1162 = vrot.lane.b32.xlu0 %v4000_v7, %s3764_s27 }
 0x201   : > { %1166 = vrot.lane.b32.xlu0 %v3995_v2, %s3764_s27 }
 0x202   : > { %958 = vadd.xlane.f32.xlu1 %v957_v21 }
 0x206   : > { %952 = vadd.xlane.f32.xlu1 %v951_v23 }
 0x217   : > { %1138 = vrot.lane.b32.xlu1 %v3952_v46, %s3763_s23 }
 0x21b   : > { %1132 = vrot.lane.b32.xlu1 %v3961_v49, %s3763_s23 }
 0x21f   : > { %1136 = vrot.lane.b32.xlu1 %v3971_v51, %s3763_s23 }
 0x223   : > { %1156 = vrot.lane.b32.xlu1 %v3990_v61, %s3764_s27 }
 0x227   : > { %1160 = vrot.lane.b32.xlu1 %v3986_v57, %s3764_s27 }
 0x22b   : > { %1164 = vrot.lane.b32.xlu1 %v4010_v16, %s3764_s27 }
 0x22f   : > { %1168 = vrot.lane.b32.xlu1 %v4005_v12, %s3764_s27 }
 0x24a   : > { %v944_v54 = vpop.xlane.xlu0 %943 }
 0x24e   : > { %v947_v61 = vpop.xlane.xlu1 %946  ;;  %v938_v24 = vpop.xlane.xlu0 %937 }
 0x24f   : > { %3599 = vrcp.f32 %v947_v61 }
 0x250   : > { %3601 = vrcp.f32 %v938_v24 }
 0x251   : > { %3603 = vrcp.f32 %v944_v54 }
 0x252   : > { %v941_v52 = vpop.xlane.xlu1 %940 }
 0x253   : > { %3605 = vrcp.f32 %v941_v52 }
 0x256   : > { %v1143_v34 = vpop.permute.xlu1 %1142 }
 0x257   : > { %v1197_v35 = vsel %vm789_vm0, %v1143_v34, 0 }
 0x258   : > { %v956_v57 = vpop.xlane.xlu0 %955 }
 0x25a   : > { %v1141_v36 = vpop.permute.xlu1 %1140 }
 0x25b   : > { %v1194_v37 = vsel %vm789_vm0, %v1141_v36, 0 }
 0x25c   : > { %v3600_v25 = vpop.eup %3599  ;;  %v950_v16 = vpop.xlane.xlu0 %949 }
 0x25d   : > { %v3602_v26 = vpop.eup %3601  ;;  %v971_v28 = vmul.f32 %v3600_v25, %v4030_v60 }
 0x25e   : > { %v3604_v27 = vpop.eup %3603  ;;  %v968_v29 = vmul.f32 %v3602_v26, %v4028_v59 }
 0x25f   : > { %v970_v30 = vmul.f32 %v3604_v27, %v4024_v55 }
 0x260   : > { %v3606_v7 = vpop.eup %3605  ;;  %v1145_v12 = vpop.permute.xlu0 %1144 }
 0x261   : > { %v969_v2 = vmul.f32 %v3606_v7, %v4036_v0  ;;  %3495 = vmatprep.subr.msk.bf16.mxu1 %vm789_vm0, %v1145_v12  ;;  %v977_v32 = vpack.c.bf16 %v971_v28, %v970_v30  ;;  %v1200_v33 = vsel %vm789_vm0, %v1145_v12, 0 }
 0x263   : > { %v976_v31 = vpack.c.bf16 %v969_v2, %v968_v29 }
 0x264   : > { %v1131_v0 = vpop.permute.xlu0 %1130 }
 0x265   : > { %3363 = vmatprep.mubr.msk.bf16.mxu1 %vm887_vm1, %v976_v31 }
 0x266   : > { %3364 = vmatmul.mubr.msk.bf16.vlgmr.msra.gmra.mxu1 %vm887_vm1, %v977_v32 }
 0x267   : > { %3372 = vmatpush3.bf16.xpose.msra.mxu1 %v1200_v33 }
 0x268   : > { %3496 = vmatprep.subr.msk.bf16.mxu1 %vm789_vm0, %v1143_v34  ;;  %v1135_v4 = vpop.permute.xlu0 %1134 }
 0x26f   : > { %3374 = vmatpush3.bf16.xpose.msra.mxu1 %v1197_v35 }
 0x270   : > { %3497 = vmatprep.subr.msk.bf16.mxu1 %vm789_vm0, %v1141_v36 }
 0x277   : > { %3376 = vmatpush3.bf16.xpose.msra.mxu1 %v1194_v37 }
 0x28b   : > { %v959_v38 = vpop.xlane.xlu1 %958 }
 0x28c   : > { %3607 = vrcp.f32 %v959_v38 }
 0x28d   : > { %3609 = vrcp.f32 %v950_v16 }
 0x28e   : > { %3611 = vrcp.f32 %v956_v57 }
 0x28f   : > { %v953_v39 = vpop.xlane.xlu1 %952 }
 0x290   : > { %3613 = vrcp.f32 %v953_v39 }
 0x293   : > { %v1139_v42 = vpop.permute.xlu1 %1138 }
 0x294   : > { %3498 = vmatprep.subr.msk.bf16.mxu1 %vm789_vm0, %v1139_v42  ;;  %v1191_v44 = vsel %vm789_vm0, %v1139_v42, 0 }
 0x295   : > { %3378 = vmatpush3.bf16.xpose.msra.mxu1 %v1191_v44 }
 0x297   : > { %v1133_v1 = vpop.permute.xlu1 %1132 }
 0x299   : > { %v3608_v47 = vpop.eup %3607 }
 0x29a   : > { %v3610_v48 = vpop.eup %3609  ;;  %v975_v56 = vmul.f32 %v3608_v47, %v4080_v20  ;;  %v1155_v20 = vpop.permute.xlu0 %1154 }
 0x29b   : > { %v3612_v53 = vpop.eup %3611  ;;  %v972_v58 = vmul.f32 %v3610_v48, %v4044_v5  ;;  %v1137_v5 = vpop.permute.xlu1 %1136 }
 0x29c   : > { %v974_v60 = vmul.f32 %v3612_v53, %v4040_v3 }
 0x29d   : > { %v3614_v55 = vpop.eup %3613 }
 0x29e   : > { %v973_v59 = vmul.f32 %v3614_v55, %v4084_v22  ;;  %v979_v63 = vpack.c.bf16 %v975_v56, %v974_v60  ;;  %v1159_v52 = vpop.permute.xlu0 %1158 }
 0x29f   : > { %v1157_v22 = vpop.permute.xlu1 %1156 }
 0x2a0   : > { %v978_v62 = vpack.c.bf16 %v973_v59, %v972_v58 }
 0x2a2   : > { %3367 = vmatprep.mubr.msk.bf16.mxu1 %vm887_vm1, %v978_v62  ;;  %v1163_v7 = vpop.permute.xlu0 %1162 }
 0x2a3   : > { %3368 = vmatmul.mubr.msk.bf16.gmra.mxu1 %vm887_vm1, %v979_v63  ;;  %v1161_v16 = vpop.permute.xlu1 %1160 }
 0x2a4   : > { %3379 = vmatprep.mubr.msk.bf16.mxu1 %vm789_vm0, %v1131_v0 }
 0x2a6   : > { %v1167_v33 = vpop.permute.xlu0 %1166 }
 0x2a7   : > { %v1165_v30 = vpop.permute.xlu1 %1164 }
 0x2ab   : > { %3380 = vmatmul.mubr.msk.bf16.vlgmr.msra.gmra.mxu1 %vm789_vm0, %v1133_v1  ;;  %v1169_v47 = vpop.permute.xlu1 %1168 }
 0x2ac   : > { %3383 = vmatprep.mubr.msk.bf16.mxu1 %vm789_vm0, %v1135_v4 }
 0x2b3   : > { %3384 = vmatmul.mubr.msk.bf16.gmra.mxu1 %vm789_vm0, %v1137_v5 }
 0x326   : > { %v3365_v6 = vpop.f32.mrf.mxu1 }
 0x327   : > { %v3224_v3 = vpack.c.bf16 %v3365_v6, %v3365_v6 }
 0x328   : > { %v1050_v13 = vpop.f32.mrf.mxu1 }
 0x329   : > { %1116 = vst.msk [vmem:[#allocation2 + $0x8] sm:$0xf] %vm1113_vm2, %v3224_v3  ;;  %v3222_v14 = vpack.c.bf16 %v1050_v13, %v1050_v13 }
 0x32a   : > { %v3366_v15 = vpop.f32.mrf.mxu1 }
 0x32b   : > { %1114 = vst.msk [vmem:[#allocation2] sm:$0xf] %vm1113_vm2, %v3222_v14  ;;  %v3225_v17 = vpack.c.bf16 %v3366_v15, %v3366_v15 }
 0x32c   : > { %v1053_v18 = vpop.f32.mrf.mxu1 }
 0x32d   : > { %1117 = vst.msk [vmem:[#allocation2 + $0xc] sm:$0xf] %vm1113_vm2, %v3225_v17  ;;  %v3223_v19 = vpack.c.bf16 %v1053_v18, %v1053_v18 }
 0x32f   : > { %1115 = vst.msk [vmem:[#allocation2 + $0x4] sm:$0xf] %vm1113_vm2, %v3223_v19 }
 0x363   : > { %v3369_v21 = vpop.f32.mrf.mxu1 }
 0x364   : > { %v3228_v23 = vpack.c.bf16 %v3369_v21, %v3369_v21 }
 0x365   : > { %v1066_v54 = vpop.f32.mrf.mxu1 }
 0x366   : > { %1120 = vst.msk [vmem:[#allocation2 + $0x18] sm:$0xf] %vm1113_vm2, %v3228_v23  ;;  %v3226_v61 = vpack.c.bf16 %v1066_v54, %v1066_v54 }
 0x367   : > { %v3370_v24 = vpop.f32.mrf.mxu1 }
 0x368   : > { %1118 = vst.msk [vmem:[#allocation2 + $0x10] sm:$0xf] %vm1113_vm2, %v3226_v61  ;;  %v3229_v57 = vpack.c.bf16 %v3370_v24, %v3370_v24 }
 0x369   : > { %v1069_v25 = vpop.f32.mrf.mxu1 }
 0x36a   : > { %1121 = vst.msk [vmem:[#allocation2 + $0x1c] sm:$0xf] %vm1113_vm2, %v3229_v57  ;;  %v3227_v26 = vpack.c.bf16 %v1069_v25, %v1069_v25 }
 0x36b   : > { %v3381_v27 = vpop.f32.mrf.mxu1 }
 0x36c   : > { %1119 = vst.msk [vmem:[#allocation2 + $0x14] sm:$0xf] %vm1113_vm2, %v3227_v26  ;;  %v1245_v12 = vadd.f32 %v3381_v27, %v1159_v52 }
 0x36d   : > { %v1236_v28 = vpop.f32.mrf.mxu1 }
 0x36e   : > { %v1237_v29 = vadd.f32 %v1236_v28, %v1155_v20  ;;  %v1269_v34 = vmul.f32 0.17677669, %v1245_v12 }
 0x36f   : > { %v3382_v2 = vpop.f32.mrf.mxu1 }
 0x370   : > { %v1267_v31 = vmul.f32 0.17677669, %v1237_v29  ;;  %v1248_v35 = vadd.f32 %v3382_v2, %v1161_v16  ;;  %v1281_v55 = vsel %vm887_vm1, %v1269_v34, -inf }
 0x371   : > { %v1239_v32 = vpop.f32.mrf.mxu1 }
 0x372   : > { %v1240_v36 = vadd.f32 %v1239_v32, %v1157_v22  ;;  %v1275_v37 = vsel %vm887_vm1, %v1267_v31, -inf  ;;  %v1270_v48 = vmul.f32 0.17677669, %v1248_v35 }
 0x373   : > { %v3385_v38 = vpop.f32.mrf.mxu1  ;;  %1276 = vmax.xlane.f32.xlu0 %v1275_v37 }
 0x374   : > { %v1268_v39 = vmul.f32 0.17677669, %v1240_v36  ;;  %v1261_v42 = vadd.f32 %v3385_v38, %v1167_v33  ;;  %v1284_v1 = vsel %vm887_vm1, %v1270_v48, -inf }
 0x375   : > { %v1252_v44 = vpop.f32.mrf.mxu1 }
 0x376   : > { %v1278_v53 = vsel %vm887_vm1, %v1268_v39, -inf  ;;  %v1273_v59 = vmul.f32 0.17677669, %v1261_v42  ;;  %v1253_v62 = vadd.f32 %v1252_v44, %v1163_v7 }
 0x377   : > { %1279 = vmax.xlane.f32.xlu1 %v1278_v53  ;;  %v3386_v56 = vpop.f32.mrf.mxu1  ;;  %1282 = vmax.xlane.f32.xlu0 %v1281_v55 }
 0x378   : > { %v1264_v58 = vadd.f32 %v3386_v56, %v1169_v47  ;;  %v1293_v6 = vsel %vm887_vm1, %v1273_v59, -inf  ;;  %v1271_v3 = vmul.f32 0.17677669, %v1253_v62 }
 0x379   : > { %v1255_v60 = vpop.f32.mrf.mxu1 }
 0x37a   : > { %v1274_v63 = vmul.f32 0.17677669, %v1264_v58  ;;  %v1256_v0 = vadd.f32 %v1255_v60, %v1165_v30  ;;  %v1287_v14 = vsel %vm887_vm1, %v1271_v3, -inf }
 0x37b   : > { %1285 = vmax.xlane.f32.xlu0 %v1284_v1 }
 0x37c   : > { %v1272_v4 = vmul.f32 0.17677669, %v1256_v0  ;;  %v1296_v5 = vsel %vm887_vm1, %v1274_v63, -inf }
 0x37d   : > { %1297 = vmax.xlane.f32.xlu1 %v1296_v5 }
 0x37e   : > { %v1290_v13 = vsel %vm887_vm1, %v1272_v4, -inf }
 0x37f   : > { %1294 = vmax.xlane.f32.xlu0 %v1293_v6 }
 0x381   : > { %1291 = vmax.xlane.f32.xlu1 %v1290_v13 }
 0x383   : > { %1288 = vmax.xlane.f32.xlu0 %v1287_v14 }
 0x392   : > { %1371 = vrot.lane.b32.xlu1 %v4054_v9, %s3763_s23 }
 0x396   : > { %1369 = vrot.lane.b32.xlu1 %v4061_v10, %s3763_s23 }
 0x399   : > { %1373 = vrot.lane.b32.xlu0 %v4049_v8, %s3763_s23 }
 0x39a   : > { %1367 = vrot.lane.b32.xlu1 %v4067_v11, %s3763_s23 }
 0x3fc   : > { %v1277_v15 = vpop.xlane.xlu0 %1276 }
 0x3fd   : > { %v1299_v17 = vsub.f32 %v1267_v31, %v1277_v15 }
 0x3ff   : > { %v1307_v23 = vmul.f32 1.442695, %v1299_v17 }
 0x400   : > { %v1280_v18 = vpop.xlane.xlu1 %1279  ;;  %v1283_v19 = vpop.xlane.xlu0 %1282 }
 0x401   : > { %v1301_v20 = vsub.f32 %v1269_v34, %v1283_v19  ;;  %v1300_v21 = vsub.f32 %v1268_v39, %v1280_v18 }
 0x403   : > { %v1311_v22 = vmul.f32 1.442695, %v1301_v20  ;;  %v1309_v52 = vmul.f32 1.442695, %v1300_v21 }
 0x404   : > { %v1286_v54 = vpop.xlane.xlu0 %1285 }
 0x405   : > { %v1302_v61 = vsub.f32 %v1270_v48, %v1286_v54  ;;  %3615 = vpow2.f32 %v1311_v22 }
 0x406   : > { %v1298_v24 = vpop.xlane.xlu1 %1297  ;;  %3617 = vpow2.f32 %v1307_v23 }
 0x407   : > { %v1313_v57 = vmul.f32 1.442695, %v1302_v61  ;;  %v1306_v25 = vsub.f32 %v1274_v63, %v1298_v24 }
 0x408   : > { %v1295_v16 = vpop.xlane.xlu0 %1294 }
 0x409   : > { %3619 = vpow2.f32 %v1313_v57  ;;  %v1305_v26 = vsub.f32 %v1273_v59, %v1295_v16  ;;  %v1321_v28 = vmul.f32 1.442695, %v1306_v25 }
 0x40a   : > { %v1292_v27 = vpop.xlane.xlu1 %1291  ;;  %3621 = vpow2.f32 %v1309_v52 }
 0x40b   : > { %v1319_v7 = vmul.f32 1.442695, %v1305_v26  ;;  %v1304_v12 = vsub.f32 %v1272_v4, %v1292_v27 }
 0x40c   : > { %v1289_v29 = vpop.xlane.xlu0 %1288 }
 0x40d   : > { %3623 = vpow2.f32 %v1319_v7  ;;  %v1303_v2 = vsub.f32 %v1271_v3, %v1289_v29  ;;  %v1317_v32 = vmul.f32 1.442695, %v1304_v12 }
 0x40e   : > { %v1372_v30 = vpop.permute.xlu1 %1371  ;;  %3625 = vpow2.f32 %v1321_v28 }
 0x40f   : > { %v1315_v31 = vmul.f32 1.442695, %v1303_v2 }
 0x410   : > { %v1374_v33 = vpop.permute.xlu0 %1373 }
 0x411   : > { %3627 = vpow2.f32 %v1315_v31  ;;  %3387 = vmatprep.subr.bf16.mxu0 %v1374_v33 }
 0x412   : > { %3388 = vmatpush3.bf16.msra.mxu0 %v1374_v33  ;;  %v1370_v34 = vpop.permute.xlu1 %1369  ;;  %v4158_v35 = vpop.eup %3615  ;;  %3629 = vpow2.f32 %v1317_v32 }
 0x413   : > { %3389 = vmatprep.subr.bf16.mxu0 %v1372_v30  ;;  %v1329_v36 = vsel %vm887_vm1, %v4158_v35, 0.0  ;;  %v3618_v37 = vpop.eup %3617 }
 0x414   : > { %1330 = vadd.xlane.f32.xlu0 %v1329_v36  ;;  %v1323_v44 = vsel %vm887_vm1, %v3618_v37, 0.0 }
 0x416   : > { %v3620_v38 = vpop.eup %3619  ;;  %3390 = vmatpush3.bf16.msra.mxu0 %v1372_v30  ;;  %v1368_v47 = vpop.permute.xlu1 %1367 }
 0x417   : > { %v1332_v39 = vsel %vm887_vm1, %v3620_v38, 0.0  ;;  %3391 = vmatprep.subr.bf16.mxu0 %v1370_v34  ;;  %v3622_v42 = vpop.eup %3621 }
 0x418   : > { %1333 = vadd.xlane.f32.xlu1 %v1332_v39  ;;  %1324 = vadd.xlane.f32.xlu0 %v1323_v44  ;;  %v1326_v53 = vsel %vm887_vm1, %v3622_v42, 0.0 }
 0x41a   : > { %v4164_v48 = vpop.eup %3623  ;;  %3392 = vmatpush3.bf16.msra.mxu0 %v1370_v34 }
 0x41b   : > { %v1341_v55 = vsel %vm887_vm1, %v4164_v48, 0.0  ;;  %3393 = vmatprep.subr.bf16.mxu0 %v1368_v47  ;;  %v3626_v56 = vpop.eup %3625 }
 0x41c   : > { %1327 = vadd.xlane.f32.xlu1 %v1326_v53  ;;  %1342 = vadd.xlane.f32.xlu0 %v1341_v55  ;;  %v1344_v60 = vsel %vm887_vm1, %v3626_v56, 0.0 }
 0x41e   : > { %v3628_v58 = vpop.eup %3627  ;;  %3394 = vmatpush3.bf16.msra.mxu0 %v1368_v47  ;;  %v4226_v47 = vld [vmem:[%s3976_s22 + $0x8] sm:$0xff] }
 0x41f   : > { %v1335_v59 = vsel %vm887_vm1, %v3628_v58, 0.0  ;;  %v3630_v62 = vpop.eup %3629 }
 0x420   : > { %1336 = vadd.xlane.f32.xlu1 %v1335_v59  ;;  %1345 = vadd.xlane.f32.xlu0 %v1344_v60  ;;  %v1338_v63 = vsel %vm887_vm1, %v3630_v62, 0.0  ;;  %v4234_v59 = vld [vmem:[%s3976_s22 + $0x18] sm:$0xff] }
 0x424   : > { %1339 = vadd.xlane.f32.xlu0 %v1338_v63  ;;  %v4237_v63 = vld [vmem:[%s3976_s22 + $0x68] sm:$0xff] }
 0x431   : > { %1533 = vrot.lane.b32.xlu1 %v3928_v41, %s3764_s27 }
 0x435   : > { %1531 = vrot.lane.b32.xlu1 %v3947_v45, %s3764_s27 }
 0x439   : > { %1529 = vrot.lane.b32.xlu1 %v3952_v46, %s3764_s27 }
 0x43a   : > { %1535 = vrot.lane.b32.xlu0 %v3925_v40, %s3764_s27 }
 0x43d   : > { %1523 = vrot.lane.b32.xlu1 %v3961_v49, %s3764_s27 }
 0x43e   : > { %1521 = vrot.lane.b32.xlu0 %v3940_v43, %s3764_s27 }
 0x441   : > { %1527 = vrot.lane.b32.xlu1 %v3971_v51, %s3764_s27 }
 0x442   : > { %1525 = vrot.lane.b32.xlu0 %v3964_v50, %s3764_s27 }
 0x49d   : > { %v1331_v41 = vpop.xlane.xlu0 %1330 }
 0x4a1   : > { %v1334_v45 = vpop.xlane.xlu1 %1333  ;;  %v1325_v0 = vpop.xlane.xlu0 %1324 }
 0x4a2   : > { %3631 = vrcp.f32 %v1334_v45 }
 0x4a3   : > { %3633 = vrcp.f32 %v1325_v0 }
 0x4a4   : > { %3635 = vrcp.f32 %v1331_v41 }
 0x4a5   : > { %v1328_v46 = vpop.xlane.xlu1 %1327  ;;  %v1343_v40 = vpop.xlane.xlu0 %1342 }
 0x4a6   : > { %3637 = vrcp.f32 %v1328_v46 }
 0x4a9   : > { %v1337_v1 = vpop.xlane.xlu1 %1336  ;;  %v1346_v49 = vpop.xlane.xlu0 %1345 }
 0x4aa   : > { %3639 = vrcp.f32 %v1346_v49 }
 0x4ab   : > { %3641 = vrcp.f32 %v1337_v1 }
 0x4ac   : > { %3643 = vrcp.f32 %v1343_v40 }
 0x4ad   : > { %v1340_v43 = vpop.xlane.xlu0 %1339  ;;  %v1534_v20 = vpop.permute.xlu1 %1533 }
 0x4ae   : > { %3645 = vrcp.f32 %v1340_v43  ;;  %v1556_v26 = vsel %vm789_vm0, %v1534_v20, 0 }
 0x4af   : > { %v3632_v51 = vpop.eup %3631 }
 0x4b0   : > { %v3634_v4 = vpop.eup %3633  ;;  %v1358_v3 = vmul.f32 %v3632_v51, %v3620_v38  ;;  %v4244_v51 = vld [vmem:[%s3976_s22 + $0x48] sm:$0xff] }
 0x4b1   : > { %v3636_v5 = vpop.eup %3635  ;;  %v1536_v50 = vpop.permute.xlu0 %1535  ;;  %v1355_v13 = vmul.f32 %v3634_v4, %v3618_v37  ;;  %v4247_v4 = vld [vmem:[%s3976_s22 + $0x78] sm:$0xff] }
 0x4b2   : > { %3499 = vmatprep.subr.msk.bf16.mxu0 %vm789_vm0, %v1536_v50  ;;  %v1357_v15 = vmul.f32 %v3636_v5, %v4158_v35  ;;  %v1559_v19 = vsel %vm789_vm0, %v1536_v50, 0  ;;  %v1532_v7 = vpop.permute.xlu1 %1531 }
 0x4b3   : > { %v3638_v6 = vpop.eup %3637  ;;  %v1553_v28 = vsel %vm789_vm0, %v1532_v7, 0 }
 0x4b4   : > { %v1356_v14 = vmul.f32 %v3638_v6, %v3622_v42  ;;  %v1364_v18 = vpack.c.bf16 %v1358_v3, %v1357_v15  ;;  %v4223_v42 = vld [vmem:[%s3976_s22 + $0x28] sm:$0xff] }
 0x4b5   : > { %v1522_v27 = vpop.permute.xlu0 %1521 }
 0x4b6   : > { %v1363_v17 = vpack.c.bf16 %v1356_v14, %v1355_v13  ;;  %v1530_v12 = vpop.permute.xlu1 %1529  ;;  %v4252_v13 = vld [vmem:[%s3976_s22 + $0x58] sm:$0xff] }
 0x4b7   : > { %v3640_v21 = vpop.eup %3639  ;;  %v1550_v29 = vsel %vm789_vm0, %v1530_v12, 0 }
 0x4b8   : > { %3395 = vmatprep.mubr.msk.bf16.mxu0 %vm887_vm1, %v1363_v17  ;;  %v3642_v22 = vpop.eup %3641  ;;  %v1362_v61 = vmul.f32 %v3640_v21, %v3626_v56  ;;  %v4231_v56 = vld [vmem:[%s3976_s22 + $0x38] sm:$0xff]  ;;  %s4665_s22 = scalar_lea.vmem [#allocation8], %s3919_s14 }
 0x4b9   : > { %3396 = vmatmul.mubr.msk.bf16.vlgmr.msra.gmra.mxu0 %vm887_vm1, %v1364_v18  ;;  %v3644_v23 = vpop.eup %3643  ;;  %v1359_v24 = vmul.f32 %v3642_v22, %v3628_v58  ;;  %v1526_v30 = vpop.permute.xlu0 %1525 }
 0x4ba   : > { %3404 = vmatpush3.bf16.xpose.msra.mxu0 %v1559_v19  ;;  %v1361_v57 = vmul.f32 %v3644_v23, %v4164_v48  ;;  %v1524_v2 = vpop.permute.xlu1 %1523 }
 0x4bb   : > { %3500 = vmatprep.subr.msk.bf16.mxu0 %vm789_vm0, %v1534_v20  ;;  %v3646_v54 = vpop.eup %3645 }
 0x4bc   : > { %v1360_v52 = vmul.f32 %v3646_v54, %v3630_v62  ;;  %v1366_v16 = vpack.c.bf16 %v1362_v61, %v1361_v57 }
 0x4be   : > { %v1365_v25 = vpack.c.bf16 %v1360_v52, %v1359_v24  ;;  %v1528_v31 = vpop.permute.xlu1 %1527 }
 0x4c0   : > { %3399 = vmatprep.mubr.msk.bf16.mxu0 %vm887_vm1, %v1365_v25 }
 0x4c1   : > { %3400 = vmatmul.mubr.msk.bf16.gmra.mxu0 %vm887_vm1, %v1366_v16 }
 0x4c2   : > { %3406 = vmatpush3.bf16.xpose.msra.mxu0 %v1556_v26  ;;  %3411 = vmatprep.mubr.msk.bf16.mxu0 %vm789_vm0, %v1522_v27 }
 0x4c3   : > { %3501 = vmatprep.subr.msk.bf16.mxu0 %vm789_vm0, %v1532_v7 }
 0x4ca   : > { %3408 = vmatpush3.bf16.xpose.msra.mxu0 %v1553_v28 }
 0x4cb   : > { %3502 = vmatprep.subr.msk.bf16.mxu0 %vm789_vm0, %v1530_v12 }
 0x4d2   : > { %3410 = vmatpush3.bf16.xpose.msra.mxu0 %v1550_v29 }
 0x4d9   : > { %3412 = vmatmul.mubr.msk.bf16.vlgmr.msra.gmra.mxu0 %vm789_vm0, %v1524_v2 }
 0x4da   : > { %3415 = vmatprep.mubr.msk.bf16.mxu0 %vm789_vm0, %v1526_v30 }
 0x4e1   : > { %3416 = vmatmul.mubr.msk.bf16.gmra.mxu0 %vm789_vm0, %v1528_v31 }
 0x579   : > { %v4206_v32 = vpop.f32.mrf.mxu0 }
 0x57b   : > { %v4208_v33 = vpop.f32.mrf.mxu0 }
 0x57d   : > { %v4210_v34 = vpop.f32.mrf.mxu0 }
 0x57f   : > { %v4212_v35 = vpop.f32.mrf.mxu0 }
 0x581   : > { %v4214_v36 = vpop.f32.mrf.mxu0 }
 0x583   : > { %v4216_v37 = vpop.f32.mrf.mxu0 }
 0x585   : > { %v4218_v38 = vpop.f32.mrf.mxu0 }
 0x587   : > { %v4220_v39 = vpop.f32.mrf.mxu0 }
 0x599   : > { %v3413_v44 = vpop.f32.mrf.mxu0 }
 0x59a   : > { %v1604_v53 = vadd.f32 %v3413_v44, %v4223_v42 }
 0x59b   : > { %v1595_v48 = vpop.f32.mrf.mxu0 }
 0x59c   : > { %v1596_v55 = vadd.f32 %v1595_v48, %v4226_v47  ;;  %v1628_v41 = vmul.f32 0.17677669, %v1604_v53 }
 0x59d   : > { %v3414_v58 = vpop.f32.mrf.mxu0 }
 0x59e   : > { %v1626_v60 = vmul.f32 0.17677669, %v1596_v55  ;;  %v1607_v45 = vadd.f32 %v3414_v58, %v4231_v56  ;;  %v1640_v6 = vsel %vm887_vm1, %v1628_v41, -inf }
 0x59f   : > { %v1598_v62 = vpop.f32.mrf.mxu0 }
 0x5a0   : > { %v1599_v0 = vadd.f32 %v1598_v62, %v4234_v59  ;;  %v1634_v46 = vsel %vm887_vm1, %v1626_v60, -inf  ;;  %v1629_v5 = vmul.f32 0.17677669, %v1607_v45 }
 0x5a1   : > { %1635 = vmax.xlane.f32.xlu0 %v1634_v46  ;;  %v3417_v40 = vpop.f32.mrf.mxu0 }
 0x5a2   : > { %v1627_v1 = vmul.f32 0.17677669, %v1599_v0  ;;  %v1620_v49 = vadd.f32 %v3417_v40, %v4237_v63  ;;  %v1643_v20 = vsel %vm887_vm1, %v1629_v5, -inf }
 0x5a3   : > { %v1611_v43 = vpop.f32.mrf.mxu0 }
 0x5a4   : > { %v1637_v50 = vsel %vm887_vm1, %v1627_v1, -inf  ;;  %v1632_v14 = vmul.f32 0.17677669, %v1620_v49  ;;  %v1612_v15 = vadd.f32 %v1611_v43, %v4244_v51 }
 0x5a5   : > { %1638 = vmax.xlane.f32.xlu1 %v1637_v50  ;;  %1641 = vmax.xlane.f32.xlu0 %v1640_v6  ;;  %v3418_v3 = vpop.f32.mrf.mxu0 }
 0x5a6   : > { %v1623_v17 = vadd.f32 %v3418_v3, %v4247_v4  ;;  %v1630_v22 = vmul.f32 0.17677669, %v1612_v15  ;;  %v1652_v61 = vsel %vm887_vm1, %v1632_v14, -inf }
 0x5a7   : > { %v1614_v18 = vpop.f32.mrf.mxu0 }
 0x5a8   : > { %v1633_v19 = vmul.f32 0.17677669, %v1623_v17  ;;  %v1615_v21 = vadd.f32 %v1614_v18, %v4252_v13  ;;  %v1646_v52 = vsel %vm887_vm1, %v1630_v22, -inf }
 0x5a9   : > { %1644 = vmax.xlane.f32.xlu0 %v1643_v20 }
 0x5aa   : > { %v1631_v23 = vmul.f32 0.17677669, %v1615_v21  ;;  %v1655_v54 = vsel %vm887_vm1, %v1633_v19, -inf }
 0x5ab   : > { %1656 = vmax.xlane.f32.xlu1 %v1655_v54  ;;  %v3727_v54 = vld [vmem:[%s3922_s15 + $0x20] ss:$8 sps:$4 sm:$0xff]  }
 0x5ac   : > { %v1649_v24 = vsel %vm887_vm1, %v1631_v23, -inf }
 0x5ad   : > { %1653 = vmax.xlane.f32.xlu0 %v1652_v61  ;;  %v3728_v61 = vld [vmem:[%s3922_s15 + $0x10] ss:$8 sps:$4 sm:$0xff]  }
 0x5af   : > { %1650 = vmax.xlane.f32.xlu1 %v1649_v24  ;;  %v3729_v24 = vld [vmem:[%s3922_s15] ss:$8 sps:$4 sm:$0xff]  }
 0x5b1   : > { %1647 = vmax.xlane.f32.xlu0 %v1646_v52  ;;  %v3730_v52 = vld [vmem:[%s3922_s15 + $0x30] ss:$8 sps:$4 sm:$0xff]  }
 0x5c0   : > { %1730 = vrot.lane.b32.xlu1 %v4054_v9, %s3764_s27 }
 0x5c4   : > { %1728 = vrot.lane.b32.xlu1 %v4061_v10, %s3764_s27 }
 0x5c7   : > { %1732 = vrot.lane.b32.xlu0 %v4049_v8, %s3764_s27 }
 0x5c8   : > { %1726 = vrot.lane.b32.xlu1 %v4067_v11, %s3764_s27 }
 0x62a   : > { %v1636_v57 = vpop.xlane.xlu0 %1635 }
 0x62b   : > { %v1658_v25 = vsub.f32 %v1626_v60, %v1636_v57  ;;  %v3731_v57 = vld [vmem:[%s3937_s19 + $0x8] sm:$0xff]  }
 0x62d   : > { %v1666_v12 = vmul.f32 1.442695, %v1658_v25  ;;  %v3732_v25 = vld [vmem:[%s3937_s19] sm:$0xff]  }
 0x62e   : > { %v1639_v16 = vpop.xlane.xlu1 %1638  ;;  %v1642_v26 = vpop.xlane.xlu0 %1641 }
 0x62f   : > { %v1660_v27 = vsub.f32 %v1628_v41, %v1642_v26  ;;  %v1659_v7 = vsub.f32 %v1627_v1, %v1639_v16  ;;  %v3733_v16 = vld [vmem:[%s3937_s19 + $0x18] sm:$0xff]   ;;  %v3734_v26 = vld [vmem:[%s3937_s19 + $0x10] sm:$0xff]  }
 0x631   : > { %v1670_v28 = vmul.f32 1.442695, %v1660_v27  ;;  %v1668_v30 = vmul.f32 1.442695, %v1659_v7 }
 0x632   : > { %v1645_v29 = vpop.xlane.xlu0 %1644 }
 0x633   : > { %v1661_v2 = vsub.f32 %v1629_v5, %v1645_v29  ;;  %3647 = vpow2.f32 %v1670_v28 }
 0x634   : > { %v1657_v9 = vpop.xlane.xlu1 %1656  ;;  %3649 = vpow2.f32 %v1666_v12 }
 0x635   : > { %v1672_v10 = vmul.f32 1.442695, %v1661_v2  ;;  %v1665_v31 = vsub.f32 %v1633_v19, %v1657_v9 }
 0x636   : > { %v1654_v8 = vpop.xlane.xlu0 %1653 }
 0x637   : > { %3651 = vpow2.f32 %v1672_v10  ;;  %v1664_v44 = vsub.f32 %v1632_v14, %v1654_v8  ;;  %v1680_v53 = vmul.f32 1.442695, %v1665_v31 }
 0x638   : > { %v1651_v11 = vpop.xlane.xlu1 %1650  ;;  %3653 = vpow2.f32 %v1668_v30 }
 0x639   : > { %v1678_v48 = vmul.f32 1.442695, %v1664_v44  ;;  %v1663_v55 = vsub.f32 %v1631_v23, %v1651_v11 }
 0x63a   : > { %v1648_v58 = vpop.xlane.xlu0 %1647 }
 0x63b   : > { %3655 = vpow2.f32 %v1678_v48  ;;  %v1662_v60 = vsub.f32 %v1630_v22, %v1648_v58  ;;  %v1676_v45 = vmul.f32 1.442695, %v1663_v55 }
 0x63c   : > { %v1731_v62 = vpop.permute.xlu1 %1730  ;;  %3657 = vpow2.f32 %v1680_v53 }
 0x63d   : > { %v1674_v41 = vmul.f32 1.442695, %v1662_v60 }
 0x63e   : > { %v1733_v0 = vpop.permute.xlu0 %1732 }
 0x63f   : > { %3659 = vpow2.f32 %v1674_v41  ;;  %3419 = vmatprep.subr.bf16.mxu1 %v1733_v0 }
 0x640   : > { %3420 = vmatpush3.bf16.msra.mxu1 %v1733_v0  ;;  %v1729_v46 = vpop.permute.xlu1 %1728  ;;  %v4270_v40 = vpop.eup %3647  ;;  %3661 = vpow2.f32 %v1676_v45 }
 0x641   : > { %3421 = vmatprep.subr.bf16.mxu1 %v1731_v62  ;;  %v1688_v1 = vsel %vm887_vm1, %v4270_v40, 0.0  ;;  %v4274_v49 = vpop.eup %3649 }
 0x642   : > { %1689 = vadd.xlane.f32.xlu0 %v1688_v1  ;;  %v1682_v6 = vsel %vm887_vm1, %v4274_v49, 0.0 }
 0x644   : > { %v4276_v43 = vpop.eup %3651  ;;  %3422 = vmatpush3.bf16.msra.mxu1 %v1731_v62  ;;  %v1727_v3 = vpop.permute.xlu1 %1726 }
 0x645   : > { %v1691_v5 = vsel %vm887_vm1, %v4276_v43, 0.0  ;;  %3423 = vmatprep.subr.bf16.mxu1 %v1729_v46  ;;  %v4280_v50 = vpop.eup %3653 }
 0x646   : > { %1692 = vadd.xlane.f32.xlu1 %v1691_v5  ;;  %1683 = vadd.xlane.f32.xlu0 %v1682_v6  ;;  %v1685_v15 = vsel %vm887_vm1, %v4280_v50, 0.0 }
 0x648   : > { %v4284_v14 = vpop.eup %3655  ;;  %3424 = vmatpush3.bf16.msra.mxu1 %v1729_v46 }
 0x649   : > { %v1700_v17 = vsel %vm887_vm1, %v4284_v14, 0.0  ;;  %3425 = vmatprep.subr.bf16.mxu1 %v1727_v3  ;;  %v4290_v18 = vpop.eup %3657 }
 0x64a   : > { %1686 = vadd.xlane.f32.xlu1 %v1685_v15  ;;  %1701 = vadd.xlane.f32.xlu0 %v1700_v17  ;;  %v1703_v21 = vsel %vm887_vm1, %v4290_v18, 0.0 }
 0x64c   : > { %v4292_v19 = vpop.eup %3659  ;;  %3426 = vmatpush3.bf16.msra.mxu1 %v1727_v3 }
 0x64d   : > { %v1694_v20 = vsel %vm887_vm1, %v4292_v19, 0.0  ;;  %v4298_v22 = vpop.eup %3661 }
 0x64e   : > { %1695 = vadd.xlane.f32.xlu1 %v1694_v20  ;;  %1704 = vadd.xlane.f32.xlu0 %v1703_v21  ;;  %v1697_v23 = vsel %vm887_vm1, %v4298_v22, 0.0 }
 0x652   : > { %1698 = vadd.xlane.f32.xlu0 %v1697_v23 }
 0x65f   : > { %1892 = vrot.lane.b32.xlu1 %v3727_v54, %s3765_s28 }
 0x663   : > { %1890 = vrot.lane.b32.xlu1 %v3728_v61, %s3765_s28 }
 0x667   : > { %1888 = vrot.lane.b32.xlu1 %v3729_v24, %s3765_s28 }
 0x668   : > { %1894 = vrot.lane.b32.xlu0 %v3730_v52, %s3765_s28 }
 0x66b   : > { %1882 = vrot.lane.b32.xlu1 %v3731_v57, %s3765_s28 }
 0x66c   : > { %1880 = vrot.lane.b32.xlu0 %v3732_v25, %s3765_s28 }
 0x66f   : > { %1886 = vrot.lane.b32.xlu1 %v3733_v16, %s3765_s28 }
 0x670   : > { %1884 = vrot.lane.b32.xlu0 %v3734_v26, %s3765_s28 }
 0x673   : > { %1906 = vrot.lane.b32.xlu1 %v4234_v59, %s3764_s27 }
 0x674   : > { %1904 = vrot.lane.b32.xlu0 %v4226_v47, %s3764_s27 }
 0x677   : > { %1910 = vrot.lane.b32.xlu1 %v4231_v56, %s3764_s27 }
 0x678   : > { %1908 = vrot.lane.b32.xlu0 %v4223_v42, %s3764_s27 }
 0x67b   : > { %1914 = vrot.lane.b32.xlu1 %v4252_v13, %s3764_s27 }
 0x67c   : > { %1912 = vrot.lane.b32.xlu0 %v4244_v51, %s3764_s27 }
 0x67f   : > { %1918 = vrot.lane.b32.xlu1 %v4247_v4, %s3764_s27 }
 0x680   : > { %1916 = vrot.lane.b32.xlu0 %v4237_v63, %s3764_s27 }
 0x6cb   : > { %v1690_v59 = vpop.xlane.xlu0 %1689 }
 0x6cf   : > { %v1693_v47 = vpop.xlane.xlu1 %1692  ;;  %v1684_v27 = vpop.xlane.xlu0 %1683 }
 0x6d0   : > { %3663 = vrcp.f32 %v1693_v47 }
 0x6d1   : > { %3665 = vrcp.f32 %v1684_v27 }
 0x6d2   : > { %3667 = vrcp.f32 %v1690_v59 }
 0x6d3   : > { %v1687_v56 = vpop.xlane.xlu1 %1686  ;;  %v1702_v42 = vpop.xlane.xlu0 %1701 }
 0x6d4   : > { %3669 = vrcp.f32 %v1687_v56 }
 0x6d7   : > { %v1696_v7 = vpop.xlane.xlu1 %1695  ;;  %v1705_v13 = vpop.xlane.xlu0 %1704 }
 0x6d8   : > { %3671 = vrcp.f32 %v1705_v13 }
 0x6d9   : > { %3673 = vrcp.f32 %v1696_v7 }
 0x6da   : > { %3675 = vrcp.f32 %v1702_v42 }
 0x6db   : > { %v1699_v51 = vpop.xlane.xlu0 %1698  ;;  %v1893_v11 = vpop.permute.xlu1 %1892 }
 0x6dc   : > { %3677 = vrcp.f32 %v1699_v51  ;;  %v1947_v46 = vsel %vm789_vm0, %v1893_v11, 0 }
 0x6dd   : > { %v3664_v4 = vpop.eup %3663 }
 0x6de   : > { %v3666_v28 = vpop.eup %3665  ;;  %v1717_v2 = vmul.f32 %v3664_v4, %v4276_v43 }
 0x6df   : > { %v3668_v12 = vpop.eup %3667  ;;  %v1895_v63 = vpop.permute.xlu0 %1894  ;;  %v1714_v9 = vmul.f32 %v3666_v28, %v4274_v49 }
 0x6e0   : > { %3503 = vmatprep.subr.msk.bf16.mxu1 %vm789_vm0, %v1895_v63  ;;  %v1716_v10 = vmul.f32 %v3668_v12, %v4270_v40  ;;  %v1950_v44 = vsel %vm789_vm0, %v1895_v63, 0  ;;  %v1891_v49 = vpop.permute.xlu1 %1890 }
 0x6e1   : > { %v3670_v29 = vpop.eup %3669  ;;  %v1944_v43 = vsel %vm789_vm0, %v1891_v49, 0 }
 0x6e2   : > { %v1715_v30 = vmul.f32 %v3670_v29, %v4280_v50  ;;  %v1723_v8 = vpack.c.bf16 %v1717_v2, %v1716_v10 }
 0x6e3   : > { %v1881_v1 = vpop.permute.xlu0 %1880 }
 0x6e4   : > { %v1722_v31 = vpack.c.bf16 %v1715_v30, %v1714_v9  ;;  %v1889_v5 = vpop.permute.xlu1 %1888 }
 0x6e5   : > { %v3672_v48 = vpop.eup %3671  ;;  %v1941_v50 = vsel %vm789_vm0, %v1889_v5, 0 }
 0x6e6   : > { %3427 = vmatprep.mubr.msk.bf16.mxu1 %vm887_vm1, %v1722_v31  ;;  %v3674_v53 = vpop.eup %3673  ;;  %v1721_v60 = vmul.f32 %v3672_v48, %v4290_v18 }
 0x6e7   : > { %3428 = vmatmul.mubr.msk.bf16.vlgmr.msra.gmra.mxu1 %vm887_vm1, %v1723_v8  ;;  %v3676_v55 = vpop.eup %3675  ;;  %v1718_v62 = vmul.f32 %v3674_v53, %v4292_v19  ;;  %v1885_v3 = vpop.permute.xlu0 %1884 }
 0x6e8   : > { %3436 = vmatpush3.bf16.xpose.msra.mxu1 %v1950_v44  ;;  %v1720_v45 = vmul.f32 %v3676_v55, %v4284_v14  ;;  %v1883_v6 = vpop.permute.xlu1 %1882 }
 0x6e9   : > { %3504 = vmatprep.subr.msk.bf16.mxu1 %vm789_vm0, %v1893_v11  ;;  %v3678_v58 = vpop.eup %3677 }
 0x6ea   : > { %v1719_v41 = vmul.f32 %v3678_v58, %v4298_v22  ;;  %v1725_v40 = vpack.c.bf16 %v1721_v60, %v1720_v45 }
 0x6eb   : > { %v1905_v22 = vpop.permute.xlu0 %1904 }
 0x6ec   : > { %v1724_v0 = vpack.c.bf16 %v1719_v41, %v1718_v62  ;;  %v1887_v14 = vpop.permute.xlu1 %1886 }
 0x6ee   : > { %3431 = vmatprep.mubr.msk.bf16.mxu1 %vm887_vm1, %v1724_v0 }
 0x6ef   : > { %3432 = vmatmul.mubr.msk.bf16.gmra.mxu1 %vm887_vm1, %v1725_v40  ;;  %v1909_v24 = vpop.permute.xlu0 %1908 }
 0x6f0   : > { %3438 = vmatpush3.bf16.xpose.msra.mxu1 %v1947_v46  ;;  %3443 = vmatprep.mubr.msk.bf16.mxu1 %vm789_vm0, %v1881_v1  ;;  %v1907_v54 = vpop.permute.xlu1 %1906  ;;  %v3735_v1 = vld [vmem:[%s3922_s15 + $0x34] ss:$8 sps:$4 sm:$0xff]  }
 0x6f1   : > { %3505 = vmatprep.subr.msk.bf16.mxu1 %vm789_vm0, %v1891_v49 }
 0x6f3   : > { %v1913_v27 = vpop.permute.xlu0 %1912 }
 0x6f4   : > { %v1911_v57 = vpop.permute.xlu1 %1910 }
 0x6f7   : > { %v1917_v10 = vpop.permute.xlu0 %1916 }
 0x6f8   : > { %3440 = vmatpush3.bf16.xpose.msra.mxu1 %v1944_v43  ;;  %v1915_v42 = vpop.permute.xlu1 %1914 }
 0x6f9   : > { %3506 = vmatprep.subr.msk.bf16.mxu1 %vm789_vm0, %v1889_v5 }
 0x6fc   : > { %v1919_v31 = vpop.permute.xlu1 %1918 }
 0x700   : > { %3442 = vmatpush3.bf16.xpose.msra.mxu1 %v1941_v50 }
 0x707   : > { %3444 = vmatmul.mubr.msk.bf16.vlgmr.msra.gmra.mxu1 %vm789_vm0, %v1883_v6 }
 0x708   : > { %3447 = vmatprep.mubr.msk.bf16.mxu1 %vm789_vm0, %v1885_v3 }
 0x70f   : > { %3448 = vmatmul.mubr.msk.bf16.gmra.mxu1 %vm789_vm0, %v1887_v14 }
 0x7a7   : > { %v4358_v15 = vpop.f32.mrf.mxu1 }
 0x7a9   : > { %v4360_v17 = vpop.f32.mrf.mxu1 }
 0x7ab   : > { %v4362_v18 = vpop.f32.mrf.mxu1 }
 0x7ad   : > { %v4364_v19 = vpop.f32.mrf.mxu1 }
 0x7af   : > { %v4366_v20 = vpop.f32.mrf.mxu1 }
 0x7b1   : > { %v4368_v21 = vpop.f32.mrf.mxu1 }
 0x7b3   : > { %v4370_v23 = vpop.f32.mrf.mxu1 }
 0x7b5   : > { %v4372_v61 = vpop.f32.mrf.mxu1 }
 0x7c7   : > { %v3445_v52 = vpop.f32.mrf.mxu1 }
 0x7c8   : > { %v1995_v16 = vadd.f32 %v3445_v52, %v1909_v24 }
 0x7c9   : > { %v1986_v25 = vpop.f32.mrf.mxu1 }
 0x7ca   : > { %v1987_v26 = vadd.f32 %v1986_v25, %v1905_v22  ;;  %v2019_v7 = vmul.f32 0.17677669, %v1995_v16 }
 0x7cb   : > { %v3446_v59 = vpop.f32.mrf.mxu1 }
 0x7cc   : > { %v2017_v47 = vmul.f32 0.17677669, %v1987_v26  ;;  %v1998_v13 = vadd.f32 %v3446_v59, %v1911_v57  ;;  %v2031_v30 = vsel %vm887_vm1, %v2019_v7, -inf }
 0x7cd   : > { %v1989_v56 = vpop.f32.mrf.mxu1 }
 0x7ce   : > { %v1990_v51 = vadd.f32 %v1989_v56, %v1907_v54  ;;  %v2025_v4 = vsel %vm887_vm1, %v2017_v47, -inf  ;;  %v2020_v29 = vmul.f32 0.17677669, %v1998_v13 }
 0x7cf   : > { %v3449_v28 = vpop.f32.mrf.mxu1  ;;  %2026 = vmax.xlane.f32.xlu0 %v2025_v4 }
 0x7d0   : > { %v2018_v12 = vmul.f32 0.17677669, %v1990_v51  ;;  %v2011_v44 = vadd.f32 %v3449_v28, %v1917_v10  ;;  %v2034_v58 = vsel %vm887_vm1, %v2020_v29, -inf }
 0x7d1   : > { %v2002_v63 = vpop.f32.mrf.mxu1 }
 0x7d2   : > { %v2003_v2 = vadd.f32 %v2002_v63, %v1913_v27  ;;  %v2028_v9 = vsel %vm887_vm1, %v2018_v12, -inf  ;;  %v2023_v41 = vmul.f32 0.17677669, %v2011_v44 }
 0x7d3   : > { %2029 = vmax.xlane.f32.xlu1 %v2028_v9  ;;  %v3450_v8 = vpop.f32.mrf.mxu1  ;;  %2032 = vmax.xlane.f32.xlu0 %v2031_v30 }
 0x7d4   : > { %v2021_v48 = vmul.f32 0.17677669, %v2003_v2  ;;  %v2014_v53 = vadd.f32 %v3450_v8, %v1919_v31  ;;  %v2043_v40 = vsel %vm887_vm1, %v2023_v41, -inf }
 0x7d5   : > { %v2005_v11 = vpop.f32.mrf.mxu1 }
 0x7d6   : > { %v2006_v55 = vadd.f32 %v2005_v11, %v1915_v42  ;;  %v2024_v62 = vmul.f32 0.17677669, %v2014_v53  ;;  %v2037_v0 = vsel %vm887_vm1, %v2021_v48, -inf }
 0x7d7   : > { %2035 = vmax.xlane.f32.xlu0 %v2034_v58 }
 0x7d8   : > { %v2022_v60 = vmul.f32 0.17677669, %v2006_v55  ;;  %v2046_v46 = vsel %vm887_vm1, %v2024_v62, -inf }
 0x7da   : > { %v2040_v45 = vsel %vm887_vm1, %v2022_v60, -inf }
 0x7db   : > { %2041 = vmax.xlane.f32.xlu1 %v2040_v45  ;;  %2038 = vmax.xlane.f32.xlu0 %v2037_v0  ;;  %v3230_v45 = vpack.c.bf16 %v4208_v33, %v4208_v33  ;;  %v3232_v0 = vpack.c.bf16 %v4206_v32, %v4206_v32  ;;  %v3240_v33 = vpack.c.bf16 %v4358_v15, %v4358_v15 }
 0x7dc   : > { %v3233_v32 = vpack.c.bf16 %v4210_v34, %v4210_v34  ;;  %v3241_v15 = vpack.c.bf16 %v4362_v18, %v4362_v18  ;;  %v3235_v34 = vpack.c.bf16 %v4220_v39, %v4220_v39 }
 0x7df   : > { %2047 = vmax.xlane.f32.xlu1 %v2046_v46  ;;  %2044 = vmax.xlane.f32.xlu0 %v2043_v40  ;;  %v3238_v46 = vpack.c.bf16 %v4360_v17, %v4360_v17  ;;  %v3738_v40 = vld [vmem:[%s3922_s15 + $0x24] ss:$8 sps:$4 sm:$0xff]   ;;  %v3234_v17 = vpack.c.bf16 %v4216_v37, %v4216_v37 }
 0x7f5   : > { %2123 = vrot.lane.b32.xlu0 %v3735_v1, %s3765_s28  ;;  %v3231_v1 = vpack.c.bf16 %v4212_v35, %v4212_v35  ;;  %v3239_v35 = vpack.c.bf16 %v4364_v19, %v4364_v19 }
 0x858   : > { %v2027_v49 = vpop.xlane.xlu0 %2026 }
 0x859   : > { %v2049_v43 = vsub.f32 %v2017_v47, %v2027_v49 }
 0x85b   : > { %v2057_v22 = vmul.f32 1.442695, %v2049_v43 }
 0x85c   : > { %v2030_v5 = vpop.xlane.xlu1 %2029  ;;  %v2033_v50 = vpop.xlane.xlu0 %2032 }
 0x85d   : > { %v2051_v6 = vsub.f32 %v2019_v7, %v2033_v50  ;;  %v2050_v3 = vsub.f32 %v2018_v12, %v2030_v5 }
 0x85f   : > { %v2061_v14 = vmul.f32 1.442695, %v2051_v6  ;;  %v2059_v52 = vmul.f32 1.442695, %v2050_v3 }
 0x860   : > { %v2036_v54 = vpop.xlane.xlu0 %2035 }
 0x861   : > { %v2052_v24 = vsub.f32 %v2020_v29, %v2036_v54  ;;  %3679 = vpow2.f32 %v2061_v14 }
 0x862   : > { %3681 = vpow2.f32 %v2057_v22 }
 0x863   : > { %v2063_v57 = vmul.f32 1.442695, %v2052_v24 }
 0x864   : > { %v2042_v25 = vpop.xlane.xlu1 %2041  ;;  %v2039_v16 = vpop.xlane.xlu0 %2038 }
 0x865   : > { %3683 = vpow2.f32 %v2063_v57  ;;  %v2053_v26 = vsub.f32 %v2021_v48, %v2039_v16  ;;  %v2054_v4 = vsub.f32 %v2022_v60, %v2042_v25 }
 0x866   : > { %3685 = vpow2.f32 %v2059_v52 }
 0x867   : > { %v2065_v42 = vmul.f32 1.442695, %v2053_v26  ;;  %v2067_v30 = vmul.f32 1.442695, %v2054_v4 }
 0x868   : > { %v2045_v59 = vpop.xlane.xlu0 %2044  ;;  %v2048_v27 = vpop.xlane.xlu1 %2047 }
 0x869   : > { %v2055_v47 = vsub.f32 %v2023_v41, %v2045_v59  ;;  %v2056_v7 = vsub.f32 %v2024_v62, %v2048_v27  ;;  %v3736_v62 = vld [vmem:[%s3922_s15 + $0x14] ss:$8 sps:$4 sm:$0xff]   ;;  %v3737_v41 = vld [vmem:[%s3922_s15 + $0x4] ss:$8 sps:$4 sm:$0xff]  }
 0x86b   : > { %v2069_v56 = vmul.f32 1.442695, %v2055_v47  ;;  %v2071_v28 = vmul.f32 1.442695, %v2056_v7 }
 0x86c   : > { %v2124_v13 = vpop.permute.xlu0 %2123 }
 0x86d   : > { %3451 = vmatprep.subr.bf16.mxu0 %v2124_v13  ;;  %3687 = vpow2.f32 %v2069_v56 }
 0x86e   : > { %3452 = vmatpush3.bf16.msra.mxu0 %v2124_v13  ;;  %v4384_v51 = vpop.eup %3679  ;;  %3689 = vpow2.f32 %v2065_v42 }
 0x86f   : > { %v2079_v12 = vsel %vm887_vm1, %v4384_v51, 0.0  ;;  %v4388_v63 = vpop.eup %3681  ;;  %3691 = vpow2.f32 %v2071_v28 }
 0x870   : > { %2080 = vadd.xlane.f32.xlu0 %v2079_v12  ;;  %v2073_v10 = vsel %vm887_vm1, %v4388_v63, 0.0  ;;  %3693 = vpow2.f32 %v2067_v30 }
 0x872   : > { %v4390_v29 = vpop.eup %3683 }
 0x873   : > { %v2082_v2 = vsel %vm887_vm1, %v4390_v29, 0.0  ;;  %v4394_v9 = vpop.eup %3685 }
 0x874   : > { %2083 = vadd.xlane.f32.xlu1 %v2082_v2  ;;  %2074 = vadd.xlane.f32.xlu0 %v2073_v10  ;;  %v2076_v31 = vsel %vm887_vm1, %v4394_v9, 0.0 }
 0x878   : > { %2077 = vadd.xlane.f32.xlu1 %v2076_v31 }
 0x87a   : > { %v4400_v8 = vpop.eup %3687 }
 0x87b   : > { %v2091_v44 = vsel %vm887_vm1, %v4400_v8, 0.0  ;;  %v4404_v11 = vpop.eup %3689 }
 0x87c   : > { %2092 = vadd.xlane.f32.xlu1 %v2091_v44  ;;  %v2085_v48 = vsel %vm887_vm1, %v4404_v11, 0.0  ;;  %v4408_v53 = vpop.eup %3691 }
 0x87d   : > { %v2094_v55 = vsel %vm887_vm1, %v4408_v53, 0.0  ;;  %v4412_v58 = vpop.eup %3693 }
 0x87e   : > { %v2088_v60 = vsel %vm887_vm1, %v4412_v58, 0.0 }
 0x880   : > { %2086 = vadd.xlane.f32.xlu1 %v2085_v48 }
 0x884   : > { %2095 = vadd.xlane.f32.xlu1 %v2094_v55 }
 0x888   : > { %2089 = vadd.xlane.f32.xlu1 %v2088_v60  ;;  %v3548_v60 = vld [vmem:[%s4716_s3 + $0x30] sm:$0xff]  }
 0x88a   : > { %2119 = vrot.lane.b32.xlu0 %v3736_v62, %s3765_s28  ;;  %v3551_v62 = vld [vmem:[%s4716_s3 + $0x18] sm:$0xff]  }
 0x88e   : > { %2117 = vrot.lane.b32.xlu0 %v3737_v41, %s3765_s28  ;;  %v3552_v41 = vld [vmem:[%s4716_s3 + $0x10] sm:$0xff]  }
 0x892   : > { %1480 = vrot.lane.b32.xlu0 %v3230_v45, %s3765_s28  ;;  %v3553_v45 = vld [vmem:[%s4716_s3 + $0x8] sm:$0xff]  }
 0x896   : > { %1484 = vrot.lane.b32.xlu0 %v3232_v0, %s3765_s28 }
 0x899   : > { %2121 = vrot.lane.b32.xlu1 %v3738_v40, %s3765_s28 }
 0x89a   : > { %1839 = vrot.lane.b32.xlu0 %v3238_v46, %s3764_s27 }
 0x89d   : > { %1482 = vrot.lane.b32.xlu1 %v3231_v1, %s3765_s28  ;;  %v3554_v1 = vld [vmem:[%s4716_s3] sm:$0xff]  }
 0x89e   : > { %1843 = vrot.lane.b32.xlu0 %v3240_v33, %s3764_s27 }
 0x8a1   : > { %1486 = vrot.lane.b32.xlu1 %v3233_v32, %s3765_s28 }
 0x8a2   : > { %1488 = vrot.lane.b32.xlu0 %v3234_v17, %s3765_s28 }
 0x8a5   : > { %1841 = vrot.lane.b32.xlu1 %v3239_v35, %s3764_s27 }
 0x8a9   : > { %1845 = vrot.lane.b32.xlu1 %v3241_v15, %s3764_s27  ;;  %v3236_v15 = vpack.c.bf16 %v4214_v36, %v4214_v36  ;;  %v3244_v36 = vpack.c.bf16 %v4366_v20, %v4366_v20 }
 0x8ad   : > { %1490 = vrot.lane.b32.xlu1 %v3235_v34, %s3765_s28 }
 0x8f9   : > { %v2081_v37 = vpop.xlane.xlu0 %2080 }
 0x8fd   : > { %v2084_v49 = vpop.xlane.xlu1 %2083  ;;  %v2075_v43 = vpop.xlane.xlu0 %2074 }
 0x8fe   : > { %3695 = vrcp.f32 %v2075_v43  ;;  %v3242_v43 = vpack.c.bf16 %v4368_v21, %v4368_v21 }
 0x901   : > { %v2078_v5 = vpop.xlane.xlu1 %2077  ;;  %v2120_v50 = vpop.permute.xlu0 %2119 }
 0x902   : > { %3697 = vrcp.f32 %v2078_v5 }
 0x903   : > { %3699 = vrcp.f32 %v2084_v49  ;;  %v3237_v49 = vpack.c.bf16 %v4218_v38, %v4218_v38  ;;  %v3245_v38 = vpack.c.bf16 %v4370_v23, %v4370_v23 }
 0x904   : > { %3701 = vrcp.f32 %v2081_v37 }
 0x905   : > { %v2093_v19 = vpop.xlane.xlu1 %2092  ;;  %v2118_v6 = vpop.permute.xlu0 %2117 }
 0x909   : > { %v2087_v3 = vpop.xlane.xlu1 %2086  ;;  %v1481_v14 = vpop.permute.xlu0 %1480 }
 0x90a   : > { %1505 = vst.msk [vmem:[#allocation2] sm:$0xf] %vm1504_vm3, %v1481_v14  ;;  %3703 = vrcp.f32 %v2087_v3 }
 0x90b   : > { %v3696_v18 = vpop.eup %3695 }
 0x90c   : > { %v2105_v24 = vmul.f32 %v3696_v18, %v4388_v63 }
 0x90d   : > { %v2096_v22 = vpop.xlane.xlu1 %2095  ;;  %v1485_v39 = vpop.permute.xlu0 %1484 }
 0x90e   : > { %1507 = vst.msk [vmem:[#allocation2 + $0x8] sm:$0xf] %vm1504_vm3, %v1485_v39 }
 0x90f   : > { %v3698_v54 = vpop.eup %3697 }
 0x910   : > { %v2106_v52 = vmul.f32 %v3698_v54, %v4394_v9  ;;  %v3700_v27 = vpop.eup %3699 }
 0x911   : > { %v2090_v57 = vpop.xlane.xlu1 %2089  ;;  %v1840_v25 = vpop.permute.xlu0 %1839  ;;  %v2108_v7 = vmul.f32 %v3700_v27, %v4390_v29 }
 0x912   : > { %v2113_v16 = vpack.c.bf16 %v2106_v52, %v2105_v24  ;;  %3705 = vrcp.f32 %v2090_v57  ;;  %1864 = vst.msk [vmem:[#allocation2] sm:$0xf] %vm1863_vm4, %v1840_v25  ;;  %v3702_v42 = vpop.eup %3701 }
 0x913   : > { %3707 = vrcp.f32 %v2096_v22  ;;  %v2107_v28 = vmul.f32 %v3702_v42, %v4384_v51 }
 0x914   : > { %3459 = vmatprep.mubr.msk.bf16.mxu0 %vm887_vm1, %v2113_v16  ;;  %3709 = vrcp.f32 %v2093_v19 }
 0x915   : > { %v2122_v26 = vpop.permute.xlu1 %2121  ;;  %v1844_v59 = vpop.permute.xlu0 %1843  ;;  %v2114_v63 = vpack.c.bf16 %v2108_v7, %v2107_v28 }
 0x916   : > { %1866 = vst.msk [vmem:[#allocation2 + $0x8] sm:$0xf] %vm1863_vm4, %v1844_v59  ;;  %3453 = vmatprep.subr.bf16.mxu0 %v2122_v26 }
 0x917   : > { %3454 = vmatpush3.bf16.msra.mxu0 %v2122_v26  ;;  %v3704_v13 = vpop.eup %3703 }
 0x918   : > { %3455 = vmatprep.subr.bf16.mxu0 %v2120_v50  ;;  %v2109_v2 = vmul.f32 %v3704_v13, %v4404_v11  ;;  %v3174_v13 = vld [vmem:[%s4717_s4] ss:$0 sm:$0xff] }
 0x919   : > { %v1483_v47 = vpop.permute.xlu1 %1482  ;;  %v1489_v56 = vpop.permute.xlu0 %1488 }
 0x91a   : > { %1506 = vst.msk [vmem:[#allocation2 + $0x4] sm:$0xf] %vm1504_vm3, %v1483_v47  ;;  %1509 = vst.msk [vmem:[#allocation2 + $0x10] sm:$0xf] %vm1504_vm3, %v1489_v56 }
 0x91b   : > { %3456 = vmatpush3.bf16.msra.mxu0 %v2120_v50  ;;  %v3243_v50 = vpack.c.bf16 %v4372_v61, %v4372_v61 }
 0x91c   : > { %3457 = vmatprep.subr.bf16.mxu0 %v2118_v6 }
 0x91d   : > { %v1487_v4 = vpop.permute.xlu1 %1486 }
 0x91e   : > { %1508 = vst.msk [vmem:[#allocation2 + $0xc] sm:$0xf] %vm1504_vm3, %v1487_v4 }
 0x91f   : > { %v3706_v12 = vpop.eup %3705  ;;  %3458 = vmatpush3.bf16.msra.mxu0 %v2118_v6 }
 0x920   : > { %v2110_v9 = vmul.f32 %v3706_v12, %v4412_v58  ;;  %v3708_v30 = vpop.eup %3707  ;;  %v3547_v58 = vld [vmem:[%s4716_s3 + $0x38] sm:$0xff]  }
 0x921   : > { %v1842_v10 = vpop.permute.xlu1 %1841  ;;  %v3710_v31 = vpop.eup %3709  ;;  %v2112_v51 = vmul.f32 %v3708_v30, %v4408_v53  ;;  %3467 = vmatprep.subr.bf16.mxu0 %v3547_v58  ;;  %v3550_v53 = vld [vmem:[%s4716_s3 + $0x20] sm:$0xff]  }
 0x922   : > { %1865 = vst.msk [vmem:[#allocation2 + $0x4] sm:$0xf] %vm1863_vm4, %v1842_v10  ;;  %3460 = vmatmul.mubr.msk.bf16.vlgmr.msra.gmra.mxu0 %vm887_vm1, %v2114_v63  ;;  %v2115_v29 = vpack.c.bf16 %v2110_v9, %v2109_v2  ;;  %v2111_v48 = vmul.f32 %v3710_v31, %v4400_v8  ;;  %v3549_v8 = vld [vmem:[%s4716_s3 + $0x28] sm:$0xff]  }
 0x923   : > { %3468 = vmatpush3.bf16.msra.mxu0 %v3547_v58 }
 0x924   : > { %3463 = vmatprep.mubr.msk.bf16.mxu0 %vm887_vm1, %v2115_v29  ;;  %v2116_v11 = vpack.c.bf16 %v2112_v51, %v2111_v48  ;;  %3469 = vmatprep.subr.bf16.mxu0 %v3548_v60 }
 0x925   : > { %v1846_v44 = vpop.permute.xlu1 %1845 }
 0x926   : > { %1867 = vst.msk [vmem:[#allocation2 + $0xc] sm:$0xf] %vm1863_vm4, %v1846_v44 }
 0x927   : > { %3470 = vmatpush3.bf16.msra.mxu0 %v3548_v60 }
 0x928   : > { %3471 = vmatprep.subr.bf16.mxu0 %v3549_v8 }
 0x929   : > { %v1491_v55 = vpop.permute.xlu1 %1490 }
 0x92a   : > { %1510 = vst.msk [vmem:[#allocation2 + $0x14] sm:$0xf] %vm1504_vm3, %v1491_v55  ;;  %3464 = vmatmul.mubr.msk.bf16.gmra.mxu0 %vm887_vm1, %v2116_v11 }
 0x92b   : > { %3472 = vmatpush3.bf16.msra.mxu0 %v3549_v8 }
 0x92c   : > { %3473 = vmatprep.subr.bf16.mxu0 %v3550_v53 }
 0x92f   : > { %3474 = vmatpush3.bf16.msra.mxu0 %v3550_v53 }
 0x930   : > { %3475 = vmatprep.subr.bf16.mxu0 %v3551_v62 }
 0x933   : > { %3476 = vmatpush3.bf16.msra.mxu0 %v3551_v62 }
 0x934   : > { %3477 = vmatprep.subr.bf16.mxu0 %v3552_v41 }
 0x937   : > { %3478 = vmatpush3.bf16.msra.mxu0 %v3552_v41 }
 0x938   : > { %3479 = vmatprep.subr.bf16.mxu0 %v3553_v45 }
 0x93b   : > { %3480 = vmatpush3.bf16.msra.mxu0 %v3553_v45 }
 0x93c   : > { %3481 = vmatprep.subr.bf16.mxu0 %v3554_v1 }
 0x93f   : > { %3482 = vmatpush3.bf16.msra.mxu0 %v3554_v1 }
 0x9e2   : > { %v3461_v0 = vpop.f32.mrf.mxu0 }
 0x9e3   : > { %v3248_v46 = vpack.c.bf16 %v3461_v0, %v3461_v0 }
 0x9e4   : > { %v2175_v40 = vpop.f32.mrf.mxu0 }
 0x9e5   : > { %2234 = vrot.lane.b32.xlu0 %v3248_v46, %s3763_s23  ;;  %v3246_v32 = vpack.c.bf16 %v2175_v40, %v2175_v40 }
 0x9e6   : > { %v3462_v33 = vpop.f32.mrf.mxu0 }
 0x9e7   : > { %v3249_v17 = vpack.c.bf16 %v3462_v33, %v3462_v33 }
 0x9e8   : > { %v2178_v35 = vpop.f32.mrf.mxu0 }
 0x9e9   : > { %2230 = vrot.lane.b32.xlu0 %v3246_v32, %s3763_s23  ;;  %2236 = vrot.lane.b32.xlu1 %v3249_v17, %s3763_s23  ;;  %v3247_v34 = vpack.c.bf16 %v2178_v35, %v2178_v35 }
 0x9ea   : > { %v3465_v37 = vpop.f32.mrf.mxu0 }
 0x9eb   : > { %v3252_v3 = vpack.c.bf16 %v3465_v37, %v3465_v37  ;;  %v3559_v37 = vld [vmem:[%s4721_s8 + $0x70] ss:$8 sps:$4 sm:$0xff]  }
 0x9ec   : > { %v2191_v5 = vpop.f32.mrf.mxu0 }
 0x9ed   : > { %1492 = vrot.lane.b32.xlu0 %v3236_v15, %s3765_s28  ;;  %2232 = vrot.lane.b32.xlu1 %v3247_v34, %s3763_s23  ;;  %v3250_v21 = vpack.c.bf16 %v2191_v5, %v2191_v5 }
 0x9ee   : > { %v3466_v19 = vpop.f32.mrf.mxu0 }
 0x9ef   : > { %v3253_v20 = vpack.c.bf16 %v3466_v19, %v3466_v19 }
 0x9f0   : > { %v2194_v6 = vpop.f32.mrf.mxu0 }
 0x9f1   : > { %1847 = vrot.lane.b32.xlu0 %v3242_v43, %s3764_s27  ;;  %1494 = vrot.lane.b32.xlu1 %v3237_v49, %s3765_s28  ;;  %v3251_v14 = vpack.c.bf16 %v2194_v6, %v2194_v6  ;;  %s4542_s28 = scalar_lea.vmem [#allocation6], %s3919_s14  ;;  %v3561_v49 = vld [vmem:[%s4721_s8 + $0x74] ss:$8 sps:$4 sm:$0xff]   ;;  %s3215_s14 = sshll.u32 (%p3862_p5), %s3843_s20, 3 }
 0x9f2   : > { %v2416_v28 = vld [vmem:[%s4542_s28 + $0x10] sm:$0xff]  ;;  %v2414_v2 = vld [vmem:[%s4542_s28] sm:$0xff]  ;;  %v2417_v29 = vld [vmem:[%s4542_s28 + $0x18] sm:$0xff]  ;;  %2669 = vmatprep.subr.bf16.mxu1 %v3561_v49  ;;  %s2810_s12 = scalar_lea.vmem (%p3862_p5), %s4723_s10, %s3215_s14 }
 0x9f3   : > { %v2415_v48 = vld [vmem:[%s4542_s28 + $0x8] sm:$0xff]  ;;  %v2420_v8 = vld [vmem:[%s4542_s28 + $0x30] sm:$0xff]  ;;  %v2418_v41 = vld [vmem:[%s4542_s28 + $0x20] sm:$0xff]  ;;  %2670 = vmatpush1.bf16.msra.mxu1 %v3559_v37 }
 0x9f4   : > { %v2421_v40 = vld [vmem:[%s4542_s28 + $0x38] sm:$0xff]  ;;  %v2419_v17 = vld [vmem:[%s4542_s28 + $0x28] sm:$0xff]  ;;  %v3187_v49 = vld [vmem:[%s4719_s6] ss:$0 sm:$0xff] }
 0x9f5   : > { %1851 = vrot.lane.b32.xlu0 %v3244_v36, %s3764_s27  ;;  %1849 = vrot.lane.b32.xlu1 %v3243_v50, %s3764_s27 }
 0x9f9   : > { %1853 = vrot.lane.b32.xlu1 %v3245_v38, %s3764_s27  ;;  %2238 = vrot.lane.b32.xlu0 %v3250_v21, %s3763_s23 }
 0x9fd   : > { %2242 = vrot.lane.b32.xlu0 %v3252_v3, %s3763_s23  ;;  %2240 = vrot.lane.b32.xlu1 %v3251_v14, %s3763_s23 }
 0xa01   : > { %2244 = vrot.lane.b32.xlu1 %v3253_v20, %s3763_s23 }
 0xa57   : > { %v2235_v61 = vpop.permute.xlu0 %2234 }
 0xa58   : > { %2257 = vst.msk [vmem:[#allocation2 + $0x8] sm:$0xf] %vm2254_vm5, %v2235_v61 }
 0xa5b   : > { %v2237_v23 = vpop.permute.xlu1 %2236  ;;  %v2231_v18 = vpop.permute.xlu0 %2230 }
 0xa5c   : > { %2258 = vst.msk [vmem:[#allocation2 + $0xc] sm:$0xf] %vm2254_vm5, %v2237_v23  ;;  %2255 = vst.msk [vmem:[#allocation2] sm:$0xf] %vm2254_vm5, %v2231_v18 }
 0xa5f   : > { %v2233_v22 = vpop.permute.xlu1 %2232  ;;  %v1493_v39 = vpop.permute.xlu0 %1492 }
 0xa60   : > { %2256 = vst.msk [vmem:[#allocation2 + $0x4] sm:$0xf] %vm2254_vm5, %v2233_v22 }
 0xa61   : > { %1511 = vst.msk [vmem:[#allocation2 + $0x18] sm:$0xf] %vm1504_vm3, %v1493_v39 }
 0xa63   : > { %v1495_v54 = vpop.permute.xlu1 %1494  ;;  %v1848_v24 = vpop.permute.xlu0 %1847  ;;  %v3556_v16 = vld [vmem:[#allocation2 + $0x8] sm:$0xff]  }
 0xa64   : > { %1512 = vst.msk [vmem:[#allocation2 + $0x1c] sm:$0xf] %vm1504_vm3, %v1495_v54  ;;  %v3564_v54 = vld [vmem:[%s4721_s8 + $0x64] ss:$8 sps:$4 sm:$0xff]  }
 0xa65   : > { %1868 = vst.msk [vmem:[#allocation2 + $0x10] sm:$0xf] %vm1863_vm4, %v1848_v24  ;;  %v3562_v24 = vld [vmem:[%s4721_s8 + $0x60] ss:$8 sps:$4 sm:$0xff]   ;;  %2671 = vmatprep.subr.bf16.mxu1 %v3564_v54 }
 0xa66   : > { %2672 = vmatpush1.bf16.msra.mxu1 %v3562_v24 }
 0xa67   : > { %v1850_v52 = vpop.permute.xlu1 %1849  ;;  %v1852_v57 = vpop.permute.xlu0 %1851  ;;  %v3555_v25 = vld [vmem:[#allocation2] sm:$0xff]  }
 0xa68   : > { %1869 = vst.msk [vmem:[#allocation2 + $0x14] sm:$0xf] %vm1863_vm4, %v1850_v52  ;;  %1870 = vst.msk [vmem:[#allocation2 + $0x18] sm:$0xf] %vm1863_vm4, %v1852_v57  ;;  %3483 = vmatprep.mubr.bf16.mxu0 %v3555_v25 }
 0xa69   : > { %3484 = vmatmul.mubr.bf16.vlgmr.msra.gmra.mxu0 %v3556_v16  ;;  %v3567_v16 = vld [vmem:[%s4721_s8 + $0x54] ss:$8 sps:$4 sm:$0xff]  }
 0xa6a   : > { %2673 = vmatprep.subr.bf16.mxu1 %v3567_v16 }
 0xa6b   : > { %v1854_v26 = vpop.permute.xlu1 %1853  ;;  %v2239_v59 = vpop.permute.xlu0 %2238 }
 0xa6c   : > { %1871 = vst.msk [vmem:[#allocation2 + $0x1c] sm:$0xf] %vm1863_vm4, %v1854_v26 }
 0xa6d   : > { %2259 = vst.msk [vmem:[#allocation2 + $0x10] sm:$0xf] %vm2254_vm5, %v2239_v59 }
 0xa6f   : > { %v2241_v27 = vpop.permute.xlu1 %2240  ;;  %v2243_v47 = vpop.permute.xlu0 %2242 }
 0xa70   : > { %2260 = vst.msk [vmem:[#allocation2 + $0x14] sm:$0xf] %vm2254_vm5, %v2241_v27  ;;  %2261 = vst.msk [vmem:[#allocation2 + $0x18] sm:$0xf] %vm2254_vm5, %v2243_v47  ;;  %v3565_v27 = vld [vmem:[%s4721_s8 + $0x50] ss:$8 sps:$4 sm:$0xff]  }
 0xa71   : > { %2674 = vmatpush1.bf16.msra.mxu1 %v3565_v27 }
 0xa73   : > { %v2245_v56 = vpop.permute.xlu1 %2244 }
 0xa74   : > { %2262 = vst.msk [vmem:[#allocation2 + $0x1c] sm:$0xf] %vm2254_vm5, %v2245_v56 }
 0xa77   : > { %v3557_v42 = vld [vmem:[#allocation2 + $0x10] sm:$0xff]  }
 0xa78   : > { %3487 = vmatprep.mubr.bf16.mxu0 %v3557_v42 }
 0xa7b   : > { %v3558_v7 = vld [vmem:[#allocation2 + $0x18] sm:$0xff]  }
 0xa7c   : > { %3488 = vmatmul.mubr.bf16.gmra.mxu0 %v3558_v7 }
 0xb29   : > { %v3485_v4 = vpop.f32.mrf.mxu0 }
 0xb2a   : > { %v2392_v12 = vadd.f32 %v3485_v4, %v3174_v13  ;;  %v3570_v4 = vld [vmem:[%s4721_s8 + $0x44] ss:$8 sps:$4 sm:$0xff]  }
 0xb2b   : > { %v2383_v63 = vpop.f32.mrf.mxu0  ;;  %2675 = vmatprep.subr.bf16.mxu1 %v3570_v4 }
 0xb2c   : > { %v2424_v9 = vadd.f32 %v2416_v28, %v2392_v12  ;;  %v2384_v30 = vadd.f32 %v3174_v13, %v2383_v63  ;;  %v3568_v12 = vld [vmem:[%s4721_s8 + $0x40] ss:$8 sps:$4 sm:$0xff]  }
 0xb2d   : > { %v3486_v10 = vpop.f32.mrf.mxu0  ;;  %2676 = vmatpush1.bf16.msra.mxu1 %v3568_v12 }
 0xb2e   : > { %2432 = vst [vmem:[%s4548_s17 + $0x10] sm:$0xff] %v2424_v9  ;;  %v2422_v31 = vadd.f32 %v2414_v2, %v2384_v30  ;;  %v2395_v51 = vadd.f32 %v3486_v10, %v3174_v13  ;;  %v3573_v10 = vld [vmem:[%s4721_s8 + $0x34] ss:$8 sps:$4 sm:$0xff]  }
 0xb2f   : > { %v2386_v44 = vpop.f32.mrf.mxu0  ;;  %2677 = vmatprep.subr.bf16.mxu1 %v3573_v10 }
 0xb30   : > { %2430 = vst [vmem:[%s4548_s17] sm:$0xff] %v2422_v31  ;;  %v2425_v11 = vadd.f32 %v2417_v29, %v2395_v51  ;;  %v2387_v55 = vadd.f32 %v3174_v13, %v2386_v44  ;;  %2438 = vadd.xlane.f32.xlu0 %v2422_v31  ;;  %v3571_v29 = vld [vmem:[%s4721_s8 + $0x30] ss:$8 sps:$4 sm:$0xff]   ;;  %v3576_v51 = vld [vmem:[%s4721_s8 + $0x24] ss:$8 sps:$4 sm:$0xff]   ;;  %v3574_v44 = vld [vmem:[%s4721_s8 + $0x20] ss:$8 sps:$4 sm:$0xff]  }
 0xb31   : > { %2678 = vmatpush1.bf16.msra.mxu1 %v3571_v29 }
 0xb32   : > { %2433 = vst [vmem:[%s4548_s17 + $0x18] sm:$0xff] %v2425_v11  ;;  %v2423_v58 = vadd.f32 %v2415_v48, %v2387_v55  ;;  %2679 = vmatprep.subr.bf16.mxu1 %v3576_v51  ;;  %v3579_v48 = vld [vmem:[%s4721_s8 + $0x14] ss:$8 sps:$4 sm:$0xff]   ;;  %v3582_v55 = vld [vmem:[%s4721_s8 + $0x4] ss:$8 sps:$4 sm:$0xff]  }
 0xb34   : > { %2431 = vst [vmem:[%s4548_s17 + $0x8] sm:$0xff] %v2423_v58  ;;  %2440 = vadd.xlane.f32.xlu1 %v2423_v58  ;;  %2442 = vadd.xlane.f32.xlu0 %v2424_v9 }
 0xb35   : > { %2680 = vmatpush1.bf16.msra.mxu1 %v3574_v44 }
 0xb36   : > { %2681 = vmatprep.subr.bf16.mxu1 %v3579_v48 }
 0xb38   : > { %2444 = vadd.xlane.f32.xlu0 %v2425_v11 }
 0xb3c   : > { %v3489_v60 = vpop.f32.mrf.mxu0 }
 0xb3d   : > { %v2408_v53 = vadd.f32 %v3489_v60, %v3174_v13  ;;  %v3766_v60 = vmov 0  }
 0xb3e   : > { %v2399_v62 = vpop.f32.mrf.mxu0  ;;  %2701 = vmatprep.mubr.bf16.mxu1 %v3766_v60 }
 0xb3f   : > { %v2428_v45 = vadd.f32 %v2420_v8, %v2408_v53  ;;  %v2400_v0 = vadd.f32 %v3174_v13, %v2399_v62 }
 0xb40   : > { %v3490_v46 = vpop.f32.mrf.mxu0 }
 0xb41   : > { %2436 = vst [vmem:[%s4548_s17 + $0x30] sm:$0xff] %v2428_v45  ;;  %v2426_v1 = vadd.f32 %v2418_v41, %v2400_v0  ;;  %v2411_v33 = vadd.f32 %v3490_v46, %v3174_v13 }
 0xb42   : > { %v2402_v32 = vpop.f32.mrf.mxu0 }
 0xb43   : > { %2434 = vst [vmem:[%s4548_s17 + $0x20] sm:$0xff] %v2426_v1  ;;  %v2429_v35 = vadd.f32 %v2421_v40, %v2411_v33  ;;  %v2403_v15 = vadd.f32 %v3174_v13, %v2402_v32  ;;  %2446 = vadd.xlane.f32.xlu0 %v2426_v1 }
 0xb45   : > { %2437 = vst [vmem:[%s4548_s17 + $0x38] sm:$0xff] %v2429_v35  ;;  %v2427_v34 = vadd.f32 %v2419_v17, %v2403_v15 }
 0xb47   : > { %2435 = vst [vmem:[%s4548_s17 + $0x28] sm:$0xff] %v2427_v34  ;;  %2448 = vadd.xlane.f32.xlu1 %v2427_v34  ;;  %2450 = vadd.xlane.f32.xlu0 %v2428_v45 }
 0xb4b   : > { %2452 = vadd.xlane.f32.xlu1 %v2429_v35 }
 0xbb9   : > { %v2439_v43 = vpop.xlane.xlu0 %2438 }
 0xbba   : > { %v2455_v5 = vmul.f32 0.0078125, %v2439_v43 }
 0xbbc   : > { %v4569_v36 = vsub.f32 %v2422_v31, %v2455_v5 }
 0xbbd   : > { %v2441_v50 = vpop.xlane.xlu1 %2440  ;;  %v2443_v19 = vpop.xlane.xlu0 %2442 }
 0xbbe   : > { %v2456_v38 = vmul.f32 0.0078125, %v2441_v50  ;;  %v2457_v21 = vmul.f32 0.0078125, %v2443_v19  ;;  %v2471_v6 = vmul.f32 %v4569_v36, %v4569_v36 }
 0xbc0   : > { %v4573_v3 = vsub.f32 %v2423_v58, %v2456_v38  ;;  %v4575_v14 = vsub.f32 %v2424_v9, %v2457_v21  ;;  %2479 = vadd.xlane.f32.xlu0 %v2471_v6  ;;  %v3580_v58 = vld [vmem:[%s4721_s8] ss:$8 sps:$4 sm:$0xff]  }
 0xbc1   : > { %v2445_v20 = vpop.xlane.xlu0 %2444 }
 0xbc2   : > { %v2458_v61 = vmul.f32 0.0078125, %v2445_v20  ;;  %v2472_v23 = vmul.f32 %v4573_v3, %v4573_v3  ;;  %v2473_v18 = vmul.f32 %v4575_v14, %v4575_v14 }
 0xbc4   : > { %v4581_v22 = vsub.f32 %v2425_v11, %v2458_v61  ;;  %2481 = vadd.xlane.f32.xlu1 %v2472_v23  ;;  %2483 = vadd.xlane.f32.xlu0 %v2473_v18  ;;  %v3577_v11 = vld [vmem:[%s4721_s8 + $0x10] ss:$8 sps:$4 sm:$0xff]  }
 0xbc5   : > { %2682 = vmatpush1.bf16.msra.mxu1 %v3577_v11 }
 0xbc6   : > { %v2474_v39 = vmul.f32 %v4581_v22, %v4581_v22  ;;  %2683 = vmatprep.subr.bf16.mxu1 %v3582_v55 }
 0xbc8   : > { %2485 = vadd.xlane.f32.xlu1 %v2474_v39 }
 0xbc9   : > { %2684 = vmatpush1.bf16.msra.mxu1 %v3580_v58 }
 0xbcc   : > { %v2447_v52 = vpop.xlane.xlu0 %2446 }
 0xbcd   : > { %v2459_v57 = vmul.f32 0.0078125, %v2447_v52 }
 0xbcf   : > { %v4591_v25 = vsub.f32 %v2426_v1, %v2459_v57 }
 0xbd0   : > { %v2449_v26 = vpop.xlane.xlu1 %2448  ;;  %v2451_v59 = vpop.xlane.xlu0 %2450 }
 0xbd1   : > { %v2460_v47 = vmul.f32 0.0078125, %v2449_v26  ;;  %v2461_v56 = vmul.f32 0.0078125, %v2451_v59  ;;  %v2475_v42 = vmul.f32 %v4591_v25, %v4591_v25 }
 0xbd3   : > { %v4601_v7 = vsub.f32 %v2427_v34, %v2460_v47  ;;  %v4603_v13 = vsub.f32 %v2428_v45, %v2461_v56  ;;  %2487 = vadd.xlane.f32.xlu0 %v2475_v42 }
 0xbd4   : > { %v2453_v28 = vpop.xlane.xlu1 %2452 }
 0xbd5   : > { %v2462_v63 = vmul.f32 0.0078125, %v2453_v28  ;;  %v2476_v2 = vmul.f32 %v4601_v7, %v4601_v7  ;;  %v2477_v9 = vmul.f32 %v4603_v13, %v4603_v13 }
 0xbd7   : > { %v4615_v30 = vsub.f32 %v2429_v35, %v2462_v63  ;;  %2489 = vadd.xlane.f32.xlu1 %v2476_v2  ;;  %2491 = vadd.xlane.f32.xlu0 %v2477_v9 }
 0xbd9   : > { %v2478_v31 = vmul.f32 %v4615_v30, %v4615_v30 }
 0xbdb   : > { %2493 = vadd.xlane.f32.xlu1 %v2478_v31 }
 0xc49   : > { %v2480_v8 = vpop.xlane.xlu0 %2479 }
 0xc4a   : > { %v2495_v53 = vmul.f32 0.0078125, %v2480_v8 }
 0xc4c   : > { %v2503_v62 = vadd.f32 1e-05, %v2495_v53 }
 0xc4d   : > { %v2482_v41 = vpop.xlane.xlu1 %2481  ;;  %v2484_v45 = vpop.xlane.xlu0 %2483 }
 0xc4e   : > { %3711 = vrsqrt.f32 %v2503_v62  ;;  %v2496_v0 = vmul.f32 0.0078125, %v2482_v41  ;;  %v2497_v46 = vmul.f32 0.0078125, %v2484_v45 }
 0xc50   : > { %v2504_v40 = vadd.f32 1e-05, %v2496_v0  ;;  %v2505_v1 = vadd.f32 1e-05, %v2497_v46 }
 0xc51   : > { %v2486_v33 = vpop.xlane.xlu1 %2485 }
 0xc52   : > { %3713 = vrsqrt.f32 %v2504_v40  ;;  %v2498_v32 = vmul.f32 0.0078125, %v2486_v33 }
 0xc53   : > { %3715 = vrsqrt.f32 %v2505_v1 }
 0xc54   : > { %v2506_v17 = vadd.f32 1e-05, %v2498_v32 }
 0xc56   : > { %3717 = vrsqrt.f32 %v2506_v17 }
 0xc5b   : > { %v3712_v35 = vpop.eup %3711 }
 0xc5c   : > { %v2519_v15 = vmul.f32 %v3712_v35, %v4569_v36  ;;  %v2488_v34 = vpop.xlane.xlu0 %2487  ;;  %v3188_v36 = vld [vmem:[%s4720_s7] ss:$0 sm:$0xff] }
 0xc5d   : > { %v2499_v37 = vmul.f32 0.0078125, %v2488_v34 }
 0xc5e   : > { %v2534_v21 = vmul.f32 %v3187_v49, %v2519_v15 }
 0xc5f   : > { %v3714_v43 = vpop.eup %3713  ;;  %v2507_v5 = vadd.f32 1e-05, %v2499_v37 }
 0xc60   : > { %v2520_v50 = vmul.f32 %v3714_v43, %v4573_v3  ;;  %v2490_v19 = vpop.xlane.xlu1 %2489  ;;  %v2492_v38 = vpop.xlane.xlu0 %2491  ;;  %v2549_v52 = vadd.f32 %v3188_v36, %v2534_v21 }
 0xc61   : > { %v3716_v6 = vpop.eup %3715  ;;  %3719 = vrsqrt.f32 %v2507_v5  ;;  %v2500_v20 = vmul.f32 0.0078125, %v2490_v19  ;;  %v2501_v61 = vmul.f32 0.0078125, %v2492_v38 }
 0xc62   : > { %v2535_v23 = vmul.f32 %v3187_v49, %v2520_v50  ;;  %v2521_v3 = vmul.f32 %v3716_v6, %v4575_v14 }
 0xc63   : > { %v3718_v18 = vpop.eup %3717  ;;  %v2508_v39 = vadd.f32 1e-05, %v2500_v20  ;;  %v2509_v54 = vadd.f32 1e-05, %v2501_v61 }
 0xc64   : > { %v2494_v24 = vpop.xlane.xlu1 %2493  ;;  %v2550_v57 = vadd.f32 %v3188_v36, %v2535_v23  ;;  %v2522_v16 = vmul.f32 %v3718_v18, %v4581_v22  ;;  %v2536_v56 = vmul.f32 %v3187_v49, %v2521_v3 }
 0xc65   : > { %3721 = vrsqrt.f32 %v2508_v39  ;;  %v2502_v26 = vmul.f32 0.0078125, %v2494_v24 }
 0xc66   : > { %v2557_v59 = vpack.c.bf16 %v2550_v57, %v2549_v52  ;;  %v2537_v27 = vmul.f32 %v3187_v49, %v2522_v16  ;;  %3723 = vrsqrt.f32 %v2509_v54  ;;  %v2551_v4 = vadd.f32 %v3188_v36, %v2536_v56 }
 0xc67   : > { %v2510_v47 = vadd.f32 1e-05, %v2502_v26 }
 0xc68   : > { %2702 = vmatmul.mubr.bf16.vlgmr.msra.gmra.mxu1 %v2557_v59  ;;  %v2552_v42 = vadd.f32 %v3188_v36, %v2537_v27 }
 0xc69   : > { %3725 = vrsqrt.f32 %v2510_v47  ;;  %2711 = vmatprep.mubr.bf16.mxu1 %v3766_v60 }
 0xc6a   : > { %v2558_v12 = vpack.c.bf16 %v2552_v42, %v2551_v4 }
 0xc6e   : > { %v3720_v28 = vpop.eup %3719 }
 0xc6f   : > { %v2523_v63 = vmul.f32 %v3720_v28, %v4591_v25 }
 0xc70   : > { %2712 = vmatmul.mubr.bf16.gmra.mxu1 %v2558_v12 }
 0xc71   : > { %2721 = vmatprep.mubr.bf16.mxu1 %v3766_v60  ;;  %v2538_v2 = vmul.f32 %v3187_v49, %v2523_v63  ;;  %v2853_v63 = vld [vmem:[%s4548_s17] sm:$0xff] (%p3862_p5) }
 0xc72   : > { %v3722_v14 = vpop.eup %3721  ;;  %2854 = vst [vmem:[%s2810_s12] sm:$0xff] (%p3862_p5), %v2853_v63 }
 0xc73   : > { %v2524_v22 = vmul.f32 %v3722_v14, %v4601_v7  ;;  %v3724_v9 = vpop.eup %3723  ;;  %v2553_v31 = vadd.f32 %v3188_v36, %v2538_v2  ;;  %v2579_v7 = vlaneseq  ;;  %v2855_v14 = vld [vmem:[%s4548_s17 + $0x8] sm:$0xff] (%p3862_p5)  ;;  %v2859_v2 = vld [vmem:[%s4548_s17 + $0x18] sm:$0xff] (%p3862_p5) }
 0xc74   : > { %v2525_v44 = vmul.f32 %v3724_v9, %v4603_v13  ;;  %v2577_v13 = vld [vmem:[%s4722_s9] sm:$0x3]  ;;  %2856 = vst [vmem:[%s2810_s12 + $0x10] sm:$0xff] (%p3862_p5), %v2855_v14  ;;  %2860 = vst [vmem:[%s2810_s12 + $0x30] sm:$0xff] (%p3862_p5), %v2859_v2 }
 0xc75   : > { %v2539_v10 = vmul.f32 %v3187_v49, %v2524_v22  ;;  %v2580_v62 = vshrl.u32 %v2579_v7, 7  ;;  %v2857_v22 = vld [vmem:[%s4548_s17 + $0x10] sm:$0xff] (%p3862_p5)  ;;  %v2861_v9 = vld [vmem:[%s4548_s17 + $0x20] sm:$0xff] (%p3862_p5) }
 0xc76   : > { %v3726_v29 = vpop.eup %3725  ;;  %v2540_v25 = vmul.f32 %v3187_v49, %v2525_v44  ;;  %2858 = vst [vmem:[%s2810_s12 + $0x20] sm:$0xff] (%p3862_p5), %v2857_v22  ;;  %2862 = vst [vmem:[%s2810_s12 + $0x40] sm:$0xff] (%p3862_p5), %v2861_v9 }
 0xc77   : > { %v2554_v51 = vadd.f32 %v3188_v36, %v2539_v10  ;;  %v2526_v48 = vmul.f32 %v3726_v29, %v4615_v30  ;;  %v2581_v41 = vsub.s32 0, %v2580_v62  ;;  %v2585_v45 = vsub.s32 1, %v2580_v62  ;;  %v2863_v10 = vld [vmem:[%s4548_s17 + $0x28] sm:$0xff] (%p3862_p5)  ;;  %v2865_v29 = vld [vmem:[%s4548_s17 + $0x30] sm:$0xff] (%p3862_p5) }
 0xc78   : > { %v2555_v8 = vadd.f32 %v3188_v36, %v2540_v25  ;;  %2864 = vst [vmem:[%s2810_s12 + $0x50] sm:$0xff] (%p3862_p5), %v2863_v10  ;;  %2866 = vst [vmem:[%s2810_s12 + $0x60] sm:$0xff] (%p3862_p5), %v2865_v29 }
 0xc79   : > { %v2559_v11 = vpack.c.bf16 %v2554_v51, %v2553_v31  ;;  %v2541_v55 = vmul.f32 %v3187_v49, %v2526_v48  ;;  %v2582_v30 = vrot.slane %v2577_v13, %v2581_v41  ;;  %v2586_v0 = vrot.slane %v2577_v13, %v2585_v45  ;;  %v2867_v31 = vld [vmem:[%s4548_s17 + $0x38] sm:$0xff] (%p3862_p5) }
 0xc7a   : > { %2868 = vst [vmem:[%s2810_s12 + $0x70] sm:$0xff] (%p3862_p5), %v2867_v31 }
 0xc7b   : > { %2722 = vmatmul.mubr.bf16.gmra.mxu1 %v2559_v11  ;;  %v2556_v58 = vadd.f32 %v3188_v36, %v2541_v55 }
 0xc7c   : > { %2731 = vmatprep.mubr.bf16.mxu1 %v3766_v60 }
 0xc7d   : > { %v2560_v53 = vpack.c.bf16 %v2556_v58, %v2555_v8 }
 0xc83   : > { %2732 = vmatmul.mubr.bf16.gmra.mxu1 %v2560_v53 }
 0xd28   : > { %v2703_v46 = vpop.f32.mrf.mxu1 }
 0xd29   : > { %v2704_v1 = vadd.f32 %v2703_v46, %v2582_v30 }
 0xd2a   : > { %v2705_v40 = vpop.f32.mrf.mxu1 }
 0xd2b   : > { %v2706_v33 = vadd.f32 %v2705_v40, %v2586_v0 }
 0xd2c   : > { %v2707_v60 = vpop.f32.mrf.mxu1 }
 0xd2d   : > { %v3254_v32 = vpack.c.bf16 %v2706_v33, %v2704_v1  ;;  %v2708_v35 = vadd.f32 %v2707_v60, %v2582_v30 }
 0xd2e   : > { %v2709_v17 = vpop.f32.mrf.mxu1 }
 0xd2f   : > { %2790 = vst [vmem:[%s4665_s22] sm:$0xff] %v3254_v32  ;;  %v2710_v15 = vadd.f32 %v2709_v17, %v2586_v0 }
 0xd30   : > { %v2713_v34 = vpop.f32.mrf.mxu1 }
 0xd31   : > { %v3255_v37 = vpack.c.bf16 %v2710_v15, %v2708_v35  ;;  %v2714_v43 = vadd.f32 %v2713_v34, %v2582_v30 }
 0xd32   : > { %v2715_v49 = vpop.f32.mrf.mxu1 }
 0xd33   : > { %2791 = vst [vmem:[%s4665_s22 + $0x8] sm:$0xff] %v3255_v37  ;;  %v2716_v5 = vadd.f32 %v2715_v49, %v2586_v0 }
 0xd34   : > { %v2717_v50 = vpop.f32.mrf.mxu1 }
 0xd35   : > { %v3256_v19 = vpack.c.bf16 %v2716_v5, %v2714_v43  ;;  %v2718_v21 = vadd.f32 %v2717_v50, %v2582_v30 }
 0xd36   : > { %v2719_v38 = vpop.f32.mrf.mxu1 }
 0xd37   : > { %2792 = vst [vmem:[%s4665_s22 + $0x10] sm:$0xff] %v3256_v19  ;;  %v2720_v6 = vadd.f32 %v2719_v38, %v2586_v0 }
 0xd39   : > { %v3257_v20 = vpack.c.bf16 %v2720_v6, %v2718_v21 }
 0xd3b   : > { %2793 = vst [vmem:[%s4665_s22 + $0x18] sm:$0xff] %v3257_v20  ;;  %v2723_v61 = vpop.f32.mrf.mxu1 }
 0xd3c   : > { %v2724_v23 = vadd.f32 %v2723_v61, %v2582_v30 }
 0xd3d   : > { %v2725_v36 = vpop.f32.mrf.mxu1 }
 0xd3e   : > { %v2726_v18 = vadd.f32 %v2725_v36, %v2586_v0 }
 0xd3f   : > { %v2727_v39 = vpop.f32.mrf.mxu1 }
 0xd40   : > { %v3258_v54 = vpack.c.bf16 %v2726_v18, %v2724_v23  ;;  %v2728_v52 = vadd.f32 %v2727_v39, %v2582_v30 }
 0xd41   : > { %v2729_v24 = vpop.f32.mrf.mxu1 }
 0xd42   : > { %2794 = vst [vmem:[%s4665_s22 + $0x20] sm:$0xff] %v3258_v54  ;;  %v2730_v57 = vadd.f32 %v2729_v24, %v2586_v0 }
 0xd43   : > { %v2733_v3 = vpop.f32.mrf.mxu1 }
 0xd44   : > { %v3259_v16 = vpack.c.bf16 %v2730_v57, %v2728_v52  ;;  %v2734_v59 = vadd.f32 %v2733_v3, %v2582_v30 }
 0xd45   : > { %v2735_v26 = vpop.f32.mrf.mxu1 }
 0xd46   : > { %2795 = vst [vmem:[%s4665_s22 + $0x28] sm:$0xff] %v3259_v16  ;;  %v2736_v27 = vadd.f32 %v2735_v26, %v2586_v0 }
 0xd47   : > { %v2737_v47 = vpop.f32.mrf.mxu1 }
 0xd48   : > { %v3260_v56 = vpack.c.bf16 %v2736_v27, %v2734_v59  ;;  %v2738_v4 = vadd.f32 %v2737_v47, %v2582_v30 }
 0xd49   : > { %v2739_v42 = vpop.f32.mrf.mxu1 }
 0xd4a   : > { %2796 = vst [vmem:[%s4665_s22 + $0x30] sm:$0xff] %v3260_v56  ;;  %v2740_v28 = vadd.f32 %v2739_v42, %v2586_v0  ;;  %2808 = sbr.rel (!%p3862_p5) target bundleno = 3407 (0xd4f), region = 204 }
 0xd4c   : > { %v3261_v12 = vpack.c.bf16 %v2740_v28, %v2738_v4 }
 0xd4e   : > { %2797 = vst [vmem:[%s4665_s22 + $0x38] sm:$0xff] %v3261_v12 }
 0xd4f PF: > { %2874 = sbr.rel (!%p3862_p5) target bundleno = 3415 (0xd57), region = 242  ;;  %s3262_s13 = sshll.u32 (%p3862_p5), %s3843_s20, 3  ;;  %v2920_v51 = vld [vmem:[%s4665_s22] sm:$0xff] (%p3862_p5)  ;;  %v2922_v44 = vld [vmem:[%s4665_s22 + $0x8] sm:$0xff] (%p3862_p5)  ;;  %v2924_v48 = vld [vmem:[%s4665_s22 + $0x10] sm:$0xff] (%p3862_p5) }
 0xd50   : > { %s2877_s15 = scalar_lea.vmem (%p3862_p5), %s4724_s11, %s3262_s13  ;;  %v2926_v11 = vld [vmem:[%s4665_s22 + $0x18] sm:$0xff] (%p3862_p5)  ;;  %v2928_v55 = vld [vmem:[%s4665_s22 + $0x20] sm:$0xff] (%p3862_p5)  ;;  %v2930_v25 = vld [vmem:[%s4665_s22 + $0x28] sm:$0xff] (%p3862_p5) }
 0xd51   : > { %2921 = vst [vmem:[%s2877_s15] sm:$0xff] (%p3862_p5), %v2920_v51  ;;  %2923 = vst [vmem:[%s2877_s15 + $0x10] sm:$0xff] (%p3862_p5), %v2922_v44  ;;  %v2932_v58 = vld [vmem:[%s4665_s22 + $0x30] sm:$0xff] (%p3862_p5) }
 0xd52   : > { %2925 = vst [vmem:[%s2877_s15 + $0x20] sm:$0xff] (%p3862_p5), %v2924_v48  ;;  %2927 = vst [vmem:[%s2877_s15 + $0x30] sm:$0xff] (%p3862_p5), %v2926_v11 }
 0xd53   : > { %2929 = vst [vmem:[%s2877_s15 + $0x40] sm:$0xff] (%p3862_p5), %v2928_v55  ;;  %2931 = vst [vmem:[%s2877_s15 + $0x50] sm:$0xff] (%p3862_p5), %v2930_v25 }
 0xd54   : > { %2933 = vst [vmem:[%s2877_s15 + $0x60] sm:$0xff] %v2932_v58 }
 0xd55   : > { %v2934_v8 = vld [vmem:[%s4665_s22 + $0x38] sm:$0xff] }
 0xd56   : > { %2935 = vst [vmem:[%s2877_s15 + $0x70] sm:$0xff] %v2934_v8 }
 0xd57 PF: > { %p19_p10 = scmp.ge.s32.totalorder %s3846_s21, 4   ;;  %s4727_s17 = smov %s3757_s18 }
 0xd58   : > { %s4728_s18 = smov %s3856_s24  ;;  %s4729_s19 = smov %s3846_s21 }
 0xd59   :  { %21 = sbr.rel (!%p19_p10) target bundleno = 2 (0x2), region = 347 }

// kernel: transformer_cross_attn_layer.9
= control target key start
LH: loop header
LB: loop body
LE: loop exit
PB: predicated region body
PF: predicated region fallthrough
CT: control target
= control target key end

     0   :  { %13 = vsyncpa [#allocation9], 0  ;;  %s4364_s0 = inlined_call_operand.vmem [shape: bf16[64,256], index: 0, kind: input, shape index: {}]   ;;  %s4365_s1 = inlined_call_operand.vmem [shape: bf16[64,512], index: 1, kind: input, shape index: {}]   ;;  %s4366_s2 = inlined_call_operand.vmem [shape: f32[64,512], index: 2, kind: input, shape index: {}]   ;;  %s4367_s3 = inlined_call_operand.vmem [shape: bf16[128,128], index: 3, kind: input, shape index: {}]   ;;  %s4368_s4 = inlined_call_operand.vmem [shape: f32[1,128], index: 4, kind: input, shape index: {}]   ;;  %s4369_s5 = inlined_call_operand.vmem [shape: f32[64,256], index: 5, kind: input, shape index: {}]   ;;  %s4370_s6 = inlined_call_operand.vmem [shape: f32[64,256], index: 6, kind: output, shape index: {0}]   ;;  %s4371_s7 = inlined_call_operand.hbm [shape: f32[2,4,64,64], index: 7, kind: output, shape index: {1}]  }
   0x1   :  { %15 = vsyncpa [#allocation9 + $0x1], 0  ;;  %s3336_s24 = smov 0   ;;  %s3338_s25 = smov 0  }
   0x2   :  { %s3340_s26 = smov 0   ;;  %s3342_s27 = smov 0  }
   0x3 LB: > { %s3357_s28 = sadd.s32 4294967295, %s3288_s27   ;;  %s2602_s29 = sadd.s32 4294967294, %s3288_s27   ;;  %s3288_s27 = sphi %s3342_s27, %s4378_s27   ;;  %s3284_s26 = sphi %s3340_s26, %s4377_s26   ;;  %s3280_s25 = sphi %s3338_s25, %s4376_s25   ;;  %s3276_s24 = sphi %s3336_s24, %s4375_s24  }
   0x4   : > { %s3361_s30 = sadd.s32 1, %s3288_s27   ;;  %s28_s8 = sadd.s32 1, %s3284_s26 }
   0x5   : > { %s25_s9 = ssub.s32 %s3288_s27, %s3361_s30  ;;  %p35_p0 = scmp.ne.s32.totalorder %s3284_s26, %s3280_s25 }
   0x6   : > { %p26_p1 = scmp.eq.s32.totalorder %s25_s9, 0  ;;  %p36_p2 = scmp.eq.s32.totalorder %s3288_s27, 0 }
   0x7   : > { %p185_p3 = scmp.eq.s32.totalorder %s3357_s28, 1  ;;  %p216_p4 = scmp.ne.s32.totalorder %s3280_s25, %s3276_s24 }
   0x8   : > { %s3373_s10 = scalar_select %p26_p1, %s3284_s26, %s28_s8  }
   0x9   : > { %p3375_p5 = por %p36_p2, %p35_p0  ;;  %p3379_p6 = por %p185_p3, %p35_p0 }
   0xa   : > { %p217_p7 = scmp.eq.s32.totalorder %s2602_s29, 1  ;;  %p2604_p9 = scmp.ge.s32.totalorder %s3288_s27, 2 }
   0xc   : > { %p3383_p8 = por %p217_p7, %p216_p4  ;;  %239 = sbr.rel (%p2604_p9) target bundleno = 54 (0x36), region = 24 }
  0x11   : > { %242 = sbr.rel (!%p3375_p5) target bundleno = 26 (0x1a), region = 28  ;;  %s244_s14 = sand.u32 (%p3375_p5), 1, %s3284_s26  }
  0x12   : > { %s2606_s15 = sshll.u32 (%p3375_p5), %s3288_s27, 2  ;;  %s2605_s16 = sshll.u32 (%p3375_p5), %s244_s14, 5 }
  0x13   : > { %s248_s19 = scalar_lea.vmem (%p3375_p5), %s4364_s0, %s2606_s15  ;;  %s246_s20 = scalar_lea.vmem (%p3375_p5), [#allocation3], %s2605_s16 }
  0x14   : > { %v265_v0 = vld [vmem:[%s248_s19] sm:$0xf] (%p3375_p5)  ;;  %v267_v1 = vld [vmem:[%s248_s19 + $0x8] sm:$0xf] (%p3375_p5)  ;;  %v269_v2 = vld [vmem:[%s248_s19 + $0x10] sm:$0xf] (%p3375_p5) }
  0x15   : > { %266 = vst [vmem:[%s246_s20] sm:$0xf] (%p3375_p5), %v265_v0  ;;  %268 = vst [vmem:[%s246_s20 + $0x4] sm:$0xf] (%p3375_p5), %v267_v1  ;;  %v271_v3 = vld [vmem:[%s248_s19 + $0x18] sm:$0xf] (%p3375_p5) }
  0x16   : > { %v273_v4 = vld [vmem:[%s248_s19 + $0x20] sm:$0xf]  ;;  %270 = vst [vmem:[%s246_s20 + $0x8] sm:$0xf] %v269_v2  ;;  %272 = vst [vmem:[%s246_s20 + $0xc] sm:$0xf] %v271_v3 }
  0x17   : > { %274 = vst [vmem:[%s246_s20 + $0x10] sm:$0xf] %v273_v4  ;;  %v275_v5 = vld [vmem:[%s248_s19 + $0x28] sm:$0xf]  ;;  %v277_v6 = vld [vmem:[%s248_s19 + $0x30] sm:$0xf] }
  0x18   : > { %v279_v7 = vld [vmem:[%s248_s19 + $0x38] sm:$0xf]  ;;  %276 = vst [vmem:[%s246_s20 + $0x14] sm:$0xf] %v275_v5  ;;  %278 = vst [vmem:[%s246_s20 + $0x18] sm:$0xf] %v277_v6 }
  0x19   : > { %280 = vst [vmem:[%s246_s20 + $0x1c] sm:$0xf] %v279_v7 }
  0x1a PF: > { %320 = sbr.rel (!%p3375_p5) target bundleno = 34 (0x22), region = 69  ;;  %s322_s21 = sand.u32 (%p3375_p5), 1, %s3284_s26  }
  0x1b   : > { %s2742_s22 = sshll.u32 (%p3375_p5), %s3288_s27, 3  ;;  %s2607_s23 = sshll.u32 (%p3375_p5), %s322_s21, 6 }
  0x1c   : > { %s327_s9 = scalar_lea.vmem (%p3375_p5), %s4365_s1, %s2742_s22  ;;  %s324_s14 = scalar_lea.vmem (%p3375_p5), [#allocation4], %s2607_s23 }
  0x1d   : > { %v370_v8 = vld [vmem:[%s327_s9] sm:$0xff] (%p3375_p5)  ;;  %v372_v9 = vld [vmem:[%s327_s9 + $0x10] sm:$0xff] (%p3375_p5) }
  0x1e   : > { %v374_v10 = vld [vmem:[%s327_s9 + $0x20] sm:$0xff] (%p3375_p5)  ;;  %371 = vst [vmem:[%s324_s14] sm:$0xff] (%p3375_p5), %v370_v8  ;;  %373 = vst [vmem:[%s324_s14 + $0x8] sm:$0xff] (%p3375_p5), %v372_v9  ;;  %v376_v11 = vld [vmem:[%s327_s9 + $0x30] sm:$0xff] (%p3375_p5) }
  0x1f   : > { %375 = vst [vmem:[%s324_s14 + $0x10] sm:$0xff] %v374_v10  ;;  %v378_v12 = vld [vmem:[%s327_s9 + $0x40] sm:$0xff]  ;;  %v380_v13 = vld [vmem:[%s327_s9 + $0x50] sm:$0xff]  ;;  %377 = vst [vmem:[%s324_s14 + $0x18] sm:$0xff] %v376_v11 }
  0x20   : > { %379 = vst [vmem:[%s324_s14 + $0x20] sm:$0xff] %v378_v12  ;;  %381 = vst [vmem:[%s324_s14 + $0x28] sm:$0xff] %v380_v13  ;;  %v382_v14 = vld [vmem:[%s327_s9 + $0x60] sm:$0xff]  ;;  %v384_v15 = vld [vmem:[%s327_s9 + $0x70] sm:$0xff] }
  0x21   : > { %383 = vst [vmem:[%s324_s14 + $0x30] sm:$0xff] %v382_v14  ;;  %385 = vst [vmem:[%s324_s14 + $0x38] sm:$0xff] %v384_v15 }
  0x22 PF: > { %391 = sbr.rel (!%p3375_p5) target bundleno = 46 (0x2e), region = 107  ;;  %s393_s15 = sand.u32 (%p3375_p5), 1, %s3284_s26  }
  0x23   : > { %s2743_s16 = sshll.u32 (%p3375_p5), %s3288_s27, 4  ;;  %s2610_s17 = sshll.u32 (%p3375_p5), %s393_s15, 7 }
  0x24   : > { %s3411_s20 = scalar_lea.vmem (%p3375_p5), %s4366_s2, %s2743_s16  ;;  %s395_s21 = scalar_lea.vmem (%p3375_p5), [#allocation5], %s2610_s17 }
  0x25   : > { %v411_v16 = vld [vmem:[%s3411_s20] sm:$0xff] (%p3375_p5)  ;;  %v413_v17 = vld [vmem:[%s3411_s20 + $0x8] sm:$0xff] (%p3375_p5) }
  0x26   : > { %v415_v18 = vld [vmem:[%s3411_s20 + $0x20] sm:$0xff] (%p3375_p5)  ;;  %412 = vst [vmem:[%s395_s21] sm:$0xff] (%p3375_p5), %v411_v16  ;;  %414 = vst [vmem:[%s395_s21 + $0x8] sm:$0xff] (%p3375_p5), %v413_v17  ;;  %v417_v19 = vld [vmem:[%s3411_s20 + $0x28] sm:$0xff] (%p3375_p5) }
  0x27   : > { %416 = vst [vmem:[%s395_s21 + $0x10] sm:$0xff] %v415_v18  ;;  %v419_v20 = vld [vmem:[%s3411_s20 + $0x40] sm:$0xff]  ;;  %v421_v21 = vld [vmem:[%s3411_s20 + $0x48] sm:$0xff]  ;;  %418 = vst [vmem:[%s395_s21 + $0x18] sm:$0xff] %v417_v19 }
  0x28   : > { %420 = vst [vmem:[%s395_s21 + $0x20] sm:$0xff] %v419_v20  ;;  %422 = vst [vmem:[%s395_s21 + $0x28] sm:$0xff] %v421_v21  ;;  %v423_v22 = vld [vmem:[%s3411_s20 + $0x60] sm:$0xff]  ;;  %v425_v23 = vld [vmem:[%s3411_s20 + $0x68] sm:$0xff] }
  0x29   : > { %v427_v24 = vld [vmem:[%s3411_s20 + $0x80] sm:$0xff]  ;;  %424 = vst [vmem:[%s395_s21 + $0x30] sm:$0xff] %v423_v22  ;;  %426 = vst [vmem:[%s395_s21 + $0x38] sm:$0xff] %v425_v23  ;;  %v429_v25 = vld [vmem:[%s3411_s20 + $0x88] sm:$0xff] }
  0x2a   : > { %428 = vst [vmem:[%s395_s21 + $0x40] sm:$0xff] %v427_v24  ;;  %v431_v26 = vld [vmem:[%s3411_s20 + $0xa0] sm:$0xff]  ;;  %v433_v27 = vld [vmem:[%s3411_s20 + $0xa8] sm:$0xff]  ;;  %430 = vst [vmem:[%s395_s21 + $0x48] sm:$0xff] %v429_v25 }
  0x2b   : > { %432 = vst [vmem:[%s395_s21 + $0x50] sm:$0xff] %v431_v26  ;;  %434 = vst [vmem:[%s395_s21 + $0x58] sm:$0xff] %v433_v27  ;;  %v435_v28 = vld [vmem:[%s3411_s20 + $0xc0] sm:$0xff]  ;;  %v437_v29 = vld [vmem:[%s3411_s20 + $0xc8] sm:$0xff] }
  0x2c   : > { %v439_v30 = vld [vmem:[%s3411_s20 + $0xe0] sm:$0xff]  ;;  %436 = vst [vmem:[%s395_s21 + $0x60] sm:$0xff] %v435_v28  ;;  %438 = vst [vmem:[%s395_s21 + $0x68] sm:$0xff] %v437_v29  ;;  %v441_v31 = vld [vmem:[%s3411_s20 + $0xe8] sm:$0xff] }
  0x2d   : > { %440 = vst [vmem:[%s395_s21 + $0x70] sm:$0xff] %v439_v30  ;;  %442 = vst [vmem:[%s395_s21 + $0x78] sm:$0xff] %v441_v31 }
  0x2e PF: > { %448 = sbr.rel (!%p3375_p5) target bundleno = 54 (0x36), region = 130  ;;  %s450_s22 = sand.u32 (%p3375_p5), 1, %s3284_s26  }
  0x2f   : > { %s2614_s23 = sshll.u32 (%p3375_p5), %s3288_s27, 3  ;;  %s2613_s29 = sshll.u32 (%p3375_p5), %s450_s22, 6 }
  0x30   : > { %s454_s14 = scalar_lea.vmem (%p3375_p5), %s4369_s5, %s2614_s23  ;;  %s452_s15 = scalar_lea.vmem (%p3375_p5), [#allocation6], %s2613_s29 }
  0x31   : > { %v497_v32 = vld [vmem:[%s454_s14] sm:$0xff] (%p3375_p5)  ;;  %v499_v33 = vld [vmem:[%s454_s14 + $0x10] sm:$0xff] (%p3375_p5) }
  0x32   : > { %v501_v34 = vld [vmem:[%s454_s14 + $0x20] sm:$0xff] (%p3375_p5)  ;;  %498 = vst [vmem:[%s452_s15] sm:$0xff] (%p3375_p5), %v497_v32  ;;  %500 = vst [vmem:[%s452_s15 + $0x8] sm:$0xff] (%p3375_p5), %v499_v33  ;;  %v503_v35 = vld [vmem:[%s454_s14 + $0x30] sm:$0xff] (%p3375_p5) }
  0x33   : > { %502 = vst [vmem:[%s452_s15 + $0x10] sm:$0xff] %v501_v34  ;;  %v505_v36 = vld [vmem:[%s454_s14 + $0x40] sm:$0xff]  ;;  %v507_v37 = vld [vmem:[%s454_s14 + $0x50] sm:$0xff]  ;;  %504 = vst [vmem:[%s452_s15 + $0x18] sm:$0xff] %v503_v35 }
  0x34   : > { %506 = vst [vmem:[%s452_s15 + $0x20] sm:$0xff] %v505_v36  ;;  %508 = vst [vmem:[%s452_s15 + $0x28] sm:$0xff] %v507_v37  ;;  %v509_v38 = vld [vmem:[%s454_s14 + $0x60] sm:$0xff]  ;;  %v511_v39 = vld [vmem:[%s454_s14 + $0x70] sm:$0xff] }
  0x35   : > { %510 = vst [vmem:[%s452_s15 + $0x30] sm:$0xff] %v509_v38  ;;  %512 = vst [vmem:[%s452_s15 + $0x38] sm:$0xff] %v511_v39 }
  0x36 PF: > { %p2615_p10 = scmp.ge.s32.totalorder %s3288_s27, 1  ;;  %p517_p11 = scmp.lt.s32.totalorder %s3288_s27, 3 }
  0x38   : > { %p518_p12 = pnand %p2615_p10, %p517_p11 }
  0x39   : > { %s3439_s11 = sand.u32 (!%p518_p12), 1, %s3280_s25   ;;  %s3290_s29 = smov (!%p518_p12), 96  }
  0x3a   : > { %521 = sbr.rel (%p518_p12) target bundleno = 2472 (0x9a8), region = 168  ;;  %s3442_s16 = sshll.u32 (!%p518_p12), %s3439_s11, 6 }
  0x3b   : > { %s3445_s17 = scalar_lea.vmem (!%p518_p12), [#allocation4], %s3442_s16  ;;  %s2616_s18 = sshll.u32 (!%p518_p12), %s3439_s11, 5 }
  0x3c   : > { %s3458_s19 = scalar_lea.vmem (!%p518_p12), [#allocation3], %s2616_s18  ;;  %s2618_s20 = sshll.u32 (!%p518_p12), %s3439_s11, 7 }
  0x3d   : > { %s3499_s21 = scalar_lea.vmem (!%p518_p12), [#allocation5], %s2618_s20  ;;  %s2621_s22 = sshll.u32 (!%p518_p12), %s3439_s11, 8 }
  0x3e   : > { %s3518_s23 = scalar_lea.vmem (!%p518_p12), [#allocation8], %s2621_s22  ;;  %s3291_s8 = smov (!%p518_p12), 64  }
  0x3f   : > { %vm684_vm0 = vcmask 261120   ;;  %v3448_v40 = vld [vmem:[%s3445_s17 + $0x30] ss:$8 sps:$4 sm:$0xff]   ;;  %v3452_v41 = vld [vmem:[%s3445_s17 + $0x20] ss:$8 sps:$4 sm:$0xff]   ;;  %vm782_vm1 = vcmask 523264  }
  0x40   : > { %3005 = vmatprep.subr.msk.bf16.mxu0 %vm684_vm0, %v3448_v40  ;;  %v707_v42 = vsel %vm684_vm0, %v3448_v40, 0  ;;  %v3461_v43 = vld [vmem:[%s3458_s19] sm:$0xff]   ;;  %v3468_v44 = vld [vmem:[%s3445_s17 + $0x10] ss:$8 sps:$4 sm:$0xff]   ;;  %v704_v45 = vsel %vm684_vm0, %v3452_v41, 0  ;;  %v3484_v49 = vld [vmem:[%s3458_s19 + $0x8] sm:$0xff]  }
  0x41   : > { %2854 = vmatpush3.bf16.xpose.msra.mxu0 %v707_v42  ;;  %2861 = vmatprep.mubr.msk.bf16.mxu0 %vm684_vm0, %v3461_v43  ;;  %v701_v46 = vsel %vm684_vm0, %v3468_v44, 0  ;;  %v3477_v47 = vld [vmem:[%s3445_s17] ss:$8 sps:$4 sm:$0xff]   ;;  %v3487_v50 = vld [vmem:[%s3458_s19 + $0x10] sm:$0xff]   ;;  %v3494_v51 = vld [vmem:[%s3458_s19 + $0x18] sm:$0xff]   ;;  %vm1016_vm2 = vcmask 257024  }
  0x42   : > { %3006 = vmatprep.subr.msk.bf16.mxu0 %vm684_vm0, %v3452_v41  ;;  %v698_v48 = vsel %vm684_vm0, %v3477_v47, 0  ;;  %v3502_v52 = vld [vmem:[%s3499_s21 + $0x20] sm:$0xff]  ;;  %v3510_v57 = vld [vmem:[%s3499_s21 + $0x30] sm:$0xff]  ;;  %s3292_s9 = smov 32   ;;  %vm1416_vm3 = vcmask 519424   ;;  %vm1784_vm4 = vcmask 781824  }
  0x43   : > { %v3506_v54 = vld [vmem:[%s3499_s21] sm:$0xff]  ;;  %v3516_v61 = vld [vmem:[%s3499_s21 + $0x10] sm:$0xff]  ;;  %vm2184_vm5 = vcmask 1044224   ;;  %s4279_s22 = scalar_lea.vmem [#allocation6], %s3442_s16  ;;  %s2737_s14 = sshll.u32 (%p3379_p6), %s3357_s28, 3 }
  0x44   : > { %v3527_v2 = vld [vmem:[%s3499_s21 + $0x60] sm:$0xff]  ;;  %v3541_v12 = vld [vmem:[%s3499_s21 + $0x70] sm:$0xff]  ;;  %s2381_s18 = scalar_lea.vmem (%p3379_p6), %s4370_s6, %s2737_s14 }
  0x45   : > { %v3534_v7 = vld [vmem:[%s3499_s21 + $0x40] sm:$0xff]  ;;  %v3550_v17 = vld [vmem:[%s3499_s21 + $0x50] sm:$0xff] }
  0x46   : > { %v3585_v28 = vld [vmem:[%s3445_s17 + $0x34] ss:$8 sps:$4 sm:$0xff]   ;;  %v3588_v29 = vld [vmem:[%s3445_s17 + $0x24] ss:$8 sps:$4 sm:$0xff]  }
  0x47   : > { %2869 = vmatprep.subr.bf16.mxu1 %v3585_v28 }
  0x48   : > { %2870 = vmatpush3.bf16.msra.mxu1 %v3585_v28 }
  0x49   : > { %2856 = vmatpush3.bf16.xpose.msra.mxu0 %v704_v45  ;;  %2871 = vmatprep.subr.bf16.mxu1 %v3588_v29 }
  0x4a   : > { %3007 = vmatprep.subr.msk.bf16.mxu0 %vm684_vm0, %v3468_v44 }
  0x4c   : > { %2872 = vmatpush3.bf16.msra.mxu1 %v3588_v29 }
  0x51   : > { %2858 = vmatpush3.bf16.xpose.msra.mxu0 %v701_v46 }
  0x52   : > { %3008 = vmatprep.subr.msk.bf16.mxu0 %vm684_vm0, %v3477_v47 }
  0x59   : > { %2860 = vmatpush3.bf16.xpose.msra.mxu0 %v698_v48 }
  0x60   : > { %2862 = vmatmul.mubr.msk.bf16.vlgmr.msra.gmra.mxu0 %vm684_vm0, %v3484_v49 }
  0x61   : > { %2865 = vmatprep.mubr.msk.bf16.mxu0 %vm684_vm0, %v3487_v50 }
  0x68   : > { %2866 = vmatmul.mubr.msk.bf16.gmra.mxu0 %vm684_vm0, %v3494_v51 }
 0x120   : > { %v2863_v53 = vpop.f32.mrf.mxu0 }
 0x121   : > { %v752_v55 = vadd.f32 %v2863_v53, %v3502_v52 }
 0x122   : > { %v743_v56 = vpop.f32.mrf.mxu0 }
 0x123   : > { %v3512_v58 = vmul.f32 0.17677669, %v752_v55  ;;  %v744_v59 = vadd.f32 %v743_v56, %v3506_v54 }
 0x124   : > { %v2864_v60 = vpop.f32.mrf.mxu0 }
 0x125   : > { %785 = vst.msk [vmem:[%s3518_s23 + $0x10] sm:$0xff] %vm782_vm1, %v3512_v58  ;;  %v774_v62 = vmul.f32 0.17677669, %v744_v59  ;;  %v755_v63 = vadd.f32 %v2864_v60, %v3510_v57  ;;  %v797_v0 = vsel %vm782_vm1, %v3512_v58, -inf }
 0x126   : > { %798 = vmax.xlane.f32.xlu1 %v797_v0  ;;  %v746_v1 = vpop.f32.mrf.mxu0 }
 0x127   : > { %783 = vst.msk [vmem:[%s3518_s23] sm:$0xff] %vm782_vm1, %v774_v62  ;;  %v777_v3 = vmul.f32 0.17677669, %v755_v63  ;;  %v747_v4 = vadd.f32 %v746_v1, %v3516_v61  ;;  %v791_v5 = vsel %vm782_vm1, %v774_v62, -inf  ;;  %v3617_v63 = vld [vmem:[%s3445_s17 + $0x4] ss:$8 sps:$4 sm:$0xff]  }
 0x128   : > { %v2867_v6 = vpop.f32.mrf.mxu0  ;;  %792 = vmax.xlane.f32.xlu0 %v791_v5 }
 0x129   : > { %786 = vst.msk [vmem:[%s3518_s23 + $0x18] sm:$0xff] %vm782_vm1, %v777_v3  ;;  %v775_v8 = vmul.f32 0.17677669, %v747_v4  ;;  %v768_v9 = vadd.f32 %v2867_v6, %v3527_v2  ;;  %v800_v10 = vsel %vm782_vm1, %v777_v3, -inf }
 0x12a   : > { %801 = vmax.xlane.f32.xlu1 %v800_v10  ;;  %v759_v11 = vpop.f32.mrf.mxu0 }
 0x12b   : > { %784 = vst.msk [vmem:[%s3518_s23 + $0x8] sm:$0xff] %vm782_vm1, %v775_v8  ;;  %v3545_v13 = vmul.f32 0.17677669, %v768_v9  ;;  %v760_v14 = vadd.f32 %v759_v11, %v3534_v7  ;;  %v794_v15 = vsel %vm782_vm1, %v775_v8, -inf }
 0x12c   : > { %v2868_v16 = vpop.f32.mrf.mxu0  ;;  %795 = vmax.xlane.f32.xlu0 %v794_v15 }
 0x12d   : > { %789 = vst.msk [vmem:[%s3518_s23 + $0x30] sm:$0xff] %vm782_vm1, %v3545_v13  ;;  %v3555_v18 = vmul.f32 0.17677669, %v760_v14  ;;  %v771_v19 = vadd.f32 %v2868_v16, %v3541_v12  ;;  %v809_v26 = vsel %vm782_vm1, %v3545_v13, -inf }
 0x12e   : > { %v762_v20 = vpop.f32.mrf.mxu0 }
 0x12f   : > { %787 = vst.msk [vmem:[%s3518_s23 + $0x20] sm:$0xff] %vm782_vm1, %v3555_v18  ;;  %v3561_v21 = vmul.f32 0.17677669, %v771_v19  ;;  %v763_v22 = vadd.f32 %v762_v20, %v3550_v17  ;;  %v803_v23 = vsel %vm782_vm1, %v3555_v18, -inf }
 0x130   : > { %804 = vmax.xlane.f32.xlu0 %v803_v23 }
 0x131   : > { %790 = vst.msk [vmem:[%s3518_s23 + $0x38] sm:$0xff] %vm782_vm1, %v3561_v21  ;;  %v3569_v24 = vmul.f32 0.17677669, %v763_v22  ;;  %v812_v25 = vsel %vm782_vm1, %v3561_v21, -inf }
 0x132   : > { %813 = vmax.xlane.f32.xlu1 %v812_v25 }
 0x133   : > { %788 = vst.msk [vmem:[%s3518_s23 + $0x28] sm:$0xff] %vm782_vm1, %v3569_v24  ;;  %v806_v27 = vsel %vm782_vm1, %v3569_v24, -inf }
 0x134   : > { %810 = vmax.xlane.f32.xlu0 %v809_v26 }
 0x136   : > { %807 = vmax.xlane.f32.xlu1 %v806_v27 }
 0x147   : > { %1045 = vrot.lane.b32.xlu1 %v3452_v41, %s3290_s29 }
 0x14b   : > { %1043 = vrot.lane.b32.xlu1 %v3468_v44, %s3290_s29 }
 0x1af   : > { %v799_v30 = vpop.xlane.xlu1 %798 }
 0x1b0   : > { %v817_v31 = vsub.f32 %v3512_v58, %v799_v30 }
 0x1b1   : > { %v793_v32 = vpop.xlane.xlu0 %792 }
 0x1b2   : > { %v827_v33 = vmul.f32 1.442695, %v817_v31  ;;  %v815_v34 = vsub.f32 %v774_v62, %v793_v32  ;;  %v3612_v62 = vld [vmem:[%s3445_s17 + $0x14] ss:$8 sps:$4 sm:$0xff]  }
 0x1b3   : > { %v802_v35 = vpop.xlane.xlu1 %801  ;;  %2873 = vmatprep.subr.bf16.mxu1 %v3612_v62 }
 0x1b4   : > { %3089 = vpow2.f32 %v827_v33  ;;  %v823_v36 = vmul.f32 1.442695, %v815_v34  ;;  %v818_v37 = vsub.f32 %v777_v3, %v802_v35  ;;  %2874 = vmatpush3.bf16.msra.mxu1 %v3612_v62 }
 0x1b5   : > { %v796_v38 = vpop.xlane.xlu0 %795  ;;  %2875 = vmatprep.subr.bf16.mxu1 %v3617_v63 }
 0x1b6   : > { %3091 = vpow2.f32 %v823_v36  ;;  %v829_v39 = vmul.f32 1.442695, %v818_v37  ;;  %v816_v42 = vsub.f32 %v775_v8, %v796_v38 }
 0x1b8   : > { %3093 = vpow2.f32 %v829_v39  ;;  %v825_v45 = vmul.f32 1.442695, %v816_v42  ;;  %2876 = vmatpush3.bf16.msra.mxu1 %v3617_v63 }
 0x1b9   : > { %v805_v0 = vpop.xlane.xlu0 %804 }
 0x1ba   : > { %3095 = vpow2.f32 %v825_v45  ;;  %v819_v5 = vsub.f32 %v3555_v18, %v805_v0 }
 0x1bb   : > { %v814_v3 = vpop.xlane.xlu1 %813 }
 0x1bc   : > { %v822_v6 = vsub.f32 %v3561_v21, %v814_v3  ;;  %v831_v10 = vmul.f32 1.442695, %v819_v5 }
 0x1bd   : > { %v811_v1 = vpop.xlane.xlu0 %810 }
 0x1be   : > { %v821_v4 = vsub.f32 %v3545_v13, %v811_v1  ;;  %v837_v11 = vmul.f32 1.442695, %v822_v6 }
 0x1bf   : > { %v808_v9 = vpop.xlane.xlu1 %807 }
 0x1c0   : > { %v835_v8 = vmul.f32 1.442695, %v821_v4  ;;  %v820_v14 = vsub.f32 %v3569_v24, %v808_v9 }
 0x1c1   : > { %v3595_v46 = vpop.eup %3089 }
 0x1c2   : > { %v845_v48 = vsel %vm782_vm1, %v3595_v46, 0.0  ;;  %3097 = vpow2.f32 %v835_v8  ;;  %v833_v15 = vmul.f32 1.442695, %v820_v14 }
 0x1c3   : > { %v3599_v53 = vpop.eup %3091  ;;  %846 = vadd.xlane.f32.xlu0 %v845_v48  ;;  %3099 = vpow2.f32 %v831_v10 }
 0x1c4   : > { %v839_v58 = vsel %vm782_vm1, %v3599_v53, 0.0  ;;  %3101 = vpow2.f32 %v837_v11 }
 0x1c5   : > { %v3601_v55 = vpop.eup %3093  ;;  %3103 = vpow2.f32 %v833_v15 }
 0x1c6   : > { %v848_v56 = vsel %vm782_vm1, %v3601_v55, 0.0 }
 0x1c7   : > { %v3607_v59 = vpop.eup %3095  ;;  %849 = vadd.xlane.f32.xlu1 %v848_v56  ;;  %840 = vadd.xlane.f32.xlu0 %v839_v58 }
 0x1c8   : > { %v842_v60 = vsel %vm782_vm1, %v3607_v59, 0.0 }
 0x1cb   : > { %843 = vadd.xlane.f32.xlu1 %v842_v60 }
 0x1dc   : > { %1447 = vrot.lane.b32.xlu1 %v3448_v40, %s3291_s8 }
 0x1dd   : > { %1047 = vrot.lane.b32.xlu0 %v3448_v40, %s3290_s29  ;;  %v3629_v40 = vpop.eup %3097 }
 0x1de   : > { %v3631_v16 = vpop.eup %3099  ;;  %v857_v13 = vsel %vm782_vm1, %v3629_v40, 0.0 }
 0x1df   : > { %v3635_v18 = vpop.eup %3101  ;;  %v851_v20 = vsel %vm782_vm1, %v3631_v16, 0.0 }
 0x1e0   : > { %v860_v19 = vsel %vm782_vm1, %v3635_v18, 0.0  ;;  %v3641_v21 = vpop.eup %3103 }
 0x1e1   : > { %v854_v22 = vsel %vm782_vm1, %v3641_v21, 0.0 }
 0x1fc   : > { %858 = vadd.xlane.f32.xlu0 %v857_v13 }
 0x200   : > { %861 = vadd.xlane.f32.xlu1 %v860_v19  ;;  %852 = vadd.xlane.f32.xlu0 %v851_v20 }
 0x204   : > { %855 = vadd.xlane.f32.xlu1 %v854_v22 }
 0x215   : > { %1445 = vrot.lane.b32.xlu1 %v3452_v41, %s3291_s8  ;;  %v1046_v41 = vpop.permute.xlu1 %1045 }
 0x216   : > { %1041 = vrot.lane.b32.xlu0 %v3477_v47, %s3290_s29  ;;  %v1100_v31 = vsel %vm684_vm0, %v1046_v41, 0 }
 0x219   : > { %1035 = vrot.lane.b32.xlu1 %v3484_v49, %s3290_s29 }
 0x21a   : > { %1033 = vrot.lane.b32.xlu0 %v3461_v43, %s3290_s29 }
 0x21d   : > { %1037 = vrot.lane.b32.xlu1 %v3487_v50, %s3290_s29 }
 0x21e   : > { %1443 = vrot.lane.b32.xlu0 %v3468_v44, %s3291_s8 }
 0x221   : > { %1441 = vrot.lane.b32.xlu1 %v3477_v47, %s3291_s8 }
 0x222   : > { %1039 = vrot.lane.b32.xlu0 %v3494_v51, %s3290_s29 }
 0x225   : > { %1435 = vrot.lane.b32.xlu1 %v3484_v49, %s3291_s8 }
 0x226   : > { %1433 = vrot.lane.b32.xlu0 %v3461_v43, %s3291_s8  ;;  %v1044_v43 = vpop.permute.xlu1 %1043 }
 0x227   : > { %v1097_v32 = vsel %vm684_vm0, %v1044_v43, 0 }
 0x229   : > { %1439 = vrot.lane.b32.xlu1 %v3494_v51, %s3291_s8 }
 0x22a   : > { %1437 = vrot.lane.b32.xlu0 %v3487_v50, %s3291_s8 }
 0x22d   : > { %1059 = vrot.lane.b32.xlu1 %v3516_v61, %s3291_s8 }
 0x22e   : > { %1057 = vrot.lane.b32.xlu0 %v3506_v54, %s3291_s8 }
 0x231   : > { %1063 = vrot.lane.b32.xlu1 %v3510_v57, %s3291_s8 }
 0x232   : > { %1061 = vrot.lane.b32.xlu0 %v3502_v52, %s3291_s8 }
 0x235   : > { %1067 = vrot.lane.b32.xlu1 %v3550_v17, %s3291_s8 }
 0x236   : > { %1065 = vrot.lane.b32.xlu0 %v3534_v7, %s3291_s8 }
 0x239   : > { %1071 = vrot.lane.b32.xlu1 %v3541_v12, %s3291_s8 }
 0x23a   : > { %1069 = vrot.lane.b32.xlu0 %v3527_v2, %s3291_s8 }
 0x24c   : > { %v847_v44 = vpop.xlane.xlu0 %846 }
 0x250   : > { %v850_v47 = vpop.xlane.xlu1 %849  ;;  %v841_v49 = vpop.xlane.xlu0 %840 }
 0x251   : > { %3105 = vrcp.f32 %v850_v47 }
 0x252   : > { %3107 = vrcp.f32 %v841_v49 }
 0x253   : > { %3109 = vrcp.f32 %v847_v44 }
 0x254   : > { %v844_v51 = vpop.xlane.xlu1 %843  ;;  %v1048_v52 = vpop.permute.xlu0 %1047 }
 0x255   : > { %3111 = vrcp.f32 %v844_v51  ;;  %3009 = vmatprep.subr.msk.bf16.mxu1 %vm684_vm0, %v1048_v52  ;;  %v1103_v30 = vsel %vm684_vm0, %v1048_v52, 0 }
 0x258   : > { %v1448_v54 = vpop.permute.xlu1 %1447 }
 0x259   : > { %3013 = vmatprep.subr.msk.bf16.mxu0 %vm684_vm0, %v1448_v54  ;;  %v1471_v57 = vsel %vm684_vm0, %v1448_v54, 0 }
 0x25a   : > { %2918 = vmatpush3.bf16.xpose.msra.mxu0 %v1471_v57 }
 0x25e   : > { %v3106_v61 = vpop.eup %3105 }
 0x25f   : > { %v3108_v2 = vpop.eup %3107  ;;  %v874_v17 = vmul.f32 %v3106_v61, %v3601_v55 }
 0x260   : > { %v3110_v7 = vpop.eup %3109  ;;  %v871_v23 = vmul.f32 %v3108_v2, %v3599_v53 }
 0x261   : > { %v873_v25 = vmul.f32 %v3110_v7, %v3595_v46 }
 0x262   : > { %v3112_v12 = vpop.eup %3111 }
 0x263   : > { %v872_v24 = vmul.f32 %v3112_v12, %v3607_v59  ;;  %v880_v27 = vpack.c.bf16 %v874_v17, %v873_v25  ;;  %v3729_v17 = vld [vmem:[%s3499_s21 + $0x28] sm:$0xff] }
 0x265   : > { %v879_v26 = vpack.c.bf16 %v872_v24, %v871_v23 }
 0x267   : > { %2877 = vmatprep.mubr.msk.bf16.mxu1 %vm782_vm1, %v879_v26 }
 0x268   : > { %2878 = vmatmul.mubr.msk.bf16.vlgmr.msra.gmra.mxu1 %vm782_vm1, %v880_v27  ;;  %v3733_v27 = vld [vmem:[%s3499_s21 + $0x8] sm:$0xff] }
 0x269   : > { %2886 = vmatpush3.bf16.xpose.msra.mxu1 %v1103_v30 }
 0x26a   : > { %3010 = vmatprep.subr.msk.bf16.mxu1 %vm684_vm0, %v1046_v41 }
 0x271   : > { %2888 = vmatpush3.bf16.xpose.msra.mxu1 %v1100_v31 }
 0x272   : > { %3011 = vmatprep.subr.msk.bf16.mxu1 %vm684_vm0, %v1044_v43 }
 0x279   : > { %2890 = vmatpush3.bf16.xpose.msra.mxu1 %v1097_v32 }
 0x285   : > { %v859_v33 = vpop.xlane.xlu0 %858 }
 0x289   : > { %v862_v34 = vpop.xlane.xlu1 %861  ;;  %v853_v35 = vpop.xlane.xlu0 %852 }
 0x28a   : > { %3113 = vrcp.f32 %v862_v34 }
 0x28b   : > { %3115 = vrcp.f32 %v853_v35  ;;  %v3739_v35 = vld [vmem:[%s3499_s21 + $0x38] sm:$0xff] }
 0x28c   : > { %3117 = vrcp.f32 %v859_v33 }
 0x28d   : > { %v856_v36 = vpop.xlane.xlu1 %855  ;;  %v1042_v37 = vpop.permute.xlu0 %1041 }
 0x28e   : > { %3119 = vrcp.f32 %v856_v36  ;;  %3012 = vmatprep.subr.msk.bf16.mxu1 %vm684_vm0, %v1042_v37  ;;  %v1094_v38 = vsel %vm684_vm0, %v1042_v37, 0 }
 0x28f   : > { %2892 = vmatpush3.bf16.xpose.msra.mxu1 %v1094_v38 }
 0x291   : > { %v1446_v39 = vpop.permute.xlu1 %1445  ;;  %v1034_v42 = vpop.permute.xlu0 %1033 }
 0x292   : > { %3014 = vmatprep.subr.msk.bf16.mxu0 %vm684_vm0, %v1446_v39  ;;  %v1468_v45 = vsel %vm684_vm0, %v1446_v39, 0 }
 0x293   : > { %2920 = vmatpush3.bf16.xpose.msra.mxu0 %v1468_v45 }
 0x295   : > { %v1036_v46 = vpop.permute.xlu1 %1035  ;;  %v1444_v48 = vpop.permute.xlu0 %1443 }
 0x296   : > { %3015 = vmatprep.subr.msk.bf16.mxu0 %vm684_vm0, %v1444_v48  ;;  %v1465_v55 = vsel %vm684_vm0, %v1444_v48, 0  ;;  %v3750_v48 = vld [vmem:[%s3499_s21 + $0x18] sm:$0xff] }
 0x297   : > { %v3114_v53 = vpop.eup %3113 }
 0x298   : > { %v3116_v56 = vpop.eup %3115  ;;  %v878_v1 = vmul.f32 %v3114_v53, %v3635_v18 }
 0x299   : > { %v1038_v58 = vpop.permute.xlu1 %1037  ;;  %v1040_v59 = vpop.permute.xlu0 %1039  ;;  %v875_v3 = vmul.f32 %v3116_v56, %v3631_v16 }
 0x29a   : > { %v3118_v60 = vpop.eup %3117 }
 0x29b   : > { %v3120_v0 = vpop.eup %3119  ;;  %2922 = vmatpush3.bf16.xpose.msra.mxu0 %v1465_v55  ;;  %v877_v6 = vmul.f32 %v3118_v60, %v3629_v40 }
 0x29c   : > { %v876_v4 = vmul.f32 %v3120_v0, %v3641_v21 }
 0x29d   : > { %v1442_v5 = vpop.permute.xlu1 %1441  ;;  %v1434_v8 = vpop.permute.xlu0 %1433  ;;  %v882_v10 = vpack.c.bf16 %v878_v1, %v877_v6  ;;  %v3764_v1 = vld [vmem:[%s3499_s21 + $0x68] sm:$0xff] }
 0x29e   : > { %v881_v9 = vpack.c.bf16 %v876_v4, %v875_v3  ;;  %3016 = vmatprep.subr.msk.bf16.mxu0 %vm684_vm0, %v1442_v5  ;;  %2925 = vmatprep.mubr.msk.bf16.mxu0 %vm684_vm0, %v1434_v8  ;;  %v1462_v11 = vsel %vm684_vm0, %v1442_v5, 0 }
 0x2a0   : > { %2881 = vmatprep.mubr.msk.bf16.mxu1 %vm782_vm1, %v881_v9 }
 0x2a1   : > { %2882 = vmatmul.mubr.msk.bf16.gmra.mxu1 %vm782_vm1, %v882_v10  ;;  %v1436_v14 = vpop.permute.xlu1 %1435  ;;  %v1438_v15 = vpop.permute.xlu0 %1437 }
 0x2a2   : > { %2893 = vmatprep.mubr.msk.bf16.mxu1 %vm684_vm0, %v1034_v42 }
 0x2a3   : > { %2924 = vmatpush3.bf16.xpose.msra.mxu0 %v1462_v11  ;;  %v3780_v11 = vld [vmem:[%s3499_s21 + $0x48] sm:$0xff] }
 0x2a5   : > { %v1440_v40 = vpop.permute.xlu1 %1439  ;;  %v1058_v43 = vpop.permute.xlu0 %1057 }
 0x2a9   : > { %2894 = vmatmul.mubr.msk.bf16.vlgmr.msra.gmra.mxu1 %vm684_vm0, %v1036_v46  ;;  %v1060_v47 = vpop.permute.xlu1 %1059  ;;  %v1062_v52 = vpop.permute.xlu0 %1061 }
 0x2aa   : > { %2897 = vmatprep.mubr.msk.bf16.mxu1 %vm684_vm0, %v1038_v58  ;;  %2926 = vmatmul.mubr.msk.bf16.vlgmr.msra.gmra.mxu0 %vm684_vm0, %v1436_v14 }
 0x2ab   : > { %2929 = vmatprep.mubr.msk.bf16.mxu0 %vm684_vm0, %v1438_v15 }
 0x2ad   : > { %v1064_v7 = vpop.permute.xlu1 %1063  ;;  %v1066_v24 = vpop.permute.xlu0 %1065 }
 0x2b1   : > { %2898 = vmatmul.mubr.msk.bf16.gmra.mxu1 %vm684_vm0, %v1040_v59  ;;  %v1068_v39 = vpop.permute.xlu1 %1067  ;;  %v1070_v58 = vpop.permute.xlu0 %1069 }
 0x2b2   : > { %2930 = vmatmul.mubr.msk.bf16.gmra.mxu0 %vm684_vm0, %v1440_v40 }
 0x328   : > { %v2879_v16 = vpop.f32.mrf.mxu1 }
 0x329   : > { %v2746_v13 = vpack.c.bf16 %v2879_v16, %v2879_v16  ;;  %v1072_v16 = vpop.permute.xlu1 %1071 }
 0x32a   : > { %v953_v18 = vpop.f32.mrf.mxu1 }
 0x32b   : > { %1019 = vst.msk [vmem:[#allocation2 + $0x8] sm:$0xf] %vm1016_vm2, %v2746_v13  ;;  %v2744_v19 = vpack.c.bf16 %v953_v18, %v953_v18 }
 0x32c   : > { %v2880_v20 = vpop.f32.mrf.mxu1 }
 0x32d   : > { %1017 = vst.msk [vmem:[#allocation2] sm:$0xf] %vm1016_vm2, %v2744_v19  ;;  %v2747_v21 = vpack.c.bf16 %v2880_v20, %v2880_v20  ;;  %v3794_v20 = vld [vmem:[%s3499_s21 + $0x78] sm:$0xff] }
 0x32e   : > { %v956_v22 = vpop.f32.mrf.mxu1 }
 0x32f   : > { %1020 = vst.msk [vmem:[#allocation2 + $0xc] sm:$0xf] %vm1016_vm2, %v2747_v21  ;;  %v2745_v41 = vpack.c.bf16 %v956_v22, %v956_v22 }
 0x331   : > { %1018 = vst.msk [vmem:[#allocation2 + $0x4] sm:$0xf] %vm1016_vm2, %v2745_v41 }
 0x361   : > { %v2883_v44 = vpop.f32.mrf.mxu1 }
 0x362   : > { %v2750_v49 = vpack.c.bf16 %v2883_v44, %v2883_v44 }
 0x363   : > { %v969_v51 = vpop.f32.mrf.mxu1 }
 0x364   : > { %1023 = vst.msk [vmem:[#allocation2 + $0x18] sm:$0xf] %vm1016_vm2, %v2750_v49  ;;  %v2748_v54 = vpack.c.bf16 %v969_v51, %v969_v51 }
 0x365   : > { %v2884_v57 = vpop.f32.mrf.mxu1 }
 0x366   : > { %1021 = vst.msk [vmem:[#allocation2 + $0x10] sm:$0xf] %vm1016_vm2, %v2748_v54  ;;  %v2751_v61 = vpack.c.bf16 %v2884_v57, %v2884_v57 }
 0x367   : > { %v972_v2 = vpop.f32.mrf.mxu1 }
 0x368   : > { %1024 = vst.msk [vmem:[#allocation2 + $0x1c] sm:$0xf] %vm1016_vm2, %v2751_v61  ;;  %v2749_v12 = vpack.c.bf16 %v972_v2, %v972_v2 }
 0x369   : > { %v2895_v23 = vpop.f32.mrf.mxu1 }
 0x36a   : > { %1022 = vst.msk [vmem:[#allocation2 + $0x14] sm:$0xf] %vm1016_vm2, %v2749_v12  ;;  %v1148_v25 = vadd.f32 %v2895_v23, %v1062_v52  ;;  %v2927_v26 = vpop.f32.mrf.mxu0  ;;  %v3812_v52 = vld [vmem:[%s3499_s21 + $0x58] sm:$0xff] }
 0x36b   : > { %v1516_v30 = vadd.f32 %v2927_v26, %v3729_v17  ;;  %v1139_v31 = vpop.f32.mrf.mxu1 }
 0x36c   : > { %v3736_v32 = vmul.f32 0.17677669, %v1148_v25  ;;  %v1140_v33 = vadd.f32 %v1139_v31, %v1058_v43  ;;  %v1507_v34 = vpop.f32.mrf.mxu0 }
 0x36d   : > { %v3741_v36 = vmul.f32 0.17677669, %v1516_v30  ;;  %v1508_v37 = vadd.f32 %v1507_v34, %v3733_v27  ;;  %v2896_v38 = vpop.f32.mrf.mxu1 }
 0x36e   : > { %2656 = vst.msk [vmem:[%s3518_s23 + $0x50] sm:$0xff] %vm782_vm1, %v3736_v32  ;;  %v3747_v42 = vmul.f32 0.17677669, %v1140_v33  ;;  %v1151_v45 = vadd.f32 %v2896_v38, %v1064_v7  ;;  %v2928_v46 = vpop.f32.mrf.mxu0  ;;  %v1193_v34 = vsel %vm782_vm1, %v3736_v32, -inf }
 0x36f   : > { %2680 = vst.msk [vmem:[%s3518_s23 + $0x90] sm:$0xff] %vm782_vm1, %v3741_v36  ;;  %v3755_v53 = vmul.f32 0.17677669, %v1508_v37  ;;  %v1519_v55 = vadd.f32 %v2928_v46, %v3739_v35  ;;  %v1142_v56 = vpop.f32.mrf.mxu1  ;;  %v1561_v44 = vsel %vm782_vm1, %v3741_v36, -inf }
 0x370   : > { %2654 = vst.msk [vmem:[%s3518_s23 + $0x40] sm:$0xff] %vm782_vm1, %v3747_v42  ;;  %v3761_v59 = vmul.f32 0.17677669, %v1151_v45  ;;  %v1143_v60 = vadd.f32 %v1142_v56, %v1060_v47  ;;  %v1510_v0 = vpop.f32.mrf.mxu0  ;;  %v1187_v38 = vsel %vm782_vm1, %v3747_v42, -inf }
 0x371   : > { %2678 = vst.msk [vmem:[%s3518_s23 + $0x80] sm:$0xff] %vm782_vm1, %v3755_v53  ;;  %v3769_v3 = vmul.f32 0.17677669, %v1519_v55  ;;  %v1511_v4 = vadd.f32 %v1510_v0, %v3750_v48  ;;  %v2899_v5 = vpop.f32.mrf.mxu1  ;;  %v1555_v6 = vsel %vm782_vm1, %v3755_v53, -inf }
 0x372   : > { %2657 = vst.msk [vmem:[%s3518_s23 + $0x58] sm:$0xff] %vm782_vm1, %v3761_v59  ;;  %v3777_v8 = vmul.f32 0.17677669, %v1143_v60  ;;  %v1164_v9 = vadd.f32 %v2899_v5, %v1070_v58  ;;  %1556 = vmax.xlane.f32.xlu0 %v1555_v6  ;;  %v2931_v10 = vpop.f32.mrf.mxu0  ;;  %v1196_v45 = vsel %vm782_vm1, %v3761_v59, -inf }
 0x373   : > { %2681 = vst.msk [vmem:[%s3518_s23 + $0x98] sm:$0xff] %vm782_vm1, %v3769_v3  ;;  %v3785_v14 = vmul.f32 0.17677669, %v1511_v4  ;;  %v1532_v15 = vadd.f32 %v2931_v10, %v3764_v1  ;;  %v1155_v40 = vpop.f32.mrf.mxu1  ;;  %v1564_v25 = vsel %vm782_vm1, %v3769_v3, -inf }
 0x374   : > { %2655 = vst.msk [vmem:[%s3518_s23 + $0x48] sm:$0xff] %vm782_vm1, %v3777_v8  ;;  %v3791_v13 = vmul.f32 0.17677669, %v1164_v9  ;;  %v1156_v18 = vadd.f32 %v1155_v40, %v1066_v24  ;;  %v1523_v19 = vpop.f32.mrf.mxu0  ;;  %v1190_v37 = vsel %vm782_vm1, %v3777_v8, -inf }
 0x375   : > { %2679 = vst.msk [vmem:[%s3518_s23 + $0x88] sm:$0xff] %vm782_vm1, %v3785_v14  ;;  %v3799_v21 = vmul.f32 0.17677669, %v1532_v15  ;;  %v1524_v22 = vadd.f32 %v1523_v19, %v3780_v11  ;;  %v2900_v41 = vpop.f32.mrf.mxu1  ;;  %v1558_v43 = vsel %vm782_vm1, %v3785_v14, -inf }
 0x376   : > { %2660 = vst.msk [vmem:[%s3518_s23 + $0x70] sm:$0xff] %vm782_vm1, %v3791_v13  ;;  %v3809_v47 = vmul.f32 0.17677669, %v1156_v18  ;;  %v1167_v49 = vadd.f32 %v2900_v41, %v1072_v16  ;;  %1559 = vmax.xlane.f32.xlu1 %v1558_v43  ;;  %1562 = vmax.xlane.f32.xlu0 %v1561_v44  ;;  %v2932_v51 = vpop.f32.mrf.mxu0  ;;  %v1205_v55 = vsel %vm782_vm1, %v3791_v13, -inf }
 0x377   : > { %2684 = vst.msk [vmem:[%s3518_s23 + $0xb0] sm:$0xff] %vm782_vm1, %v3799_v21  ;;  %v3817_v54 = vmul.f32 0.17677669, %v1524_v22  ;;  %v1535_v57 = vadd.f32 %v2932_v51, %v3794_v20  ;;  %v1158_v61 = vpop.f32.mrf.mxu1  ;;  %v1573_v60 = vsel %vm782_vm1, %v3799_v21, -inf }
 0x378   : > { %2658 = vst.msk [vmem:[%s3518_s23 + $0x60] sm:$0xff] %vm782_vm1, %v3809_v47  ;;  %v3823_v2 = vmul.f32 0.17677669, %v1167_v49  ;;  %v1159_v7 = vadd.f32 %v1158_v61, %v1068_v39  ;;  %v1526_v12 = vpop.f32.mrf.mxu0  ;;  %v1199_v58 = vsel %vm782_vm1, %v3809_v47, -inf }
 0x379   : > { %2682 = vst.msk [vmem:[%s3518_s23 + $0xa0] sm:$0xff] %vm782_vm1, %v3817_v54  ;;  %v3828_v23 = vmul.f32 0.17677669, %v1535_v57  ;;  %v1527_v24 = vadd.f32 %v1526_v12, %v3812_v52  ;;  %v1567_v26 = vsel %vm782_vm1, %v3817_v54, -inf }
 0x37a   : > { %2661 = vst.msk [vmem:[%s3518_s23 + $0x78] sm:$0xff] %vm782_vm1, %v3823_v2  ;;  %v3838_v30 = vmul.f32 0.17677669, %v1159_v7  ;;  %1565 = vmax.xlane.f32.xlu1 %v1564_v25  ;;  %1568 = vmax.xlane.f32.xlu0 %v1567_v26  ;;  %v1208_v46 = vsel %vm782_vm1, %v3823_v2, -inf }
 0x37b   : > { %2685 = vst.msk [vmem:[%s3518_s23 + $0xb8] sm:$0xff] %vm782_vm1, %v3828_v23  ;;  %v1543_v31 = vmul.f32 0.17677669, %v1527_v24  ;;  %v1576_v39 = vsel %vm782_vm1, %v3828_v23, -inf }
 0x37c   : > { %2659 = vst.msk [vmem:[%s3518_s23 + $0x68] sm:$0xff] %vm782_vm1, %v3838_v30  ;;  %v1202_v56 = vsel %vm782_vm1, %v3838_v30, -inf }
 0x37d   : > { %2683 = vst.msk [vmem:[%s3518_s23 + $0xa8] sm:$0xff] %vm782_vm1, %v1543_v31  ;;  %v1570_v33 = vsel %vm782_vm1, %v1543_v31, -inf }
 0x37e   : > { %1571 = vmax.xlane.f32.xlu1 %v1570_v33  ;;  %1194 = vmax.xlane.f32.xlu0 %v1193_v34 }
 0x382   : > { %1191 = vmax.xlane.f32.xlu1 %v1190_v37  ;;  %1188 = vmax.xlane.f32.xlu0 %v1187_v38 }
 0x386   : > { %1577 = vmax.xlane.f32.xlu1 %v1576_v39  ;;  %1197 = vmax.xlane.f32.xlu0 %v1196_v45 }
 0x38a   : > { %1209 = vmax.xlane.f32.xlu1 %v1208_v46  ;;  %1206 = vmax.xlane.f32.xlu0 %v1205_v55 }
 0x38e   : > { %1203 = vmax.xlane.f32.xlu1 %v1202_v56  ;;  %1200 = vmax.xlane.f32.xlu0 %v1199_v58 }
 0x392   : > { %1574 = vmax.xlane.f32.xlu0 %v1573_v60 }
 0x3a8   : > { %1285 = vrot.lane.b32.xlu0 %v3585_v28, %s3290_s29 }
 0x3ac   : > { %1281 = vrot.lane.b32.xlu0 %v3612_v62, %s3290_s29 }
 0x3b0   : > { %1279 = vrot.lane.b32.xlu0 %v3617_v63, %s3290_s29 }
 0x3b4   : > { %1653 = vrot.lane.b32.xlu0 %v3585_v28, %s3291_s8 }
 0x3b8   : > { %1649 = vrot.lane.b32.xlu0 %v3612_v62, %s3291_s8 }
 0x3fb   : > { %v1557_v0 = vpop.xlane.xlu0 %1556 }
 0x3fc   : > { %v1579_v4 = vsub.f32 %v3755_v53, %v1557_v0 }
 0x3fe   : > { %v1587_v5 = vmul.f32 1.442695, %v1579_v4 }
 0x3ff   : > { %v1560_v6 = vpop.xlane.xlu1 %1559  ;;  %v1563_v9 = vpop.xlane.xlu0 %1562 }
 0x400   : > { %3121 = vpow2.f32 %v1587_v5  ;;  %v1580_v10 = vsub.f32 %v3785_v14, %v1560_v6  ;;  %v1581_v15 = vsub.f32 %v3741_v36, %v1563_v9 }
 0x402   : > { %v1589_v40 = vmul.f32 1.442695, %v1580_v10  ;;  %v1591_v16 = vmul.f32 1.442695, %v1581_v15 }
 0x403   : > { %v1566_v18 = vpop.xlane.xlu1 %1565  ;;  %v3882_v19 = vpop.xlane.xlu0 %1568 }
 0x404   : > { %3123 = vpow2.f32 %v1589_v40  ;;  %v1582_v28 = vsub.f32 %v3769_v3, %v1566_v18 }
 0x405   : > { %3125 = vpow2.f32 %v1591_v16 }
 0x406   : > { %v1593_v62 = vmul.f32 1.442695, %v1582_v28 }
 0x407   : > { %v1572_v22 = vpop.xlane.xlu1 %1571  ;;  %v1195_v53 = vpop.xlane.xlu0 %1194 }
 0x408   : > { %v1584_v41 = vsub.f32 %v1543_v31, %v1572_v22  ;;  %v1213_v43 = vsub.f32 %v3736_v32, %v1195_v53  ;;  %3127 = vpow2.f32 %v1593_v62  ;;  %v1583_v62 = vsub.f32 %v3817_v54, %v3882_v19 }
 0x40a   : > { %v1597_v44 = vmul.f32 1.442695, %v1584_v41  ;;  %v1223_v14 = vmul.f32 1.442695, %v1213_v43  ;;  %v1595_v22 = vmul.f32 1.442695, %v1583_v62 }
 0x40b   : > { %v1189_v49 = vpop.xlane.xlu0 %1188  ;;  %v1192_v12 = vpop.xlane.xlu1 %1191 }
 0x40c   : > { %3129 = vpow2.f32 %v1597_v44  ;;  %v1211_v36 = vsub.f32 %v3747_v42, %v1189_v49  ;;  %v1212_v43 = vsub.f32 %v3777_v8, %v1192_v12 }
 0x40d   : > { %v3887_v51 = vpop.eup %3121  ;;  %3131 = vpow2.f32 %v1223_v14 }
 0x40e   : > { %v1219_v57 = vmul.f32 1.442695, %v1211_v36  ;;  %v1603_v3 = vsel %vm782_vm1, %v3887_v51, 0.0  ;;  %v1221_v14 = vmul.f32 1.442695, %v1212_v43 }
 0x40f   : > { %1604 = vadd.xlane.f32.xlu1 %v1603_v3  ;;  %v1198_v61 = vpop.xlane.xlu0 %1197  ;;  %v1578_v37 = vpop.xlane.xlu1 %1577  ;;  %v3217_v36 = vld [vmem:[%s3445_s17 + $0x30] ss:$8 sps:$4 sm:$0xff]  }
 0x410   : > { %3133 = vpow2.f32 %v1219_v57  ;;  %v1586_v56 = vsub.f32 %v3828_v23, %v1578_v37  ;;  %v1214_v53 = vsub.f32 %v3761_v59, %v1198_v61  ;;  %v3218_v57 = vld [vmem:[%s3458_s19] sm:$0xff]  }
 0x411   : > { %v3891_v7 = vpop.eup %3123 }
 0x412   : > { %v1606_v32 = vsel %vm782_vm1, %v3891_v7, 0.0  ;;  %v3895_v24 = vpop.eup %3125  ;;  %v1601_v5 = vmul.f32 1.442695, %v1586_v56  ;;  %v1225_v44 = vmul.f32 1.442695, %v1214_v53 }
 0x413   : > { %1607 = vadd.xlane.f32.xlu1 %v1606_v32  ;;  %v1207_v42 = vpop.xlane.xlu0 %1206  ;;  %v1609_v31 = vsel %vm782_vm1, %v3895_v24, 0.0  ;;  %v1210_v41 = vpop.xlane.xlu1 %1209 }
 0x414   : > { %v1217_v25 = vsub.f32 %v3791_v13, %v1207_v42  ;;  %v3219_v42 = vld [vmem:[%s3445_s17 + $0x20] ss:$8 sps:$4 sm:$0xff]  }
 0x415   : > { %v3900_v33 = vpop.eup %3127 }
 0x416   : > { %v1231_v26 = vmul.f32 1.442695, %v1217_v25  ;;  %v1612_v13 = vsel %vm782_vm1, %v3900_v33, 0.0  ;;  %v3221_v25 = vld [vmem:[%s3445_s17] ss:$8 sps:$4 sm:$0xff]  }
 0x417   : > { %1610 = vadd.xlane.f32.xlu1 %v1609_v31  ;;  %v1201_v34 = vpop.xlane.xlu0 %1200  ;;  %v1204_v49 = vpop.xlane.xlu1 %1203 }
 0x418   : > { %v1215_v38 = vsub.f32 %v3809_v47, %v1201_v34  ;;  %3135 = vpow2.f32 %v1231_v26  ;;  %v1216_v19 = vsub.f32 %v3838_v30, %v1204_v49  ;;  %v3222_v26 = vld [vmem:[%s3458_s19 + $0x8] sm:$0xff]  }
 0x419   : > { %v3903_v39 = vpop.eup %3129 }
 0x41a   : > { %v1227_v45 = vmul.f32 1.442695, %v1215_v38  ;;  %v1618_v46 = vsel %vm782_vm1, %v3903_v39, 0.0  ;;  %v3909_v55 = vpop.eup %3131  ;;  %v1229_v59 = vmul.f32 1.442695, %v1216_v19 }
 0x41b   : > { %1619 = vadd.xlane.f32.xlu0 %v1618_v46  ;;  %1613 = vadd.xlane.f32.xlu1 %v1612_v13  ;;  %v1575_v58 = vpop.xlane.xlu0 %1574  ;;  %v1241_v0 = vsel %vm782_vm1, %v3909_v55, 0.0 }
 0x41c   : > { %v1585_v60 = vsub.f32 %v3799_v21, %v1575_v58  ;;  %3137 = vpow2.f32 %v1227_v45 }
 0x41d   : > { %v3915_v4 = vpop.eup %3133 }
 0x41e   : > { %v1599_v47 = vmul.f32 1.442695, %v1585_v60  ;;  %v1235_v23 = vsel %vm782_vm1, %v3915_v4, 0.0 }
 0x41f   : > { %1242 = vadd.xlane.f32.xlu0 %v1241_v0  ;;  %v1286_v6 = vpop.permute.xlu0 %1285 }
 0x420   : > { %3139 = vpow2.f32 %v1599_v47  ;;  %2901 = vmatprep.subr.bf16.mxu1 %v1286_v6 }
 0x421   : > { %2902 = vmatpush3.bf16.msra.mxu1 %v1286_v6  ;;  %3141 = vpow2.f32 %v1601_v5 }
 0x422   : > { %3143 = vpow2.f32 %v1595_v22 }
 0x423   : > { %1236 = vadd.xlane.f32.xlu0 %v1235_v23  ;;  %3145 = vpow2.f32 %v1225_v44  ;;  %v1282_v38 = vpop.permute.xlu0 %1281 }
 0x424   : > { %3147 = vpow2.f32 %v1221_v14 }
 0x425   : > { %v3919_v9 = vpop.eup %3135 }
 0x426   : > { %v1253_v21 = vsel %vm782_vm1, %v3919_v9, 0.0 }
 0x427   : > { %1254 = vadd.xlane.f32.xlu0 %v1253_v21 }
 0x429   : > { %v3923_v10 = vpop.eup %3137 }
 0x42a   : > { %v1247_v15 = vsel %vm782_vm1, %v3923_v10, 0.0 }
 0x42b   : > { %1248 = vadd.xlane.f32.xlu0 %v1247_v15 }
 0x42c   : > { %1283 = vrot.lane.b32.xlu1 %v3588_v29, %s3290_s29 }
 0x42d   : > { %v3929_v40 = vpop.eup %3139 }
 0x42e   : > { %v1621_v16 = vsel %vm782_vm1, %v3929_v40, 0.0  ;;  %v3933_v18 = vpop.eup %3141 }
 0x42f   : > { %1622 = vadd.xlane.f32.xlu0 %v1621_v16  ;;  %v1624_v28 = vsel %vm782_vm1, %v3933_v18, 0.0  ;;  %v3949_v8 = vpop.eup %3143 }
 0x430   : > { %1651 = vrot.lane.b32.xlu1 %v3588_v29, %s3291_s8  ;;  %v1218_v29 = vsub.f32 %v3823_v2, %v1210_v41  ;;  %v1615_v2 = vsel %vm782_vm1, %v3949_v8, 0.0  ;;  %v3955_v3 = vpop.eup %3145 }
 0x431   : > { %v1244_v30 = vsel %vm782_vm1, %v3955_v3, 0.0  ;;  %v3961_v61 = vpop.eup %3147 }
 0x432   : > { %v1233_v54 = vmul.f32 1.442695, %v1218_v29 }
 0x433   : > { %1625 = vadd.xlane.f32.xlu0 %v1624_v28 }
 0x434   : > { %3149 = vpow2.f32 %v1233_v54 }
 0x435   : > { %3151 = vpow2.f32 %v1229_v59 }
 0x441   : > { %v3967_v12 = vpop.eup %3149 }
 0x442   : > { %v3973_v32 = vpop.eup %3151 }
 0x449   : > { %1815 = vrot.lane.b32.xlu0 %v3217_v36, %s3292_s9 }
 0x44d   : > { %1801 = vrot.lane.b32.xlu0 %v3218_v57, %s3292_s9 }
 0x451   : > { %1805 = vrot.lane.b32.xlu0 %v3487_v50, %s3292_s9  ;;  %v1238_v50 = vsel %vm782_vm1, %v3961_v61, 0.0 }
 0x454   : > { %1616 = vadd.xlane.f32.xlu1 %v1615_v2 }
 0x455   : > { %1825 = vrot.lane.b32.xlu0 %v3733_v27, %s3291_s8  ;;  %v1256_v27 = vsel %vm782_vm1, %v3967_v12, 0.0 }
 0x458   : > { %1245 = vadd.xlane.f32.xlu1 %v1244_v30 }
 0x459   : > { %1829 = vrot.lane.b32.xlu0 %v3729_v17, %s3291_s8  ;;  %v1250_v17 = vsel %vm782_vm1, %v3973_v32, 0.0 }
 0x45c   : > { %1239 = vadd.xlane.f32.xlu1 %v1238_v50 }
 0x45d   : > { %1833 = vrot.lane.b32.xlu0 %v3780_v11, %s3291_s8  ;;  %v3220_v11 = vld [vmem:[%s3445_s17 + $0x10] ss:$8 sps:$4 sm:$0xff]  }
 0x460   : > { %1257 = vadd.xlane.f32.xlu1 %v1256_v27 }
 0x461   : > { %1837 = vrot.lane.b32.xlu0 %v3764_v1, %s3291_s8  ;;  %v3223_v1 = vld [vmem:[%s3458_s19 + $0x18] sm:$0xff]  }
 0x464   : > { %1251 = vadd.xlane.f32.xlu1 %v1250_v17 }
 0x475   : > { %1647 = vrot.lane.b32.xlu1 %v3617_v63, %s3291_s8 }
 0x479   : > { %1813 = vrot.lane.b32.xlu1 %v3219_v42, %s3292_s9 }
 0x47d   : > { %1811 = vrot.lane.b32.xlu1 %v3220_v11, %s3292_s9 }
 0x481   : > { %1809 = vrot.lane.b32.xlu1 %v3221_v25, %s3292_s9 }
 0x485   : > { %1803 = vrot.lane.b32.xlu1 %v3222_v26, %s3292_s9 }
 0x489   : > { %1807 = vrot.lane.b32.xlu1 %v3223_v1, %s3292_s9 }
 0x48d   : > { %1827 = vrot.lane.b32.xlu1 %v3750_v48, %s3291_s8 }
 0x491   : > { %1831 = vrot.lane.b32.xlu1 %v3739_v35, %s3291_s8 }
 0x495   : > { %1835 = vrot.lane.b32.xlu1 %v3812_v52, %s3291_s8 }
 0x498   : > { %v1605_v63 = vpop.xlane.xlu1 %1604 }
 0x499   : > { %1839 = vrot.lane.b32.xlu1 %v3794_v20, %s3291_s8  ;;  %3153 = vrcp.f32 %v1605_v63  ;;  %v1280_v20 = vpop.permute.xlu0 %1279 }
 0x49c   : > { %v1608_v31 = vpop.xlane.xlu1 %1607 }
 0x49d   : > { %3155 = vrcp.f32 %v1608_v31  ;;  %v1654_v60 = vpop.permute.xlu0 %1653 }
 0x4a0   : > { %v1611_v34 = vpop.xlane.xlu1 %1610 }
 0x4a1   : > { %3157 = vrcp.f32 %v1611_v34 }
 0x4a4   : > { %v1614_v37 = vpop.xlane.xlu1 %1613 }
 0x4a5   : > { %3159 = vrcp.f32 %v1614_v37 }
 0x4a6   : > { %v3154_v45 = vpop.eup %3153 }
 0x4a7   : > { %v4000_v35 = vmul.f32 %v3154_v45, %v3887_v51 }
 0x4a8   : > { %v1284_v48 = vpop.permute.xlu1 %1283 }
 0x4a9   : > { %2903 = vmatprep.subr.bf16.mxu1 %v1284_v48 }
 0x4aa   : > { %v3156_v46 = vpop.eup %3155  ;;  %2904 = vmatpush3.bf16.msra.mxu1 %v1284_v48 }
 0x4ab   : > { %2905 = vmatprep.subr.bf16.mxu1 %v1282_v38  ;;  %v4003_v52 = vmul.f32 %v3156_v46, %v3891_v7  ;;  %v1650_v7 = vpop.permute.xlu0 %1649 }
 0x4ac   : > { %v1652_v23 = vpop.permute.xlu1 %1651 }
 0x4ad   : > { %v1643_v13 = vpack.c.bf16 %v4003_v52, %v4000_v35 }
 0x4ae   : > { %2906 = vmatpush3.bf16.msra.mxu1 %v1282_v38  ;;  %v3158_v56 = vpop.eup %3157 }
 0x4af   : > { %2907 = vmatprep.subr.bf16.mxu1 %v1280_v20  ;;  %v4008_v47 = vmul.f32 %v3158_v56, %v3895_v24  ;;  %v1620_v5 = vpop.xlane.xlu0 %1619 }
 0x4b2   : > { %v3160_v58 = vpop.eup %3159  ;;  %2908 = vmatpush3.bf16.msra.mxu1 %v1280_v20 }
 0x4b3   : > { %v4011_v0 = vmul.f32 %v3160_v58, %v3900_v33  ;;  %2933 = vmatprep.subr.bf16.mxu1 %v1654_v60  ;;  %v1243_v6 = vpop.xlane.xlu0 %1242 }
 0x4b5   : > { %v1644_v51 = vpack.c.bf16 %v4011_v0, %v4008_v47 }
 0x4b7   : > { %v1237_v21 = vpop.xlane.xlu0 %1236 }
 0x4bb   : > { %v1255_v28 = vpop.xlane.xlu0 %1254 }
 0x4bf   : > { %v1249_v62 = vpop.xlane.xlu0 %1248 }
 0x4c3   : > { %v1623_v44 = vpop.xlane.xlu0 %1622 }
 0x4c7   : > { %v1626_v2 = vpop.xlane.xlu0 %1625 }
 0x4dd   : > { %v1617_v15 = vpop.xlane.xlu1 %1616 }
 0x4e1   : > { %v1246_v16 = vpop.xlane.xlu1 %1245 }
 0x4e2   : > { %3161 = vrcp.f32 %v1246_v16 }
 0x4e3   : > { %3163 = vrcp.f32 %v1237_v21 }
 0x4e4   : > { %3165 = vrcp.f32 %v1243_v6 }
 0x4e5   : > { %v1240_v24 = vpop.xlane.xlu1 %1239 }
 0x4e6   : > { %3167 = vrcp.f32 %v1240_v24 }
 0x4e9   : > { %v1258_v33 = vpop.xlane.xlu1 %1257 }
 0x4ea   : > { %3169 = vrcp.f32 %v1258_v33 }
 0x4eb   : > { %3171 = vrcp.f32 %v1249_v62 }
 0x4ec   : > { %3173 = vrcp.f32 %v1255_v28 }
 0x4ed   : > { %v1252_v22 = vpop.xlane.xlu1 %1251 }
 0x4ee   : > { %3175 = vrcp.f32 %v1252_v22 }
 0x4ef   : > { %v3162_v53 = vpop.eup %3161  ;;  %3177 = vrcp.f32 %v1617_v15 }
 0x4f0   : > { %v3164_v41 = vpop.eup %3163  ;;  %v1270_v29 = vmul.f32 %v3162_v53, %v3955_v3  ;;  %3179 = vrcp.f32 %v1620_v5 }
 0x4f1   : > { %v3166_v43 = vpop.eup %3165  ;;  %v1267_v49 = vmul.f32 %v3164_v41, %v3915_v4  ;;  %3181 = vrcp.f32 %v1626_v2  ;;  %v1648_v11 = vpop.permute.xlu1 %1647 }
 0x4f2   : > { %v1269_v54 = vmul.f32 %v3166_v43, %v3909_v55  ;;  %3183 = vrcp.f32 %v1623_v44 }
 0x4f3   : > { %v3168_v14 = vpop.eup %3167 }
 0x4f4   : > { %v1268_v36 = vmul.f32 %v3168_v14, %v3961_v61  ;;  %v1276_v57 = vpack.c.bf16 %v1270_v29, %v1269_v54 }
 0x4f5   : > { %v1814_v31 = vpop.permute.xlu1 %1813 }
 0x4f6   : > { %v1275_v19 = vpack.c.bf16 %v1268_v36, %v1267_v49  ;;  %v1868_v37 = vsel %vm684_vm0, %v1814_v31, 0 }
 0x4f7   : > { %v3170_v59 = vpop.eup %3169 }
 0x4f8   : > { %2909 = vmatprep.mubr.msk.bf16.mxu1 %vm782_vm1, %v1275_v19  ;;  %v3172_v30 = vpop.eup %3171  ;;  %v1274_v4 = vmul.f32 %v3170_v59, %v3967_v12  ;;  %v1816_v12 = vpop.permute.xlu0 %1815 }
 0x4f9   : > { %2910 = vmatmul.mubr.msk.bf16.vlgmr.msra.gmra.mxu1 %vm782_vm1, %v1276_v57  ;;  %v3174_v50 = vpop.eup %3173  ;;  %v1271_v61 = vmul.f32 %v3172_v30, %v3923_v10  ;;  %v1871_v26 = vsel %vm684_vm0, %v1816_v12, 0  ;;  %v1812_v48 = vpop.permute.xlu1 %1811 }
 0x4fa   : > { %2934 = vmatpush3.bf16.msra.mxu1 %v1654_v60  ;;  %v1273_v27 = vmul.f32 %v3174_v50, %v3919_v9  ;;  %v1865_v46 = vsel %vm684_vm0, %v1812_v48, 0 }
 0x4fb   : > { %v3176_v3 = vpop.eup %3175  ;;  %2935 = vmatprep.subr.bf16.mxu1 %v1652_v23 }
 0x4fc   : > { %v1272_v55 = vmul.f32 %v3176_v3, %v3973_v32  ;;  %v1278_v42 = vpack.c.bf16 %v1274_v4, %v1273_v27  ;;  %v3178_v25 = vpop.eup %3177  ;;  %v1802_v45 = vpop.permute.xlu0 %1801 }
 0x4fd   : > { %v3180_v10 = vpop.eup %3179  ;;  %v1639_v9 = vmul.f32 %v3178_v25, %v3949_v8  ;;  %v1810_v35 = vpop.permute.xlu1 %1809 }
 0x4fe   : > { %2936 = vmatpush3.bf16.msra.mxu1 %v1652_v23  ;;  %v1277_v17 = vpack.c.bf16 %v1272_v55, %v1271_v61  ;;  %v1640_v32 = vmul.f32 %v3180_v10, %v3903_v39  ;;  %v3182_v1 = vpop.eup %3181 }
 0x4ff   : > { %2937 = vmatprep.subr.bf16.mxu1 %v1650_v7  ;;  %v3184_v34 = vpop.eup %3183  ;;  %v1642_v39 = vmul.f32 %v3182_v1, %v3933_v18 }
 0x500   : > { %2913 = vmatprep.mubr.msk.bf16.mxu1 %vm782_vm1, %v1277_v17  ;;  %v1645_v63 = vpack.c.bf16 %v1640_v32, %v1639_v9  ;;  %v1641_v8 = vmul.f32 %v3184_v34, %v3929_v40  ;;  %v1862_v40 = vsel %vm684_vm0, %v1810_v35, 0  ;;  %v1806_v52 = vpop.permute.xlu0 %1805 }
 0x501   : > { %2914 = vmatmul.mubr.msk.bf16.gmra.mxu1 %vm782_vm1, %v1278_v42  ;;  %v1804_v18 = vpop.permute.xlu1 %1803 }
 0x502   : > { %2938 = vmatpush3.bf16.msra.mxu1 %v1650_v7  ;;  %2941 = vmatprep.mubr.msk.bf16.mxu1 %vm782_vm1, %v1643_v13  ;;  %v1646_v38 = vpack.c.bf16 %v1642_v39, %v1641_v8 }
 0x503   : > { %2939 = vmatprep.subr.bf16.mxu1 %v1648_v11 }
 0x504   : > { %v1826_v28 = vpop.permute.xlu0 %1825 }
 0x505   : > { %v1808_v20 = vpop.permute.xlu1 %1807 }
 0x506   : > { %2940 = vmatpush3.bf16.msra.mxu1 %v1648_v11 }
 0x507   : > { %3017 = vmatprep.subr.msk.bf16.mxu1 %vm684_vm0, %v1816_v12 }
 0x508   : > { %v1830_v33 = vpop.permute.xlu0 %1829 }
 0x509   : > { %2942 = vmatmul.mubr.msk.bf16.vlgmr.msra.gmra.mxu1 %vm782_vm1, %v1644_v51  ;;  %v1828_v24 = vpop.permute.xlu1 %1827 }
 0x50a   : > { %2950 = vmatpush3.bf16.xpose.msra.mxu1 %v1871_v26  ;;  %2945 = vmatprep.mubr.msk.bf16.mxu1 %vm782_vm1, %v1645_v63 }
 0x50b   : > { %3018 = vmatprep.subr.msk.bf16.mxu1 %vm684_vm0, %v1814_v31 }
 0x50c   : > { %v1834_v43 = vpop.permute.xlu0 %1833 }
 0x50d   : > { %v1832_v53 = vpop.permute.xlu1 %1831 }
 0x510   : > { %v1838_v2 = vpop.permute.xlu0 %1837 }
 0x511   : > { %2946 = vmatmul.mubr.msk.bf16.gmra.mxu1 %vm782_vm1, %v1646_v38  ;;  %v1836_v54 = vpop.permute.xlu1 %1835 }
 0x512   : > { %2952 = vmatpush3.bf16.xpose.msra.mxu1 %v1868_v37  ;;  %2957 = vmatprep.mubr.msk.bf16.mxu1 %vm684_vm0, %v1802_v45 }
 0x513   : > { %3019 = vmatprep.subr.msk.bf16.mxu1 %vm684_vm0, %v1812_v48 }
 0x515   : > { %v1840_v17 = vpop.permute.xlu1 %1839 }
 0x51a   : > { %2954 = vmatpush3.bf16.xpose.msra.mxu1 %v1865_v46 }
 0x51b   : > { %3020 = vmatprep.subr.msk.bf16.mxu1 %vm684_vm0, %v1810_v35 }
 0x522   : > { %2956 = vmatpush3.bf16.xpose.msra.mxu1 %v1862_v40 }
 0x529   : > { %2958 = vmatmul.mubr.msk.bf16.vlgmr.msra.gmra.mxu1 %vm684_vm0, %v1804_v18 }
 0x52a   : > { %2961 = vmatprep.mubr.msk.bf16.mxu1 %vm684_vm0, %v1806_v52 }
 0x531   : > { %2962 = vmatmul.mubr.msk.bf16.gmra.mxu1 %vm684_vm0, %v1808_v20 }
 0x5b9   : > { %v4053_v13 = vpop.f32.mrf.mxu1 }
 0x5bb   : > { %v4055_v56 = vpop.f32.mrf.mxu1 }
 0x5bd   : > { %v4057_v58 = vpop.f32.mrf.mxu1 }
 0x5bf   : > { %v4059_v60 = vpop.f32.mrf.mxu1 }
 0x5c1   : > { %v4061_v47 = vpop.f32.mrf.mxu1 }
 0x5c3   : > { %v4063_v0 = vpop.f32.mrf.mxu1 }
 0x5c5   : > { %v4065_v51 = vpop.f32.mrf.mxu1 }
 0x5c7   : > { %v4067_v7 = vpop.f32.mrf.mxu1 }
 0x5c9   : > { %v4069_v5 = vpop.f32.mrf.mxu1 }
 0x5cb   : > { %v4071_v6 = vpop.f32.mrf.mxu1 }
 0x5cd   : > { %v4073_v23 = vpop.f32.mrf.mxu1 }
 0x5cf   : > { %v4075_v21 = vpop.f32.mrf.mxu1 }
 0x5d1   : > { %v4077_v15 = vpop.f32.mrf.mxu1 }
 0x5d3   : > { %v4079_v16 = vpop.f32.mrf.mxu1 }
 0x5d5   : > { %v4081_v62 = vpop.f32.mrf.mxu1 }
 0x5d7   : > { %v4083_v22 = vpop.f32.mrf.mxu1 }
 0x5e9   : > { %v2959_v41 = vpop.f32.mrf.mxu1 }
 0x5ea   : > { %v1916_v44 = vadd.f32 %v2959_v41, %v1830_v33 }
 0x5eb   : > { %v1907_v14 = vpop.f32.mrf.mxu1 }
 0x5ec   : > { %v1940_v29 = vmul.f32 0.17677669, %v1916_v44  ;;  %v1908_v49 = vadd.f32 %v1907_v14, %v1826_v28 }
 0x5ed   : > { %v2960_v36 = vpop.f32.mrf.mxu1 }
 0x5ee   : > { %2704 = vst.msk [vmem:[%s3518_s23 + $0xd0] sm:$0xff] %vm782_vm1, %v1940_v29  ;;  %v1938_v19 = vmul.f32 0.17677669, %v1908_v49  ;;  %v1919_v57 = vadd.f32 %v2960_v36, %v1832_v53  ;;  %v1961_v11 = vsel %vm782_vm1, %v1940_v29, -inf }
 0x5ef   : > { %v1910_v59 = vpop.f32.mrf.mxu1 }
 0x5f0   : > { %2702 = vst.msk [vmem:[%s3518_s23 + $0xc0] sm:$0xff] %vm782_vm1, %v1938_v19  ;;  %v1941_v30 = vmul.f32 0.17677669, %v1919_v57  ;;  %v1911_v50 = vadd.f32 %v1910_v59, %v1828_v24  ;;  %v1955_v3 = vsel %vm782_vm1, %v1938_v19, -inf }
 0x5f1   : > { %v2963_v4 = vpop.f32.mrf.mxu1  ;;  %1956 = vmax.xlane.f32.xlu0 %v1955_v3 }
 0x5f2   : > { %2705 = vst.msk [vmem:[%s3518_s23 + $0xd8] sm:$0xff] %vm782_vm1, %v1941_v30  ;;  %v1939_v61 = vmul.f32 0.17677669, %v1911_v50  ;;  %v1932_v55 = vadd.f32 %v2963_v4, %v1838_v2  ;;  %v1964_v63 = vsel %vm782_vm1, %v1941_v30, -inf }
 0x5f3   : > { %v1923_v27 = vpop.f32.mrf.mxu1 }
 0x5f4   : > { %2703 = vst.msk [vmem:[%s3518_s23 + $0xc8] sm:$0xff] %vm782_vm1, %v1939_v61  ;;  %v1958_v42 = vsel %vm782_vm1, %v1939_v61, -inf  ;;  %v1924_v25 = vadd.f32 %v1923_v27, %v1834_v43  ;;  %v1944_v10 = vmul.f32 0.17677669, %v1932_v55  ;;  %v3224_v27 = vld [vmem:[%s3445_s17 + $0x24] ss:$8 sps:$4 sm:$0xff]  }
 0x5f5   : > { %1959 = vmax.xlane.f32.xlu1 %v1958_v42  ;;  %v2964_v12 = vpop.f32.mrf.mxu1  ;;  %1962 = vmax.xlane.f32.xlu0 %v1961_v11 }
 0x5f6   : > { %v1942_v9 = vmul.f32 0.17677669, %v1924_v25  ;;  %v1935_v32 = vadd.f32 %v2964_v12, %v1840_v17  ;;  %2708 = vst.msk [vmem:[%s3518_s23 + $0xf0] sm:$0xff] %vm782_vm1, %v1944_v10  ;;  %v1973_v38 = vsel %vm782_vm1, %v1944_v10, -inf  ;;  %v3225_v17 = vld [vmem:[%s3445_s17 + $0x14] ss:$8 sps:$4 sm:$0xff]   ;;  %v2752_v12 = vpack.c.bf16 %v4055_v56, %v4055_v56 }
 0x5f7   : > { %v1926_v26 = vpop.f32.mrf.mxu1  ;;  %v3226_v25 = vld [vmem:[%s3445_s17 + $0x34] ss:$8 sps:$4 sm:$0xff]   ;;  %v2762_v56 = vpack.c.bf16 %v4069_v5, %v4069_v5  ;;  %v2764_v5 = vpack.c.bf16 %v4079_v16, %v4079_v16  ;;  %v2761_v16 = vpack.c.bf16 %v4075_v21, %v4075_v21  ;;  %v2765_v21 = vpack.c.bf16 %v4083_v22, %v4083_v22 }
 0x5f8   : > { %v1927_v1 = vadd.f32 %v1926_v26, %v1836_v54  ;;  %2706 = vst.msk [vmem:[%s3518_s23 + $0xe0] sm:$0xff] %vm782_vm1, %v1942_v9  ;;  %v4101_v31 = vmul.f32 0.17677669, %v1935_v32  ;;  %v1967_v39 = vsel %vm782_vm1, %v1942_v9, -inf  ;;  %v2754_v26 = vpack.c.bf16 %v4053_v13, %v4053_v13 }
 0x5f9   : > { %1965 = vmax.xlane.f32.xlu0 %v1964_v63  ;;  %v2760_v63 = vpack.c.bf16 %v4071_v6, %v4071_v6 }
 0x5fa   : > { %v4103_v34 = vmul.f32 0.17677669, %v1927_v1  ;;  %2709 = vst.msk [vmem:[%s3518_s23 + $0xf8] sm:$0xff] %vm782_vm1, %v4101_v31  ;;  %v1976_v37 = vsel %vm782_vm1, %v4101_v31, -inf }
 0x5fc   : > { %2707 = vst.msk [vmem:[%s3518_s23 + $0xe8] sm:$0xff] %vm782_vm1, %v4103_v34  ;;  %v1970_v8 = vsel %vm782_vm1, %v4103_v34, -inf }
 0x5fd   : > { %1971 = vmax.xlane.f32.xlu1 %v1970_v8  ;;  %1968 = vmax.xlane.f32.xlu0 %v1967_v39  ;;  %v3227_v8 = vld [vmem:[%s3445_s17 + $0x4] ss:$8 sps:$4 sm:$0xff]  }
 0x601   : > { %1977 = vmax.xlane.f32.xlu1 %v1976_v37  ;;  %1974 = vmax.xlane.f32.xlu0 %v1973_v38  ;;  %v2755_v37 = vpack.c.bf16 %v4057_v58, %v4057_v58  ;;  %v2763_v38 = vpack.c.bf16 %v4073_v23, %v4073_v23  ;;  %v2759_v58 = vpack.c.bf16 %v4065_v51, %v4065_v51 }
 0x67a   : > { %v1957_v45 = vpop.xlane.xlu0 %1956 }
 0x67b   : > { %v1979_v48 = vsub.f32 %v1938_v19, %v1957_v45 }
 0x67d   : > { %v1987_v20 = vmul.f32 1.442695, %v1979_v48 }
 0x67e   : > { %v1960_v46 = vpop.xlane.xlu1 %1959  ;;  %v1963_v35 = vpop.xlane.xlu0 %1962 }
 0x67f   : > { %v1981_v40 = vsub.f32 %v1940_v29, %v1963_v35  ;;  %v1980_v18 = vsub.f32 %v1939_v61, %v1960_v46 }
 0x681   : > { %v1991_v52 = vmul.f32 1.442695, %v1981_v40  ;;  %v1989_v33 = vmul.f32 1.442695, %v1980_v18 }
 0x682   : > { %v1966_v28 = vpop.xlane.xlu0 %1965 }
 0x683   : > { %v1982_v24 = vsub.f32 %v1941_v30, %v1966_v28  ;;  %3185 = vpow2.f32 %v1991_v52 }
 0x684   : > { %3187 = vpow2.f32 %v1987_v20 }
 0x685   : > { %v1993_v53 = vmul.f32 1.442695, %v1982_v24 }
 0x686   : > { %v1969_v41 = vpop.xlane.xlu0 %1968  ;;  %v1972_v42 = vpop.xlane.xlu1 %1971 }
 0x687   : > { %3189 = vpow2.f32 %v1993_v53  ;;  %v1983_v43 = vsub.f32 %v1942_v9, %v1969_v41  ;;  %v1984_v9 = vsub.f32 %v4103_v34, %v1972_v42  ;;  %v2758_v34 = vpack.c.bf16 %v4061_v47, %v4061_v47 }
 0x688   : > { %3191 = vpow2.f32 %v1989_v33  ;;  %v2753_v47 = vpack.c.bf16 %v4059_v60, %v4059_v60  ;;  %v2757_v60 = vpack.c.bf16 %v4067_v7, %v4067_v7 }
 0x689   : > { %v1995_v36 = vmul.f32 1.442695, %v1983_v43  ;;  %v1997_v1 = vmul.f32 1.442695, %v1984_v9 }
 0x68a   : > { %v1975_v44 = vpop.xlane.xlu0 %1974  ;;  %v1978_v11 = vpop.xlane.xlu1 %1977 }
 0x68b   : > { %v1985_v14 = vsub.f32 %v1944_v10, %v1975_v44  ;;  %v1986_v10 = vsub.f32 %v4101_v31, %v1978_v11  ;;  %v2756_v31 = vpack.c.bf16 %v4063_v0, %v4063_v0 }
 0x68d   : > { %v1999_v49 = vmul.f32 1.442695, %v1985_v14  ;;  %v2001_v32 = vmul.f32 1.442695, %v1986_v10 }
 0x68f   : > { %3193 = vpow2.f32 %v1999_v49 }
 0x690   : > { %v4117_v54 = vpop.eup %3185  ;;  %3195 = vpow2.f32 %v1995_v36 }
 0x691   : > { %v2009_v29 = vsel %vm782_vm1, %v4117_v54, 0.0  ;;  %v4121_v19 = vpop.eup %3187  ;;  %3197 = vpow2.f32 %v2001_v32 }
 0x692   : > { %2010 = vadd.xlane.f32.xlu0 %v2009_v29  ;;  %v2003_v30 = vsel %vm782_vm1, %v4121_v19, 0.0  ;;  %3199 = vpow2.f32 %v1997_v1 }
 0x694   : > { %v4123_v57 = vpop.eup %3189 }
 0x695   : > { %v2012_v59 = vsel %vm782_vm1, %v4123_v57, 0.0  ;;  %v4127_v2 = vpop.eup %3191 }
 0x696   : > { %2013 = vadd.xlane.f32.xlu1 %v2012_v59  ;;  %2004 = vadd.xlane.f32.xlu0 %v2003_v30  ;;  %v2006_v50 = vsel %vm782_vm1, %v4127_v2, 0.0 }
 0x69a   : > { %2007 = vadd.xlane.f32.xlu1 %v2006_v50 }
 0x69c   : > { %v4133_v3 = vpop.eup %3193 }
 0x69d   : > { %v2021_v4 = vsel %vm782_vm1, %v4133_v3, 0.0  ;;  %v4137_v61 = vpop.eup %3195 }
 0x69e   : > { %2022 = vadd.xlane.f32.xlu0 %v2021_v4  ;;  %v2015_v55 = vsel %vm782_vm1, %v4137_v61, 0.0  ;;  %v4164_v13 = vpop.eup %3197 }
 0x69f   : > { %v2024_v6 = vsel %vm782_vm1, %v4164_v13, 0.0  ;;  %v4171_v39 = vpop.eup %3199 }
 0x6a0   : > { %v2018_v0 = vsel %vm782_vm1, %v4171_v39, 0.0 }
 0x6a2   : > { %2016 = vadd.xlane.f32.xlu0 %v2015_v55 }
 0x6ab   : > { %2051 = vrot.lane.b32.xlu1 %v3224_v27, %s3292_s9 }
 0x6af   : > { %2049 = vrot.lane.b32.xlu1 %v3225_v17, %s3292_s9 }
 0x6b8   : > { %2053 = vrot.lane.b32.xlu0 %v3226_v25, %s3292_s9 }
 0x6bc   : > { %1392 = vrot.lane.b32.xlu0 %v2752_v12, %s3292_s9 }
 0x6c0   : > { %1396 = vrot.lane.b32.xlu0 %v2754_v26, %s3292_s9 }
 0x6c4   : > { %1760 = vrot.lane.b32.xlu0 %v2760_v63, %s3291_s8 }
 0x6c8   : > { %1764 = vrot.lane.b32.xlu0 %v2762_v56, %s3291_s8 }
 0x6cc   : > { %1400 = vrot.lane.b32.xlu0 %v2756_v31, %s3292_s9  ;;  %v3078_v31 = vld [vmem:[%s4367_s3 + $0x30] sm:$0xff]  }
 0x6d0   : > { %1404 = vrot.lane.b32.xlu0 %v2758_v34, %s3292_s9  ;;  %v3080_v34 = vld [vmem:[%s4367_s3 + $0x20] sm:$0xff]  }
 0x6d3   : > { %2025 = vadd.xlane.f32.xlu1 %v2024_v6  ;;  %v3081_v6 = vld [vmem:[%s4367_s3 + $0x18] sm:$0xff]  }
 0x6d4   : > { %1768 = vrot.lane.b32.xlu0 %v2764_v5, %s3291_s8  ;;  %v3083_v5 = vld [vmem:[%s4367_s3 + $0x8] sm:$0xff]  }
 0x6d7   : > { %2019 = vadd.xlane.f32.xlu1 %v2018_v0 }
 0x6e8   : > { %2047 = vrot.lane.b32.xlu1 %v3227_v8, %s3292_s9 }
 0x6ec   : > { %1394 = vrot.lane.b32.xlu1 %v2753_v47, %s3292_s9 }
 0x6f0   : > { %1398 = vrot.lane.b32.xlu1 %v2755_v37, %s3292_s9  ;;  %v3084_v37 = vld [vmem:[%s4367_s3] sm:$0xff]  }
 0x6f4   : > { %1762 = vrot.lane.b32.xlu1 %v2761_v16, %s3291_s8 }
 0x6f8   : > { %1766 = vrot.lane.b32.xlu1 %v2763_v38, %s3291_s8 }
 0x6fc   : > { %1402 = vrot.lane.b32.xlu1 %v2757_v60, %s3292_s9 }
 0x700   : > { %1406 = vrot.lane.b32.xlu1 %v2759_v58, %s3292_s9  ;;  %s4285_s9 = scalar_lea.vmem [#allocation7], %s3442_s16  ;;  %s2373_s16 = scalar_lea.sflag [#allocation9], %s3439_s11 }
 0x704   : > { %1770 = vrot.lane.b32.xlu1 %v2765_v21, %s3291_s8  ;;  %v2766_v21 = vpack.c.bf16 %v4077_v15, %v4077_v15 }
 0x71b   : > { %v2011_v45 = vpop.xlane.xlu0 %2010 }
 0x71f   : > { %v2014_v48 = vpop.xlane.xlu1 %2013  ;;  %v2005_v23 = vpop.xlane.xlu0 %2004 }
 0x720   : > { %3201 = vrcp.f32 %v2005_v23  ;;  %v2767_v23 = vpack.c.bf16 %v4081_v62, %v4081_v62 }
 0x723   : > { %v2008_v46 = vpop.xlane.xlu1 %2007 }
 0x724   : > { %3203 = vrcp.f32 %v2008_v46 }
 0x725   : > { %3205 = vrcp.f32 %v2014_v48 }
 0x726   : > { %3207 = vrcp.f32 %v2011_v45 }
 0x727   : > { %v2023_v35 = vpop.xlane.xlu0 %2022  ;;  %v2052_v18 = vpop.permute.xlu1 %2051 }
 0x72b   : > { %v2017_v7 = vpop.xlane.xlu0 %2016  ;;  %v2050_v33 = vpop.permute.xlu1 %2049 }
 0x72d   : > { %v3202_v40 = vpop.eup %3201 }
 0x72e   : > { %v2035_v51 = vmul.f32 %v3202_v40, %v4121_v19 }
 0x72f   : > { %v2054_v52 = vpop.permute.xlu0 %2053 }
 0x730   : > { %2965 = vmatprep.subr.bf16.mxu0 %v2054_v52 }
 0x731   : > { %v3204_v20 = vpop.eup %3203  ;;  %2966 = vmatpush3.bf16.msra.mxu0 %v2054_v52 }
 0x732   : > { %v2036_v22 = vmul.f32 %v3204_v20, %v4127_v2  ;;  %2967 = vmatprep.subr.bf16.mxu0 %v2052_v18  ;;  %v3206_v29 = vpop.eup %3205 }
 0x733   : > { %v1393_v28 = vpop.permute.xlu0 %1392  ;;  %v3208_v59 = vpop.eup %3207  ;;  %v2038_v2 = vmul.f32 %v3206_v29, %v4123_v57  ;;  %v2722_v29 = vld [vmem:[%s4368_s4] ss:$0 sm:$0xff] }
 0x734   : > { %v2043_v24 = vpack.c.bf16 %v2036_v22, %v2035_v51  ;;  %1417 = vst.msk [vmem:[#allocation2] sm:$0xf] %vm1416_vm3, %v1393_v28  ;;  %v2037_v50 = vmul.f32 %v3208_v59, %v4117_v54  ;;  %v2346_v59 = vld [vmem:[%s4279_s22 + $0x10] sm:$0xff] }
 0x735   : > { %2968 = vmatpush3.bf16.msra.mxu0 %v2052_v18 }
 0x736   : > { %2973 = vmatprep.mubr.msk.bf16.mxu0 %vm782_vm1, %v2043_v24  ;;  %2969 = vmatprep.subr.bf16.mxu0 %v2050_v33  ;;  %v2044_v4 = vpack.c.bf16 %v2038_v2, %v2037_v50  ;;  %v2344_v50 = vld [vmem:[%s4279_s22] sm:$0xff] }
 0x737   : > { %v1397_v53 = vpop.permute.xlu0 %1396 }
 0x738   : > { %1419 = vst.msk [vmem:[#allocation2 + $0x8] sm:$0xf] %vm1416_vm3, %v1397_v53 }
 0x739   : > { %2970 = vmatpush3.bf16.msra.mxu0 %v2050_v33 }
 0x73b   : > { %v1761_v41 = vpop.permute.xlu0 %1760 }
 0x73c   : > { %1785 = vst.msk [vmem:[#allocation2] sm:$0xf] %vm1784_vm4, %v1761_v41 }
 0x73f   : > { %v1765_v43 = vpop.permute.xlu0 %1764 }
 0x740   : > { %1787 = vst.msk [vmem:[#allocation2 + $0x8] sm:$0xf] %vm1784_vm4, %v1765_v43 }
 0x743   : > { %v1401_v44 = vpop.permute.xlu0 %1400 }
 0x744   : > { %1421 = vst.msk [vmem:[#allocation2 + $0x10] sm:$0xf] %vm1416_vm3, %v1401_v44 }
 0x747   : > { %v1405_v14 = vpop.permute.xlu0 %1404 }
 0x748   : > { %1423 = vst.msk [vmem:[#allocation2 + $0x18] sm:$0xf] %vm1416_vm3, %v1405_v14 }
 0x74b   : > { %v1769_v49 = vpop.permute.xlu0 %1768 }
 0x74c   : > { %1789 = vst.msk [vmem:[#allocation2 + $0x10] sm:$0xf] %vm1784_vm4, %v1769_v49 }
 0x75c   : > { %v2026_v36 = vpop.xlane.xlu1 %2025 }
 0x75d   : > { %3209 = vrcp.f32 %v2026_v36 }
 0x75e   : > { %3211 = vrcp.f32 %v2017_v7 }
 0x75f   : > { %3213 = vrcp.f32 %v2023_v35 }
 0x760   : > { %v2020_v19 = vpop.xlane.xlu1 %2019 }
 0x761   : > { %3215 = vrcp.f32 %v2020_v19 }
 0x764   : > { %v2048_v30 = vpop.permute.xlu1 %2047 }
 0x765   : > { %2971 = vmatprep.subr.bf16.mxu0 %v2048_v30 }
 0x766   : > { %2972 = vmatpush3.bf16.msra.mxu0 %v2048_v30 }
 0x768   : > { %v1395_v55 = vpop.permute.xlu1 %1394 }
 0x769   : > { %1418 = vst.msk [vmem:[#allocation2 + $0x4] sm:$0xf] %vm1416_vm3, %v1395_v55  ;;  %2974 = vmatmul.mubr.msk.bf16.vlgmr.msra.gmra.mxu0 %vm782_vm1, %v2044_v4 }
 0x76a   : > { %v3210_v27 = vpop.eup %3209 }
 0x76b   : > { %v3212_v17 = vpop.eup %3211  ;;  %v2042_v57 = vmul.f32 %v3210_v27, %v4164_v13  ;;  %v3079_v13 = vld [vmem:[%s4367_s3 + $0x28] sm:$0xff]  }
 0x76c   : > { %v1399_v42 = vpop.permute.xlu1 %1398  ;;  %v3214_v11 = vpop.eup %3213  ;;  %v2039_v10 = vmul.f32 %v3212_v17, %v4137_v61  ;;  %v2347_v17 = vld [vmem:[%s4279_s22 + $0x18] sm:$0xff] }
 0x76d   : > { %1420 = vst.msk [vmem:[#allocation2 + $0xc] sm:$0xf] %vm1416_vm3, %v1399_v42  ;;  %v2041_v9 = vmul.f32 %v3214_v11, %v4133_v3  ;;  %v3077_v3 = vld [vmem:[%s4367_s3 + $0x38] sm:$0xff]  }
 0x76e   : > { %v3216_v25 = vpop.eup %3215  ;;  %2981 = vmatprep.subr.bf16.mxu0 %v3077_v3 }
 0x76f   : > { %v2040_v54 = vmul.f32 %v3216_v25, %v4171_v39  ;;  %v2046_v26 = vpack.c.bf16 %v2042_v57, %v2041_v9  ;;  %2982 = vmatpush3.bf16.msra.mxu0 %v3077_v3  ;;  %v3082_v39 = vld [vmem:[%s4367_s3 + $0x10] sm:$0xff]   ;;  %v2345_v57 = vld [vmem:[%s4279_s22 + $0x8] sm:$0xff] }
 0x770   : > { %v1763_v12 = vpop.permute.xlu1 %1762  ;;  %2983 = vmatprep.subr.bf16.mxu0 %v3078_v31 }
 0x771   : > { %1786 = vst.msk [vmem:[#allocation2 + $0x4] sm:$0xf] %vm1784_vm4, %v1763_v12  ;;  %v2045_v32 = vpack.c.bf16 %v2040_v54, %v2039_v10 }
 0x773   : > { %2977 = vmatprep.mubr.msk.bf16.mxu0 %vm782_vm1, %v2045_v32  ;;  %2984 = vmatpush3.bf16.msra.mxu0 %v3078_v31  ;;  %v2350_v32 = vld [vmem:[%s4279_s22 + $0x30] sm:$0xff]  ;;  %v2351_v31 = vld [vmem:[%s4279_s22 + $0x38] sm:$0xff] }
 0x774   : > { %v1767_v1 = vpop.permute.xlu1 %1766  ;;  %2978 = vmatmul.mubr.msk.bf16.gmra.mxu0 %vm782_vm1, %v2046_v26  ;;  %2985 = vmatprep.subr.bf16.mxu0 %v3079_v13 }
 0x775   : > { %1788 = vst.msk [vmem:[#allocation2 + $0xc] sm:$0xf] %vm1784_vm4, %v1767_v1 }
 0x777   : > { %2986 = vmatpush3.bf16.msra.mxu0 %v3079_v13 }
 0x778   : > { %v1403_v63 = vpop.permute.xlu1 %1402  ;;  %2987 = vmatprep.subr.bf16.mxu0 %v3080_v34 }
 0x779   : > { %1422 = vst.msk [vmem:[#allocation2 + $0x14] sm:$0xf] %vm1416_vm3, %v1403_v63  ;;  %v2348_v63 = vld [vmem:[%s4279_s22 + $0x20] sm:$0xff] }
 0x77b   : > { %2988 = vmatpush3.bf16.msra.mxu0 %v3080_v34 }
 0x77c   : > { %v1407_v61 = vpop.permute.xlu1 %1406  ;;  %2989 = vmatprep.subr.bf16.mxu0 %v3081_v6 }
 0x77d   : > { %1424 = vst.msk [vmem:[#allocation2 + $0x1c] sm:$0xf] %vm1416_vm3, %v1407_v61 }
 0x77f   : > { %2990 = vmatpush3.bf16.msra.mxu0 %v3081_v6 }
 0x780   : > { %v1771_v56 = vpop.permute.xlu1 %1770  ;;  %2991 = vmatprep.subr.bf16.mxu0 %v3082_v39 }
 0x781   : > { %1790 = vst.msk [vmem:[#allocation2 + $0x14] sm:$0xf] %vm1784_vm4, %v1771_v56 }
 0x783   : > { %2992 = vmatpush3.bf16.msra.mxu0 %v3082_v39  ;;  %v2349_v39 = vld [vmem:[%s4279_s22 + $0x28] sm:$0xff] }
 0x784   : > { %2993 = vmatprep.subr.bf16.mxu0 %v3083_v5 }
 0x787   : > { %2994 = vmatpush3.bf16.msra.mxu0 %v3083_v5 }
 0x788   : > { %2995 = vmatprep.subr.bf16.mxu0 %v3084_v37 }
 0x78b   : > { %2996 = vmatpush3.bf16.msra.mxu0 %v3084_v37 }
 0x829   : > { %v2975_v0 = vpop.f32.mrf.mxu0 }
 0x82a   : > { %v2770_v8 = vpack.c.bf16 %v2975_v0, %v2975_v0 }
 0x82b   : > { %v2105_v47 = vpop.f32.mrf.mxu0 }
 0x82c   : > { %2164 = vrot.lane.b32.xlu0 %v2770_v8, %s3290_s29  ;;  %v2768_v38 = vpack.c.bf16 %v2105_v47, %v2105_v47 }
 0x82d   : > { %v2976_v16 = vpop.f32.mrf.mxu0 }
 0x82e   : > { %v2771_v60 = vpack.c.bf16 %v2976_v16, %v2976_v16 }
 0x82f   : > { %v2108_v58 = vpop.f32.mrf.mxu0 }
 0x830   : > { %2160 = vrot.lane.b32.xlu0 %v2768_v38, %s3290_s29  ;;  %2166 = vrot.lane.b32.xlu1 %v2771_v60, %s3290_s29  ;;  %v2769_v45 = vpack.c.bf16 %v2108_v58, %v2108_v58 }
 0x834   : > { %1772 = vrot.lane.b32.xlu0 %v2766_v21, %s3291_s8  ;;  %2162 = vrot.lane.b32.xlu1 %v2769_v45, %s3290_s29  ;;  %v2979_v48 = vpop.f32.mrf.mxu0 }
 0x835   : > { %v2774_v18 = vpack.c.bf16 %v2979_v48, %v2979_v48 }
 0x836   : > { %v2121_v46 = vpop.f32.mrf.mxu0 }
 0x837   : > { %v2772_v35 = vpack.c.bf16 %v2121_v46, %v2121_v46 }
 0x838   : > { %1774 = vrot.lane.b32.xlu1 %v2767_v23, %s3291_s8  ;;  %v2980_v7 = vpop.f32.mrf.mxu0 }
 0x839   : > { %2168 = vrot.lane.b32.xlu0 %v2772_v35, %s3290_s29  ;;  %v2775_v15 = vpack.c.bf16 %v2980_v7, %v2980_v7 }
 0x83a   : > { %v2124_v40 = vpop.f32.mrf.mxu0 }
 0x83b   : > { %v2773_v52 = vpack.c.bf16 %v2124_v40, %v2124_v40 }
 0x83d   : > { %2172 = vrot.lane.b32.xlu0 %v2774_v18, %s3290_s29  ;;  %2170 = vrot.lane.b32.xlu1 %v2773_v52, %s3290_s29 }
 0x841   : > { %2174 = vrot.lane.b32.xlu1 %v2775_v15, %s3290_s29 }
 0x89e   : > { %v2165_v20 = vpop.permute.xlu0 %2164 }
 0x89f   : > { %2187 = vst.msk [vmem:[#allocation2 + $0x8] sm:$0xf] %vm2184_vm5, %v2165_v20 }
 0x8a2   : > { %v2167_v62 = vpop.permute.xlu1 %2166  ;;  %v2161_v51 = vpop.permute.xlu0 %2160 }
 0x8a3   : > { %2188 = vst.msk [vmem:[#allocation2 + $0xc] sm:$0xf] %vm2184_vm5, %v2167_v62  ;;  %2185 = vst.msk [vmem:[#allocation2] sm:$0xf] %vm2184_vm5, %v2161_v51 }
 0x8a6   : > { %v2163_v22 = vpop.permute.xlu1 %2162  ;;  %v1773_v28 = vpop.permute.xlu0 %1772 }
 0x8a7   : > { %2186 = vst.msk [vmem:[#allocation2 + $0x4] sm:$0xf] %vm2184_vm5, %v2163_v22 }
 0x8a8   : > { %1791 = vst.msk [vmem:[#allocation2 + $0x18] sm:$0xf] %vm1784_vm4, %v1773_v28 }
 0x8aa   : > { %v1775_v24 = vpop.permute.xlu1 %1774  ;;  %v3086_v44 = vld [vmem:[#allocation2 + $0x8] sm:$0xff]  }
 0x8ab   : > { %1792 = vst.msk [vmem:[#allocation2 + $0x1c] sm:$0xf] %vm1784_vm4, %v1775_v24  ;;  %v2169_v33 = vpop.permute.xlu0 %2168 }
 0x8ac   : > { %2189 = vst.msk [vmem:[#allocation2 + $0x10] sm:$0xf] %vm2184_vm5, %v2169_v33 }
 0x8ae   : > { %v3085_v53 = vld [vmem:[#allocation2] sm:$0xff]  }
 0x8af   : > { %v2171_v41 = vpop.permute.xlu1 %2170  ;;  %v2173_v43 = vpop.permute.xlu0 %2172  ;;  %2997 = vmatprep.mubr.bf16.mxu0 %v3085_v53 }
 0x8b0   : > { %2190 = vst.msk [vmem:[#allocation2 + $0x14] sm:$0xf] %vm2184_vm5, %v2171_v41  ;;  %2191 = vst.msk [vmem:[#allocation2 + $0x18] sm:$0xf] %vm2184_vm5, %v2173_v43  ;;  %2998 = vmatmul.mubr.bf16.vlgmr.msra.gmra.mxu0 %v3086_v44 }
 0x8b3   : > { %v2175_v14 = vpop.permute.xlu1 %2174 }
 0x8b4   : > { %2192 = vst.msk [vmem:[#allocation2 + $0x1c] sm:$0xf] %vm2184_vm5, %v2175_v14 }
 0x8b7   : > { %v3087_v49 = vld [vmem:[#allocation2 + $0x10] sm:$0xff]  }
 0x8b8   : > { %3001 = vmatprep.mubr.bf16.mxu0 %v3087_v49 }
 0x8bb   : > { %v3088_v36 = vld [vmem:[#allocation2 + $0x18] sm:$0xff]  }
 0x8bc   : > { %3002 = vmatmul.mubr.bf16.gmra.mxu0 %v3088_v36 }
 0x970   : > { %v2999_v19 = vpop.f32.mrf.mxu0 }
 0x971   : > { %v2322_v2 = vadd.f32 %v2999_v19, %v2722_v29 }
 0x972   : > { %v2313_v30 = vpop.f32.mrf.mxu0 }
 0x973   : > { %v2354_v4 = vadd.f32 %v2346_v59, %v2322_v2  ;;  %v2314_v55 = vadd.f32 %v2722_v29, %v2313_v30 }
 0x974   : > { %v3000_v27 = vpop.f32.mrf.mxu0 }
 0x975   : > { %2362 = vst [vmem:[%s4285_s9 + $0x10] sm:$0xff] %v2354_v4  ;;  %v2352_v42 = vadd.f32 %v2344_v50, %v2314_v55  ;;  %v2325_v11 = vadd.f32 %v3000_v27, %v2722_v29 }
 0x976   : > { %v2316_v25 = vpop.f32.mrf.mxu0 }
 0x977   : > { %2360 = vst [vmem:[%s4285_s9] sm:$0xff] %v2352_v42  ;;  %v2355_v10 = vadd.f32 %v2347_v17, %v2325_v11  ;;  %v2317_v54 = vadd.f32 %v2722_v29, %v2316_v25 }
 0x979   : > { %2363 = vst [vmem:[%s4285_s9 + $0x18] sm:$0xff] %v2355_v10  ;;  %v2353_v12 = vadd.f32 %v2345_v57, %v2317_v54 }
 0x97b   : > { %2361 = vst [vmem:[%s4285_s9 + $0x8] sm:$0xff] %v2353_v12 }
 0x97c   : > { %v3003_v9 = vpop.f32.mrf.mxu0  ;;  %v2428_v16 = vld [vmem:[%s4285_s9 + $0x10] sm:$0xff] (%p3379_p6) }
 0x97d   : > { %v2338_v26 = vadd.f32 %v3003_v9, %v2722_v29  ;;  %2429 = vst [vmem:[%s2381_s18 + $0x20] sm:$0xff] (%p3379_p6), %v2428_v16 }
 0x97e   : > { %v2329_v1 = vpop.f32.mrf.mxu0  ;;  %v2424_v47 = vld [vmem:[%s4285_s9] sm:$0xff] (%p3379_p6) }
 0x97f   : > { %v2358_v61 = vadd.f32 %v2350_v32, %v2338_v26  ;;  %v2330_v56 = vadd.f32 %v2722_v29, %v2329_v1  ;;  %2425 = vst [vmem:[%s2381_s18] sm:$0xff] (%p3379_p6), %v2424_v47 }
 0x980   : > { %v3004_v3 = vpop.f32.mrf.mxu0  ;;  %v2430_v38 = vld [vmem:[%s4285_s9 + $0x18] sm:$0xff] (%p3379_p6) }
 0x981   : > { %2366 = vst [vmem:[%s4285_s9 + $0x30] sm:$0xff] %v2358_v61  ;;  %v2356_v13 = vadd.f32 %v2348_v63, %v2330_v56  ;;  %v2341_v34 = vadd.f32 %v3004_v3, %v2722_v29  ;;  %2431 = vst [vmem:[%s2381_s18 + $0x30] sm:$0xff] (%p3379_p6), %v2430_v38 }
 0x982   : > { %v2332_v6 = vpop.f32.mrf.mxu0  ;;  %v2426_v37 = vld [vmem:[%s4285_s9 + $0x8] sm:$0xff] (%p3379_p6) }
 0x983   : > { %2364 = vst [vmem:[%s4285_s9 + $0x20] sm:$0xff] %v2356_v13  ;;  %v2359_v5 = vadd.f32 %v2351_v31, %v2341_v34  ;;  %v2333_v0 = vadd.f32 %v2722_v29, %v2332_v6  ;;  %2379 = sbr.rel (!%p3379_p6) target bundleno = 2448 (0x990), region = 188  ;;  %2427 = vst [vmem:[%s2381_s18 + $0x10] sm:$0xff] (%p3379_p6), %v2426_v37 }
 0x985   : > { %2367 = vst [vmem:[%s4285_s9 + $0x38] sm:$0xff] %v2359_v5  ;;  %v2357_v8 = vadd.f32 %v2349_v39, %v2333_v0 }
 0x987   : > { %2365 = vst [vmem:[%s4285_s9 + $0x28] sm:$0xff] %v2357_v8 }
 0x988   : > { %v2436_v21 = vld [vmem:[%s4285_s9 + $0x30] sm:$0xff] }
 0x989   : > { %2437 = vst [vmem:[%s2381_s18 + $0x60] sm:$0xff] %v2436_v21 }
 0x98a   : > { %v2432_v60 = vld [vmem:[%s4285_s9 + $0x20] sm:$0xff] }
 0x98b   : > { %2433 = vst [vmem:[%s2381_s18 + $0x40] sm:$0xff] %v2432_v60 }
 0x98c   : > { %v2438_v45 = vld [vmem:[%s4285_s9 + $0x38] sm:$0xff] }
 0x98d   : > { %2439 = vst [vmem:[%s2381_s18 + $0x70] sm:$0xff] %v2438_v45 }
 0x98e   : > { %v2434_v58 = vld [vmem:[%s4285_s9 + $0x28] sm:$0xff] }
 0x98f   : > { %2435 = vst [vmem:[%s2381_s18 + $0x50] sm:$0xff] %v2434_v58 }
 0x990 PF: > { %s2776_s19 = sshll.u32 %s3357_s28, 12  ;;  %s2452_s20 = sshll.u32 %s3518_s23, 4  ;;  %s4322_s20 = int_to_ptr.vmem [resolvable:$true] %s2452_s20 }
 0x991   : > { %s4320_s8 = scalar_lea.hbm %s4371_s7, %s2776_s19  ;;  %s3228_s22 = scalar_lea.vmem %s4322_s20, 4096 }
 0x992   : > { %p3229_p13 = scmp.ne.s32.totalorder %s4322_s20, %s3228_s22  ;;  %s3293_s9 = smov [#allocation8]  }
 0x993   : > { %s3232_s14 = sshll.u32 %s3293_s9, 4  ;;  %s3233_s14 = int_to_ptr.vmem [resolvable:$false] %s3232_s14 }
 0x994   : > { %p3230_p0 = pnand %p3229_p13, %p3379_p6  ;;  %s3234_s28 = scalar_lea.vmem %s3233_s14, 8192 }
 0x995   : > { %p3235_p2 = scmp.lt.s32.totalorder %s4322_s20, %s3233_s14  ;;  %p3236_p3 = scmp.lt.s32.totalorder %s3234_s28, %s3228_s22 }
 0x996   : > { %p3231_p1 = pneg %p3230_p0 }
 0x997   : > { %p3237_p4 = por %p3236_p3, %p3235_p2 }
 0x999   : > { %p3238_p5 = pnand %p3237_p4, %p3231_p1 }
 0x99b   : > { %3241 = shalt.err (!%p3238_p5)
}
 0x99c   : > { %s3242_s23 = scalar_lea.hbm %s4320_s8, 4096  ;;  %s3246_s18 = scalar_lea.hbm %s4371_s7, 8192 }
 0x99d   : > { %p3243_p7 = scmp.ne.s32.totalorder %s4320_s8, %s3242_s23  ;;  %p3247_p12 = scmp.lt.s32.totalorder %s4320_s8, %s4371_s7 }
 0x99e   : > { %p3248_p13 = scmp.lt.s32.totalorder %s3246_s18, %s3242_s23 }
 0x99f   : > { %p3244_p10 = pnand %p3243_p7, %p3379_p6 }
 0x9a0   : > { %p3249_p0 = por %p3248_p13, %p3247_p12 }
 0x9a1   : > { %p3245_p11 = pneg %p3244_p10 }
 0x9a3   : > { %p3250_p1 = pnand %p3249_p0, %p3245_p11 }
 0x9a5   : > { %3253 = shalt.err (!%p3250_p1)
}
 0x9a6   : > { %s3294_s29 = smov 128   ;;  %s3295_s22 = smov 8  }
 0x9a7   : > { %3021 = dma.vmem_to_hbm [thread:$0]  (%p3379_p6), %s4322_s20, 4096, %s4320_s8, %s2373_s16, %s3294_s29, %s3294_s29, %s3295_s22  }
 0x9a8 PF: > { %s2474_s9 = sand.u32 1, %s3276_s24   ;;  %p3024_p2 = pnand %p2604_p9, %p3383_p8 }
 0x9a9   : > { %s2475_s14 = scalar_lea.sflag [#allocation9], %s2474_s9 }
 0x9aa   : > { %p3025_p3 = pneg %p3024_p2 }
 0x9ac   : > { %3271 = dma.done.wait (%p3025_p3), %s2475_s14, 4096  }
 0x9ad   : > { %3273 = vsyncadd (%p3025_p3), %s2475_s14, 4294963200  ;;  %p18_p4 = scmp.ge.s32.totalorder %s3361_s30, 4   ;;  %s4375_s24 = smov %s3280_s25 }
 0x9ae   : > { %s4376_s25 = smov %s3284_s26  ;;  %s4377_s26 = smov %s3373_s10 }
 0x9af   : > { %s4378_s27 = smov %s3361_s30  ;;  %20 = sbr.rel (!%p18_p4) target bundleno = 3 (0x3), region = 301 }
 0x9b4   :  { %2480 = vsyncpa [#allocation9], 1 }
 0x9b5   :  { %2482 = vsyncpa [#allocation9 + $0x1], 1 }

</bundles_post_ra>
